<compile_context>
chip_gen: v7x
topology: tpu7x:2x2x1
jax: 0.10.0
libtpu: 0.0.40
codegen_flags: <defaults>
</compile_context>

<pallas_src>
import jax
import jax.numpy as jnp
from jax.experimental import pallas as pl
from jax.experimental.pallas import tpu as pltpu

# Logical model dims (PyTorch VAE defaults).
INPUT_DIM = 28 * 28     # 784
HIDDEN_DIM = 400
LATENT_DIM = 200
Z_DIM = 2

# Lane-aligned (multiple of 128) dims used inside the kernel.
IN_P = 896              # 784 -> 7*128
HID_P = 512             # 400 -> 4*128
LAT_P = 256             # 200 -> 2*128
HEAD_P = 128            # fused mean/log_var head width == padded z width


def _leaky_relu(v, slope=0.2):
    return jnp.where(v >= 0, v, slope * v)


def vae_kernel(
    x_ref, eps_ref,
    w1_ref, b1_ref,      # encoder L1: (IN_P, HID_P) bf16, (1, HID_P) f32
    w2_ref, b2_ref,      # encoder L2: (HID_P, LAT_P)
    wh_ref, bh_ref,      # fused mean/log_var head: (LAT_P, HEAD_P)
    wd1_ref, bd1_ref,    # decoder L1: (HEAD_P, LAT_P)  (rows >= Z_DIM are zero)
    wd2_ref, bd2_ref,    # decoder L2: (LAT_P, HID_P)
    wd3_ref, bd3_ref,    # decoder L3: (HID_P, IN_P)
    xhat_ref, head_ref,
):
    x = x_ref[...]                                   # already bf16

    # ----- encoder -----
    h1 = jnp.dot(x, w1_ref[...], preferred_element_type=jnp.float32) + b1_ref[...]
    h1 = _leaky_relu(h1).astype(jnp.bfloat16)
    h2 = jnp.dot(h1, w2_ref[...], preferred_element_type=jnp.float32) + b2_ref[...]
    h2 = _leaky_relu(h2).astype(jnp.bfloat16)

    # ----- fused mean / log_var head -----
    # lanes [0:2] = mean, [2:4] = log_var, lanes >= 4 are exactly 0 (zero-padded
    # weights / biases — see _check_padding_invariants).  Written lane-dense.
    head = jnp.dot(h2, wh_ref[...], preferred_element_type=jnp.float32) + bh_ref[...]
    head_ref[...] = head

    # ----- reparameterization (matches reference: z = mean + log_var * eps) -----
    # roll brings log_var (lanes 2:4) onto lanes 0:2; eps lanes >= Z_DIM are 0,
    # and wd1 rows >= Z_DIM are 0, so any junk on z lanes >= Z_DIM is inert.
    log_var_shift = pltpu.roll(head, shift=HEAD_P - Z_DIM, axis=1)
    z = (head + log_var_shift * eps_ref[...].astype(jnp.float32)).astype(jnp.bfloat16)

    # ----- decoder -----
    d1 = jnp.dot(z, wd1_ref[...], preferred_element_type=jnp.float32) + bd1_ref[...]
    d1 = _leaky_relu(d1).astype(jnp.bfloat16)
    d2 = jnp.dot(d1, wd2_ref[...], preferred_element_type=jnp.float32) + bd2_ref[...]
    d2 = _leaky_relu(d2).astype(jnp.bfloat16)
    d3 = jnp.dot(d2, wd3_ref[...], preferred_element_type=jnp.float32) + bd3_ref[...]
    # bf16 epilogue: sigmoid on a bf16 input (bf16 EUP on v6e/v7x), bf16 store.
    xhat_ref[...] = jax.nn.sigmoid(d3.astype(jnp.bfloat16))


_WEIGHT_ORDER = ("w1", "b1", "w2", "b2", "wh", "bh",
                 "wd1", "bd1", "wd2", "bd2", "wd3", "bd3")

# Padded MACs per batch row (used for CostEstimate).
_MACS_PER_ROW = (IN_P * HID_P + HID_P * LAT_P + LAT_P * HEAD_P
                 + HEAD_P * LAT_P + LAT_P * HID_P + HID_P * IN_P)
_WEIGHT_BYTES = 2 * _MACS_PER_ROW + 4 * (HID_P + LAT_P + HEAD_P + LAT_P + HID_P + IN_P)


@jax.jit
def vae_forward(x, eps, params):
    """x: (B, 784) f32/bf16, eps: (B, 2) f32, params: padded bf16 W / f32 b.

    Returns (x_hat (B,784) bf16, mean (B,2) f32, log_var (B,2) f32)."""
    B = x.shape[0]
    # Keep >= 2 grid steps per v7x TensorCore for small batches; use a 256-row
    # tile (fills the 256-tall MXU, halves per-step overhead) for big batches.
    TB = 256 if B >= 1024 else 128
    B_pad = ((B + TB - 1) // TB) * TB

    # bf16 activations into the kernel: cast first so the pad copy is bf16.
    x_p = jnp.pad(x.astype(jnp.bfloat16),
                  ((0, B_pad - B), (0, IN_P - INPUT_DIM)))
    eps_p = jnp.pad(eps.astype(jnp.bfloat16),
                    ((0, B_pad - B), (0, HEAD_P - Z_DIM)))

    def batch_spec(width):
        # TODO(synk): if the x/xhat DMA is still exposed on v5e, add
        # pipeline_mode=pl.Buffered(3) here.
        return pl.BlockSpec((TB, width), lambda i: (i, 0))

    def const_spec(shape):
        # Whole-array block with a constant index map -> resident in VMEM
        # across all grid steps (single DMA of ~2.5 MiB of weights).
        return pl.BlockSpec(shape, lambda i: (0, 0))

    weights = tuple(params[k] for k in _WEIGHT_ORDER)
    in_specs = [batch_spec(IN_P), batch_spec(HEAD_P)] + [
        const_spec(params[k].shape) for k in _WEIGHT_ORDER
    ]
    out_shapes = (
        jax.ShapeDtypeStruct((B_pad, IN_P), jnp.bfloat16),   # x_hat (padded, bf16)
        jax.ShapeDtypeStruct((B_pad, HEAD_P), jnp.float32),  # fused mean/log_var
    )
    out_specs = (batch_spec(IN_P), batch_spec(HEAD_P))

    cost = pl.CostEstimate(
        flops=2 * B_pad * _MACS_PER_ROW,
        transcendentals=B_pad * IN_P,                        # sigmoid
        bytes_accessed=(B_pad * (2 * IN_P + 2 * HEAD_P       # x, eps in (bf16)
                                 + 2 * IN_P + 4 * HEAD_P)    # x_hat, head out
                        + _WEIGHT_BYTES),
    )

    xhat_p, head_p = pl.pallas_call(
        vae_kernel,
        grid=(B_pad // TB,),
        in_specs=in_specs,
        out_specs=out_specs,
        out_shape=out_shapes,
        compiler_params=pltpu.CompilerParams(
            dimension_semantics=("parallel",),
            vmem_limit_bytes=(48 * 1024 * 1024) if TB > 128 else None,
        ),
        cost_estimate=cost,
    )(x_p, eps_p, *weights)

    # Slices are on bf16 / tiny f32 arrays (cheap); callers needing raw padded
    # outputs can take xhat_p/head_p directly.
    x_hat = xhat_p[:B, :INPUT_DIM]
    mean = head_p[:B, 0:Z_DIM]
    log_var = head_p[:B, Z_DIM:2 * Z_DIM]
    return x_hat, mean, log_var


def init_params(key):
    """PyTorch nn.Linear-style init at logical dims, then zero-pad to
    lane-aligned shapes.  Weights are (in, out) bf16; biases (1, out) f32."""
    def linear(k, fan_in, fan_out):
        kw, kb = jax.random.split(k)
        bound = 1.0 / jnp.sqrt(fan_in)
        w = jax.random.uniform(kw, (fan_in, fan_out), jnp.float32, -bound, bound)
        b = jax.random.uniform(kb, (fan_out,), jnp.float32, -bound, bound)
        return w, b

    keys = jax.random.split(key, 7)
    w1, b1 = linear(keys[0], INPUT_DIM, HIDDEN_DIM)
    w2, b2 = linear(keys[1], HIDDEN_DIM, LATENT_DIM)
    wm, bm = linear(keys[2], LATENT_DIM, Z_DIM)
    wv, bv = linear(keys[3], LATENT_DIM, Z_DIM)
    wd1, bd1 = linear(keys[4], Z_DIM, LATENT_DIM)
    wd2, bd2 = linear(keys[5], LATENT_DIM, HIDDEN_DIM)
    wd3, bd3 = linear(keys[6], HIDDEN_DIM, INPUT_DIM)

    def pad_w(w, rows, cols):
        out = jnp.zeros((rows, cols), jnp.float32)
        out = out.at[: w.shape[0], : w.shape[1]].set(w)
        return out.astype(jnp.bfloat16)

    def pad_b(b, cols):
        out = jnp.zeros((1, cols), jnp.float32)
        return out.at[0, : b.shape[0]].set(b)

    return {
        "w1": pad_w(w1, IN_P, HID_P), "b1": pad_b(b1, HID_P),
        "w2": pad_w(w2, HID_P, LAT_P), "b2": pad_b(b2, LAT_P),
        # fused head: cols 0:2 = mean layer, cols 2:4 = log_var layer
        "wh": pad_w(jnp.concatenate([wm, wv], axis=1), LAT_P, HEAD_P),
        "bh": pad_b(jnp.concatenate([bm, bv], axis=0), HEAD_P),
        "wd1": pad_w(wd1, HEAD_P, LAT_P), "bd1": pad_b(bd1, LAT_P),
        "wd2": pad_w(wd2, LAT_P, HID_P), "bd2": pad_b(bd2, HID_P),
        "wd3": pad_w(wd3, HID_P, IN_P), "bd3": pad_b(bd3, IN_P),
    }


def _check_padding_invariants(p):
    """The roll-based reparameterization relies on these zero-padded regions."""
    assert bool(jnp.all(p["wh"][:, 2 * Z_DIM:] == 0))
    assert bool(jnp.all(p["bh"][:, 2 * Z_DIM:] == 0))
    assert bool(jnp.all(p["wd1"][Z_DIM:, :] == 0))


def _reference_forward(x, eps, p):
    """Pure-JAX reference using the same bf16 weights / f32 accumulation."""
    def leaky(v):
        return jnp.where(v >= 0, v, 0.2 * v)

    def lin(a, w, b):
        return jnp.dot(a.astype(jnp.bfloat16), w,
                       preferred_element_type=jnp.float32) + b

    w1 = p["w1"][:INPUT_DIM, :HIDDEN_DIM]; b1 = p["b1"][:, :HIDDEN_DIM]
    w2 = p["w2"][:HIDDEN_DIM, :LATENT_DIM]; b2 = p["b2"][:, :LATENT_DIM]
    wm = p["wh"][:LATENT_DIM, 0:Z_DIM]; bm = p["bh"][:, 0:Z_DIM]
    wv = p["wh"][:LATENT_DIM, Z_DIM:2 * Z_DIM]; bv = p["bh"][:, Z_DIM:2 * Z_DIM]
    wd1 = p["wd1"][:Z_DIM, :LATENT_DIM]; bd1 = p["bd1"][:, :LATENT_DIM]
    wd2 = p["wd2"][:LATENT_DIM, :HIDDEN_DIM]; bd2 = p["bd2"][:, :HIDDEN_DIM]
    wd3 = p["wd3"][:HIDDEN_DIM, :INPUT_DIM]; bd3 = p["bd3"][:, :INPUT_DIM]

    h = leaky(lin(x, w1, b1))
    h = leaky(lin(h, w2, b2))
    mean = lin(h, wm, bm)
    log_var = lin(h, wv, bv)
    z = mean + log_var * eps           # reference module uses log_var directly
    d = leaky(lin(z, wd1, bd1))
    d = leaky(lin(d, wd2, bd2))
    x_hat = jax.nn.sigmoid(lin(d, wd3, bd3))
    return x_hat, mean, log_var


if __name__ == "__main__":
    BATCH = 256   # 2 grid steps of TB=128 rows

    root = jax.random.PRNGKey(0)
    k_params, k_x, k_eps = jax.random.split(root, 3)

    params = init_params(k_params)
    _check_padding_invariants(params)

    x = jax.random.uniform(k_x, (BATCH, INPUT_DIM), jnp.float32)   # MNIST-like [0,1)
    eps = jax.random.normal(k_eps, (BATCH, Z_DIM), jnp.float32)    # randn_like(log_var)

    x_hat, mean, log_var = vae_forward(x, eps, params)
    jax.block_until_ready((x_hat, mean, log_var))

    x_hat_r, mean_r, log_var_r = _reference_forward(x, eps, params)

    assert x_hat.shape == (BATCH, INPUT_DIM)
    assert mean.shape == (BATCH, Z_DIM) and log_var.shape == (BATCH, Z_DIM)
    assert jnp.allclose(x_hat.astype(jnp.float32), x_hat_r, atol=1e-2, rtol=1e-2)
    assert jnp.allclose(mean, mean_r, atol=1e-2, rtol=1e-2)
    assert jnp.allclose(log_var, log_var_r, atol=1e-2, rtol=1e-2)

    print("KERNEL_OK")
</pallas_src>

<mosaic_0001>
module attributes {stable_mosaic.version = 11 : i64} {
  func.func @vae_kernel(%arg0: i32, %arg1: memref<128x896xbf16, #tpu.memory_space<vmem>>, %arg2: memref<128x128xbf16, #tpu.memory_space<vmem>>, %arg3: memref<896x512xbf16, #tpu.memory_space<vmem>>, %arg4: memref<1x512xf32, #tpu.memory_space<vmem>>, %arg5: memref<512x256xbf16, #tpu.memory_space<vmem>>, %arg6: memref<1x256xf32, #tpu.memory_space<vmem>>, %arg7: memref<256x128xbf16, #tpu.memory_space<vmem>>, %arg8: memref<1x128xf32, #tpu.memory_space<vmem>>, %arg9: memref<128x256xbf16, #tpu.memory_space<vmem>>, %arg10: memref<1x256xf32, #tpu.memory_space<vmem>>, %arg11: memref<256x512xbf16, #tpu.memory_space<vmem>>, %arg12: memref<1x512xf32, #tpu.memory_space<vmem>>, %arg13: memref<512x896xbf16, #tpu.memory_space<vmem>>, %arg14: memref<1x896xf32, #tpu.memory_space<vmem>>, %arg15: memref<128x896xbf16, #tpu.memory_space<vmem>>, %arg16: memref<128x128xf32, #tpu.memory_space<vmem>>) attributes {dimension_semantics = [#tpu.dimension_semantics<parallel>], iteration_bounds = array<i64: 2>, scalar_prefetch = 0 : i64, scratch_operands = 0 : i64, tpu.core_type = #tpu.core_type<tc>, window_params = [{transform_indices = @transform_0, window_bounds = array<i64: 128, 896>}, {transform_indices = @transform_1, window_bounds = array<i64: 128, 128>}, {pipeline_mode = #tpu.pipeline_mode<synchronous>, transform_indices = @transform_2, window_bounds = array<i64: 896, 512>}, {pipeline_mode = #tpu.pipeline_mode<synchronous>, transform_indices = @transform_3, window_bounds = array<i64: 1, 512>}, {pipeline_mode = #tpu.pipeline_mode<synchronous>, transform_indices = @transform_4, window_bounds = array<i64: 512, 256>}, {pipeline_mode = #tpu.pipeline_mode<synchronous>, transform_indices = @transform_5, window_bounds = array<i64: 1, 256>}, {pipeline_mode = #tpu.pipeline_mode<synchronous>, transform_indices = @transform_6, window_bounds = array<i64: 256, 128>}, {pipeline_mode = #tpu.pipeline_mode<synchronous>, transform_indices = @transform_7, window_bounds = array<i64: 1, 128>}, {pipeline_mode = #tpu.pipeline_mode<synchronous>, transform_indices = @transform_8, window_bounds = array<i64: 128, 256>}, {pipeline_mode = #tpu.pipeline_mode<synchronous>, transform_indices = @transform_9, window_bounds = array<i64: 1, 256>}, {pipeline_mode = #tpu.pipeline_mode<synchronous>, transform_indices = @transform_10, window_bounds = array<i64: 256, 512>}, {pipeline_mode = #tpu.pipeline_mode<synchronous>, transform_indices = @transform_11, window_bounds = array<i64: 1, 512>}, {pipeline_mode = #tpu.pipeline_mode<synchronous>, transform_indices = @transform_12, window_bounds = array<i64: 512, 896>}, {pipeline_mode = #tpu.pipeline_mode<synchronous>, transform_indices = @transform_13, window_bounds = array<i64: 1, 896>}, {transform_indices = @transform_14, window_bounds = array<i64: 128, 896>}, {transform_indices = @transform_15, window_bounds = array<i64: 128, 128>}]} {
    %c0 = arith.constant 0 : index
    %c0_0 = arith.constant 0 : index
    %0 = vector.load %arg1[%c0, %c0_0] : memref<128x896xbf16, #tpu.memory_space<vmem>>, vector<128x896xbf16>
    %c0_1 = arith.constant 0 : index
    %c0_2 = arith.constant 0 : index
    %1 = vector.load %arg3[%c0_1, %c0_2] : memref<896x512xbf16, #tpu.memory_space<vmem>>, vector<896x512xbf16>
    %cst = arith.constant dense<0.000000e+00> : vector<128x512xf32>
    %2 = tpu.matmul %0, %1, %cst {dimension_numbers = #tpu.dot_dimension_numbers<[1], [0], [0], [1], [0, 0, 1, 1], [], []>} : vector<128x896xbf16>, vector<896x512xbf16>, vector<128x512xf32> -> vector<128x512xf32>
    %c0_3 = arith.constant 0 : index
    %c0_4 = arith.constant 0 : index
    %3 = vector.load %arg4[%c0_3, %c0_4] : memref<1x512xf32, #tpu.memory_space<vmem>>, vector<1x512xf32>
    %4 = vector.broadcast %3 : vector<1x512xf32> to vector<128x512xf32>
    %5 = arith.addf %2, %4 : vector<128x512xf32>
    %cst_5 = arith.constant 0.000000e+00 : f32
    %6 = vector.broadcast %cst_5 : f32 to vector<128x512xf32>
    %7 = arith.cmpf oge, %5, %6 : vector<128x512xf32>
    %cst_6 = arith.constant 2.000000e-01 : f32
    %8 = vector.broadcast %cst_6 : f32 to vector<128x512xf32>
    %9 = arith.mulf %8, %5 : vector<128x512xf32>
    %10 = arith.select %7, %5, %9 : vector<128x512xi1>, vector<128x512xf32>
    %11 = arith.truncf %10 : vector<128x512xf32> to vector<128x512xbf16>
    %c0_7 = arith.constant 0 : index
    %c0_8 = arith.constant 0 : index
    %12 = vector.load %arg5[%c0_7, %c0_8] : memref<512x256xbf16, #tpu.memory_space<vmem>>, vector<512x256xbf16>
    %cst_9 = arith.constant dense<0.000000e+00> : vector<128x256xf32>
    %13 = tpu.matmul %11, %12, %cst_9 {dimension_numbers = #tpu.dot_dimension_numbers<[1], [0], [0], [1], [0, 0, 1, 1], [], []>} : vector<128x512xbf16>, vector<512x256xbf16>, vector<128x256xf32> -> vector<128x256xf32>
    %c0_10 = arith.constant 0 : index
    %c0_11 = arith.constant 0 : index
    %14 = vector.load %arg6[%c0_10, %c0_11] : memref<1x256xf32, #tpu.memory_space<vmem>>, vector<1x256xf32>
    %15 = vector.broadcast %14 : vector<1x256xf32> to vector<128x256xf32>
    %16 = arith.addf %13, %15 : vector<128x256xf32>
    %cst_12 = arith.constant 0.000000e+00 : f32
    %17 = vector.broadcast %cst_12 : f32 to vector<128x256xf32>
    %18 = arith.cmpf oge, %16, %17 : vector<128x256xf32>
    %cst_13 = arith.constant 2.000000e-01 : f32
    %19 = vector.broadcast %cst_13 : f32 to vector<128x256xf32>
    %20 = arith.mulf %19, %16 : vector<128x256xf32>
    %21 = arith.select %18, %16, %20 : vector<128x256xi1>, vector<128x256xf32>
    %22 = arith.truncf %21 : vector<128x256xf32> to vector<128x256xbf16>
    %c0_14 = arith.constant 0 : index
    %c0_15 = arith.constant 0 : index
    %23 = vector.load %arg7[%c0_14, %c0_15] : memref<256x128xbf16, #tpu.memory_space<vmem>>, vector<256x128xbf16>
    %cst_16 = arith.constant dense<0.000000e+00> : vector<128x128xf32>
    %24 = tpu.matmul %22, %23, %cst_16 {dimension_numbers = #tpu.dot_dimension_numbers<[1], [0], [0], [1], [0, 0, 1, 1], [], []>} : vector<128x256xbf16>, vector<256x128xbf16>, vector<128x128xf32> -> vector<128x128xf32>
    %c0_17 = arith.constant 0 : index
    %c0_18 = arith.constant 0 : index
    %25 = vector.load %arg8[%c0_17, %c0_18] : memref<1x128xf32, #tpu.memory_space<vmem>>, vector<1x128xf32>
    %26 = vector.broadcast %25 : vector<1x128xf32> to vector<128x128xf32>
    %27 = arith.addf %24, %26 : vector<128x128xf32>
    %c0_19 = arith.constant 0 : index
    %c0_20 = arith.constant 0 : index
    %28 = vector.load %arg16[%c0_19, %c0_20] : memref<128x128xf32, #tpu.memory_space<vmem>>, vector<128x128xf32>
    tpu.vector_store %arg16[%c0_19, %c0_20], %27 {strides = array<i32>} : memref<128x128xf32, #tpu.memory_space<vmem>>, vector<128x128xf32>,
    %c126_i32 = arith.constant 126 : i32
    %29 = tpu.dynamic_rotate %27 by %c126_i32 dim 1 : vector<128x128xf32>, i32 -> vector<128x128xf32>
    %c0_21 = arith.constant 0 : index
    %c0_22 = arith.constant 0 : index
    %30 = vector.load %arg2[%c0_21, %c0_22] : memref<128x128xbf16, #tpu.memory_space<vmem>>, vector<128x128xbf16>
    %31 = arith.extf %30 : vector<128x128xbf16> to vector<128x128xf32>
    %32 = arith.mulf %29, %31 : vector<128x128xf32>
    %33 = arith.addf %27, %32 : vector<128x128xf32>
    %34 = arith.truncf %33 : vector<128x128xf32> to vector<128x128xbf16>
    %c0_23 = arith.constant 0 : index
    %c0_24 = arith.constant 0 : index
    %35 = vector.load %arg9[%c0_23, %c0_24] : memref<128x256xbf16, #tpu.memory_space<vmem>>, vector<128x256xbf16>
    %cst_25 = arith.constant dense<0.000000e+00> : vector<128x256xf32>
    %36 = tpu.matmul %34, %35, %cst_25 {dimension_numbers = #tpu.dot_dimension_numbers<[1], [0], [0], [1], [0, 0, 1, 1], [], []>} : vector<128x128xbf16>, vector<128x256xbf16>, vector<128x256xf32> -> vector<128x256xf32>
    %c0_26 = arith.constant 0 : index
    %c0_27 = arith.constant 0 : index
    %37 = vector.load %arg10[%c0_26, %c0_27] : memref<1x256xf32, #tpu.memory_space<vmem>>, vector<1x256xf32>
    %38 = vector.broadcast %37 : vector<1x256xf32> to vector<128x256xf32>
    %39 = arith.addf %36, %38 : vector<128x256xf32>
    %cst_28 = arith.constant 0.000000e+00 : f32
    %40 = vector.broadcast %cst_28 : f32 to vector<128x256xf32>
    %41 = arith.cmpf oge, %39, %40 : vector<128x256xf32>
    %cst_29 = arith.constant 2.000000e-01 : f32
    %42 = vector.broadcast %cst_29 : f32 to vector<128x256xf32>
    %43 = arith.mulf %42, %39 : vector<128x256xf32>
    %44 = arith.select %41, %39, %43 : vector<128x256xi1>, vector<128x256xf32>
    %45 = arith.truncf %44 : vector<128x256xf32> to vector<128x256xbf16>
    %c0_30 = arith.constant 0 : index
    %c0_31 = arith.constant 0 : index
    %46 = vector.load %arg11[%c0_30, %c0_31] : memref<256x512xbf16, #tpu.memory_space<vmem>>, vector<256x512xbf16>
    %cst_32 = arith.constant dense<0.000000e+00> : vector<128x512xf32>
    %47 = tpu.matmul %45, %46, %cst_32 {dimension_numbers = #tpu.dot_dimension_numbers<[1], [0], [0], [1], [0, 0, 1, 1], [], []>} : vector<128x256xbf16>, vector<256x512xbf16>, vector<128x512xf32> -> vector<128x512xf32>
    %c0_33 = arith.constant 0 : index
    %c0_34 = arith.constant 0 : index
    %48 = vector.load %arg12[%c0_33, %c0_34] : memref<1x512xf32, #tpu.memory_space<vmem>>, vector<1x512xf32>
    %49 = vector.broadcast %48 : vector<1x512xf32> to vector<128x512xf32>
    %50 = arith.addf %47, %49 : vector<128x512xf32>
    %cst_35 = arith.constant 0.000000e+00 : f32
    %51 = vector.broadcast %cst_35 : f32 to vector<128x512xf32>
    %52 = arith.cmpf oge, %50, %51 : vector<128x512xf32>
    %cst_36 = arith.constant 2.000000e-01 : f32
    %53 = vector.broadcast %cst_36 : f32 to vector<128x512xf32>
    %54 = arith.mulf %53, %50 : vector<128x512xf32>
    %55 = arith.select %52, %50, %54 : vector<128x512xi1>, vector<128x512xf32>
    %56 = arith.truncf %55 : vector<128x512xf32> to vector<128x512xbf16>
    %c0_37 = arith.constant 0 : index
    %c0_38 = arith.constant 0 : index
    %57 = vector.load %arg13[%c0_37, %c0_38] : memref<512x896xbf16, #tpu.memory_space<vmem>>, vector<512x896xbf16>
    %cst_39 = arith.constant dense<0.000000e+00> : vector<128x896xf32>
    %58 = tpu.matmul %56, %57, %cst_39 {dimension_numbers = #tpu.dot_dimension_numbers<[1], [0], [0], [1], [0, 0, 1, 1], [], []>} : vector<128x512xbf16>, vector<512x896xbf16>, vector<128x896xf32> -> vector<128x896xf32>
    %c0_40 = arith.constant 0 : index
    %c0_41 = arith.constant 0 : index
    %59 = vector.load %arg14[%c0_40, %c0_41] : memref<1x896xf32, #tpu.memory_space<vmem>>, vector<1x896xf32>
    %60 = vector.broadcast %59 : vector<1x896xf32> to vector<128x896xf32>
    %61 = arith.addf %58, %60 : vector<128x896xf32>
    %62 = arith.truncf %61 : vector<128x896xf32> to vector<128x896xbf16>
    %63 = arith.negf %62 : vector<128x896xbf16>
    %64 = math.exp %63 : vector<128x896xbf16>
    %cst_42 = arith.constant 1.000000e+00 : bf16
    %65 = vector.broadcast %cst_42 : bf16 to vector<128x896xbf16>
    %66 = arith.addf %65, %64 : vector<128x896xbf16>
    %67 = arith.divf %65, %66 : vector<128x896xbf16>
    %c0_43 = arith.constant 0 : index
    %c0_44 = arith.constant 0 : index
    %68 = vector.load %arg15[%c0_43, %c0_44] : memref<128x896xbf16, #tpu.memory_space<vmem>>, vector<128x896xbf16>
    tpu.vector_store %arg15[%c0_43, %c0_44], %67 {strides = array<i32>} : memref<128x896xbf16, #tpu.memory_space<vmem>>, vector<128x896xbf16>,
    return
  }
  func.func @transform_0(%arg0: i32) -> (i32, i32) {
    %c0_i32 = arith.constant 0 : i32
    %c0_i32_0 = arith.constant 0 : i32
    return %arg0, %c0_i32 : i32, i32
  }
  func.func @transform_1(%arg0: i32) -> (i32, i32) {
    %c0_i32 = arith.constant 0 : i32
    %c0_i32_0 = arith.constant 0 : i32
    return %arg0, %c0_i32 : i32, i32
  }
  func.func @transform_2(%arg0: i32) -> (i32, i32) {
    %c0_i32 = arith.constant 0 : i32
    %c0_i32_0 = arith.constant 0 : i32
    %c0_i32_1 = arith.constant 0 : i32
    return %c0_i32, %c0_i32_0 : i32, i32
  }
  func.func @transform_3(%arg0: i32) -> (i32, i32) {
    %c0_i32 = arith.constant 0 : i32
    %c0_i32_0 = arith.constant 0 : i32
    %c0_i32_1 = arith.constant 0 : i32
    return %c0_i32, %c0_i32_0 : i32, i32
  }
  func.func @transform_4(%arg0: i32) -> (i32, i32) {
    %c0_i32 = arith.constant 0 : i32
    %c0_i32_0 = arith.constant 0 : i32
    %c0_i32_1 = arith.constant 0 : i32
    return %c0_i32, %c0_i32_0 : i32, i32
  }
  func.func @transform_5(%arg0: i32) -> (i32, i32) {
    %c0_i32 = arith.constant 0 : i32
    %c0_i32_0 = arith.constant 0 : i32
    %c0_i32_1 = arith.constant 0 : i32
    return %c0_i32, %c0_i32_0 : i32, i32
  }
  func.func @transform_6(%arg0: i32) -> (i32, i32) {
    %c0_i32 = arith.constant 0 : i32
    %c0_i32_0 = arith.constant 0 : i32
    %c0_i32_1 = arith.constant 0 : i32
    return %c0_i32, %c0_i32_0 : i32, i32
  }
  func.func @transform_7(%arg0: i32) -> (i32, i32) {
    %c0_i32 = arith.constant 0 : i32
    %c0_i32_0 = arith.constant 0 : i32
    %c0_i32_1 = arith.constant 0 : i32
    return %c0_i32, %c0_i32_0 : i32, i32
  }
  func.func @transform_8(%arg0: i32) -> (i32, i32) {
    %c0_i32 = arith.constant 0 : i32
    %c0_i32_0 = arith.constant 0 : i32
    %c0_i32_1 = arith.constant 0 : i32
    return %c0_i32, %c0_i32_0 : i32, i32
  }
  func.func @transform_9(%arg0: i32) -> (i32, i32) {
    %c0_i32 = arith.constant 0 : i32
    %c0_i32_0 = arith.constant 0 : i32
    %c0_i32_1 = arith.constant 0 : i32
    return %c0_i32, %c0_i32_0 : i32, i32
  }
  func.func @transform_10(%arg0: i32) -> (i32, i32) {
    %c0_i32 = arith.constant 0 : i32
    %c0_i32_0 = arith.constant 0 : i32
    %c0_i32_1 = arith.constant 0 : i32
    return %c0_i32, %c0_i32_0 : i32, i32
  }
  func.func @transform_11(%arg0: i32) -> (i32, i32) {
    %c0_i32 = arith.constant 0 : i32
    %c0_i32_0 = arith.constant 0 : i32
    %c0_i32_1 = arith.constant 0 : i32
    return %c0_i32, %c0_i32_0 : i32, i32
  }
  func.func @transform_12(%arg0: i32) -> (i32, i32) {
    %c0_i32 = arith.constant 0 : i32
    %c0_i32_0 = arith.constant 0 : i32
    %c0_i32_1 = arith.constant 0 : i32
    return %c0_i32, %c0_i32_0 : i32, i32
  }
  func.func @transform_13(%arg0: i32) -> (i32, i32) {
    %c0_i32 = arith.constant 0 : i32
    %c0_i32_0 = arith.constant 0 : i32
    %c0_i32_1 = arith.constant 0 : i32
    return %c0_i32, %c0_i32_0 : i32, i32
  }
  func.func @transform_14(%arg0: i32) -> (i32, i32) {
    %c0_i32 = arith.constant 0 : i32
    %c0_i32_0 = arith.constant 0 : i32
    return %arg0, %c0_i32 : i32, i32
  }
  func.func @transform_15(%arg0: i32) -> (i32, i32) {
    %c0_i32 = arith.constant 0 : i32
    %c0_i32_0 = arith.constant 0 : i32
    return %arg0, %c0_i32 : i32, i32
  }
}

</mosaic_0001>

<bundles_post_ra>
// kernel: vae_forward.1
= control target key start
LH: loop header
LB: loop body
LE: loop exit
PB: predicated region body
PF: predicated region fallthrough
CT: control target
= control target key end

     0   :  { %s11727_s18 = smov 0   ;;  %s14858_s0 = inlined_call_operand.vmem [shape: bf16[256,896], index: 0, kind: input, shape index: {}]   ;;  %s14859_s1 = inlined_call_operand.vmem [shape: bf16[256,128], index: 1, kind: input, shape index: {}]   ;;  %s14860_s2 = inlined_call_operand.vmem [shape: bf16[896,512], index: 2, kind: input, shape index: {}]   ;;  %s14861_s3 = inlined_call_operand.vmem [shape: f32[1,512], index: 3, kind: input, shape index: {}]   ;;  %s14862_s4 = inlined_call_operand.vmem [shape: bf16[512,256], index: 4, kind: input, shape index: {}]   ;;  %s14863_s5 = inlined_call_operand.vmem [shape: f32[1,256], index: 5, kind: input, shape index: {}]   ;;  %s14864_s6 = inlined_call_operand.vmem [shape: bf16[256,128], index: 6, kind: input, shape index: {}]   ;;  %s14865_s7 = inlined_call_operand.vmem [shape: f32[1,128], index: 7, kind: input, shape index: {}]   ;;  %s14866_s8 = inlined_call_operand.vmem [shape: bf16[128,256], index: 8, kind: input, shape index: {}]   ;;  %s14867_s9 = inlined_call_operand.vmem [shape: f32[1,256], index: 9, kind: input, shape index: {}]   ;;  %s14868_s10 = inlined_call_operand.vmem [shape: bf16[256,512], index: 10, kind: input, shape index: {}]   ;;  %s14869_s11 = inlined_call_operand.vmem [shape: f32[1,512], index: 11, kind: input, shape index: {}]   ;;  %s14870_s12 = inlined_call_operand.vmem [shape: bf16[512,896], index: 12, kind: input, shape index: {}]   ;;  %s14871_s13 = inlined_call_operand.vmem [shape: f32[1,896], index: 13, kind: input, shape index: {}]   ;;  %s14872_s14 = inlined_call_operand.vmem [shape: bf16[256,896], index: 14, kind: output, shape index: {0}]   ;;  %s14873_s15 = inlined_call_operand.vmem [shape: f32[256,128], index: 15, kind: output, shape index: {1}]  }
   0x1 LB: > { %s8891_s19 = sadd.s32 4294967295, %s11643_s18   ;;  %p8895_p0 = scmp.ge.s32.totalorder %s11643_s18, 1  ;;  %s11643_s18 = sphi %s11727_s18, %s26_s18  }
   0x2   : > { %p453_p1 = scmp.lt.s32.totalorder %s11643_s18, 3 }
   0x4   : > { %p454_p2 = pnand %p8895_p0, %p453_p1 }
   0x6   : > { %457 = sbr.rel (%p454_p2) target bundleno = 2088 (0x828), region = 76 }
   0xd   : > { %v10445_v0 = vld [vmem:[%s14860_s2 + $0x4] ss:$16 sps:$4 sm:$0xff]   ;;  %v10447_v1 = vld [vmem:[%s14860_s2 + $0xc] ss:$16 sps:$4 sm:$0xff]   ;;  %v10449_v2 = vld [vmem:[%s14860_s2] ss:$16 sps:$4 sm:$0xff]  }
   0xe   : > { %2259 = vmatprep.subr.bf16.mxu0 %v10445_v0  ;;  %v10450_v3 = vld [vmem:[%s14860_s2 + $0x8] ss:$16 sps:$4 sm:$0xff]   ;;  %2711 = vmatprep.subr.bf16.mxu1 %v10447_v1  ;;  %v10451_v4 = vld [vmem:[%s14860_s2 + $0x24] ss:$16 sps:$4 sm:$0xff]   ;;  %v10453_v5 = vld [vmem:[%s14860_s2 + $0x2c] ss:$16 sps:$4 sm:$0xff]  }
   0xf   : > { %2260 = vmatpush1.bf16.msra.mxu0 %v10449_v2  ;;  %2712 = vmatpush1.bf16.msra.mxu1 %v10450_v3  ;;  %v10455_v6 = vld [vmem:[%s14860_s2 + $0x20] ss:$16 sps:$4 sm:$0xff]   ;;  %v10456_v7 = vld [vmem:[%s14860_s2 + $0x28] ss:$16 sps:$4 sm:$0xff]   ;;  %v10457_v8 = vld [vmem:[%s14860_s2 + $0x44] ss:$16 sps:$4 sm:$0xff]  }
  0x10   : > { %2261 = vmatprep.subr.bf16.mxu0 %v10451_v4  ;;  %2713 = vmatprep.subr.bf16.mxu1 %v10453_v5  ;;  %v10459_v9 = vld [vmem:[%s14860_s2 + $0x4c] ss:$16 sps:$4 sm:$0xff]   ;;  %v10461_v10 = vld [vmem:[%s14860_s2 + $0x40] ss:$16 sps:$4 sm:$0xff]   ;;  %v10462_v11 = vld [vmem:[%s14860_s2 + $0x48] ss:$16 sps:$4 sm:$0xff]  }
  0x11   : > { %v10463_v12 = vld [vmem:[%s14860_s2 + $0x64] ss:$16 sps:$4 sm:$0xff]   ;;  %v10465_v13 = vld [vmem:[%s14860_s2 + $0x6c] ss:$16 sps:$4 sm:$0xff]   ;;  %v10467_v14 = vld [vmem:[%s14860_s2 + $0x60] ss:$16 sps:$4 sm:$0xff]  }
  0x12   : > { %v10468_v15 = vld [vmem:[%s14860_s2 + $0x68] ss:$16 sps:$4 sm:$0xff]   ;;  %v10469_v16 = vld [vmem:[%s14860_s2 + $0x84] ss:$16 sps:$4 sm:$0xff]   ;;  %v10471_v17 = vld [vmem:[%s14860_s2 + $0x8c] ss:$16 sps:$4 sm:$0xff]  }
  0x13   : > { %2262 = vmatpush1.bf16.msra.mxu0 %v10455_v6  ;;  %2714 = vmatpush1.bf16.msra.mxu1 %v10456_v7  ;;  %v10473_v18 = vld [vmem:[%s14860_s2 + $0x80] ss:$16 sps:$4 sm:$0xff]   ;;  %v10474_v19 = vld [vmem:[%s14860_s2 + $0x88] ss:$16 sps:$4 sm:$0xff]   ;;  %v10475_v20 = vld [vmem:[%s14860_s2 + $0xa4] ss:$16 sps:$4 sm:$0xff]  }
  0x14   : > { %2263 = vmatprep.subr.bf16.mxu0 %v10457_v8  ;;  %2715 = vmatprep.subr.bf16.mxu1 %v10459_v9  ;;  %v10477_v21 = vld [vmem:[%s14860_s2 + $0xac] ss:$16 sps:$4 sm:$0xff]   ;;  %v10479_v22 = vld [vmem:[%s14860_s2 + $0xa0] ss:$16 sps:$4 sm:$0xff]   ;;  %v10480_v23 = vld [vmem:[%s14860_s2 + $0xa8] ss:$16 sps:$4 sm:$0xff]  }
  0x15   : > { %v10481_v24 = vld [vmem:[%s14860_s2 + $0xc4] ss:$16 sps:$4 sm:$0xff]   ;;  %v10483_v25 = vld [vmem:[%s14860_s2 + $0xcc] ss:$16 sps:$4 sm:$0xff]   ;;  %v10485_v26 = vld [vmem:[%s14860_s2 + $0xc0] ss:$16 sps:$4 sm:$0xff]  }
  0x16   : > { %v10486_v27 = vld [vmem:[%s14860_s2 + $0xc8] ss:$16 sps:$4 sm:$0xff]   ;;  %v10487_v28 = vld [vmem:[%s14860_s2 + $0xe4] ss:$16 sps:$4 sm:$0xff]   ;;  %v10489_v29 = vld [vmem:[%s14860_s2 + $0xec] ss:$16 sps:$4 sm:$0xff]  }
  0x17   : > { %2264 = vmatpush1.bf16.msra.mxu0 %v10461_v10  ;;  %2716 = vmatpush1.bf16.msra.mxu1 %v10462_v11  ;;  %s8896_s28 = sshll.u32 %s8891_s19, 4  ;;  %v10491_v30 = vld [vmem:[%s14860_s2 + $0xe0] ss:$16 sps:$4 sm:$0xff]   ;;  %v10492_v31 = vld [vmem:[%s14860_s2 + $0xe8] ss:$16 sps:$4 sm:$0xff]   ;;  %s11646_s21 = smov 126  }
  0x18   : > { %2265 = vmatprep.subr.bf16.mxu0 %v10463_v12  ;;  %2717 = vmatprep.subr.bf16.mxu1 %v10465_v13  ;;  %v10493_v32 = vld [vmem:[%s14860_s2 + $0x104] ss:$16 sps:$4 sm:$0xff]   ;;  %p514_p3 = scmp.lt.s32.totalorder %s8896_s28, 31  ;;  %v10495_v33 = vld [vmem:[%s14860_s2 + $0x10c] ss:$16 sps:$4 sm:$0xff]  }
  0x19   : > { %v10497_v34 = vld [vmem:[%s14860_s2 + $0x100] ss:$16 sps:$4 sm:$0xff]   ;;  %v10498_v35 = vld [vmem:[%s14860_s2 + $0x108] ss:$16 sps:$4 sm:$0xff]   ;;  %v10499_v36 = vld [vmem:[%s14860_s2 + $0x124] ss:$16 sps:$4 sm:$0xff]  }
  0x1a   : > { %s14933_s28 = smov (!%p514_p3, %s8896_s28), 31  ;;  %v10501_v37 = vld [vmem:[%s14860_s2 + $0x12c] ss:$16 sps:$4 sm:$0xff]   ;;  %v10503_v38 = vld [vmem:[%s14860_s2 + $0x120] ss:$16 sps:$4 sm:$0xff]  }
  0x1b   : > { %2266 = vmatpush1.bf16.msra.mxu0 %v10467_v14  ;;  %2718 = vmatpush1.bf16.msra.mxu1 %v10468_v15  ;;  %v10504_v39 = vld [vmem:[%s14860_s2 + $0x128] ss:$16 sps:$4 sm:$0xff]   ;;  %v10505_v40 = vld [vmem:[%s14860_s2 + $0x144] ss:$16 sps:$4 sm:$0xff]   ;;  %s10434_s24 = smul.u32 28, %s14933_s28  ;;  %s8903_s27 = sshll.u32 %s14933_s28, 3 }
  0x1c   : > { %2267 = vmatprep.subr.bf16.mxu0 %v10469_v16  ;;  %2719 = vmatprep.subr.bf16.mxu1 %v10471_v17  ;;  %v10507_v41 = vld [vmem:[%s14860_s2 + $0x14c] ss:$16 sps:$4 sm:$0xff]   ;;  %v10509_v42 = vld [vmem:[%s14860_s2 + $0x140] ss:$16 sps:$4 sm:$0xff]   ;;  %v10510_v43 = vld [vmem:[%s14860_s2 + $0x148] ss:$16 sps:$4 sm:$0xff]   ;;  %s13234_s20 = scalar_lea.vmem %s14873_s15, %s8903_s27 }
  0x1d   : > { %v10511_v44 = vld [vmem:[%s14860_s2 + $0x164] ss:$16 sps:$4 sm:$0xff]   ;;  %s11880_s23 = scalar_lea.vmem %s14858_s0, %s10434_s24  ;;  %v10513_v45 = vld [vmem:[%s14860_s2 + $0x16c] ss:$16 sps:$4 sm:$0xff]   ;;  %v10515_v46 = vld [vmem:[%s14860_s2 + $0x160] ss:$16 sps:$4 sm:$0xff]   ;;  %s14657_s27 = scalar_lea.vmem %s14872_s14, %s10434_s24 }
  0x1e   : > { %v10516_v47 = vld [vmem:[%s14860_s2 + $0x168] ss:$16 sps:$4 sm:$0xff]   ;;  %v10543_v48 = vld [vmem:[%s11880_s23 + $0x4] ss:$28 sps:$4 sm:$0xff]   ;;  %v10519_v50 = vld [vmem:[%s14860_s2 + $0x18c] ss:$16 sps:$4 sm:$0xff]  }
  0x1f   : > { %2268 = vmatpush1.bf16.msra.mxu0 %v10473_v18  ;;  %2720 = vmatpush1.bf16.msra.mxu1 %v10474_v19  ;;  %v10517_v49 = vld [vmem:[%s14860_s2 + $0x184] ss:$16 sps:$4 sm:$0xff]   ;;  %v10521_v51 = vld [vmem:[%s14860_s2 + $0x180] ss:$16 sps:$4 sm:$0xff]   ;;  %v10522_v52 = vld [vmem:[%s14860_s2 + $0x188] ss:$16 sps:$4 sm:$0xff]  }
  0x20   : > { %2269 = vmatprep.subr.bf16.mxu0 %v10475_v20  ;;  %2721 = vmatprep.subr.bf16.mxu1 %v10477_v21  ;;  %v10523_v53 = vld [vmem:[%s14860_s2 + $0x1a4] ss:$16 sps:$4 sm:$0xff]   ;;  %v10525_v54 = vld [vmem:[%s14860_s2 + $0x1ac] ss:$16 sps:$4 sm:$0xff]   ;;  %v10527_v55 = vld [vmem:[%s14860_s2 + $0x1a0] ss:$16 sps:$4 sm:$0xff]  }
  0x21   : > { %2291 = vmatprep.mubr.bf16.mxu0 %v10543_v48  ;;  %2743 = vmatprep.mubr.bf16.mxu1 %v10543_v48  ;;  %v10528_v56 = vld [vmem:[%s14860_s2 + $0x1a8] ss:$16 sps:$4 sm:$0xff]   ;;  %v10529_v57 = vld [vmem:[%s14860_s2 + $0x1c4] ss:$16 sps:$4 sm:$0xff]   ;;  %v10531_v58 = vld [vmem:[%s14860_s2 + $0x1cc] ss:$16 sps:$4 sm:$0xff]  }
  0x22   : > { %v10533_v59 = vld [vmem:[%s14860_s2 + $0x1c0] ss:$16 sps:$4 sm:$0xff]   ;;  %v10534_v60 = vld [vmem:[%s14860_s2 + $0x1c8] ss:$16 sps:$4 sm:$0xff]   ;;  %v10535_v61 = vld [vmem:[%s14860_s2 + $0x1e4] ss:$16 sps:$4 sm:$0xff]  }
  0x23   : > { %2270 = vmatpush1.bf16.msra.mxu0 %v10479_v22  ;;  %2722 = vmatpush1.bf16.msra.mxu1 %v10480_v23  ;;  %v10537_v62 = vld [vmem:[%s14860_s2 + $0x1ec] ss:$16 sps:$4 sm:$0xff]   ;;  %v10539_v63 = vld [vmem:[%s14860_s2 + $0x1e0] ss:$16 sps:$4 sm:$0xff]   ;;  %v10540_v0 = vld [vmem:[%s14860_s2 + $0x1e8] ss:$16 sps:$4 sm:$0xff]  }
  0x24   : > { %2271 = vmatprep.subr.bf16.mxu0 %v10481_v24  ;;  %2723 = vmatprep.subr.bf16.mxu1 %v10483_v25  ;;  %v10546_v1 = vld [vmem:[%s14860_s2 + $0x204] ss:$16 sps:$4 sm:$0xff]   ;;  %v10549_v2 = vld [vmem:[%s14860_s2 + $0x20c] ss:$16 sps:$4 sm:$0xff]   ;;  %v10544_v4 = vld [vmem:[%s14860_s2 + $0x200] ss:$16 sps:$4 sm:$0xff]  }
  0x25   : > { %v10541_v3 = vld [vmem:[%s11880_s23] ss:$28 sps:$4 sm:$0xff]   ;;  %v10547_v5 = vld [vmem:[%s14860_s2 + $0x208] ss:$16 sps:$4 sm:$0xff]   ;;  %v10552_v6 = vld [vmem:[%s14860_s2 + $0x224] ss:$16 sps:$4 sm:$0xff]  }
  0x26   : > { %v10555_v7 = vld [vmem:[%s14860_s2 + $0x22c] ss:$16 sps:$4 sm:$0xff]   ;;  %v10550_v9 = vld [vmem:[%s14860_s2 + $0x220] ss:$16 sps:$4 sm:$0xff]   ;;  %v10553_v10 = vld [vmem:[%s14860_s2 + $0x228] ss:$16 sps:$4 sm:$0xff]  }
  0x27   : > { %2272 = vmatpush1.bf16.msra.mxu0 %v10485_v26  ;;  %2724 = vmatpush1.bf16.msra.mxu1 %v10486_v27  ;;  %v10556_v8 = vld [vmem:[%s11880_s23 + $0x3c] ss:$28 sps:$4 sm:$0xff]   ;;  %v10561_v11 = vld [vmem:[%s14860_s2 + $0x244] ss:$16 sps:$4 sm:$0xff]   ;;  %v10559_v14 = vld [vmem:[%s14860_s2 + $0x240] ss:$16 sps:$4 sm:$0xff]  }
  0x28   : > { %2273 = vmatprep.subr.bf16.mxu0 %v10487_v28  ;;  %2725 = vmatprep.subr.bf16.mxu1 %v10489_v29  ;;  %v10564_v12 = vld [vmem:[%s14860_s2 + $0x24c] ss:$16 sps:$4 sm:$0xff]   ;;  %v10558_v13 = vld [vmem:[%s11880_s23 + $0x38] ss:$28 sps:$4 sm:$0xff]   ;;  %v10565_v19 = vld [vmem:[%s14860_s2 + $0x260] ss:$16 sps:$4 sm:$0xff]  }
  0x29   : > { %v10562_v15 = vld [vmem:[%s14860_s2 + $0x248] ss:$16 sps:$4 sm:$0xff]   ;;  %v10567_v16 = vld [vmem:[%s14860_s2 + $0x264] ss:$16 sps:$4 sm:$0xff]   ;;  %v10570_v17 = vld [vmem:[%s14860_s2 + $0x26c] ss:$16 sps:$4 sm:$0xff]  }
  0x2a   : > { %v10571_v18 = vld [vmem:[%s11880_s23 + $0x74] ss:$28 sps:$4 sm:$0xff]   ;;  %v10568_v20 = vld [vmem:[%s14860_s2 + $0x268] ss:$16 sps:$4 sm:$0xff]   ;;  %v10579_v22 = vld [vmem:[%s14860_s2 + $0x28c] ss:$16 sps:$4 sm:$0xff]  }
  0x2b   : > { %2274 = vmatpush1.bf16.msra.mxu0 %v10491_v30  ;;  %2726 = vmatpush1.bf16.msra.mxu1 %v10492_v31  ;;  %v10576_v21 = vld [vmem:[%s14860_s2 + $0x284] ss:$16 sps:$4 sm:$0xff]   ;;  %v10573_v23 = vld [vmem:[%s11880_s23 + $0x70] ss:$28 sps:$4 sm:$0xff]   ;;  %v10577_v25 = vld [vmem:[%s14860_s2 + $0x288] ss:$16 sps:$4 sm:$0xff]  }
  0x2c   : > { %2275 = vmatprep.subr.bf16.mxu0 %v10493_v32  ;;  %2727 = vmatprep.subr.bf16.mxu1 %v10495_v33  ;;  %v10574_v24 = vld [vmem:[%s14860_s2 + $0x280] ss:$16 sps:$4 sm:$0xff]   ;;  %v10582_v26 = vld [vmem:[%s14860_s2 + $0x2a4] ss:$16 sps:$4 sm:$0xff]   ;;  %v10585_v27 = vld [vmem:[%s14860_s2 + $0x2ac] ss:$16 sps:$4 sm:$0xff]  }
  0x2d   : > { %v10586_v28 = vld [vmem:[%s11880_s23 + $0xac] ss:$28 sps:$4 sm:$0xff]   ;;  %v10580_v29 = vld [vmem:[%s14860_s2 + $0x2a0] ss:$16 sps:$4 sm:$0xff]   ;;  %v10591_v31 = vld [vmem:[%s14860_s2 + $0x2c4] ss:$16 sps:$4 sm:$0xff]  }
  0x2e   : > { %v10583_v30 = vld [vmem:[%s14860_s2 + $0x2a8] ss:$16 sps:$4 sm:$0xff]   ;;  %v10594_v32 = vld [vmem:[%s14860_s2 + $0x2cc] ss:$16 sps:$4 sm:$0xff]  }
  0x2f   : > { %2276 = vmatpush1.bf16.msra.mxu0 %v10497_v34  ;;  %2728 = vmatpush1.bf16.msra.mxu1 %v10498_v35  ;;  %v10588_v33 = vld [vmem:[%s11880_s23 + $0xa8] ss:$28 sps:$4 sm:$0xff]   ;;  %v10589_v34 = vld [vmem:[%s14860_s2 + $0x2c0] ss:$16 sps:$4 sm:$0xff]   ;;  %v10616_v48 = vld [vmem:[%s11880_s23 + $0x11c] ss:$28 sps:$4 sm:$0xff]  }
  0x30   : > { %2277 = vmatprep.subr.bf16.mxu0 %v10499_v36  ;;  %2729 = vmatprep.subr.bf16.mxu1 %v10501_v37  ;;  %v10592_v35 = vld [vmem:[%s14860_s2 + $0x2c8] ss:$16 sps:$4 sm:$0xff]   ;;  %v10597_v36 = vld [vmem:[%s14860_s2 + $0x2e4] ss:$16 sps:$4 sm:$0xff]   ;;  %v10600_v37 = vld [vmem:[%s14860_s2 + $0x2ec] ss:$16 sps:$4 sm:$0xff]  }
  0x33   : > { %2278 = vmatpush1.bf16.msra.mxu0 %v10503_v38  ;;  %2730 = vmatpush1.bf16.msra.mxu1 %v10504_v39  ;;  %v10601_v38 = vld [vmem:[%s11880_s23 + $0xe4] ss:$28 sps:$4 sm:$0xff]  }
  0x34   : > { %2279 = vmatprep.subr.bf16.mxu0 %v10505_v40  ;;  %2731 = vmatprep.subr.bf16.mxu1 %v10507_v41  ;;  %v10595_v39 = vld [vmem:[%s14860_s2 + $0x2e0] ss:$16 sps:$4 sm:$0xff]   ;;  %v10598_v40 = vld [vmem:[%s14860_s2 + $0x2e8] ss:$16 sps:$4 sm:$0xff]   ;;  %v10606_v41 = vld [vmem:[%s14860_s2 + $0x304] ss:$16 sps:$4 sm:$0xff]  }
  0x37   : > { %2280 = vmatpush1.bf16.msra.mxu0 %v10509_v42  ;;  %2732 = vmatpush1.bf16.msra.mxu1 %v10510_v43  ;;  %v10609_v42 = vld [vmem:[%s14860_s2 + $0x30c] ss:$16 sps:$4 sm:$0xff]  }
  0x38   : > { %2281 = vmatprep.subr.bf16.mxu0 %v10511_v44  ;;  %2733 = vmatprep.subr.bf16.mxu1 %v10513_v45  ;;  %v10603_v43 = vld [vmem:[%s11880_s23 + $0xe0] ss:$28 sps:$4 sm:$0xff]   ;;  %v10607_v45 = vld [vmem:[%s14860_s2 + $0x308] ss:$16 sps:$4 sm:$0xff]  }
  0x39   : > { %v10604_v44 = vld [vmem:[%s14860_s2 + $0x300] ss:$16 sps:$4 sm:$0xff]  }
  0x3b   : > { %2282 = vmatpush1.bf16.msra.mxu0 %v10515_v46  ;;  %2734 = vmatpush1.bf16.msra.mxu1 %v10516_v47  ;;  %v10612_v46 = vld [vmem:[%s14860_s2 + $0x324] ss:$16 sps:$4 sm:$0xff]   ;;  %v10615_v47 = vld [vmem:[%s14860_s2 + $0x32c] ss:$16 sps:$4 sm:$0xff]  }
  0x3c   : > { %2283 = vmatprep.subr.bf16.mxu0 %v10517_v49  ;;  %2735 = vmatprep.subr.bf16.mxu1 %v10519_v50  ;;  %v10610_v49 = vld [vmem:[%s14860_s2 + $0x320] ss:$16 sps:$4 sm:$0xff]   ;;  %v10613_v50 = vld [vmem:[%s14860_s2 + $0x328] ss:$16 sps:$4 sm:$0xff]  }
  0x3f   : > { %2284 = vmatpush1.bf16.msra.mxu0 %v10521_v51  ;;  %2736 = vmatpush1.bf16.msra.mxu1 %v10522_v52  ;;  %v10621_v51 = vld [vmem:[%s14860_s2 + $0x344] ss:$16 sps:$4 sm:$0xff]   ;;  %v10624_v52 = vld [vmem:[%s14860_s2 + $0x34c] ss:$16 sps:$4 sm:$0xff]  }
  0x40   : > { %2285 = vmatprep.subr.bf16.mxu0 %v10523_v53  ;;  %2737 = vmatprep.subr.bf16.mxu1 %v10525_v54  ;;  %v10618_v53 = vld [vmem:[%s11880_s23 + $0x118] ss:$28 sps:$4 sm:$0xff]   ;;  %v10619_v54 = vld [vmem:[%s14860_s2 + $0x340] ss:$16 sps:$4 sm:$0xff]  }
  0x43   : > { %2286 = vmatpush1.bf16.msra.mxu0 %v10527_v55  ;;  %2738 = vmatpush1.bf16.msra.mxu1 %v10528_v56  ;;  %v10622_v55 = vld [vmem:[%s14860_s2 + $0x348] ss:$16 sps:$4 sm:$0xff]   ;;  %v10627_v56 = vld [vmem:[%s14860_s2 + $0x364] ss:$16 sps:$4 sm:$0xff]  }
  0x44   : > { %2287 = vmatprep.subr.bf16.mxu0 %v10529_v57  ;;  %2739 = vmatprep.subr.bf16.mxu1 %v10531_v58  ;;  %v10630_v57 = vld [vmem:[%s14860_s2 + $0x36c] ss:$16 sps:$4 sm:$0xff]   ;;  %v10631_v58 = vld [vmem:[%s11880_s23 + $0x154] ss:$28 sps:$4 sm:$0xff]  }
  0x47   : > { %2288 = vmatpush1.bf16.msra.mxu0 %v10533_v59  ;;  %2740 = vmatpush1.bf16.msra.mxu1 %v10534_v60  ;;  %v10625_v59 = vld [vmem:[%s14860_s2 + $0x360] ss:$16 sps:$4 sm:$0xff]   ;;  %v10628_v60 = vld [vmem:[%s14860_s2 + $0x368] ss:$16 sps:$4 sm:$0xff]  }
  0x48   : > { %2289 = vmatprep.subr.bf16.mxu0 %v10535_v61  ;;  %2741 = vmatprep.subr.bf16.mxu1 %v10537_v62  ;;  %v10636_v61 = vld [vmem:[%s14860_s2 + $0x384] ss:$16 sps:$4 sm:$0xff]   ;;  %v10639_v62 = vld [vmem:[%s14860_s2 + $0x38c] ss:$16 sps:$4 sm:$0xff]  }
  0x4b   : > { %2290 = vmatpush1.bf16.msra.mxu0 %v10539_v63  ;;  %2742 = vmatpush1.bf16.msra.mxu1 %v10540_v0  ;;  %v10633_v63 = vld [vmem:[%s11880_s23 + $0x150] ss:$28 sps:$4 sm:$0xff]  }
  0x4c   : > { %2372 = vmatprep.subr.bf16.mxu0 %v10546_v1  ;;  %2824 = vmatprep.subr.bf16.mxu1 %v10549_v2  ;;  %v10634_v0 = vld [vmem:[%s14860_s2 + $0x380] ss:$16 sps:$4 sm:$0xff]   ;;  %v10637_v1 = vld [vmem:[%s14860_s2 + $0x388] ss:$16 sps:$4 sm:$0xff]   ;;  %v10642_v2 = vld [vmem:[%s14860_s2 + $0x3a4] ss:$16 sps:$4 sm:$0xff]  }
  0x4e   : > { %2292 = vmatmul.mubr.bf16.vlgmr.msra.gmra.mrb[0].mxu0 %v10541_v3  ;;  %2744 = vmatmul.mubr.bf16.vlgmr.msra.gmra.mrb[0].mxu1 %v10541_v3  ;;  %v10645_v3 = vld [vmem:[%s14860_s2 + $0x3ac] ss:$16 sps:$4 sm:$0xff]  }
  0x4f   : > { %2373 = vmatpush1.bf16.msra.mxu0 %v10544_v4  ;;  %2825 = vmatpush1.bf16.msra.mxu1 %v10547_v5  ;;  %v10646_v4 = vld [vmem:[%s11880_s23 + $0x18c] ss:$28 sps:$4 sm:$0xff]   ;;  %v10640_v5 = vld [vmem:[%s14860_s2 + $0x3a0] ss:$16 sps:$4 sm:$0xff]  }
  0x50   : > { %2374 = vmatprep.subr.bf16.mxu0 %v10552_v6  ;;  %2826 = vmatprep.subr.bf16.mxu1 %v10555_v7  ;;  %v10643_v6 = vld [vmem:[%s14860_s2 + $0x3a8] ss:$16 sps:$4 sm:$0xff]   ;;  %v10651_v7 = vld [vmem:[%s14860_s2 + $0x3c4] ss:$16 sps:$4 sm:$0xff]  }
  0x51   : > { %2301 = vmatprep.mubr.bf16.mxu0 %v10556_v8  ;;  %2753 = vmatprep.mubr.bf16.mxu1 %v10556_v8  ;;  %v10654_v8 = vld [vmem:[%s14860_s2 + $0x3cc] ss:$16 sps:$4 sm:$0xff]  }
  0x53   : > { %2375 = vmatpush1.bf16.msra.mxu0 %v10550_v9  ;;  %2827 = vmatpush1.bf16.msra.mxu1 %v10553_v10  ;;  %v10648_v9 = vld [vmem:[%s11880_s23 + $0x188] ss:$28 sps:$4 sm:$0xff]   ;;  %v10649_v10 = vld [vmem:[%s14860_s2 + $0x3c0] ss:$16 sps:$4 sm:$0xff]  }
  0x54   : > { %2376 = vmatprep.subr.bf16.mxu0 %v10561_v11  ;;  %2828 = vmatprep.subr.bf16.mxu1 %v10564_v12  ;;  %v10652_v11 = vld [vmem:[%s14860_s2 + $0x3c8] ss:$16 sps:$4 sm:$0xff]   ;;  %v10657_v12 = vld [vmem:[%s14860_s2 + $0x3e4] ss:$16 sps:$4 sm:$0xff]  }
  0x56   : > { %2302 = vmatmul.mubr.bf16.gmra.mrb[4].mxu0 %v10558_v13  ;;  %2754 = vmatmul.mubr.bf16.gmra.mrb[4].mxu1 %v10558_v13  ;;  %v10660_v13 = vld [vmem:[%s14860_s2 + $0x3ec] ss:$16 sps:$4 sm:$0xff]  }
  0x57   : > { %2377 = vmatpush1.bf16.msra.mxu0 %v10559_v14  ;;  %2829 = vmatpush1.bf16.msra.mxu1 %v10562_v15  ;;  %v10663_v14 = vld [vmem:[%s11880_s23 + $0xc] ss:$28 sps:$4 sm:$0xff]   ;;  %v10655_v15 = vld [vmem:[%s14860_s2 + $0x3e0] ss:$16 sps:$4 sm:$0xff]  }
  0x58   : > { %2378 = vmatprep.subr.bf16.mxu0 %v10567_v16  ;;  %2830 = vmatprep.subr.bf16.mxu1 %v10570_v17  ;;  %v10658_v16 = vld [vmem:[%s14860_s2 + $0x3e8] ss:$16 sps:$4 sm:$0xff]   ;;  %v10666_v17 = vld [vmem:[%s14860_s2 + $0x404] ss:$16 sps:$4 sm:$0xff]  }
  0x59   : > { %2311 = vmatprep.mubr.bf16.mxu0 %v10571_v18  ;;  %2763 = vmatprep.mubr.bf16.mxu1 %v10571_v18  ;;  %v10669_v18 = vld [vmem:[%s14860_s2 + $0x40c] ss:$16 sps:$4 sm:$0xff]  }
  0x5b   : > { %2379 = vmatpush1.bf16.msra.mxu0 %v10565_v19  ;;  %2831 = vmatpush1.bf16.msra.mxu1 %v10568_v20  ;;  %v10661_v19 = vld [vmem:[%s11880_s23 + $0x8] ss:$28 sps:$4 sm:$0xff]   ;;  %v10664_v20 = vld [vmem:[%s14860_s2 + $0x400] ss:$16 sps:$4 sm:$0xff]  }
  0x5c   : > { %2380 = vmatprep.subr.bf16.mxu0 %v10576_v21  ;;  %2832 = vmatprep.subr.bf16.mxu1 %v10579_v22  ;;  %v10667_v21 = vld [vmem:[%s14860_s2 + $0x408] ss:$16 sps:$4 sm:$0xff]   ;;  %v10672_v22 = vld [vmem:[%s14860_s2 + $0x424] ss:$16 sps:$4 sm:$0xff]  }
  0x5e   : > { %2312 = vmatmul.mubr.bf16.gmra.mrb[8].mxu0 %v10573_v23  ;;  %2764 = vmatmul.mubr.bf16.gmra.mrb[8].mxu1 %v10573_v23  ;;  %v10675_v23 = vld [vmem:[%s14860_s2 + $0x42c] ss:$16 sps:$4 sm:$0xff]  }
  0x5f   : > { %2381 = vmatpush1.bf16.msra.mxu0 %v10574_v24  ;;  %2833 = vmatpush1.bf16.msra.mxu1 %v10577_v25  ;;  %v10676_v24 = vld [vmem:[%s11880_s23 + $0x44] ss:$28 sps:$4 sm:$0xff]  }
  0x60   : > { %2382 = vmatprep.subr.bf16.mxu0 %v10582_v26  ;;  %2834 = vmatprep.subr.bf16.mxu1 %v10585_v27  ;;  %v10670_v25 = vld [vmem:[%s14860_s2 + $0x420] ss:$16 sps:$4 sm:$0xff]   ;;  %v10673_v26 = vld [vmem:[%s14860_s2 + $0x428] ss:$16 sps:$4 sm:$0xff]   ;;  %v10681_v27 = vld [vmem:[%s14860_s2 + $0x444] ss:$16 sps:$4 sm:$0xff]  }
  0x61   : > { %2321 = vmatprep.mubr.bf16.mxu0 %v10586_v28  ;;  %2773 = vmatprep.mubr.bf16.mxu1 %v10586_v28  ;;  %v10684_v28 = vld [vmem:[%s14860_s2 + $0x44c] ss:$16 sps:$4 sm:$0xff]  }
  0x63   : > { %2383 = vmatpush1.bf16.msra.mxu0 %v10580_v29  ;;  %2835 = vmatpush1.bf16.msra.mxu1 %v10583_v30  ;;  %v10678_v29 = vld [vmem:[%s11880_s23 + $0x40] ss:$28 sps:$4 sm:$0xff]  }
  0x64   : > { %2384 = vmatprep.subr.bf16.mxu0 %v10591_v31  ;;  %2836 = vmatprep.subr.bf16.mxu1 %v10594_v32  ;;  %v10679_v30 = vld [vmem:[%s14860_s2 + $0x440] ss:$16 sps:$4 sm:$0xff]   ;;  %v10682_v31 = vld [vmem:[%s14860_s2 + $0x448] ss:$16 sps:$4 sm:$0xff]   ;;  %v10687_v32 = vld [vmem:[%s14860_s2 + $0x464] ss:$16 sps:$4 sm:$0xff]  }
  0x66   : > { %2322 = vmatmul.mubr.bf16.gmra.mrb[12].mxu0 %v10588_v33  ;;  %2774 = vmatmul.mubr.bf16.gmra.mrb[12].mxu1 %v10588_v33  ;;  %v10690_v33 = vld [vmem:[%s14860_s2 + $0x46c] ss:$16 sps:$4 sm:$0xff]  }
  0x67   : > { %2385 = vmatpush1.bf16.msra.mxu0 %v10589_v34  ;;  %2837 = vmatpush1.bf16.msra.mxu1 %v10592_v35  ;;  %v10691_v34 = vld [vmem:[%s11880_s23 + $0x7c] ss:$28 sps:$4 sm:$0xff]   ;;  %v10685_v35 = vld [vmem:[%s14860_s2 + $0x460] ss:$16 sps:$4 sm:$0xff]  }
  0x68   : > { %2386 = vmatprep.subr.bf16.mxu0 %v10597_v36  ;;  %2838 = vmatprep.subr.bf16.mxu1 %v10600_v37  ;;  %v10688_v36 = vld [vmem:[%s14860_s2 + $0x468] ss:$16 sps:$4 sm:$0xff]   ;;  %v10696_v37 = vld [vmem:[%s14860_s2 + $0x484] ss:$16 sps:$4 sm:$0xff]  }
  0x69   : > { %2331 = vmatprep.mubr.bf16.mxu0 %v10601_v38  ;;  %2783 = vmatprep.mubr.bf16.mxu1 %v10601_v38  ;;  %v10699_v38 = vld [vmem:[%s14860_s2 + $0x48c] ss:$16 sps:$4 sm:$0xff]  }
  0x6b   : > { %2387 = vmatpush1.bf16.msra.mxu0 %v10595_v39  ;;  %2839 = vmatpush1.bf16.msra.mxu1 %v10598_v40  ;;  %v10693_v39 = vld [vmem:[%s11880_s23 + $0x78] ss:$28 sps:$4 sm:$0xff]   ;;  %v10694_v40 = vld [vmem:[%s14860_s2 + $0x480] ss:$16 sps:$4 sm:$0xff]  }
  0x6c   : > { %2388 = vmatprep.subr.bf16.mxu0 %v10606_v41  ;;  %2840 = vmatprep.subr.bf16.mxu1 %v10609_v42  ;;  %v10697_v41 = vld [vmem:[%s14860_s2 + $0x488] ss:$16 sps:$4 sm:$0xff]   ;;  %v10702_v42 = vld [vmem:[%s14860_s2 + $0x4a4] ss:$16 sps:$4 sm:$0xff]  }
  0x6e   : > { %2332 = vmatmul.mubr.bf16.gmra.mrb[16].mxu0 %v10603_v43  ;;  %2784 = vmatmul.mubr.bf16.gmra.mrb[16].mxu1 %v10603_v43  ;;  %v10705_v43 = vld [vmem:[%s14860_s2 + $0x4ac] ss:$16 sps:$4 sm:$0xff]  }
  0x6f   : > { %2389 = vmatpush1.bf16.msra.mxu0 %v10604_v44  ;;  %2841 = vmatpush1.bf16.msra.mxu1 %v10607_v45  ;;  %v10706_v44 = vld [vmem:[%s11880_s23 + $0xb4] ss:$28 sps:$4 sm:$0xff]  }
  0x70   : > { %2390 = vmatprep.subr.bf16.mxu0 %v10612_v46  ;;  %2842 = vmatprep.subr.bf16.mxu1 %v10615_v47  ;;  %v10700_v45 = vld [vmem:[%s14860_s2 + $0x4a0] ss:$16 sps:$4 sm:$0xff]   ;;  %v10703_v46 = vld [vmem:[%s14860_s2 + $0x4a8] ss:$16 sps:$4 sm:$0xff]   ;;  %v10711_v47 = vld [vmem:[%s14860_s2 + $0x4c4] ss:$16 sps:$4 sm:$0xff]  }
  0x71   : > { %2341 = vmatprep.mubr.bf16.mxu0 %v10616_v48  ;;  %2793 = vmatprep.mubr.bf16.mxu1 %v10616_v48  ;;  %v10714_v48 = vld [vmem:[%s14860_s2 + $0x4cc] ss:$16 sps:$4 sm:$0xff]  }
  0x73   : > { %2391 = vmatpush1.bf16.msra.mxu0 %v10610_v49  ;;  %2843 = vmatpush1.bf16.msra.mxu1 %v10613_v50  ;;  %v10708_v49 = vld [vmem:[%s11880_s23 + $0xb0] ss:$28 sps:$4 sm:$0xff]  }
  0x74   : > { %2392 = vmatprep.subr.bf16.mxu0 %v10621_v51  ;;  %2844 = vmatprep.subr.bf16.mxu1 %v10624_v52  ;;  %v10709_v50 = vld [vmem:[%s14860_s2 + $0x4c0] ss:$16 sps:$4 sm:$0xff]   ;;  %v10712_v51 = vld [vmem:[%s14860_s2 + $0x4c8] ss:$16 sps:$4 sm:$0xff]   ;;  %v10717_v52 = vld [vmem:[%s14860_s2 + $0x4e4] ss:$16 sps:$4 sm:$0xff]  }
  0x76   : > { %2342 = vmatmul.mubr.bf16.gmra.mrb[20].mxu0 %v10618_v53  ;;  %2794 = vmatmul.mubr.bf16.gmra.mrb[20].mxu1 %v10618_v53  ;;  %v10720_v53 = vld [vmem:[%s14860_s2 + $0x4ec] ss:$16 sps:$4 sm:$0xff]  }
  0x77   : > { %2393 = vmatpush1.bf16.msra.mxu0 %v10619_v54  ;;  %2845 = vmatpush1.bf16.msra.mxu1 %v10622_v55  ;;  %v10721_v54 = vld [vmem:[%s11880_s23 + $0xec] ss:$28 sps:$4 sm:$0xff]   ;;  %v10715_v55 = vld [vmem:[%s14860_s2 + $0x4e0] ss:$16 sps:$4 sm:$0xff]  }
  0x78   : > { %2394 = vmatprep.subr.bf16.mxu0 %v10627_v56  ;;  %2846 = vmatprep.subr.bf16.mxu1 %v10630_v57  ;;  %v10718_v56 = vld [vmem:[%s14860_s2 + $0x4e8] ss:$16 sps:$4 sm:$0xff]   ;;  %v10726_v57 = vld [vmem:[%s14860_s2 + $0x504] ss:$16 sps:$4 sm:$0xff]  }
  0x79   : > { %2351 = vmatprep.mubr.bf16.mxu0 %v10631_v58  ;;  %2803 = vmatprep.mubr.bf16.mxu1 %v10631_v58  ;;  %v10729_v58 = vld [vmem:[%s14860_s2 + $0x50c] ss:$16 sps:$4 sm:$0xff]  }
  0x7b   : > { %2395 = vmatpush1.bf16.msra.mxu0 %v10625_v59  ;;  %2847 = vmatpush1.bf16.msra.mxu1 %v10628_v60  ;;  %v10723_v59 = vld [vmem:[%s11880_s23 + $0xe8] ss:$28 sps:$4 sm:$0xff]   ;;  %v10724_v60 = vld [vmem:[%s14860_s2 + $0x500] ss:$16 sps:$4 sm:$0xff]  }
  0x7c   : > { %2396 = vmatprep.subr.bf16.mxu0 %v10636_v61  ;;  %2848 = vmatprep.subr.bf16.mxu1 %v10639_v62  ;;  %v10727_v61 = vld [vmem:[%s14860_s2 + $0x508] ss:$16 sps:$4 sm:$0xff]   ;;  %v10732_v62 = vld [vmem:[%s14860_s2 + $0x524] ss:$16 sps:$4 sm:$0xff]  }
  0x7e   : > { %2352 = vmatmul.mubr.bf16.gmra.mrb[24].mxu0 %v10633_v63  ;;  %2804 = vmatmul.mubr.bf16.gmra.mrb[24].mxu1 %v10633_v63  ;;  %v10735_v63 = vld [vmem:[%s14860_s2 + $0x52c] ss:$16 sps:$4 sm:$0xff]  }
  0x7f   : > { %2397 = vmatpush1.bf16.msra.mxu0 %v10634_v0  ;;  %2849 = vmatpush1.bf16.msra.mxu1 %v10637_v1  ;;  %v10736_v0 = vld [vmem:[%s11880_s23 + $0x124] ss:$28 sps:$4 sm:$0xff]  }
  0x80   : > { %2398 = vmatprep.subr.bf16.mxu0 %v10642_v2  ;;  %2850 = vmatprep.subr.bf16.mxu1 %v10645_v3  ;;  %v10730_v1 = vld [vmem:[%s14860_s2 + $0x520] ss:$16 sps:$4 sm:$0xff]   ;;  %v10733_v2 = vld [vmem:[%s14860_s2 + $0x528] ss:$16 sps:$4 sm:$0xff]   ;;  %v10741_v3 = vld [vmem:[%s14860_s2 + $0x544] ss:$16 sps:$4 sm:$0xff]  }
  0x81   : > { %2361 = vmatprep.mubr.bf16.mxu0 %v10646_v4  ;;  %2813 = vmatprep.mubr.bf16.mxu1 %v10646_v4  ;;  %v10744_v4 = vld [vmem:[%s14860_s2 + $0x54c] ss:$16 sps:$4 sm:$0xff]  }
  0x83   : > { %2399 = vmatpush1.bf16.msra.mxu0 %v10640_v5  ;;  %2851 = vmatpush1.bf16.msra.mxu1 %v10643_v6  ;;  %v10738_v5 = vld [vmem:[%s11880_s23 + $0x120] ss:$28 sps:$4 sm:$0xff]  }
  0x84   : > { %2400 = vmatprep.subr.bf16.mxu0 %v10651_v7  ;;  %2852 = vmatprep.subr.bf16.mxu1 %v10654_v8  ;;  %v10739_v6 = vld [vmem:[%s14860_s2 + $0x540] ss:$16 sps:$4 sm:$0xff]   ;;  %v10742_v7 = vld [vmem:[%s14860_s2 + $0x548] ss:$16 sps:$4 sm:$0xff]   ;;  %v10747_v8 = vld [vmem:[%s14860_s2 + $0x564] ss:$16 sps:$4 sm:$0xff]  }
  0x86   : > { %2362 = vmatmul.mubr.bf16.gmra.mrb[28].mxu0 %v10648_v9  ;;  %2814 = vmatmul.mubr.bf16.gmra.mrb[28].mxu1 %v10648_v9  ;;  %v10750_v9 = vld [vmem:[%s14860_s2 + $0x56c] ss:$16 sps:$4 sm:$0xff]  }
  0x87   : > { %2401 = vmatpush1.bf16.msra.mxu0 %v10649_v10  ;;  %2853 = vmatpush1.bf16.msra.mxu1 %v10652_v11  ;;  %v10751_v10 = vld [vmem:[%s11880_s23 + $0x15c] ss:$28 sps:$4 sm:$0xff]   ;;  %v10745_v11 = vld [vmem:[%s14860_s2 + $0x560] ss:$16 sps:$4 sm:$0xff]  }
  0x88   : > { %2402 = vmatprep.subr.bf16.mxu0 %v10657_v12  ;;  %2854 = vmatprep.subr.bf16.mxu1 %v10660_v13  ;;  %v10748_v12 = vld [vmem:[%s14860_s2 + $0x568] ss:$16 sps:$4 sm:$0xff]   ;;  %v10756_v13 = vld [vmem:[%s14860_s2 + $0x584] ss:$16 sps:$4 sm:$0xff]  }
  0x89   : > { %2404 = vmatprep.mubr.bf16.mxu0 %v10663_v14  ;;  %2856 = vmatprep.mubr.bf16.mxu1 %v10663_v14  ;;  %v10759_v14 = vld [vmem:[%s14860_s2 + $0x58c] ss:$16 sps:$4 sm:$0xff]  }
  0x8b   : > { %2403 = vmatpush1.bf16.msra.mxu0 %v10655_v15  ;;  %2855 = vmatpush1.bf16.msra.mxu1 %v10658_v16  ;;  %v10753_v15 = vld [vmem:[%s11880_s23 + $0x158] ss:$28 sps:$4 sm:$0xff]   ;;  %v10754_v16 = vld [vmem:[%s14860_s2 + $0x580] ss:$16 sps:$4 sm:$0xff]  }
  0x8c   : > { %2485 = vmatprep.subr.bf16.mxu0 %v10666_v17  ;;  %2937 = vmatprep.subr.bf16.mxu1 %v10669_v18  ;;  %v10757_v17 = vld [vmem:[%s14860_s2 + $0x588] ss:$16 sps:$4 sm:$0xff]   ;;  %v10762_v18 = vld [vmem:[%s14860_s2 + $0x5a4] ss:$16 sps:$4 sm:$0xff]  }
  0x8e   : > { %2405 = vmatmul.mubr.bf16.vlgmr.msra.gmra.mrb[0].mxu0 %v10661_v19  ;;  %2857 = vmatmul.mubr.bf16.vlgmr.msra.gmra.mrb[0].mxu1 %v10661_v19  ;;  %v10765_v19 = vld [vmem:[%s14860_s2 + $0x5ac] ss:$16 sps:$4 sm:$0xff]  }
  0x8f   : > { %2486 = vmatpush1.bf16.msra.mxu0 %v10664_v20  ;;  %2938 = vmatpush1.bf16.msra.mxu1 %v10667_v21  ;;  %v10766_v20 = vld [vmem:[%s11880_s23 + $0x194] ss:$28 sps:$4 sm:$0xff]  }
  0x90   : > { %2487 = vmatprep.subr.bf16.mxu0 %v10672_v22  ;;  %2939 = vmatprep.subr.bf16.mxu1 %v10675_v23  ;;  %v10760_v21 = vld [vmem:[%s14860_s2 + $0x5a0] ss:$16 sps:$4 sm:$0xff]   ;;  %v10763_v22 = vld [vmem:[%s14860_s2 + $0x5a8] ss:$16 sps:$4 sm:$0xff]   ;;  %v10771_v23 = vld [vmem:[%s14860_s2 + $0x5c4] ss:$16 sps:$4 sm:$0xff]  }
  0x91   : > { %2414 = vmatprep.mubr.bf16.mxu0 %v10676_v24  ;;  %2866 = vmatprep.mubr.bf16.mxu1 %v10676_v24  ;;  %v10768_v24 = vld [vmem:[%s11880_s23 + $0x190] ss:$28 sps:$4 sm:$0xff]  }
  0x93   : > { %2488 = vmatpush1.bf16.msra.mxu0 %v10670_v25  ;;  %2940 = vmatpush1.bf16.msra.mxu1 %v10673_v26  ;;  %v10774_v25 = vld [vmem:[%s14860_s2 + $0x5cc] ss:$16 sps:$4 sm:$0xff]   ;;  %v10769_v26 = vld [vmem:[%s14860_s2 + $0x5c0] ss:$16 sps:$4 sm:$0xff]  }
  0x94   : > { %2489 = vmatprep.subr.bf16.mxu0 %v10681_v27  ;;  %2941 = vmatprep.subr.bf16.mxu1 %v10684_v28  ;;  %v10772_v27 = vld [vmem:[%s14860_s2 + $0x5c8] ss:$16 sps:$4 sm:$0xff]   ;;  %v10777_v28 = vld [vmem:[%s14860_s2 + $0x5e4] ss:$16 sps:$4 sm:$0xff]  }
  0x96   : > { %2415 = vmatmul.mubr.bf16.gmra.mrb[4].mxu0 %v10678_v29  ;;  %2867 = vmatmul.mubr.bf16.gmra.mrb[4].mxu1 %v10678_v29  ;;  %v10780_v29 = vld [vmem:[%s14860_s2 + $0x5ec] ss:$16 sps:$4 sm:$0xff]  }
  0x97   : > { %2490 = vmatpush1.bf16.msra.mxu0 %v10679_v30  ;;  %2942 = vmatpush1.bf16.msra.mxu1 %v10682_v31  ;;  %v10775_v30 = vld [vmem:[%s14860_s2 + $0x5e0] ss:$16 sps:$4 sm:$0xff]  }
  0x98   : > { %2491 = vmatprep.subr.bf16.mxu0 %v10687_v32  ;;  %2943 = vmatprep.subr.bf16.mxu1 %v10690_v33  ;;  %v10783_v31 = vld [vmem:[%s11880_s23 + $0x14] ss:$28 sps:$4 sm:$0xff]   ;;  %v10778_v32 = vld [vmem:[%s14860_s2 + $0x5e8] ss:$16 sps:$4 sm:$0xff]  }
  0x99   : > { %2424 = vmatprep.mubr.bf16.mxu0 %v10691_v34  ;;  %2876 = vmatprep.mubr.bf16.mxu1 %v10691_v34  ;;  %v10786_v33 = vld [vmem:[%s14860_s2 + $0x604] ss:$16 sps:$4 sm:$0xff]   ;;  %v10813_v34 = vld [vmem:[%s14860_s2 + $0x60c] ss:$16 sps:$4 sm:$0xff]  }
  0x9b   : > { %2492 = vmatpush1.bf16.msra.mxu0 %v10685_v35  ;;  %2944 = vmatpush1.bf16.msra.mxu1 %v10688_v36  ;;  %v10781_v35 = vld [vmem:[%s11880_s23 + $0x10] ss:$28 sps:$4 sm:$0xff]  }
  0x9c   : > { %2493 = vmatprep.subr.bf16.mxu0 %v10696_v37  ;;  %2945 = vmatprep.subr.bf16.mxu1 %v10699_v38  ;;  %v10784_v36 = vld [vmem:[%s14860_s2 + $0x600] ss:$16 sps:$4 sm:$0xff]   ;;  %v10787_v37 = vld [vmem:[%s11880_s23 + $0x4c] ss:$28 sps:$4 sm:$0xff]   ;;  %v10792_v38 = vld [vmem:[%s14860_s2 + $0x624] ss:$16 sps:$4 sm:$0xff]  }
  0x9e   : > { %2425 = vmatmul.mubr.bf16.gmra.mrb[8].mxu0 %v10693_v39  ;;  %2877 = vmatmul.mubr.bf16.gmra.mrb[8].mxu1 %v10693_v39  ;;  %v10811_v39 = vld [vmem:[%s14860_s2 + $0x608] ss:$16 sps:$4 sm:$0xff]  }
  0x9f   : > { %2494 = vmatpush1.bf16.msra.mxu0 %v10694_v40  ;;  %2946 = vmatpush1.bf16.msra.mxu1 %v10697_v41  ;;  %v10816_v40 = vld [vmem:[%s14860_s2 + $0x62c] ss:$16 sps:$4 sm:$0xff]   ;;  %v10790_v41 = vld [vmem:[%s14860_s2 + $0x620] ss:$16 sps:$4 sm:$0xff]  }
  0xa0   : > { %2495 = vmatprep.subr.bf16.mxu0 %v10702_v42  ;;  %2947 = vmatprep.subr.bf16.mxu1 %v10705_v43  ;;  %v10798_v42 = vld [vmem:[%s14860_s2 + $0x644] ss:$16 sps:$4 sm:$0xff]   ;;  %v10814_v43 = vld [vmem:[%s14860_s2 + $0x628] ss:$16 sps:$4 sm:$0xff]  }
  0xa1   : > { %2434 = vmatprep.mubr.bf16.mxu0 %v10706_v44  ;;  %2886 = vmatprep.mubr.bf16.mxu1 %v10706_v44  ;;  %v10789_v44 = vld [vmem:[%s11880_s23 + $0x48] ss:$28 sps:$4 sm:$0xff]  }
  0xa3   : > { %2496 = vmatpush1.bf16.msra.mxu0 %v10700_v45  ;;  %2948 = vmatpush1.bf16.msra.mxu1 %v10703_v46  ;;  %v10793_v45 = vld [vmem:[%s11880_s23 + $0x84] ss:$28 sps:$4 sm:$0xff]  }
  0xa4   : > { %2497 = vmatprep.subr.bf16.mxu0 %v10711_v47  ;;  %2949 = vmatprep.subr.bf16.mxu1 %v10714_v48  ;;  %v10796_v46 = vld [vmem:[%s14860_s2 + $0x640] ss:$16 sps:$4 sm:$0xff]   ;;  %v10825_v47 = vld [vmem:[%s14860_s2 + $0x64c] ss:$16 sps:$4 sm:$0xff]   ;;  %v10804_v48 = vld [vmem:[%s14860_s2 + $0x664] ss:$16 sps:$4 sm:$0xff]  }
  0xa6   : > { %2435 = vmatmul.mubr.bf16.gmra.mrb[12].mxu0 %v10708_v49  ;;  %2887 = vmatmul.mubr.bf16.gmra.mrb[12].mxu1 %v10708_v49  ;;  %v10823_v49 = vld [vmem:[%s14860_s2 + $0x648] ss:$16 sps:$4 sm:$0xff]  }
  0xa7   : > { %2498 = vmatpush1.bf16.msra.mxu0 %v10709_v50  ;;  %2950 = vmatpush1.bf16.msra.mxu1 %v10712_v51  ;;  %v10828_v50 = vld [vmem:[%s14860_s2 + $0x66c] ss:$16 sps:$4 sm:$0xff]  }
  0xa8   : > { %2499 = vmatprep.subr.bf16.mxu0 %v10717_v52  ;;  %2951 = vmatprep.subr.bf16.mxu1 %v10720_v53  ;;  %v10795_v51 = vld [vmem:[%s11880_s23 + $0x80] ss:$28 sps:$4 sm:$0xff]  }
  0xa9   : > { %2444 = vmatprep.mubr.bf16.mxu0 %v10721_v54  ;;  %2896 = vmatprep.mubr.bf16.mxu1 %v10721_v54  ;;  %v10802_v52 = vld [vmem:[%s14860_s2 + $0x660] ss:$16 sps:$4 sm:$0xff]   ;;  %v10799_v53 = vld [vmem:[%s11880_s23 + $0xbc] ss:$28 sps:$4 sm:$0xff]   ;;  %v10810_v54 = vld [vmem:[%s14860_s2 + $0x684] ss:$16 sps:$4 sm:$0xff]  }
  0xab   : > { %2500 = vmatpush1.bf16.msra.mxu0 %v10715_v55  ;;  %2952 = vmatpush1.bf16.msra.mxu1 %v10718_v56  ;;  %v10826_v55 = vld [vmem:[%s14860_s2 + $0x668] ss:$16 sps:$4 sm:$0xff]   ;;  %v10808_v56 = vld [vmem:[%s14860_s2 + $0x680] ss:$16 sps:$4 sm:$0xff]  }
  0xac   : > { %2501 = vmatprep.subr.bf16.mxu0 %v10726_v57  ;;  %2953 = vmatprep.subr.bf16.mxu1 %v10729_v58  ;;  %v10837_v57 = vld [vmem:[%s14860_s2 + $0x68c] ss:$16 sps:$4 sm:$0xff]   ;;  %v10822_v58 = vld [vmem:[%s14860_s2 + $0x6a4] ss:$16 sps:$4 sm:$0xff]  }
  0xae   : > { %2445 = vmatmul.mubr.bf16.gmra.mrb[16].mxu0 %v10723_v59  ;;  %2897 = vmatmul.mubr.bf16.gmra.mrb[16].mxu1 %v10723_v59  ;;  %v10835_v59 = vld [vmem:[%s14860_s2 + $0x688] ss:$16 sps:$4 sm:$0xff]  }
  0xaf   : > { %2502 = vmatpush1.bf16.msra.mxu0 %v10724_v60  ;;  %2954 = vmatpush1.bf16.msra.mxu1 %v10727_v61  ;;  %v10840_v60 = vld [vmem:[%s14860_s2 + $0x6ac] ss:$16 sps:$4 sm:$0xff]   ;;  %v10820_v61 = vld [vmem:[%s14860_s2 + $0x6a0] ss:$16 sps:$4 sm:$0xff]  }
  0xb0   : > { %2503 = vmatprep.subr.bf16.mxu0 %v10732_v62  ;;  %2955 = vmatprep.subr.bf16.mxu1 %v10735_v63  ;;  %v10834_v62 = vld [vmem:[%s14860_s2 + $0x6c4] ss:$16 sps:$4 sm:$0xff]   ;;  %v10838_v63 = vld [vmem:[%s14860_s2 + $0x6a8] ss:$16 sps:$4 sm:$0xff]  }
  0xb1   : > { %2454 = vmatprep.mubr.bf16.mxu0 %v10736_v0  ;;  %2906 = vmatprep.mubr.bf16.mxu1 %v10736_v0  ;;  %v10801_v0 = vld [vmem:[%s11880_s23 + $0xb8] ss:$28 sps:$4 sm:$0xff]  }
  0xb3   : > { %2504 = vmatpush1.bf16.msra.mxu0 %v10730_v1  ;;  %2956 = vmatpush1.bf16.msra.mxu1 %v10733_v2  ;;  %v10805_v1 = vld [vmem:[%s11880_s23 + $0xf4] ss:$28 sps:$4 sm:$0xff]  }
  0xb4   : > { %2505 = vmatprep.subr.bf16.mxu0 %v10741_v3  ;;  %2957 = vmatprep.subr.bf16.mxu1 %v10744_v4  ;;  %v10832_v2 = vld [vmem:[%s14860_s2 + $0x6c0] ss:$16 sps:$4 sm:$0xff]   ;;  %v10849_v3 = vld [vmem:[%s14860_s2 + $0x6cc] ss:$16 sps:$4 sm:$0xff]   ;;  %v10846_v4 = vld [vmem:[%s14860_s2 + $0x6e4] ss:$16 sps:$4 sm:$0xff]  }
  0xb6   : > { %2455 = vmatmul.mubr.bf16.gmra.mrb[20].mxu0 %v10738_v5  ;;  %2907 = vmatmul.mubr.bf16.gmra.mrb[20].mxu1 %v10738_v5  ;;  %v10847_v5 = vld [vmem:[%s14860_s2 + $0x6c8] ss:$16 sps:$4 sm:$0xff]  }
  0xb7   : > { %2506 = vmatpush1.bf16.msra.mxu0 %v10739_v6  ;;  %2958 = vmatpush1.bf16.msra.mxu1 %v10742_v7  ;;  %v10852_v6 = vld [vmem:[%s14860_s2 + $0x6ec] ss:$16 sps:$4 sm:$0xff]   ;;  %v10844_v7 = vld [vmem:[%s14860_s2 + $0x6e0] ss:$16 sps:$4 sm:$0xff]  }
  0xb8   : > { %2507 = vmatprep.subr.bf16.mxu0 %v10747_v8  ;;  %2959 = vmatprep.subr.bf16.mxu1 %v10750_v9  ;;  %v10850_v8 = vld [vmem:[%s14860_s2 + $0x6e8] ss:$16 sps:$4 sm:$0xff]   ;;  %v10863_v9 = vld [vmem:[%s14862_s4 + $0x4] ss:$8 sps:$4 sm:$0xff]  }
  0xb9   : > { %2464 = vmatprep.mubr.bf16.mxu0 %v10751_v10  ;;  %2916 = vmatprep.mubr.bf16.mxu1 %v10751_v10  ;;  %v10807_v10 = vld [vmem:[%s11880_s23 + $0xf0] ss:$28 sps:$4 sm:$0xff]  }
  0xbb   : > { %2508 = vmatpush1.bf16.msra.mxu0 %v10745_v11  ;;  %2960 = vmatpush1.bf16.msra.mxu1 %v10748_v12  ;;  %v10817_v11 = vld [vmem:[%s11880_s23 + $0x12c] ss:$28 sps:$4 sm:$0xff]  }
  0xbc   : > { %2509 = vmatprep.subr.bf16.mxu0 %v10756_v13  ;;  %2961 = vmatprep.subr.bf16.mxu1 %v10759_v14  ;;  %v10819_v12 = vld [vmem:[%s11880_s23 + $0x128] ss:$28 sps:$4 sm:$0xff]   ;;  %v10831_v14 = vld [vmem:[%s11880_s23 + $0x160] ss:$28 sps:$4 sm:$0xff]  }
  0xbd   : > { %v10829_v13 = vld [vmem:[%s11880_s23 + $0x164] ss:$28 sps:$4 sm:$0xff]  }
  0xbe   : > { %2465 = vmatmul.mubr.bf16.gmra.mrb[24].mxu0 %v10753_v15  ;;  %2917 = vmatmul.mubr.bf16.gmra.mrb[24].mxu1 %v10753_v15  ;;  %v10841_v15 = vld [vmem:[%s11880_s23 + $0x19c] ss:$28 sps:$4 sm:$0xff]  }
  0xbf   : > { %2510 = vmatpush1.bf16.msra.mxu0 %v10754_v16  ;;  %2962 = vmatpush1.bf16.msra.mxu1 %v10757_v17  ;;  %v10843_v16 = vld [vmem:[%s11880_s23 + $0x198] ss:$28 sps:$4 sm:$0xff]   ;;  %v14874_v17 = vmov 0  }
  0xc0   : > { %2511 = vmatprep.subr.bf16.mxu0 %v10762_v18  ;;  %2963 = vmatprep.subr.bf16.mxu1 %v10765_v19  ;;  %v10853_v18 = vld [vmem:[%s11880_s23 + $0x18] ss:$28 sps:$4 sm:$0xff]   ;;  %v10861_v19 = vld [vmem:[%s14862_s4] ss:$8 sps:$4 sm:$0xff]  }
  0xc1   : > { %2474 = vmatprep.mubr.bf16.mxu0 %v10766_v20  ;;  %2926 = vmatprep.mubr.bf16.mxu1 %v10766_v20  ;;  %v10866_v20 = vld [vmem:[%s14862_s4 + $0x14] ss:$8 sps:$4 sm:$0xff]  }
  0xc3   : > { %2512 = vmatpush1.bf16.msra.mxu0 %v10760_v21  ;;  %2964 = vmatpush1.bf16.msra.mxu1 %v10763_v22  ;;  %v10864_v21 = vld [vmem:[%s14862_s4 + $0x10] ss:$8 sps:$4 sm:$0xff]   ;;  %v10869_v22 = vld [vmem:[%s14862_s4 + $0x24] ss:$8 sps:$4 sm:$0xff]  }
  0xc4   : > { %2513 = vmatprep.subr.bf16.mxu0 %v10771_v23  ;;  %2965 = vmatprep.subr.bf16.mxu1 %v10774_v25  ;;  %v10854_v23 = vld [vmem:[%s11880_s23 + $0x50] ss:$28 sps:$4 sm:$0xff]   ;;  %v10872_v25 = vld [vmem:[%s14862_s4 + $0x34] ss:$8 sps:$4 sm:$0xff]  }
  0xc6   : > { %2475 = vmatmul.mubr.bf16.gmra.mrb[28].mxu0 %v10768_v24  ;;  %2927 = vmatmul.mubr.bf16.gmra.mrb[28].mxu1 %v10768_v24  ;;  %v10867_v24 = vld [vmem:[%s14862_s4 + $0x20] ss:$8 sps:$4 sm:$0xff]  }
  0xc7   : > { %2514 = vmatpush1.bf16.msra.mxu0 %v10769_v26  ;;  %2966 = vmatpush1.bf16.msra.mxu1 %v10772_v27  ;;  %v10870_v26 = vld [vmem:[%s14862_s4 + $0x30] ss:$8 sps:$4 sm:$0xff]   ;;  %v10875_v27 = vld [vmem:[%s14862_s4 + $0x44] ss:$8 sps:$4 sm:$0xff]  }
  0xc8   : > { %2515 = vmatprep.subr.bf16.mxu0 %v10777_v28  ;;  %2967 = vmatprep.subr.bf16.mxu1 %v10780_v29  ;;  %v10855_v28 = vld [vmem:[%s11880_s23 + $0x88] ss:$28 sps:$4 sm:$0xff]  }
  0xc9   : > { %2517 = vmatprep.mubr.bf16.mxu0 %v10783_v31  ;;  %2969 = vmatprep.mubr.bf16.mxu1 %v10783_v31  ;;  %v10873_v29 = vld [vmem:[%s14862_s4 + $0x40] ss:$8 sps:$4 sm:$0xff]   ;;  %v10876_v31 = vld [vmem:[%s14862_s4 + $0x50] ss:$8 sps:$4 sm:$0xff]  }
  0xcb   : > { %2516 = vmatpush1.bf16.msra.mxu0 %v10775_v30  ;;  %2968 = vmatpush1.bf16.msra.mxu1 %v10778_v32  ;;  %v10878_v30 = vld [vmem:[%s14862_s4 + $0x54] ss:$8 sps:$4 sm:$0xff]   ;;  %v10881_v32 = vld [vmem:[%s14862_s4 + $0x64] ss:$8 sps:$4 sm:$0xff]  }
  0xcc   : > { %2598 = vmatprep.subr.bf16.mxu0 %v10786_v33  ;;  %3050 = vmatprep.subr.bf16.mxu1 %v10813_v34  ;;  %v10856_v33 = vld [vmem:[%s11880_s23 + $0xc0] ss:$28 sps:$4 sm:$0xff]  }
  0xcd   : > { %v10879_v34 = vld [vmem:[%s14862_s4 + $0x60] ss:$8 sps:$4 sm:$0xff]  }
  0xce   : > { %2518 = vmatmul.mubr.bf16.vlgmr.msra.gmra.mrb[0].mxu0 %v10781_v35  ;;  %2970 = vmatmul.mubr.bf16.vlgmr.msra.gmra.mrb[0].mxu1 %v10781_v35  ;;  %v10884_v35 = vld [vmem:[%s14862_s4 + $0x74] ss:$8 sps:$4 sm:$0xff]  }
  0xcf   : > { %2599 = vmatpush1.bf16.msra.mxu0 %v10784_v36  ;;  %2527 = vmatprep.mubr.bf16.mxu0 %v10787_v37  ;;  %v10882_v36 = vld [vmem:[%s14862_s4 + $0x70] ss:$8 sps:$4 sm:$0xff]  }
  0xd0   : > { %2979 = vmatprep.mubr.bf16.mxu1 %v10787_v37  ;;  %2600 = vmatprep.subr.bf16.mxu0 %v10792_v38  ;;  %v10887_v37 = vld [vmem:[%s14862_s4 + $0x84] ss:$8 sps:$4 sm:$0xff]   ;;  %v10857_v38 = vld [vmem:[%s11880_s23 + $0xf8] ss:$28 sps:$4 sm:$0xff]  }
  0xd1   : > { %3051 = vmatpush1.bf16.msra.mxu1 %v10811_v39  ;;  %v10885_v39 = vld [vmem:[%s14862_s4 + $0x80] ss:$8 sps:$4 sm:$0xff]  }
  0xd2   : > { %3052 = vmatprep.subr.bf16.mxu1 %v10816_v40  ;;  %v10890_v40 = vld [vmem:[%s14862_s4 + $0x94] ss:$8 sps:$4 sm:$0xff]  }
  0xd3   : > { %2601 = vmatpush1.bf16.msra.mxu0 %v10790_v41  ;;  %v10888_v41 = vld [vmem:[%s14862_s4 + $0x90] ss:$8 sps:$4 sm:$0xff]  }
  0xd4   : > { %2602 = vmatprep.subr.bf16.mxu0 %v10798_v42  ;;  %v10893_v42 = vld [vmem:[%s14862_s4 + $0xa4] ss:$8 sps:$4 sm:$0xff]  }
  0xd5   : > { %3053 = vmatpush1.bf16.msra.mxu1 %v10814_v43  ;;  %v10858_v43 = vld [vmem:[%s11880_s23 + $0x130] ss:$28 sps:$4 sm:$0xff]  }
  0xd6   : > { %2528 = vmatmul.mubr.bf16.gmra.mrb[4].mxu0 %v10789_v44  ;;  %2980 = vmatmul.mubr.bf16.gmra.mrb[4].mxu1 %v10789_v44  ;;  %v10891_v44 = vld [vmem:[%s14862_s4 + $0xa0] ss:$8 sps:$4 sm:$0xff]  }
  0xd7   : > { %2537 = vmatprep.mubr.bf16.mxu0 %v10793_v45  ;;  %2989 = vmatprep.mubr.bf16.mxu1 %v10793_v45  ;;  %v10896_v45 = vld [vmem:[%s14862_s4 + $0xb4] ss:$8 sps:$4 sm:$0xff]  }
  0xd8   : > { %2603 = vmatpush1.bf16.msra.mxu0 %v10796_v46  ;;  %3054 = vmatprep.subr.bf16.mxu1 %v10825_v47  ;;  %v10894_v46 = vld [vmem:[%s14862_s4 + $0xb0] ss:$8 sps:$4 sm:$0xff]   ;;  %v10899_v47 = vld [vmem:[%s14862_s4 + $0xc4] ss:$8 sps:$4 sm:$0xff]  }
  0xd9   : > { %2604 = vmatprep.subr.bf16.mxu0 %v10804_v48  ;;  %3055 = vmatpush1.bf16.msra.mxu1 %v10823_v49  ;;  %v10859_v48 = vld [vmem:[%s11880_s23 + $0x168] ss:$28 sps:$4 sm:$0xff]  }
  0xda   : > { %3056 = vmatprep.subr.bf16.mxu1 %v10828_v50  ;;  %v10897_v49 = vld [vmem:[%s14862_s4 + $0xc0] ss:$8 sps:$4 sm:$0xff]  }
  0xdb   : > { %v10860_v50 = vld [vmem:[%s11880_s23 + $0x1a0] ss:$28 sps:$4 sm:$0xff]  }
  0xdc   : > { %2605 = vmatpush1.bf16.msra.mxu0 %v10802_v52  ;;  %v10900_v52 = vld [vmem:[%s14862_s4 + $0xd0] ss:$8 sps:$4 sm:$0xff]  }
  0xdd   : > { %2606 = vmatprep.subr.bf16.mxu0 %v10810_v54  ;;  %3057 = vmatpush1.bf16.msra.mxu1 %v10826_v55  ;;  %v10903_v54 = vld [vmem:[%s14862_s4 + $0xe0] ss:$8 sps:$4 sm:$0xff]   ;;  %v10908_v55 = vld [vmem:[%s14862_s4 + $0xf4] ss:$8 sps:$4 sm:$0xff]  }
  0xde   : > { %2538 = vmatmul.mubr.bf16.gmra.mrb[8].mxu0 %v10795_v51  ;;  %2990 = vmatmul.mubr.bf16.gmra.mrb[8].mxu1 %v10795_v51  ;;  %v10902_v51 = vld [vmem:[%s14862_s4 + $0xd4] ss:$8 sps:$4 sm:$0xff]  }
  0xdf   : > { %2547 = vmatprep.mubr.bf16.mxu0 %v10799_v53  ;;  %2999 = vmatprep.mubr.bf16.mxu1 %v10799_v53  ;;  %v10905_v53 = vld [vmem:[%s14862_s4 + $0xe4] ss:$8 sps:$4 sm:$0xff]  }
  0xe0   : > { %2607 = vmatpush1.bf16.msra.mxu0 %v10808_v56  ;;  %3058 = vmatprep.subr.bf16.mxu1 %v10837_v57  ;;  %v10906_v56 = vld [vmem:[%s14862_s4 + $0xf0] ss:$8 sps:$4 sm:$0xff]   ;;  %v10911_v57 = vld [vmem:[%s14862_s4 + $0x104] ss:$8 sps:$4 sm:$0xff]  }
  0xe1   : > { %2608 = vmatprep.subr.bf16.mxu0 %v10822_v58  ;;  %3059 = vmatpush1.bf16.msra.mxu1 %v10835_v59  ;;  %v831_v58 = vlaneseq }
  0xe2   : > { %3060 = vmatprep.subr.bf16.mxu1 %v10840_v60 }
  0xe3   : > { %v12590_v59 = vshrl.u32 %v831_v58, 7 }
  0xe4   : > { %2609 = vmatpush1.bf16.msra.mxu0 %v10820_v61 }
  0xe5   : > { %2610 = vmatprep.subr.bf16.mxu0 %v10834_v62  ;;  %3061 = vmatpush1.bf16.msra.mxu1 %v10838_v63  ;;  %14894 = vst [vmem:[#allocation2_spill] sm:$0xff] %v12590_v59  ;;  %v12593_v60 = vsub.s32 0, %v12590_v59  ;;  %v12596_v61 = vsub.s32 2, %v12590_v59  ;;  %v829_v62 = vld [vmem:[%s14861_s3] sm:$0xf]  ;;  %v12602_v63 = vsub.s32 1, %v12590_v59 }
  0xe6   : > { %2548 = vmatmul.mubr.bf16.gmra.mrb[12].mxu0 %v10801_v0  ;;  %3000 = vmatmul.mubr.bf16.gmra.mrb[12].mxu1 %v10801_v0  ;;  %v12605_v0 = vsub.s32 3, %v12590_v59  ;;  %v10941_v59 = vld [vmem:[%s14862_s4 + $0x1a4] ss:$8 sps:$4 sm:$0xff]  }
  0xe7   : > { %2557 = vmatprep.mubr.bf16.mxu0 %v10805_v1  ;;  %3009 = vmatprep.mubr.bf16.mxu1 %v10805_v1  ;;  %14895 = vst [vmem:[#allocation3_spill] sm:$0xff] %v12593_v60  ;;  %14896 = vst [vmem:[#allocation4_spill] sm:$0xff] %v12596_v61  ;;  %v12608_v1 = vrot.slane %v829_v62, %v12593_v60 }
  0xe8   : > { %2611 = vmatpush1.bf16.msra.mxu0 %v10832_v2  ;;  %3062 = vmatprep.subr.bf16.mxu1 %v10849_v3  ;;  %14897 = vst [vmem:[#allocation5_spill] sm:$0xff] %v12602_v63  ;;  %14898 = vst [vmem:[#allocation6_spill] sm:$0xff] %v12605_v0  ;;  %v12611_v2 = vrot.slane %v829_v62, %v12596_v61  ;;  %v12614_v3 = vrot.slane %v829_v62, %v12602_v63 }
  0xe9   : > { %2612 = vmatprep.subr.bf16.mxu0 %v10846_v4  ;;  %3063 = vmatpush1.bf16.msra.mxu1 %v10847_v5  ;;  %v12617_v4 = vrot.slane %v829_v62, %v12605_v0 }
  0xea   : > { %3064 = vmatprep.subr.bf16.mxu1 %v10852_v6 }
  0xec   : > { %2613 = vmatpush1.bf16.msra.mxu0 %v10844_v7 }
  0xed   : > { %3065 = vmatpush1.bf16.msra.mxu1 %v10850_v8  ;;  %3783 = vmatprep.subr.bf16.mxu0 %v10863_v9 }
  0xee   : > { %2558 = vmatmul.mubr.bf16.gmra.mrb[16].mxu0 %v10807_v10  ;;  %3010 = vmatmul.mubr.bf16.gmra.mrb[16].mxu1 %v10807_v10 }
  0xef   : > { %2567 = vmatprep.mubr.bf16.mxu0 %v10817_v11  ;;  %3019 = vmatprep.mubr.bf16.mxu1 %v10817_v11 }
  0xf6   : > { %2568 = vmatmul.mubr.bf16.gmra.mrb[20].mxu0 %v10819_v12  ;;  %3020 = vmatmul.mubr.bf16.gmra.mrb[20].mxu1 %v10819_v12 }
  0xf7   : > { %2577 = vmatprep.mubr.bf16.mxu0 %v10829_v13  ;;  %3029 = vmatprep.mubr.bf16.mxu1 %v10829_v13 }
  0xfe   : > { %2578 = vmatmul.mubr.bf16.gmra.mrb[24].mxu0 %v10831_v14  ;;  %3030 = vmatmul.mubr.bf16.gmra.mrb[24].mxu1 %v10831_v14 }
  0xff   : > { %2587 = vmatprep.mubr.bf16.mxu0 %v10841_v15  ;;  %3039 = vmatprep.mubr.bf16.mxu1 %v10841_v15 }
 0x106   : > { %2588 = vmatmul.mubr.bf16.gmra.mrb[28].mxu0 %v10843_v16  ;;  %3040 = vmatmul.mubr.bf16.gmra.mrb[28].mxu1 %v10843_v16 }
 0x107   : > { %2630 = vmatprep.mubr.bf16.mxu0 %v14874_v17  ;;  %3082 = vmatprep.mubr.bf16.mxu1 %v14874_v17 }
 0x10e   : > { %2631 = vmatmul.mubr.bf16.vlgmr.msra.gmra.mrb[0].mxu0 %v10853_v18  ;;  %3083 = vmatmul.mubr.bf16.vlgmr.msra.gmra.mrb[0].mxu1 %v10853_v18 }
 0x10f   : > { %2640 = vmatprep.mubr.bf16.mxu0 %v14874_v17  ;;  %3092 = vmatprep.mubr.bf16.mxu1 %v14874_v17 }
 0x110   : > { %3784 = vmatpush1.bf16.msra.mxu0 %v10861_v19 }
 0x111   : > { %3785 = vmatprep.subr.bf16.mxu0 %v10866_v20 }
 0x114   : > { %3786 = vmatpush1.bf16.msra.mxu0 %v10864_v21 }
 0x115   : > { %3787 = vmatprep.subr.bf16.mxu0 %v10869_v22 }
 0x116   : > { %2641 = vmatmul.mubr.bf16.gmra.mrb[4].mxu0 %v10854_v23  ;;  %3093 = vmatmul.mubr.bf16.gmra.mrb[4].mxu1 %v10854_v23 }
 0x117   : > { %2650 = vmatprep.mubr.bf16.mxu0 %v14874_v17  ;;  %3102 = vmatprep.mubr.bf16.mxu1 %v14874_v17 }
 0x118   : > { %3788 = vmatpush1.bf16.msra.mxu0 %v10867_v24 }
 0x119   : > { %3789 = vmatprep.subr.bf16.mxu0 %v10872_v25 }
 0x11c   : > { %3790 = vmatpush1.bf16.msra.mxu0 %v10870_v26 }
 0x11d   : > { %3791 = vmatprep.subr.bf16.mxu0 %v10875_v27 }
 0x11e   : > { %2651 = vmatmul.mubr.bf16.gmra.mrb[8].mxu0 %v10855_v28  ;;  %3103 = vmatmul.mubr.bf16.gmra.mrb[8].mxu1 %v10855_v28 }
 0x11f   : > { %2660 = vmatprep.mubr.bf16.mxu0 %v14874_v17  ;;  %3112 = vmatprep.mubr.bf16.mxu1 %v14874_v17 }
 0x120   : > { %3792 = vmatpush1.bf16.msra.mxu0 %v10873_v29 }
 0x121   : > { %3793 = vmatprep.subr.bf16.mxu0 %v10878_v30 }
 0x124   : > { %3794 = vmatpush1.bf16.msra.mxu0 %v10876_v31 }
 0x125   : > { %3795 = vmatprep.subr.bf16.mxu0 %v10881_v32 }
 0x126   : > { %2661 = vmatmul.mubr.bf16.gmra.mrb[12].mxu0 %v10856_v33  ;;  %3113 = vmatmul.mubr.bf16.gmra.mrb[12].mxu1 %v10856_v33 }
 0x127   : > { %2670 = vmatprep.mubr.bf16.mxu0 %v14874_v17  ;;  %3122 = vmatprep.mubr.bf16.mxu1 %v14874_v17 }
 0x128   : > { %3796 = vmatpush1.bf16.msra.mxu0 %v10879_v34 }
 0x129   : > { %3797 = vmatprep.subr.bf16.mxu0 %v10884_v35 }
 0x12c   : > { %3798 = vmatpush1.bf16.msra.mxu0 %v10882_v36 }
 0x12d   : > { %3799 = vmatprep.subr.bf16.mxu0 %v10887_v37 }
 0x12e   : > { %2671 = vmatmul.mubr.bf16.gmra.mrb[16].mxu0 %v10857_v38  ;;  %3123 = vmatmul.mubr.bf16.gmra.mrb[16].mxu1 %v10857_v38 }
 0x12f   : > { %2680 = vmatprep.mubr.bf16.mxu0 %v14874_v17  ;;  %3132 = vmatprep.mubr.bf16.mxu1 %v14874_v17 }
 0x130   : > { %3800 = vmatpush1.bf16.msra.mxu0 %v10885_v39 }
 0x131   : > { %3801 = vmatprep.subr.bf16.mxu0 %v10890_v40 }
 0x134   : > { %3802 = vmatpush1.bf16.msra.mxu0 %v10888_v41 }
 0x135   : > { %3803 = vmatprep.subr.bf16.mxu0 %v10893_v42  ;;  %v10957_v42 = vld [vmem:[%s14864_s6 + $0x40] sm:$0xff]  }
 0x136   : > { %2681 = vmatmul.mubr.bf16.gmra.mrb[20].mxu0 %v10858_v43  ;;  %3133 = vmatmul.mubr.bf16.gmra.mrb[20].mxu1 %v10858_v43  ;;  %v10958_v43 = vld [vmem:[%s14864_s6] sm:$0xff]  }
 0x137   : > { %2690 = vmatprep.mubr.bf16.mxu0 %v14874_v17  ;;  %3142 = vmatprep.mubr.bf16.mxu1 %v14874_v17 }
 0x138   : > { %3804 = vmatpush1.bf16.msra.mxu0 %v10891_v44  ;;  %v10959_v44 = vld [vmem:[%s14864_s6 + $0x48] sm:$0xff]   ;;  %9730 = vmatprep.subr.bf16.mxu1 %v10957_v42  ;;  %v10964_v42 = vld [vmem:[%s14864_s6 + $0x18] sm:$0xff]  }
 0x139   : > { %3805 = vmatprep.subr.bf16.mxu0 %v10896_v45  ;;  %9731 = vmatpush3.bf16.msra.mxu1 %v10958_v43 }
 0x13a   : > { %9732 = vmatprep.subr.bf16.mxu1 %v10959_v44  ;;  %v10915_v44 = vld [vmem:[%s14862_s4 + $0x120] ss:$8 sps:$4 sm:$0xff]  }
 0x13c   : > { %3806 = vmatpush1.bf16.msra.mxu0 %v10894_v46 }
 0x13d   : > { %3807 = vmatprep.subr.bf16.mxu0 %v10899_v47 }
 0x13e   : > { %2691 = vmatmul.mubr.bf16.gmra.mrb[24].mxu0 %v10859_v48  ;;  %3143 = vmatmul.mubr.bf16.gmra.mrb[24].mxu1 %v10859_v48 }
 0x13f   : > { %2700 = vmatprep.mubr.bf16.mxu0 %v14874_v17  ;;  %3152 = vmatprep.mubr.bf16.mxu1 %v14874_v17 }
 0x140   : > { %3808 = vmatpush1.bf16.msra.mxu0 %v10897_v49 }
 0x141   : > { %3809 = vmatprep.subr.bf16.mxu0 %v10902_v51 }
 0x144   : > { %3810 = vmatpush1.bf16.msra.mxu0 %v10900_v52 }
 0x145   : > { %3811 = vmatprep.subr.bf16.mxu0 %v10905_v53 }
 0x146   : > { %2701 = vmatmul.mubr.bf16.gmra.mrb[28].mxu0 %v10860_v50  ;;  %3153 = vmatmul.mubr.bf16.gmra.mrb[28].mxu1 %v10860_v50 }
 0x148   : > { %3812 = vmatpush1.bf16.msra.mxu0 %v10903_v54 }
 0x149   : > { %3813 = vmatprep.subr.bf16.mxu0 %v10908_v55  ;;  %v10960_v55 = vld [vmem:[%s14864_s6 + $0x8] sm:$0xff]  }
 0x14a   : > { %9733 = vmatpush3.bf16.msra.mxu1 %v10960_v55  ;;  %v10920_v55 = vld [vmem:[%s14862_s4 + $0x134] ss:$8 sps:$4 sm:$0xff]  }
 0x14c   : > { %3814 = vmatpush1.bf16.msra.mxu0 %v10906_v56 }
 0x14d   : > { %3896 = vmatprep.subr.bf16.mxu0 %v10911_v57 }
 0x1e1   : > { %v2632_v5 = vpop.f32.mrb[0].mxu0  ;;  %v3084_v6 = vpop.f32.mrb[0].mxu1 }
 0x1e2   : > { %v9922_v7 = vadd.f32 %v2632_v5, %v12608_v1  ;;  %v9954_v8 = vadd.f32 %v3084_v6, %v12611_v2  ;;  %v2634_v9 = vpop.f32.mrb[1].mxu0  ;;  %v3086_v10 = vpop.f32.mrb[1].mxu1  ;;  %v10909_v6 = vld [vmem:[%s14862_s4 + $0x100] ss:$8 sps:$4 sm:$0xff]  }
 0x1e3   : > { %v9923_v11 = vadd.f32 %v2634_v9, %v12614_v3  ;;  %v9955_v12 = vadd.f32 %v3086_v10, %v12617_v4  ;;  %v2636_v13 = vpop.f32.mrb[2].mxu0  ;;  %v3088_v14 = vpop.f32.mrb[2].mxu1  ;;  %v10914_v10 = vld [vmem:[%s14862_s4 + $0x114] ss:$8 sps:$4 sm:$0xff]  }
 0x1e4   : > { %vm3163_vm0 = vcmp.ge.f32.partialorder %v9922_v7, 0.0  ;;  %v3227_v15 = vmul.f32 0.2, %v9922_v7  ;;  %vm3165_vm1 = vcmp.ge.f32.partialorder %v9954_v8, 0.0  ;;  %v3229_v16 = vmul.f32 0.2, %v9954_v8 }
 0x1e5   : > { %vm3164_vm2 = vcmp.ge.f32.partialorder %v9923_v11, 0.0  ;;  %v3228_v18 = vmul.f32 0.2, %v9923_v11  ;;  %v9924_v19 = vadd.f32 %v2636_v13, %v12608_v1  ;;  %v9956_v20 = vadd.f32 %v3088_v14, %v12611_v2  ;;  %v2638_v21 = vpop.f32.mrb[3].mxu0  ;;  %v3090_v22 = vpop.f32.mrb[3].mxu1  ;;  %v10962_v13 = vld [vmem:[%s14864_s6 + $0x10] sm:$0xff]  }
 0x1e6   : > { %vm3166_vm3 = vcmp.ge.f32.partialorder %v9955_v12, 0.0  ;;  %v3230_v23 = vmul.f32 0.2, %v9955_v12  ;;  %v9925_v24 = vadd.f32 %v2638_v21, %v12614_v3  ;;  %v9957_v25 = vadd.f32 %v3090_v22, %v12617_v4 }
 0x1e7   : > { %vm3167_vm4 = vcmp.ge.f32.partialorder %v9924_v19, 0.0  ;;  %v3231_v26 = vmul.f32 0.2, %v9924_v19  ;;  %vm3169_vm5 = vcmp.ge.f32.partialorder %v9956_v20, 0.0  ;;  %v3233_v27 = vmul.f32 0.2, %v9956_v20 }
 0x1e8   : > { %v3291_v28 = vsel %vm3163_vm0, %v9922_v7, %v3227_v15  ;;  %vm3168_vm6 = vcmp.ge.f32.partialorder %v9925_v24, 0.0  ;;  %v3232_v29 = vmul.f32 0.2, %v9925_v24  ;;  %v3234_v30 = vmul.f32 0.2, %v9957_v25 }
 0x1e9   : > { %v12629_v31 = vsel %vm3165_vm1, %v9954_v8, %v3229_v16  ;;  %v3295_v32 = vsel %vm3167_vm4, %v9924_v19, %v3231_v26  ;;  %v12631_v33 = vsel %vm3169_vm5, %v9956_v20, %v3233_v27  ;;  %vm3170_vm7 = vcmp.ge.f32.partialorder %v9957_v25, 0.0  ;;  %v2642_v34 = vpop.f32.mrb[4].mxu0  ;;  %v3094_v35 = vpop.f32.mrb[4].mxu1  ;;  %v10912_v16 = vld [vmem:[%s14862_s4 + $0x110] ss:$8 sps:$4 sm:$0xff]  }
 0x1ea   : > { %v3355_v36 = vpack.c.bf16 %v3295_v32, %v3291_v28  ;;  %v9926_v38 = vadd.f32 %v2642_v34, %v12608_v1  ;;  %v12637_v39 = vadd.f32 %v3094_v35, %v12611_v2  ;;  %v2644_v40 = vpop.f32.mrb[5].mxu0  ;;  %v3096_v41 = vpop.f32.mrb[5].mxu1  ;;  %v3296_v48 = vsel %vm3168_vm6, %v9925_v24, %v3232_v29  ;;  %v10917_v32 = vld [vmem:[%s14862_s4 + $0x124] ss:$8 sps:$4 sm:$0xff]  }
 0x1eb   : > { %v9927_v45 = vadd.f32 %v2644_v40, %v12614_v3  ;;  %v2646_v46 = vpop.f32.mrb[6].mxu0  ;;  %v3098_v47 = vpop.f32.mrb[6].mxu1  ;;  %v12651_v49 = vadd.f32 %v3096_v41, %v12617_v4  ;;  %v3292_v50 = vsel %vm3164_vm2, %v9923_v11, %v3228_v18  ;;  %v12655_v51 = vsel %vm3170_vm7, %v9957_v25, %v3234_v30  ;;  %v10963_v40 = vld [vmem:[%s14864_s6 + $0x58] sm:$0xff]  }
 0x1ec   : > { %vm3171_vm8 = vcmp.ge.f32.partialorder %v9926_v38, 0.0  ;;  %v3235_v52 = vmul.f32 0.2, %v9926_v38  ;;  %v12658_v53 = vmul.f32 0.2, %v12637_v39  ;;  %v12661_v54 = vsel %vm3166_vm3, %v9955_v12, %v3230_v23  ;;  %v2648_v58 = vpop.f32.mrb[7].mxu0 }
 0x1ed   : > { %vm3172_vm9 = vcmp.ge.f32.partialorder %v9927_v45, 0.0  ;;  %v9928_v56 = vadd.f32 %v2646_v46, %v12608_v1  ;;  %v9960_v57 = vadd.f32 %v3098_v47, %v12611_v2  ;;  %v3100_v62 = vpop.f32.mrb[7].mxu1  ;;  %v3356_v5 = vpack.c.bf16 %v3296_v48, %v3292_v50  ;;  %v10961_v12 = vld [vmem:[%s14864_s6 + $0x50] sm:$0xff]   ;;  %v10965_v46 = vld [vmem:[%s14864_s6 + $0x60] sm:$0xff]  }
 0x1ee   : > { %v3236_v7 = vmul.f32 0.2, %v9927_v45  ;;  %v9929_v8 = vadd.f32 %v2648_v58, %v12614_v3  ;;  %v9961_v9 = vadd.f32 %v3100_v62, %v12617_v4  ;;  %vm3174_vm10 = vcmp.ge.f32.partialorder %v12651_v49, 0.0  ;;  %9734 = vmatprep.subr.bf16.mxu1 %v10961_v12  ;;  %v10967_v12 = vld [vmem:[%s14864_s6 + $0x68] sm:$0xff]  }
 0x1ef   : > { %vm3175_vm11 = vcmp.ge.f32.partialorder %v9928_v56, 0.0  ;;  %v3239_v14 = vmul.f32 0.2, %v9928_v56  ;;  %v3241_v15 = vmul.f32 0.2, %v9960_v57  ;;  %3815 = vmatprep.mubr.bf16.mxu0 %v3356_v5  ;;  %vm3177_vm14 = vcmp.ge.f32.partialorder %v9960_v57, 0.0  ;;  %9735 = vmatpush3.bf16.msra.mxu1 %v10962_v13 }
 0x1f0   : > { %vm3176_vm12 = vcmp.ge.f32.partialorder %v9929_v8, 0.0  ;;  %v3240_v18 = vmul.f32 0.2, %v9929_v8  ;;  %vm3178_vm13 = vcmp.ge.f32.partialorder %v9961_v9, 0.0  ;;  %v3242_v19 = vmul.f32 0.2, %v9961_v9  ;;  %3816 = vmatmul.mubr.bf16.vlgmr.msra.gmra.mrb[32].mxu0 %v3355_v36  ;;  %9736 = vmatprep.subr.bf16.mxu1 %v10963_v40 }
 0x1f1   : > { %v3238_v20 = vmul.f32 0.2, %v12651_v49  ;;  %3897 = vmatpush1.bf16.msra.mxu0 %v10909_v6  ;;  %v2652_v21 = vpop.f32.mrb[8].mxu0  ;;  %v12689_v22 = vpop.f32.mrb[8].mxu1  ;;  %v3299_v23 = vsel %vm3171_vm8, %v9926_v38, %v3235_v52  ;;  %v3303_v24 = vsel %vm3175_vm11, %v9928_v56, %v3239_v14  ;;  %v3300_v28 = vsel %vm3172_vm9, %v9927_v45, %v3236_v7 }
 0x1f2   : > { %v9930_v25 = vadd.f32 %v2652_v21, %v12608_v1  ;;  %3898 = vmatprep.subr.bf16.mxu0 %v10914_v10  ;;  %v2654_v26 = vpop.f32.mrb[9].mxu0  ;;  %v3106_v27 = vpop.f32.mrb[9].mxu1  ;;  %v3304_v29 = vsel %vm3176_vm12, %v9929_v8, %v3240_v18  ;;  %v3359_v30 = vpack.c.bf16 %v3303_v24, %v3299_v23  ;;  %vm3173_vm15 = vcmp.ge.f32.partialorder %v12637_v39, 0.0 }
 0x1f3   : > { %v2656_v34 = vpop.f32.mrb[10].mxu0  ;;  %v12700_v35 = vpop.f32.mrb[10].mxu1  ;;  %v3360_v36 = vpack.c.bf16 %v3304_v29, %v3300_v28  ;;  %v12703_v38 = vsel %vm3178_vm13, %v9961_v9, %v3242_v19  ;;  %v12709_v41 = vsel %vm3177_vm14, %v9960_v57, %v3241_v15  ;;  %v9931_v43 = vadd.f32 %v2654_v26, %v12614_v3  ;;  %9737 = vmatpush3.bf16.msra.mxu1 %v10964_v42  ;;  %v10923_v19 = vld [vmem:[%s14862_s4 + $0x144] ss:$8 sps:$4 sm:$0xff]  }
 0x1f4   : > { %v12721_v45 = vsel %vm3174_vm10, %v12651_v49, %v3238_v20  ;;  %v3243_v47 = vmul.f32 0.2, %v9930_v25  ;;  %v9932_v48 = vadd.f32 %v2656_v34, %v12608_v1  ;;  %v2658_v50 = vpop.f32.mrb[11].mxu0  ;;  %v3110_v52 = vpop.f32.mrb[11].mxu1  ;;  %v12736_v49 = vsel %vm3173_vm15, %v12637_v39, %v12658_v53  ;;  %v10918_v39 = vld [vmem:[%s14862_s4 + $0x130] ss:$8 sps:$4 sm:$0xff]   ;;  %9738 = vmatprep.subr.bf16.mxu1 %v10965_v46 }
 0x1f5   : > { %3899 = vmatpush1.bf16.msra.mxu0 %v10912_v16  ;;  %3825 = vmatprep.mubr.bf16.mxu0 %v3360_v36  ;;  %vm3179_vm0 = vcmp.ge.f32.partialorder %v9930_v25, 0.0  ;;  %v9933_v57 = vadd.f32 %v2658_v50, %v12614_v3  ;;  %v9965_v58 = vadd.f32 %v3110_v52, %v12617_v4  ;;  %v9963_v7 = vadd.f32 %v3106_v27, %v12617_v4  ;;  %v10966_v53 = vld [vmem:[%s14864_s6 + $0x20] sm:$0xff]   ;;  %v10968_v28 = vld [vmem:[%s14864_s6 + $0x28] sm:$0xff]   ;;  %v10926_v50 = vld [vmem:[%s14862_s4 + $0x154] ss:$8 sps:$4 sm:$0xff]  }
 0x1f6   : > { %3900 = vmatprep.subr.bf16.mxu0 %v10917_v32  ;;  %vm3183_vm1 = vcmp.ge.f32.partialorder %v9932_v48, 0.0  ;;  %v3247_v8 = vmul.f32 0.2, %v9932_v48  ;;  %v3244_v9 = vmul.f32 0.2, %v9931_v43  ;;  %vm3180_vm3 = vcmp.ge.f32.partialorder %v9931_v43, 0.0 }
 0x1f7   : > { %vm3184_vm2 = vcmp.ge.f32.partialorder %v9933_v57, 0.0  ;;  %v3248_v10 = vmul.f32 0.2, %v9933_v57  ;;  %v3307_v16 = vsel %vm3179_vm0, %v9930_v25, %v3243_v47  ;;  %v3250_v20 = vmul.f32 0.2, %v9965_v58  ;;  %9739 = vmatpush3.bf16.msra.mxu1 %v10966_v53  ;;  %v10969_v32 = vld [vmem:[%s14864_s6 + $0x70] sm:$0xff]  }
 0x1f8   : > { %3826 = vmatmul.mubr.bf16.gmra.mrb[36].mxu0 %v3359_v30  ;;  %v3311_v18 = vsel %vm3183_vm1, %v9932_v48, %v3247_v8  ;;  %v3246_v27 = vmul.f32 0.2, %v9963_v7  ;;  %vm3186_vm4 = vcmp.ge.f32.partialorder %v9965_v58, 0.0  ;;  %v12764_v25 = vadd.f32 %v12689_v22, %v12611_v2  ;;  %9740 = vmatprep.subr.bf16.mxu1 %v10967_v12  ;;  %v10921_v46 = vld [vmem:[%s14862_s4 + $0x140] ss:$8 sps:$4 sm:$0xff]  }
 0x1f9   : > { %v2662_v62 = vpop.f32.mrb[12].mxu0  ;;  %v3114_v5 = vpop.f32.mrb[12].mxu1  ;;  %3901 = vmatpush1.bf16.msra.mxu0 %v10915_v44  ;;  %v3312_v24 = vsel %vm3184_vm2, %v9933_v57, %v3248_v10  ;;  %v3363_v26 = vpack.c.bf16 %v3311_v18, %v3307_v16  ;;  %vm3182_vm5 = vcmp.ge.f32.partialorder %v9963_v7, 0.0  ;;  %v3308_v30 = vsel %vm3180_vm3, %v9931_v43, %v3244_v9  ;;  %v10924_v53 = vld [vmem:[%s14862_s4 + $0x150] ss:$8 sps:$4 sm:$0xff]  }
 0x1fa   : > { %v9934_v13 = vadd.f32 %v2662_v62, %v12608_v1  ;;  %3902 = vmatprep.subr.bf16.mxu0 %v10920_v55  ;;  %v2664_v14 = vpop.f32.mrb[13].mxu0  ;;  %v3116_v15 = vpop.f32.mrb[13].mxu1  ;;  %v12773_v34 = vadd.f32 %v12700_v35, %v12611_v2  ;;  %v3364_v44 = vpack.c.bf16 %v3312_v24, %v3308_v30  ;;  %v12780_v43 = vadd.f32 %v3114_v5, %v12611_v2  ;;  %v10970_v5 = vld [vmem:[%s14864_s6 + $0x30] sm:$0xff]  }
 0x1fb   : > { %v2666_v21 = vpop.f32.mrb[14].mxu0  ;;  %v3118_v23 = vpop.f32.mrb[14].mxu1  ;;  %v9935_v29 = vadd.f32 %v2664_v14, %v12614_v3  ;;  %v12787_v52 = vsel %vm3186_vm4, %v9965_v58, %v3250_v20  ;;  %v12790_v55 = vadd.f32 %v3116_v15, %v12617_v4  ;;  %v12793_v62 = vsel %vm3182_vm5, %v9963_v7, %v3246_v27  ;;  %9741 = vmatpush3.bf16.msra.mxu1 %v10968_v28 }
 0x1fc   : > { %v3251_v36 = vmul.f32 0.2, %v9934_v13  ;;  %v9936_v40 = vadd.f32 %v2666_v21, %v12608_v1  ;;  %v2668_v22 = vpop.f32.mrb[15].mxu0  ;;  %v3120_v42 = vpop.f32.mrb[15].mxu1  ;;  %vm3187_vm6 = vcmp.ge.f32.partialorder %v9934_v13, 0.0  ;;  %14899 = vst [vmem:[#allocation7_spill] sm:$0xff] %v12787_v52  ;;  %3835 = vmatprep.mubr.bf16.mxu0 %v3364_v44  ;;  %9742 = vmatprep.subr.bf16.mxu1 %v10969_v32  ;;  %v12807_v15 = vadd.f32 %v3118_v23, %v12611_v2 }
 0x1fd   : > { %3903 = vmatpush1.bf16.msra.mxu0 %v10918_v39  ;;  %v9937_v47 = vadd.f32 %v2668_v22, %v12614_v3  ;;  %14900 = vst [vmem:[#allocation8_spill] sm:$0xff] %v12793_v62  ;;  %vm3188_vm8 = vcmp.ge.f32.partialorder %v9935_v29, 0.0  ;;  %v3252_v8 = vmul.f32 0.2, %v9935_v29  ;;  %v10929_v21 = vld [vmem:[%s14862_s4 + $0x164] ss:$8 sps:$4 sm:$0xff]   ;;  %v12829_v32 = vadd.f32 %v3120_v42, %v12617_v4 }
 0x1fe   : > { %3904 = vmatprep.subr.bf16.mxu0 %v10923_v19  ;;  %vm3191_vm7 = vcmp.ge.f32.partialorder %v9936_v40, 0.0  ;;  %v3255_v57 = vmul.f32 0.2, %v9936_v40  ;;  %v3315_v10 = vsel %vm3187_vm6, %v9934_v13, %v3251_v36  ;;  %vm3181_vm10 = vcmp.ge.f32.partialorder %v12764_v25, 0.0  ;;  %v10927_v23 = vld [vmem:[%s14862_s4 + $0x160] ss:$8 sps:$4 sm:$0xff]  }
 0x1ff   : > { %vm3192_vm9 = vcmp.ge.f32.partialorder %v9937_v47, 0.0  ;;  %v3256_v39 = vmul.f32 0.2, %v9937_v47  ;;  %v3245_v13 = vmul.f32 0.2, %v12764_v25  ;;  %vm3185_vm11 = vcmp.ge.f32.partialorder %v12773_v34, 0.0  ;;  %9743 = vmatpush3.bf16.msra.mxu1 %v10970_v5 }
 0x200   : > { %3836 = vmatmul.mubr.bf16.gmra.mrb[40].mxu0 %v3363_v26  ;;  %v3319_v12 = vsel %vm3191_vm7, %v9936_v40, %v3255_v57  ;;  %v3249_v26 = vmul.f32 0.2, %v12773_v34  ;;  %v12822_v27 = vmul.f32 0.2, %v12780_v43  ;;  %v12825_v28 = vmul.f32 0.2, %v12790_v55 }
 0x201   : > { %v2672_v48 = vpop.f32.mrb[16].mxu0  ;;  %v3124_v35 = vpop.f32.mrb[16].mxu1  ;;  %3905 = vmatpush1.bf16.msra.mxu0 %v10921_v46  ;;  %v3320_v19 = vsel %vm3192_vm9, %v9937_v47, %v3256_v39  ;;  %v3367_v20 = vpack.c.bf16 %v3319_v12, %v3315_v10  ;;  %v3316_v30 = vsel %vm3188_vm8, %v9935_v29, %v3252_v8  ;;  %v10932_v47 = vld [vmem:[%s14862_s4 + $0x174] ss:$8 sps:$4 sm:$0xff]   ;;  %vm3190_vm15 = vcmp.ge.f32.partialorder %v12790_v55, 0.0 }
 0x202   : > { %v9938_v58 = vadd.f32 %v2672_v48, %v12608_v1  ;;  %v2674_v7 = vpop.f32.mrb[17].mxu0  ;;  %v3126_v9 = vpop.f32.mrb[17].mxu1  ;;  %3906 = vmatprep.subr.bf16.mxu0 %v10926_v50  ;;  %v3368_v46 = vpack.c.bf16 %v3320_v19, %v3316_v30  ;;  %v12836_v48 = vmul.f32 0.2, %v12807_v15  ;;  %v12839_v29 = vadd.f32 %v3124_v35, %v12611_v2 }
 0x203   : > { %v2676_v16 = vpop.f32.mrb[18].mxu0  ;;  %v3128_v18 = vpop.f32.mrb[18].mxu1  ;;  %v9939_v24 = vadd.f32 %v2674_v7, %v12614_v3  ;;  %v12843_v8 = vadd.f32 %v3126_v9, %v12617_v4  ;;  %v10930_v9 = vld [vmem:[%s14862_s4 + $0x170] ss:$8 sps:$4 sm:$0xff]   ;;  %vm3194_vm1 = vcmp.ge.f32.partialorder %v12829_v32, 0.0  ;;  %vm3189_vm6 = vcmp.ge.f32.partialorder %v12780_v43, 0.0 }
 0x204   : > { %v3259_v36 = vmul.f32 0.2, %v9938_v58  ;;  %v9940_v40 = vadd.f32 %v2676_v16, %v12608_v1  ;;  %v2678_v22 = vpop.f32.mrb[19].mxu0  ;;  %v3130_v44 = vpop.f32.mrb[19].mxu1  ;;  %vm3195_vm12 = vcmp.ge.f32.partialorder %v9938_v58, 0.0  ;;  %3845 = vmatprep.mubr.bf16.mxu0 %v3368_v46  ;;  %vm3193_vm9 = vcmp.ge.f32.partialorder %v12807_v15, 0.0 }
 0x205   : > { %3907 = vmatpush1.bf16.msra.mxu0 %v10924_v53  ;;  %v9941_v42 = vadd.f32 %v2678_v22, %v12614_v3  ;;  %v3260_v5 = vmul.f32 0.2, %v9939_v24  ;;  %v12846_v53 = vadd.f32 %v3128_v18, %v12611_v2  ;;  %v12849_v35 = vadd.f32 %v3130_v44, %v12617_v4  ;;  %v10935_v46 = vld [vmem:[%s14862_s4 + $0x184] ss:$8 sps:$4 sm:$0xff]  }
 0x206   : > { %3908 = vmatprep.subr.bf16.mxu0 %v10929_v21  ;;  %vm3199_vm13 = vcmp.ge.f32.partialorder %v9940_v40, 0.0  ;;  %v3263_v39 = vmul.f32 0.2, %v9940_v40  ;;  %vm3196_vm0 = vcmp.ge.f32.partialorder %v9939_v24, 0.0  ;;  %v3323_v18 = vsel %vm3195_vm12, %v9938_v58, %v3259_v36 }
 0x207   : > { %vm3200_vm14 = vcmp.ge.f32.partialorder %v9941_v42, 0.0  ;;  %v3264_v7 = vmul.f32 0.2, %v9941_v42  ;;  %v12859_v21 = vmul.f32 0.2, %v12829_v32 }
 0x208   : > { %3846 = vmatmul.mubr.bf16.gmra.mrb[44].mxu0 %v3367_v20  ;;  %v3327_v19 = vsel %vm3199_vm13, %v9940_v40, %v3263_v39  ;;  %v12870_v58 = vmul.f32 0.2, %v12839_v29  ;;  %v12873_v36 = vmul.f32 0.2, %v12843_v8  ;;  %v10933_v39 = vld [vmem:[%s14862_s4 + $0x180] ss:$8 sps:$4 sm:$0xff]  }
 0x209   : > { %v2682_v50 = vpop.f32.mrb[20].mxu0  ;;  %v3134_v57 = vpop.f32.mrb[20].mxu1  ;;  %3909 = vmatpush1.bf16.msra.mxu0 %v10927_v23  ;;  %v3328_v22 = vsel %vm3200_vm14, %v9941_v42, %v3264_v7  ;;  %v3371_v44 = vpack.c.bf16 %v3327_v19, %v3323_v18  ;;  %v12882_v42 = vmul.f32 0.2, %v12846_v53  ;;  %v12894_v7 = vsel %vm3181_vm10, %v12764_v25, %v3245_v13 }
 0x20a   : > { %v9942_v10 = vadd.f32 %v2682_v50, %v12608_v1  ;;  %v2684_v12 = vpop.f32.mrb[21].mxu0  ;;  %v3136_v16 = vpop.f32.mrb[21].mxu1  ;;  %v12862_v20 = vadd.f32 %v3134_v57, %v12611_v2  ;;  %3910 = vmatprep.subr.bf16.mxu0 %v10932_v47  ;;  %v12879_v47 = vsel %vm3185_vm11, %v12773_v34, %v3249_v26  ;;  %v12885_v50 = vmul.f32 0.2, %v12849_v35  ;;  %14902 = vst [vmem:[#allocation10_spill] sm:$0xff] %v12894_v7 }
 0x20b   : > { %v2686_v23 = vpop.f32.mrb[22].mxu0  ;;  %v3138_v30 = vpop.f32.mrb[22].mxu1  ;;  %v9943_v40 = vadd.f32 %v2684_v12, %v12614_v3  ;;  %14901 = vst [vmem:[#allocation9_spill] sm:$0xff] %v12879_v47  ;;  %v3324_v57 = vsel %vm3196_vm0, %v9939_v24, %v3260_v5  ;;  %v12897_v34 = vadd.f32 %v3136_v16, %v12617_v4  ;;  %v10938_v24 = vld [vmem:[%s14862_s4 + $0x194] ss:$8 sps:$4 sm:$0xff]   ;;  %vm3198_vm10 = vcmp.ge.f32.partialorder %v12843_v8, 0.0 }
 0x20c   : > { %v3267_v12 = vmul.f32 0.2, %v9942_v10  ;;  %v9944_v26 = vadd.f32 %v2686_v23, %v12608_v1  ;;  %v2688_v18 = vpop.f32.mrb[23].mxu0  ;;  %v3140_v19 = vpop.f32.mrb[23].mxu1  ;;  %v3372_v17 = vpack.c.bf16 %v3328_v22, %v3324_v57  ;;  %vm3203_vm2 = vcmp.ge.f32.partialorder %v9942_v10, 0.0 }
 0x20d   : > { %3911 = vmatpush1.bf16.msra.mxu0 %v10930_v9  ;;  %v12904_v5 = vmul.f32 0.2, %v12862_v20  ;;  %v9945_v25 = vadd.f32 %v2688_v18, %v12614_v3  ;;  %v3268_v23 = vmul.f32 0.2, %v9943_v40  ;;  %v12910_v22 = vadd.f32 %v3138_v30, %v12611_v2  ;;  %v10936_v9 = vld [vmem:[%s14862_s4 + $0x190] ss:$8 sps:$4 sm:$0xff]  }
 0x20e   : > { %3912 = vmatprep.subr.bf16.mxu0 %v10935_v46  ;;  %vm3207_vm3 = vcmp.ge.f32.partialorder %v9944_v26, 0.0  ;;  %v3271_v14 = vmul.f32 0.2, %v9944_v26  ;;  %3855 = vmatprep.mubr.bf16.mxu0 %v3372_v17  ;;  %vm3204_vm4 = vcmp.ge.f32.partialorder %v9943_v40, 0.0  ;;  %v12913_v6 = vadd.f32 %v3140_v19, %v12617_v4  ;;  %v10947_v47 = vld [vmem:[%s14862_s4 + $0x1c4] ss:$8 sps:$4 sm:$0xff]  }
 0x20f   : > { %vm3208_vm5 = vcmp.ge.f32.partialorder %v9945_v25, 0.0  ;;  %v3272_v57 = vmul.f32 0.2, %v9945_v25  ;;  %v3331_v17 = vsel %vm3203_vm2, %v9942_v10, %v3267_v12  ;;  %v12933_v0 = vmul.f32 0.2, %v12897_v34 }
 0x210   : > { %3856 = vmatmul.mubr.bf16.gmra.mrb[48].mxu0 %v3371_v44  ;;  %v3335_v37 = vsel %vm3207_vm3, %v9944_v26, %v3271_v14  ;;  %v12936_v14 = vmul.f32 0.2, %v12910_v22  ;;  %v3332_v12 = vsel %vm3204_vm4, %v9943_v40, %v3268_v23  ;;  %vm3202_vm11 = vcmp.ge.f32.partialorder %v12849_v35, 0.0 }
 0x211   : > { %v2692_v13 = vpop.f32.mrb[24].mxu0  ;;  %v3144_v16 = vpop.f32.mrb[24].mxu1  ;;  %3913 = vmatpush1.bf16.msra.mxu0 %v10933_v39  ;;  %v3375_v11 = vpack.c.bf16 %v3335_v37, %v3331_v17  ;;  %v12944_v37 = vmul.f32 0.2, %v12913_v6  ;;  %v10944_v17 = vld [vmem:[%s14862_s4 + $0x1b4] ss:$8 sps:$4 sm:$0xff]  }
 0x212   : > { %v9946_v46 = vadd.f32 %v2692_v13, %v12608_v1  ;;  %v12917_v18 = vadd.f32 %v3144_v16, %v12611_v2  ;;  %v2694_v30 = vpop.f32.mrb[25].mxu0  ;;  %v3146_v56 = vpop.f32.mrb[25].mxu1  ;;  %3914 = vmatprep.subr.bf16.mxu0 %v10938_v24  ;;  %v3336_v16 = vsel %vm3208_vm5, %v9945_v25, %v3272_v57  ;;  %v12950_v24 = vsel %vm3190_vm15, %v12790_v55, %v12825_v28 }
 0x213   : > { %v9947_v19 = vadd.f32 %v2694_v30, %v12614_v3  ;;  %v12926_v44 = vadd.f32 %v3146_v56, %v12617_v4  ;;  %v2696_v39 = vpop.f32.mrb[26].mxu0  ;;  %v3148_v13 = vpop.f32.mrb[26].mxu1  ;;  %v10939_v56 = vld [vmem:[%s14862_s4 + $0x1a0] ss:$8 sps:$4 sm:$0xff]   ;;  %14903 = vst [vmem:[#allocation11_spill] sm:$0xff] %v12950_v24  ;;  %v3376_v30 = vpack.c.bf16 %v3336_v16, %v3332_v12  ;;  %v12973_v16 = vsel %vm3194_vm1, %v12829_v32, %v12859_v21 }
 0x214   : > { %v3275_v10 = vmul.f32 0.2, %v9946_v46  ;;  %vm3211_vm7 = vcmp.ge.f32.partialorder %v9946_v46, 0.0  ;;  %v9948_v40 = vadd.f32 %v2696_v39, %v12608_v1  ;;  %v12954_v25 = vadd.f32 %v3148_v13, %v12611_v2  ;;  %v2698_v23 = vpop.f32.mrb[27].mxu0  ;;  %v3150_v57 = vpop.f32.mrb[27].mxu1  ;;  %14904 = vst [vmem:[#allocation12_spill] sm:$0xff] %v12973_v16 }
 0x215   : > { %v3276_v26 = vmul.f32 0.2, %v9947_v19  ;;  %vm3212_vm8 = vcmp.ge.f32.partialorder %v9947_v19, 0.0  ;;  %3915 = vmatpush1.bf16.msra.mxu0 %v10936_v9  ;;  %v12963_v55 = vmul.f32 0.2, %v12917_v18  ;;  %v9949_v9 = vadd.f32 %v2698_v23, %v12614_v3  ;;  %3865 = vmatprep.mubr.bf16.mxu0 %v3376_v30 }
 0x216   : > { %v12966_v28 = vmul.f32 0.2, %v12926_v44  ;;  %3916 = vmatprep.subr.bf16.mxu0 %v10941_v59  ;;  %vm3215_vm12 = vcmp.ge.f32.partialorder %v9948_v40, 0.0  ;;  %v3279_v12 = vmul.f32 0.2, %v9948_v40  ;;  %v12976_v61 = vadd.f32 %v3150_v57, %v12617_v4 }
 0x217   : > { %v3339_v63 = vsel %vm3211_vm7, %v9946_v46, %v3275_v10  ;;  %vm3197_vm13 = vcmp.ge.f32.partialorder %v12839_v29, 0.0  ;;  %vm3201_vm14 = vcmp.ge.f32.partialorder %v12846_v53, 0.0  ;;  %vm3206_vm15 = vcmp.ge.f32.partialorder %v12897_v34, 0.0  ;;  %v10942_v23 = vld [vmem:[%s14862_s4 + $0x1b0] ss:$8 sps:$4 sm:$0xff]  }
 0x218   : > { %v12983_v59 = vmul.f32 0.2, %v12954_v25  ;;  %vm3216_vm0 = vcmp.ge.f32.partialorder %v9949_v9, 0.0  ;;  %v3280_v32 = vmul.f32 0.2, %v9949_v9  ;;  %3866 = vmatmul.mubr.bf16.gmra.mrb[52].mxu0 %v3375_v11  ;;  %v3340_v21 = vsel %vm3212_vm8, %v9947_v19, %v3276_v26 }
 0x219   : > { %v2702_v39 = vpop.f32.mrb[28].mxu0  ;;  %v3154_v13 = vpop.f32.mrb[28].mxu1  ;;  %vm3205_vm1 = vcmp.ge.f32.partialorder %v12862_v20, 0.0  ;;  %vm3210_vm3 = vcmp.ge.f32.partialorder %v12913_v6, 0.0  ;;  %3917 = vmatpush1.bf16.msra.mxu0 %v10939_v56  ;;  %v3343_v19 = vsel %vm3215_vm12, %v9948_v40, %v3279_v12  ;;  %vm3214_vm5 = vcmp.ge.f32.partialorder %v12926_v44, 0.0 }
 0x21a   : > { %v9950_v46 = vadd.f32 %v2702_v39, %v12608_v1  ;;  %v12991_v10 = vadd.f32 %v3154_v13, %v12611_v2  ;;  %v2704_v57 = vpop.f32.mrb[29].mxu0  ;;  %v3156_v11 = vpop.f32.mrb[29].mxu1  ;;  %3918 = vmatprep.subr.bf16.mxu0 %v10944_v17  ;;  %v3344_v60 = vsel %vm3216_vm0, %v9949_v9, %v3280_v32  ;;  %v3379_v7 = vpack.c.bf16 %v3343_v19, %v3339_v63  ;;  %v10945_v24 = vld [vmem:[%s14862_s4 + $0x1c0] ss:$8 sps:$4 sm:$0xff]  }
 0x21b   : > { %v9951_v30 = vadd.f32 %v2704_v57, %v12614_v3  ;;  %v13001_v56 = vadd.f32 %v3156_v11, %v12617_v4  ;;  %v2706_v39 = vpop.f32.mrb[30].mxu0  ;;  %v3158_v13 = vpop.f32.mrb[30].mxu1  ;;  %vm3218_vm8 = vcmp.ge.f32.partialorder %v12976_v61, 0.0  ;;  %v3282_v40 = vmul.f32 0.2, %v12976_v61 }
 0x21c   : > { %vm3219_vm12 = vcmp.ge.f32.partialorder %v9950_v46, 0.0  ;;  %v3283_v17 = vmul.f32 0.2, %v9950_v46  ;;  %v13013_v12 = vmul.f32 0.2, %v12991_v10  ;;  %v9952_v32 = vadd.f32 %v2706_v39, %v12608_v1  ;;  %v2708_v11 = vpop.f32.mrb[31].mxu0 }
 0x21d   : > { %vm3220_vm0 = vcmp.ge.f32.partialorder %v9951_v30, 0.0  ;;  %v3284_v63 = vmul.f32 0.2, %v9951_v30  ;;  %v3286_v9 = vmul.f32 0.2, %v13001_v56  ;;  %3919 = vmatpush1.bf16.msra.mxu0 %v10942_v23  ;;  %v9984_v57 = vadd.f32 %v3158_v13, %v12611_v2  ;;  %v3160_v19 = vpop.f32.mrb[31].mxu1 }
 0x21e   : > { %v3380_v26 = vpack.c.bf16 %v3344_v60, %v3340_v21  ;;  %v9953_v16 = vadd.f32 %v2708_v11, %v12614_v3  ;;  %v9985_v62 = vadd.f32 %v3160_v19, %v12617_v4  ;;  %3920 = vmatprep.subr.bf16.mxu0 %v10947_v47  ;;  %v10950_v23 = vld [vmem:[%s14862_s4 + $0x1d4] ss:$8 sps:$4 sm:$0xff]   ;;  %v3347_v1 = vsel %vm3219_vm12, %v9950_v46, %v3283_v17  ;;  %v10948_v47 = vld [vmem:[%s14862_s4 + $0x1d0] ss:$8 sps:$4 sm:$0xff]   ;;  %v14917_v17 = vld [vmem:[#allocation10_spill] sm:$0xff] }
 0x21f   : > { %v3348_v52 = vsel %vm3220_vm0, %v9951_v30, %v3284_v63  ;;  %vm3223_vm2 = vcmp.ge.f32.partialorder %v9952_v32, 0.0  ;;  %v3287_v2 = vmul.f32 0.2, %v9952_v32  ;;  %v3289_v39 = vmul.f32 0.2, %v9984_v57  ;;  %v14919_v63 = vld [vmem:[#allocation12_spill] sm:$0xff] }
 0x220   : > { %3875 = vmatprep.mubr.bf16.mxu0 %v3380_v26  ;;  %v3317_v60 = vsel %vm3189_vm6, %v12780_v43, %v12822_v27  ;;  %vm3224_vm7 = vcmp.ge.f32.partialorder %v9953_v16, 0.0  ;;  %v3288_v3 = vmul.f32 0.2, %v9953_v16  ;;  %vm3226_vm4 = vcmp.ge.f32.partialorder %v9985_v62, 0.0  ;;  %v10953_v26 = vld [vmem:[%s14862_s4 + $0x1e4] ss:$8 sps:$4 sm:$0xff]  }
 0x221   : > { %v3290_v4 = vmul.f32 0.2, %v9985_v62  ;;  %3876 = vmatmul.mubr.bf16.gmra.mrb[56].mxu0 %v3379_v7  ;;  %v3351_v21 = vsel %vm3223_vm2, %v9952_v32, %v3287_v2  ;;  %v3321_v46 = vsel %vm3193_vm9, %v12807_v15, %v12836_v48  ;;  %v3326_v43 = vsel %vm3198_vm10, %v12843_v8, %v12873_v36  ;;  %v14923_v32 = vld [vmem:[#allocation5_spill] sm:$0xff] }
 0x222   : > { %3921 = vmatpush1.bf16.msra.mxu0 %v10945_v24  ;;  %v3330_v27 = vsel %vm3202_vm11, %v12849_v35, %v12885_v50  ;;  %v3352_v7 = vsel %vm3224_vm7, %v9953_v16, %v3288_v3  ;;  %v3383_v24 = vpack.c.bf16 %v3351_v21, %v3347_v1  ;;  %v3369_v30 = vpack.c.bf16 %v3321_v46, %v3317_v60 }
 0x223   : > { %3922 = vmatprep.subr.bf16.mxu0 %v10950_v23  ;;  %v3374_v13 = vpack.c.bf16 %v3330_v27, %v3326_v43  ;;  %v3384_v15 = vpack.c.bf16 %v3352_v7, %v3348_v52  ;;  %v3325_v48 = vsel %vm3197_vm13, %v12839_v29, %v12870_v58  ;;  %v3329_v8 = vsel %vm3201_vm14, %v12846_v53, %v12882_v42 }
 0x224   : > { %v3334_v35 = vsel %vm3206_vm15, %v12897_v34, %v12933_v0  ;;  %v3373_v36 = vpack.c.bf16 %v3329_v8, %v3325_v48  ;;  %v3338_v52 = vsel %vm3210_vm3, %v12913_v6, %v12944_v37  ;;  %v3333_v29 = vsel %vm3205_vm1, %v12862_v20, %v12904_v5  ;;  %v10951_v0 = vld [vmem:[%s14862_s4 + $0x1e0] ss:$8 sps:$4 sm:$0xff]   ;;  %v10956_v20 = vld [vmem:[%s14862_s4 + $0x1f4] ss:$8 sps:$4 sm:$0xff]  }
 0x225   : > { %vm14905_vm6 = vcmp.ge.f32.partialorder %v12910_v22, 0.0  ;;  %vm3221_vm9 = vcmp.ge.f32.partialorder %v12991_v10, 0.0  ;;  %vm3225_vm10 = vcmp.ge.f32.partialorder %v9984_v57, 0.0  ;;  %3885 = vmatprep.mubr.bf16.mxu0 %v3384_v15  ;;  %v3378_v6 = vpack.c.bf16 %v3338_v52, %v3334_v35 }
 0x226   : > { %v3337_v53 = vsel %vm14905_vm6, %v12910_v22, %v12936_v14  ;;  %3923 = vmatpush1.bf16.msra.mxu0 %v10948_v47  ;;  %v3342_v42 = vsel %vm3214_vm5, %v12926_v44, %v12966_v28  ;;  %v3346_v50 = vsel %vm3218_vm8, %v12976_v61, %v3282_v40  ;;  %vm14906_vm11 = vcmp.ge.f32.partialorder %v12917_v18, 0.0  ;;  %v10954_v28 = vld [vmem:[%s14862_s4 + $0x1f0] ss:$8 sps:$4 sm:$0xff]  }
 0x227   : > { %v3377_v58 = vpack.c.bf16 %v3337_v53, %v3333_v29  ;;  %3924 = vmatprep.subr.bf16.mxu0 %v10953_v26  ;;  %v3341_v34 = vsel %vm14906_vm11, %v12917_v18, %v12963_v55  ;;  %vm14907_vm13 = vcmp.ge.f32.partialorder %v12954_v25, 0.0  ;;  %v3382_v22 = vpack.c.bf16 %v3346_v50, %v3342_v42  ;;  %v14916_v40 = vld [vmem:[#allocation9_spill] sm:$0xff] }
 0x228   : > { %v3345_v5 = vsel %vm14907_vm13, %v12954_v25, %v12983_v59  ;;  %vm14908_vm14 = vcmp.ge.f32.partialorder %v13001_v56, 0.0  ;;  %v3354_v37 = vsel %vm3226_vm4, %v9985_v62, %v3290_v4  ;;  %v3349_v18 = vsel %vm3221_vm9, %v12991_v10, %v13013_v12 }
 0x229   : > { %v3381_v14 = vpack.c.bf16 %v3345_v5, %v3341_v34  ;;  %v3350_v44 = vsel %vm14908_vm14, %v13001_v56, %v3286_v9  ;;  %3886 = vmatmul.mubr.bf16.gmra.mrb[60].mxu0 %v3383_v24  ;;  %v3353_v55 = vsel %vm3225_vm10, %v9984_v57, %v3289_v39  ;;  %v14909_v25 = vpack.c.bf16 %v12655_v51, %v12661_v54  ;;  %v14913_v51 = vld [vmem:[#allocation7_spill] sm:$0xff]  ;;  %v14914_v54 = vld [vmem:[#allocation8_spill] sm:$0xff] }
 0x22a   : > { %v3386_v61 = vpack.c.bf16 %v3354_v37, %v3350_v44  ;;  %3925 = vmatpush1.bf16.msra.mxu0 %v10951_v0  ;;  %v3385_v16 = vpack.c.bf16 %v3353_v55, %v3349_v18  ;;  %v14910_v62 = vpack.c.bf16 %v12631_v33, %v12629_v31  ;;  %v14911_v59 = vpack.c.bf16 %v12703_v38, %v12721_v45  ;;  %v14920_v9 = vld [vmem:[#allocation11_spill] sm:$0xff]  ;;  %v10971_v33 = vld [vmem:[%s14864_s6 + $0x78] sm:$0xff]  }
 0x22b   : > { %3928 = vmatprep.mubr.bf16.mxu0 %v14909_v25  ;;  %3926 = vmatprep.subr.bf16.mxu0 %v10956_v20  ;;  %v14912_v10 = vpack.c.bf16 %v12709_v41, %v12736_v49  ;;  %v14915_v56 = vpack.c.bf16 %v14913_v51, %v14914_v54  ;;  %v14918_v12 = vpack.c.bf16 %v14916_v40, %v14917_v17  ;;  %v10972_v38 = vld [vmem:[%s14864_s6 + $0x38] sm:$0xff]   ;;  %v3451_v41 = vld [vmem:[%s14863_s5] sm:$0x3]  ;;  %v14922_v45 = vld [vmem:[#allocation3_spill] sm:$0xff] }
 0x22c   : > { %v14921_v31 = vpack.c.bf16 %v14919_v63, %v14920_v9  ;;  %9744 = vmatprep.subr.bf16.mxu1 %v10971_v33  ;;  %v13139_v49 = vrot.slane %v3451_v41, %v14922_v45  ;;  %v13142_v57 = vrot.slane %v3451_v41, %v14923_v32 }
 0x22d   : > { %9745 = vmatpush3.bf16.msra.mxu1 %v10972_v38 }
 0x22e   : > { %3927 = vmatpush1.bf16.msra.mxu0 %v10954_v28 }
 0x231   : > { %3929 = vmatmul.mubr.bf16.vlgmr.msra.gmra.mrb[32].mxu0 %v14910_v62 }
 0x232   : > { %3938 = vmatprep.mubr.bf16.mxu0 %v14911_v59 }
 0x239   : > { %3939 = vmatmul.mubr.bf16.gmra.mrb[36].mxu0 %v14912_v10 }
 0x23a   : > { %3948 = vmatprep.mubr.bf16.mxu0 %v14915_v56 }
 0x241   : > { %3949 = vmatmul.mubr.bf16.gmra.mrb[40].mxu0 %v14918_v12 }
 0x242   : > { %3958 = vmatprep.mubr.bf16.mxu0 %v14921_v31 }
 0x249   : > { %3959 = vmatmul.mubr.bf16.gmra.mrb[44].mxu0 %v3369_v30 }
 0x24a   : > { %3968 = vmatprep.mubr.bf16.mxu0 %v3374_v13 }
 0x251   : > { %3969 = vmatmul.mubr.bf16.gmra.mrb[48].mxu0 %v3373_v36 }
 0x252   : > { %3978 = vmatprep.mubr.bf16.mxu0 %v3378_v6 }
 0x259   : > { %3979 = vmatmul.mubr.bf16.gmra.mrb[52].mxu0 %v3377_v58 }
 0x25a   : > { %3988 = vmatprep.mubr.bf16.mxu0 %v3382_v22 }
 0x261   : > { %3989 = vmatmul.mubr.bf16.gmra.mrb[56].mxu0 %v3381_v14 }
 0x262   : > { %3998 = vmatprep.mubr.bf16.mxu0 %v3386_v61 }
 0x269   : > { %3999 = vmatmul.mubr.bf16.gmra.mrb[60].mxu0 %v3385_v16 }
 0x304   : > { %v3930_v11 = vpop.f32.mrb[32].mxu0 }
 0x305   : > { %v9986_v19 = vadd.f32 %v3930_v11, %v13139_v49  ;;  %v3932_v23 = vpop.f32.mrb[33].mxu0 }
 0x306   : > { %v9987_v1 = vadd.f32 %v3932_v23, %v13142_v57  ;;  %v3934_v2 = vpop.f32.mrb[34].mxu0 }
 0x307   : > { %v4041_v39 = vmul.f32 0.2, %v9986_v19  ;;  %v9988_v60 = vadd.f32 %v3934_v2, %v13139_v49  ;;  %v3936_v3 = vpop.f32.mrb[35].mxu0  ;;  %vm4009_vm15 = vcmp.ge.f32.partialorder %v9986_v19, 0.0 }
 0x308   : > { %v4042_v4 = vmul.f32 0.2, %v9987_v1  ;;  %v9989_v47 = vadd.f32 %v3936_v3, %v13142_v57  ;;  %vm4010_vm1 = vcmp.ge.f32.partialorder %v9987_v1, 0.0 }
 0x309   : > { %vm4011_vm2 = vcmp.ge.f32.partialorder %v9988_v60, 0.0  ;;  %v4043_v21 = vmul.f32 0.2, %v9988_v60  ;;  %v4073_v43 = vsel %vm4009_vm15, %v9986_v19, %v4041_v39 }
 0x30a   : > { %vm4012_vm3 = vcmp.ge.f32.partialorder %v9989_v47, 0.0  ;;  %v4044_v46 = vmul.f32 0.2, %v9989_v47  ;;  %v4074_v26 = vsel %vm4010_vm1, %v9987_v1, %v4042_v4 }
 0x30b   : > { %v4075_v27 = vsel %vm4011_vm2, %v9988_v60, %v4043_v21 }
 0x30c   : > { %v4105_v7 = vpack.c.bf16 %v4075_v27, %v4073_v43  ;;  %v3940_v24 = vpop.f32.mrb[36].mxu0  ;;  %v4076_v30 = vsel %vm4012_vm3, %v9989_v47, %v4044_v46 }
 0x30d   : > { %v9990_v13 = vadd.f32 %v3940_v24, %v13139_v49  ;;  %v3942_v15 = vpop.f32.mrb[37].mxu0  ;;  %v4106_v48 = vpack.c.bf16 %v4076_v30, %v4074_v26 }
 0x30e   : > { %v9991_v8 = vadd.f32 %v3942_v15, %v13142_v57  ;;  %v3944_v35 = vpop.f32.mrb[38].mxu0 }
 0x30f   : > { %v4045_v36 = vmul.f32 0.2, %v9990_v13  ;;  %v9992_v52 = vadd.f32 %v3944_v35, %v13139_v49  ;;  %v3946_v29 = vpop.f32.mrb[39].mxu0  ;;  %4288 = vmatprep.mubr.bf16.mxu1 %v4106_v48  ;;  %vm4013_vm4 = vcmp.ge.f32.partialorder %v9990_v13, 0.0 }
 0x310   : > { %v4046_v53 = vmul.f32 0.2, %v9991_v8  ;;  %v9993_v0 = vadd.f32 %v3946_v29, %v13142_v57  ;;  %4289 = vmatmul.mubr.bf16.vlgmr.msra.gmra.mrb[32].mxu1 %v4105_v7  ;;  %vm4014_vm5 = vcmp.ge.f32.partialorder %v9991_v8, 0.0 }
 0x311   : > { %vm4015_vm7 = vcmp.ge.f32.partialorder %v9992_v52, 0.0  ;;  %v4047_v6 = vmul.f32 0.2, %v9992_v52  ;;  %v4077_v20 = vsel %vm4013_vm4, %v9990_v13, %v4045_v36 }
 0x312   : > { %vm4016_vm8 = vcmp.ge.f32.partialorder %v9993_v0, 0.0  ;;  %v4048_v58 = vmul.f32 0.2, %v9993_v0  ;;  %v4078_v34 = vsel %vm4014_vm5, %v9991_v8, %v4046_v53 }
 0x313   : > { %v4079_v42 = vsel %vm4015_vm7, %v9992_v52, %v4047_v6 }
 0x314   : > { %v3950_v50 = vpop.f32.mrb[40].mxu0  ;;  %v4080_v5 = vsel %vm4016_vm8, %v9993_v0, %v4048_v58  ;;  %v4107_v22 = vpack.c.bf16 %v4079_v42, %v4077_v20 }
 0x315   : > { %v9994_v14 = vadd.f32 %v3950_v50, %v13139_v49  ;;  %v3952_v44 = vpop.f32.mrb[41].mxu0  ;;  %v4108_v37 = vpack.c.bf16 %v4080_v5, %v4078_v34 }
 0x316   : > { %v9995_v61 = vadd.f32 %v3952_v44, %v13142_v57  ;;  %v3954_v18 = vpop.f32.mrb[42].mxu0 }
 0x317   : > { %v4049_v55 = vmul.f32 0.2, %v9994_v14  ;;  %v9996_v25 = vadd.f32 %v3954_v18, %v13139_v49  ;;  %v3956_v28 = vpop.f32.mrb[43].mxu0  ;;  %4296 = vmatprep.mubr.bf16.mxu1 %v4108_v37  ;;  %vm4017_vm12 = vcmp.ge.f32.partialorder %v9994_v14, 0.0 }
 0x318   : > { %v4050_v16 = vmul.f32 0.2, %v9995_v61  ;;  %v9997_v62 = vadd.f32 %v3956_v28, %v13142_v57  ;;  %4297 = vmatmul.mubr.bf16.gmra.mrb[36].mxu1 %v4107_v22  ;;  %vm4018_vm0 = vcmp.ge.f32.partialorder %v9995_v61, 0.0 }
 0x319   : > { %vm4019_vm6 = vcmp.ge.f32.partialorder %v9996_v25, 0.0  ;;  %v4051_v59 = vmul.f32 0.2, %v9996_v25  ;;  %v4081_v51 = vsel %vm4017_vm12, %v9994_v14, %v4049_v55 }
 0x31a   : > { %vm4020_vm9 = vcmp.ge.f32.partialorder %v9997_v62, 0.0  ;;  %v4052_v10 = vmul.f32 0.2, %v9997_v62  ;;  %v4082_v40 = vsel %vm4018_vm0, %v9995_v61, %v4050_v16 }
 0x31b   : > { %v4083_v54 = vsel %vm4019_vm6, %v9996_v25, %v4051_v59 }
 0x31c   : > { %v3960_v56 = vpop.f32.mrb[44].mxu0  ;;  %v4084_v17 = vsel %vm4020_vm9, %v9997_v62, %v4052_v10  ;;  %v4109_v12 = vpack.c.bf16 %v4083_v54, %v4081_v51 }
 0x31d   : > { %v9998_v63 = vadd.f32 %v3960_v56, %v13139_v49  ;;  %v3962_v9 = vpop.f32.mrb[45].mxu0  ;;  %v4110_v31 = vpack.c.bf16 %v4084_v17, %v4082_v40 }
 0x31e   : > { %v9999_v33 = vadd.f32 %v3962_v9, %v13142_v57  ;;  %v3964_v38 = vpop.f32.mrb[46].mxu0 }
 0x31f   : > { %v4053_v41 = vmul.f32 0.2, %v9998_v63  ;;  %v10000_v11 = vadd.f32 %v3964_v38, %v13139_v49  ;;  %v3966_v19 = vpop.f32.mrb[47].mxu0  ;;  %4304 = vmatprep.mubr.bf16.mxu1 %v4110_v31  ;;  %vm4021_vm10 = vcmp.ge.f32.partialorder %v9998_v63, 0.0 }
 0x320   : > { %v4054_v23 = vmul.f32 0.2, %v9999_v33  ;;  %v10001_v1 = vadd.f32 %v3966_v19, %v13142_v57  ;;  %4305 = vmatmul.mubr.bf16.gmra.mrb[40].mxu1 %v4109_v12  ;;  %vm4022_vm11 = vcmp.ge.f32.partialorder %v9999_v33, 0.0 }
 0x321   : > { %vm4023_vm13 = vcmp.ge.f32.partialorder %v10000_v11, 0.0  ;;  %v4055_v2 = vmul.f32 0.2, %v10000_v11  ;;  %v4085_v60 = vsel %vm4021_vm10, %v9998_v63, %v4053_v41 }
 0x322   : > { %vm4024_vm14 = vcmp.ge.f32.partialorder %v10001_v1, 0.0  ;;  %v4056_v39 = vmul.f32 0.2, %v10001_v1  ;;  %v4086_v47 = vsel %vm4022_vm11, %v9999_v33, %v4054_v23 }
 0x323   : > { %v4087_v3 = vsel %vm4023_vm13, %v10000_v11, %v4055_v2 }
 0x324   : > { %v3970_v4 = vpop.f32.mrb[48].mxu0  ;;  %v4088_v21 = vsel %vm4024_vm14, %v10001_v1, %v4056_v39  ;;  %v4111_v46 = vpack.c.bf16 %v4087_v3, %v4085_v60 }
 0x325   : > { %v10002_v43 = vadd.f32 %v3970_v4, %v13139_v49  ;;  %v3972_v27 = vpop.f32.mrb[49].mxu0  ;;  %v4112_v7 = vpack.c.bf16 %v4088_v21, %v4086_v47 }
 0x326   : > { %v10003_v24 = vadd.f32 %v3972_v27, %v13142_v57  ;;  %v3974_v26 = vpop.f32.mrb[50].mxu0 }
 0x327   : > { %v4057_v30 = vmul.f32 0.2, %v10002_v43  ;;  %v10004_v13 = vadd.f32 %v3974_v26, %v13139_v49  ;;  %v3976_v15 = vpop.f32.mrb[51].mxu0  ;;  %4312 = vmatprep.mubr.bf16.mxu1 %v4112_v7  ;;  %vm4025_vm15 = vcmp.ge.f32.partialorder %v10002_v43, 0.0 }
 0x328   : > { %v4058_v48 = vmul.f32 0.2, %v10003_v24  ;;  %v10005_v8 = vadd.f32 %v3976_v15, %v13142_v57  ;;  %4313 = vmatmul.mubr.bf16.gmra.mrb[44].mxu1 %v4111_v46  ;;  %vm4026_vm1 = vcmp.ge.f32.partialorder %v10003_v24, 0.0 }
 0x329   : > { %vm4027_vm2 = vcmp.ge.f32.partialorder %v10004_v13, 0.0  ;;  %v4059_v35 = vmul.f32 0.2, %v10004_v13  ;;  %v4089_v52 = vsel %vm4025_vm15, %v10002_v43, %v4057_v30 }
 0x32a   : > { %vm4028_vm3 = vcmp.ge.f32.partialorder %v10005_v8, 0.0  ;;  %v4060_v36 = vmul.f32 0.2, %v10005_v8  ;;  %v4090_v0 = vsel %vm4026_vm1, %v10003_v24, %v4058_v48 }
 0x32b   : > { %v4091_v29 = vsel %vm4027_vm2, %v10004_v13, %v4059_v35 }
 0x32c   : > { %v3980_v53 = vpop.f32.mrb[52].mxu0  ;;  %v4092_v6 = vsel %vm4028_vm3, %v10005_v8, %v4060_v36  ;;  %v4113_v58 = vpack.c.bf16 %v4091_v29, %v4089_v52  ;;  %v10975_v52 = vld [vmem:[%s14866_s8 + $0x4] ss:$8 sps:$4 sm:$0xff]   ;;  %v10978_v29 = vld [vmem:[%s14866_s8 + $0x14] ss:$8 sps:$4 sm:$0xff]  }
 0x32d   : > { %v10006_v20 = vadd.f32 %v3980_v53, %v13139_v49  ;;  %v3982_v42 = vpop.f32.mrb[53].mxu0  ;;  %v4114_v50 = vpack.c.bf16 %v4092_v6, %v4090_v0  ;;  %4581 = vmatprep.subr.bf16.mxu1 %v10975_v52  ;;  %v10976_v53 = vld [vmem:[%s14866_s8 + $0x10] ss:$8 sps:$4 sm:$0xff]   ;;  %v10981_v0 = vld [vmem:[%s14866_s8 + $0x24] ss:$8 sps:$4 sm:$0xff]  }
 0x32e   : > { %v10007_v34 = vadd.f32 %v3982_v42, %v13142_v57  ;;  %v3984_v5 = vpop.f32.mrb[54].mxu0  ;;  %v10979_v6 = vld [vmem:[%s14866_s8 + $0x20] ss:$8 sps:$4 sm:$0xff]   ;;  %v10987_v42 = vld [vmem:[%s14866_s8 + $0x44] ss:$8 sps:$4 sm:$0xff]  }
 0x32f   : > { %v4061_v22 = vmul.f32 0.2, %v10006_v20  ;;  %v10008_v14 = vadd.f32 %v3984_v5, %v13139_v49  ;;  %v3986_v44 = vpop.f32.mrb[55].mxu0  ;;  %4320 = vmatprep.mubr.bf16.mxu1 %v4114_v50  ;;  %vm4029_vm4 = vcmp.ge.f32.partialorder %v10006_v20, 0.0  ;;  %v10985_v50 = vld [vmem:[%s14866_s8 + $0x40] ss:$8 sps:$4 sm:$0xff]  }
 0x330   : > { %v4062_v37 = vmul.f32 0.2, %v10007_v34  ;;  %v10009_v61 = vadd.f32 %v3986_v44, %v13142_v57  ;;  %4321 = vmatmul.mubr.bf16.gmra.mrb[48].mxu1 %v4113_v58  ;;  %vm4030_vm5 = vcmp.ge.f32.partialorder %v10007_v34, 0.0  ;;  %v10984_v58 = vld [vmem:[%s14866_s8 + $0x34] ss:$8 sps:$4 sm:$0xff]  }
 0x331   : > { %vm4031_vm7 = vcmp.ge.f32.partialorder %v10008_v14, 0.0  ;;  %v4063_v18 = vmul.f32 0.2, %v10008_v14  ;;  %v4093_v25 = vsel %vm4029_vm4, %v10006_v20, %v4061_v22  ;;  %v10982_v20 = vld [vmem:[%s14866_s8 + $0x30] ss:$8 sps:$4 sm:$0xff]  }
 0x332   : > { %vm4032_vm8 = vcmp.ge.f32.partialorder %v10009_v61, 0.0  ;;  %v4064_v55 = vmul.f32 0.2, %v10009_v61  ;;  %v4094_v62 = vsel %vm4030_vm5, %v10007_v34, %v4062_v37  ;;  %v10990_v34 = vld [vmem:[%s14866_s8 + $0x54] ss:$8 sps:$4 sm:$0xff]  }
 0x333   : > { %v4095_v28 = vsel %vm4031_vm7, %v10008_v14, %v4063_v18  ;;  %v10988_v5 = vld [vmem:[%s14866_s8 + $0x50] ss:$8 sps:$4 sm:$0xff]   ;;  %v10993_v22 = vld [vmem:[%s14866_s8 + $0x64] ss:$8 sps:$4 sm:$0xff]   ;;  %v10991_v14 = vld [vmem:[%s14866_s8 + $0x60] ss:$8 sps:$4 sm:$0xff]  }
 0x334   : > { %v3990_v16 = vpop.f32.mrb[56].mxu0  ;;  %v4096_v59 = vsel %vm4032_vm8, %v10009_v61, %v4064_v55  ;;  %v4115_v10 = vpack.c.bf16 %v4095_v28, %v4093_v25  ;;  %v10994_v44 = vld [vmem:[%s14866_s8 + $0x70] ss:$8 sps:$4 sm:$0xff]   ;;  %v10996_v37 = vld [vmem:[%s14866_s8 + $0x74] ss:$8 sps:$4 sm:$0xff]  }
 0x335   : > { %v10010_v51 = vadd.f32 %v3990_v16, %v13139_v49  ;;  %v3992_v54 = vpop.f32.mrb[57].mxu0  ;;  %v4116_v56 = vpack.c.bf16 %v4096_v59, %v4094_v62  ;;  %v13229_v18 = vld [vmem:[%s14865_s7] ss:$0 sm:$0xff] }
 0x336   : > { %v10011_v40 = vadd.f32 %v3992_v54, %v13142_v57  ;;  %v3994_v17 = vpop.f32.mrb[58].mxu0 }
 0x337   : > { %v4065_v12 = vmul.f32 0.2, %v10010_v51  ;;  %v10012_v63 = vadd.f32 %v3994_v17, %v13139_v49  ;;  %v3996_v9 = vpop.f32.mrb[59].mxu0  ;;  %4328 = vmatprep.mubr.bf16.mxu1 %v4116_v56  ;;  %vm4033_vm12 = vcmp.ge.f32.partialorder %v10010_v51, 0.0 }
 0x338   : > { %v4066_v31 = vmul.f32 0.2, %v10011_v40  ;;  %v10013_v33 = vadd.f32 %v3996_v9, %v13142_v57  ;;  %4329 = vmatmul.mubr.bf16.gmra.mrb[52].mxu1 %v4115_v10  ;;  %vm4034_vm0 = vcmp.ge.f32.partialorder %v10011_v40, 0.0 }
 0x339   : > { %vm4035_vm6 = vcmp.ge.f32.partialorder %v10012_v63, 0.0  ;;  %v4067_v38 = vmul.f32 0.2, %v10012_v63  ;;  %v4097_v11 = vsel %vm4033_vm12, %v10010_v51, %v4065_v12 }
 0x33a   : > { %vm4036_vm9 = vcmp.ge.f32.partialorder %v10013_v33, 0.0  ;;  %v4068_v41 = vmul.f32 0.2, %v10013_v33  ;;  %v4098_v1 = vsel %vm4034_vm0, %v10011_v40, %v4066_v31 }
 0x33b   : > { %v4099_v19 = vsel %vm4035_vm6, %v10012_v63, %v4067_v38 }
 0x33c   : > { %v4000_v23 = vpop.f32.mrb[60].mxu0  ;;  %v4100_v2 = vsel %vm4036_vm9, %v10013_v33, %v4068_v41  ;;  %v4117_v39 = vpack.c.bf16 %v4099_v19, %v4097_v11 }
 0x33d   : > { %v10014_v60 = vadd.f32 %v4000_v23, %v13139_v49  ;;  %v4002_v3 = vpop.f32.mrb[61].mxu0  ;;  %v4118_v4 = vpack.c.bf16 %v4100_v2, %v4098_v1 }
 0x33e   : > { %v10015_v47 = vadd.f32 %v4002_v3, %v13142_v57  ;;  %v4004_v21 = vpop.f32.mrb[62].mxu0 }
 0x33f   : > { %v4069_v46 = vmul.f32 0.2, %v10014_v60  ;;  %v10016_v43 = vadd.f32 %v4004_v21, %v13139_v49  ;;  %v4006_v27 = vpop.f32.mrb[63].mxu0  ;;  %4336 = vmatprep.mubr.bf16.mxu1 %v4118_v4  ;;  %vm4037_vm10 = vcmp.ge.f32.partialorder %v10014_v60, 0.0  ;;  %v14924_v49 = vmov 0  }
 0x340   : > { %v4070_v7 = vmul.f32 0.2, %v10015_v47  ;;  %v10017_v24 = vadd.f32 %v4006_v27, %v13142_v57  ;;  %4337 = vmatmul.mubr.bf16.gmra.mrb[56].mxu1 %v4117_v39  ;;  %vm4038_vm11 = vcmp.ge.f32.partialorder %v10015_v47, 0.0  ;;  %v10973_v57 = vld [vmem:[%s14866_s8] ss:$8 sps:$4 sm:$0xff]  }
 0x341   : > { %vm4039_vm13 = vcmp.ge.f32.partialorder %v10016_v43, 0.0  ;;  %v4071_v26 = vmul.f32 0.2, %v10016_v43  ;;  %v4101_v13 = vsel %vm4037_vm10, %v10014_v60, %v4069_v46  ;;  %4582 = vmatpush1.bf16.msra.mxu1 %v10973_v57 }
 0x342   : > { %vm4040_vm14 = vcmp.ge.f32.partialorder %v10017_v24, 0.0  ;;  %v4072_v30 = vmul.f32 0.2, %v10017_v24  ;;  %v4102_v48 = vsel %vm4038_vm11, %v10015_v47, %v4070_v7  ;;  %4583 = vmatprep.subr.bf16.mxu1 %v10978_v29 }
 0x343   : > { %v4103_v15 = vsel %vm4039_vm13, %v10016_v43, %v4071_v26 }
 0x344   : > { %v4104_v8 = vsel %vm4040_vm14, %v10017_v24, %v4072_v30  ;;  %v4119_v35 = vpack.c.bf16 %v4103_v15, %v4101_v13 }
 0x345   : > { %v4120_v36 = vpack.c.bf16 %v4104_v8, %v4102_v48  ;;  %4584 = vmatpush1.bf16.msra.mxu1 %v10976_v53 }
 0x346   : > { %4585 = vmatprep.subr.bf16.mxu1 %v10981_v0 }
 0x347   : > { %4344 = vmatprep.mubr.bf16.mxu1 %v4120_v36 }
 0x348   : > { %4345 = vmatmul.mubr.bf16.gmra.mrb[60].mxu1 %v4119_v35 }
 0x349   : > { %4613 = vmatprep.mubr.bf16.mxu1 %v14924_v49  ;;  %4586 = vmatpush1.bf16.msra.mxu1 %v10979_v6 }
 0x34a   : > { %4587 = vmatprep.subr.bf16.mxu1 %v10984_v58 }
 0x34d   : > { %4588 = vmatpush1.bf16.msra.mxu1 %v10982_v20 }
 0x34e   : > { %4589 = vmatprep.subr.bf16.mxu1 %v10987_v42 }
 0x351   : > { %4590 = vmatpush1.bf16.msra.mxu1 %v10985_v50 }
 0x352   : > { %4591 = vmatprep.subr.bf16.mxu1 %v10990_v34 }
 0x355   : > { %4592 = vmatpush1.bf16.msra.mxu1 %v10988_v5 }
 0x356   : > { %4593 = vmatprep.subr.bf16.mxu1 %v10993_v22 }
 0x359   : > { %4594 = vmatpush1.bf16.msra.mxu1 %v10991_v14 }
 0x35a   : > { %4595 = vmatprep.subr.bf16.mxu1 %v10996_v37 }
 0x35d   : > { %4596 = vmatpush1.bf16.msra.mxu1 %v10994_v44 }
 0x3e3   : > { %v9746_v61 = vpop.f32.mrb[32].mxu1 }
 0x3e4   : > { %v9747_v55 = vpop.f32.mrb[33].mxu1 }
 0x3e5   : > { %v9748_v25 = vadd.f32 %v9747_v55, %v9746_v61  ;;  %v9749_v28 = vpop.f32.mrb[34].mxu1  ;;  %v10997_v55 = vld [vmem:[%s14868_s10] ss:$16 sps:$4 sm:$0xff]  }
 0x3e6   : > { %v9750_v16 = vpop.f32.mrb[35].mxu1 }
 0x3e7   : > { %v13237_v62 = vadd.f32 %v9748_v25, %v13229_v18  ;;  %v9751_v59 = vadd.f32 %v9750_v16, %v9749_v28  ;;  %v10999_v25 = vld [vmem:[%s14868_s10 + $0x4] ss:$16 sps:$4 sm:$0xff]  }
 0x3e8   : > { %5212 = vmatprep.subr.bf16.mxu0 %v10999_v25 }
 0x3e9   : > { %4353 = vst [vmem:[%s13234_s20] sm:$0xff] %v13237_v62  ;;  %v13242_v10 = vadd.f32 %v9751_v59, %v13229_v18  ;;  %4369 = vrot.lane.b32.xlu0 %v13237_v62, %s11646_s21  ;;  %v11002_v59 = vld [vmem:[%s14868_s10 + $0xc] ss:$16 sps:$4 sm:$0xff]   ;;  %5213 = vmatpush1.bf16.msra.mxu0 %v10997_v55 }
 0x3ea   : > { %5325 = vmatprep.subr.bf16.mxu1 %v11002_v59 }
 0x3eb   : > { %4354 = vst [vmem:[%s13234_s20 + $0x8] sm:$0xff] %v13242_v10  ;;  %v9752_v51 = vpop.f32.mrb[36].mxu1 }
 0x3ec   : > { %v9753_v54 = vpop.f32.mrb[37].mxu1 }
 0x3ed   : > { %v9754_v56 = vadd.f32 %v9753_v54, %v9752_v51  ;;  %v9755_v40 = vpop.f32.mrb[38].mxu1  ;;  %4371 = vrot.lane.b32.xlu0 %v13242_v10, %s11646_s21  ;;  %v11005_v51 = vld [vmem:[%s14868_s10 + $0x24] ss:$16 sps:$4 sm:$0xff]  }
 0x3ee   : > { %v9756_v17 = vpop.f32.mrb[39].mxu1  ;;  %5214 = vmatprep.subr.bf16.mxu0 %v11005_v51 }
 0x3ef   : > { %v13251_v12 = vadd.f32 %v9754_v56, %v13229_v18  ;;  %v9757_v63 = vadd.f32 %v9756_v17, %v9755_v40  ;;  %v11003_v56 = vld [vmem:[%s14868_s10 + $0x20] ss:$16 sps:$4 sm:$0xff]   ;;  %v11017_v17 = vld [vmem:[%s14868_s10 + $0x64] ss:$16 sps:$4 sm:$0xff]  }
 0x3f0   : > { %5215 = vmatpush1.bf16.msra.mxu0 %v11003_v56  ;;  %v11009_v40 = vld [vmem:[%s14868_s10 + $0x40] ss:$16 sps:$4 sm:$0xff]  }
 0x3f1   : > { %4355 = vst [vmem:[%s13234_s20 + $0x10] sm:$0xff] %v13251_v12  ;;  %v13256_v9 = vadd.f32 %v9757_v63, %v13229_v18  ;;  %4373 = vrot.lane.b32.xlu1 %v13251_v12, %s11646_s21  ;;  %v11015_v63 = vld [vmem:[%s14868_s10 + $0x60] ss:$16 sps:$4 sm:$0xff]  }
 0x3f3   : > { %4356 = vst [vmem:[%s13234_s20 + $0x18] sm:$0xff] %v13256_v9  ;;  %v9758_v31 = vpop.f32.mrb[40].mxu1 }
 0x3f4   : > { %v9759_v33 = vpop.f32.mrb[41].mxu1 }
 0x3f5   : > { %v9760_v38 = vadd.f32 %v9759_v33, %v9758_v31  ;;  %v9761_v41 = vpop.f32.mrb[42].mxu1  ;;  %4375 = vrot.lane.b32.xlu1 %v13256_v9, %s11646_s21  ;;  %v11023_v31 = vld [vmem:[%s14868_s10 + $0x84] ss:$16 sps:$4 sm:$0xff]   ;;  %v11021_v33 = vld [vmem:[%s14868_s10 + $0x80] ss:$16 sps:$4 sm:$0xff]  }
 0x3f6   : > { %v9762_v11 = vpop.f32.mrb[43].mxu1 }
 0x3f7   : > { %v13265_v19 = vadd.f32 %v9760_v38, %v13229_v18  ;;  %v9763_v23 = vadd.f32 %v9762_v11, %v9761_v41  ;;  %v11029_v38 = vld [vmem:[%s14868_s10 + $0xa4] ss:$16 sps:$4 sm:$0xff]   ;;  %v11027_v41 = vld [vmem:[%s14868_s10 + $0xa0] ss:$16 sps:$4 sm:$0xff]  }
 0x3f8   : > { %v11035_v11 = vld [vmem:[%s14868_s10 + $0xc4] ss:$16 sps:$4 sm:$0xff]  }
 0x3f9   : > { %4357 = vst [vmem:[%s13234_s20 + $0x20] sm:$0xff] %v13265_v19  ;;  %v13270_v1 = vadd.f32 %v9763_v23, %v13229_v18  ;;  %4377 = vrot.lane.b32.xlu0 %v13265_v19, %s11646_s21  ;;  %v11033_v23 = vld [vmem:[%s14868_s10 + $0xc0] ss:$16 sps:$4 sm:$0xff]  }
 0x3fb   : > { %4358 = vst [vmem:[%s13234_s20 + $0x28] sm:$0xff] %v13270_v1  ;;  %v9764_v2 = vpop.f32.mrb[44].mxu1  ;;  %4379 = vrot.lane.b32.xlu1 %v13270_v1, %s11646_s21 }
 0x3fc   : > { %v9765_v39 = vpop.f32.mrb[45].mxu1 }
 0x3fd   : > { %v9766_v60 = vadd.f32 %v9765_v39, %v9764_v2  ;;  %v9767_v3 = vpop.f32.mrb[46].mxu1  ;;  %v11041_v2 = vld [vmem:[%s14868_s10 + $0xe4] ss:$16 sps:$4 sm:$0xff]   ;;  %v11039_v39 = vld [vmem:[%s14868_s10 + $0xe0] ss:$16 sps:$4 sm:$0xff]  }
 0x3fe   : > { %v9768_v4 = vpop.f32.mrb[47].mxu1 }
 0x3ff   : > { %v13279_v47 = vadd.f32 %v9766_v60, %v13229_v18  ;;  %v9769_v21 = vadd.f32 %v9768_v4, %v9767_v3  ;;  %v11047_v60 = vld [vmem:[%s14868_s10 + $0x104] ss:$16 sps:$4 sm:$0xff]   ;;  %v11045_v3 = vld [vmem:[%s14868_s10 + $0x100] ss:$16 sps:$4 sm:$0xff]  }
 0x400   : > { %v11053_v4 = vld [vmem:[%s14868_s10 + $0x124] ss:$16 sps:$4 sm:$0xff]  }
 0x401   : > { %4359 = vst [vmem:[%s13234_s20 + $0x30] sm:$0xff] %v13279_v47  ;;  %v13284_v46 = vadd.f32 %v9769_v21, %v13229_v18  ;;  %4381 = vrot.lane.b32.xlu0 %v13279_v47, %s11646_s21  ;;  %v11051_v21 = vld [vmem:[%s14868_s10 + $0x120] ss:$16 sps:$4 sm:$0xff]  }
 0x403   : > { %4360 = vst [vmem:[%s13234_s20 + $0x38] sm:$0xff] %v13284_v46  ;;  %v9770_v43 = vpop.f32.mrb[48].mxu1  ;;  %4383 = vrot.lane.b32.xlu1 %v13284_v46, %s11646_s21 }
 0x404   : > { %v9771_v27 = vpop.f32.mrb[49].mxu1 }
 0x405   : > { %v9772_v7 = vadd.f32 %v9771_v27, %v9770_v43  ;;  %v9773_v24 = vpop.f32.mrb[50].mxu1  ;;  %v11059_v43 = vld [vmem:[%s14868_s10 + $0x144] ss:$16 sps:$4 sm:$0xff]   ;;  %v11057_v27 = vld [vmem:[%s14868_s10 + $0x140] ss:$16 sps:$4 sm:$0xff]  }
 0x406   : > { %v9774_v26 = vpop.f32.mrb[51].mxu1 }
 0x407   : > { %v13293_v30 = vadd.f32 %v9772_v7, %v13229_v18  ;;  %v9775_v13 = vadd.f32 %v9774_v26, %v9773_v24  ;;  %v11065_v7 = vld [vmem:[%s14868_s10 + $0x164] ss:$16 sps:$4 sm:$0xff]   ;;  %v11063_v24 = vld [vmem:[%s14868_s10 + $0x160] ss:$16 sps:$4 sm:$0xff]  }
 0x408   : > { %v11071_v26 = vld [vmem:[%s14868_s10 + $0x184] ss:$16 sps:$4 sm:$0xff]  }
 0x409   : > { %4361 = vst [vmem:[%s13234_s20 + $0x40] sm:$0xff] %v13293_v30  ;;  %v13298_v15 = vadd.f32 %v9775_v13, %v13229_v18  ;;  %4385 = vrot.lane.b32.xlu0 %v13293_v30, %s11646_s21  ;;  %v11069_v13 = vld [vmem:[%s14868_s10 + $0x180] ss:$16 sps:$4 sm:$0xff]  }
 0x40b   : > { %4362 = vst [vmem:[%s13234_s20 + $0x48] sm:$0xff] %v13298_v15  ;;  %v9776_v48 = vpop.f32.mrb[52].mxu1  ;;  %4387 = vrot.lane.b32.xlu1 %v13298_v15, %s11646_s21 }
 0x40c   : > { %v9777_v8 = vpop.f32.mrb[53].mxu1 }
 0x40d   : > { %v9778_v35 = vadd.f32 %v9777_v8, %v9776_v48  ;;  %v9779_v36 = vpop.f32.mrb[54].mxu1 }
 0x40e   : > { %v9780_v57 = vpop.f32.mrb[55].mxu1 }
 0x40f   : > { %v13307_v52 = vadd.f32 %v9778_v35, %v13229_v18  ;;  %v9781_v29 = vadd.f32 %v9780_v57, %v9779_v36 }
 0x411   : > { %4363 = vst [vmem:[%s13234_s20 + $0x50] sm:$0xff] %v13307_v52  ;;  %v13312_v53 = vadd.f32 %v9781_v29, %v13229_v18  ;;  %4389 = vrot.lane.b32.xlu0 %v13307_v52, %s11646_s21 }
 0x413   : > { %4364 = vst [vmem:[%s13234_s20 + $0x58] sm:$0xff] %v13312_v53  ;;  %v9782_v0 = vpop.f32.mrb[56].mxu1  ;;  %4391 = vrot.lane.b32.xlu1 %v13312_v53, %s11646_s21 }
 0x414   : > { %v9783_v6 = vpop.f32.mrb[57].mxu1 }
 0x415   : > { %v9784_v58 = vadd.f32 %v9783_v6, %v9782_v0  ;;  %v9785_v20 = vpop.f32.mrb[58].mxu1 }
 0x416   : > { %v9786_v42 = vpop.f32.mrb[59].mxu1 }
 0x417   : > { %v13321_v50 = vadd.f32 %v9784_v58, %v13229_v18  ;;  %v9787_v34 = vadd.f32 %v9786_v42, %v9785_v20 }
 0x419   : > { %4365 = vst [vmem:[%s13234_s20 + $0x60] sm:$0xff] %v13321_v50  ;;  %v13326_v5 = vadd.f32 %v9787_v34, %v13229_v18  ;;  %4393 = vrot.lane.b32.xlu0 %v13321_v50, %s11646_s21 }
 0x41b   : > { %4366 = vst [vmem:[%s13234_s20 + $0x68] sm:$0xff] %v13326_v5  ;;  %v9788_v22 = vpop.f32.mrb[60].mxu1  ;;  %4395 = vrot.lane.b32.xlu1 %v13326_v5, %s11646_s21 }
 0x41c   : > { %v9789_v14 = vpop.f32.mrb[61].mxu1 }
 0x41d   : > { %v9790_v44 = vadd.f32 %v9789_v14, %v9788_v22  ;;  %v9791_v37 = vpop.f32.mrb[62].mxu1  ;;  %v11000_v22 = vld [vmem:[%s14868_s10 + $0x8] ss:$16 sps:$4 sm:$0xff]  }
 0x41e   : > { %v9792_v61 = vpop.f32.mrb[63].mxu1 }
 0x41f   : > { %v13341_v28 = vadd.f32 %v9790_v44, %v13229_v18  ;;  %v9793_v16 = vadd.f32 %v9792_v61, %v9791_v37  ;;  %v11008_v37 = vld [vmem:[%s14868_s10 + $0x2c] ss:$16 sps:$4 sm:$0xff]  }
 0x421   : > { %4367 = vst [vmem:[%s13234_s20 + $0x70] sm:$0xff] %v13341_v28  ;;  %v13352_v54 = vadd.f32 %v9793_v16, %v13229_v18  ;;  %4397 = vrot.lane.b32.xlu0 %v13341_v28, %s11646_s21  ;;  %v11011_v18 = vld [vmem:[%s14868_s10 + $0x44] ss:$16 sps:$4 sm:$0xff]   ;;  %v11014_v16 = vld [vmem:[%s14868_s10 + $0x4c] ss:$16 sps:$4 sm:$0xff]  }
 0x422   : > { %5216 = vmatprep.subr.bf16.mxu0 %v11011_v18 }
 0x423   : > { %4368 = vst [vmem:[%s13234_s20 + $0x78] sm:$0xff] %v13352_v54  ;;  %4399 = vrot.lane.b32.xlu1 %v13352_v54, %s11646_s21  ;;  %5217 = vmatpush1.bf16.msra.mxu0 %v11009_v40  ;;  %s8899_s21 = sshll.u32 %s14933_s28, 2 }
 0x424   : > { %5218 = vmatprep.subr.bf16.mxu0 %v11017_v17  ;;  %s13433_s17 = scalar_lea.vmem %s14859_s1, %s8899_s21  ;;  %v11012_v17 = vld [vmem:[%s14868_s10 + $0x48] ss:$16 sps:$4 sm:$0xff]  }
 0x425   : > { %v9692_v48 = vld [vmem:[%s13433_s17] sm:$0xff]   ;;  %v9723_v0 = vld [vmem:[%s13433_s17 + $0x8] sm:$0xff]   ;;  %v9724_v25 = vld [vmem:[%s13433_s17 + $0x10] sm:$0xff]  }
 0x426   : > { %v9693_v8 = vunpack.c.l.bf16 %v9692_v48  ;;  %v9694_v36 = vunpack.c.h.bf16 %v9692_v48  ;;  %v9697_v42 = vunpack.c.l.bf16 %v9723_v0  ;;  %v9698_v44 = vunpack.c.h.bf16 %v9723_v0 }
 0x427   : > { %5219 = vmatpush1.bf16.msra.mxu0 %v11015_v63  ;;  %v9701_v56 = vunpack.c.l.bf16 %v9724_v25  ;;  %v9702_v18 = vunpack.c.h.bf16 %v9724_v25 }
 0x428   : > { %5220 = vmatprep.subr.bf16.mxu0 %v11023_v31  ;;  %v11020_v31 = vld [vmem:[%s14868_s10 + $0x6c] ss:$16 sps:$4 sm:$0xff]  }
 0x42b   : > { %5221 = vmatpush1.bf16.msra.mxu0 %v11021_v33 }
 0x42c   : > { %5222 = vmatprep.subr.bf16.mxu0 %v11029_v38 }
 0x42f   : > { %5223 = vmatpush1.bf16.msra.mxu0 %v11027_v41 }
 0x430   : > { %5224 = vmatprep.subr.bf16.mxu0 %v11035_v11 }
 0x433   : > { %5225 = vmatpush1.bf16.msra.mxu0 %v11033_v23  ;;  %v11026_v23 = vld [vmem:[%s14868_s10 + $0x8c] ss:$16 sps:$4 sm:$0xff]  }
 0x434   : > { %5226 = vmatprep.subr.bf16.mxu0 %v11041_v2 }
 0x437   : > { %5227 = vmatpush1.bf16.msra.mxu0 %v11039_v39 }
 0x438   : > { %5228 = vmatprep.subr.bf16.mxu0 %v11047_v60 }
 0x43b   : > { %5229 = vmatpush1.bf16.msra.mxu0 %v11045_v3 }
 0x43c   : > { %5230 = vmatprep.subr.bf16.mxu0 %v11053_v4  ;;  %v11024_v4 = vld [vmem:[%s14868_s10 + $0x88] ss:$16 sps:$4 sm:$0xff]  }
 0x43f   : > { %5231 = vmatpush1.bf16.msra.mxu0 %v11051_v21 }
 0x440   : > { %5232 = vmatprep.subr.bf16.mxu0 %v11059_v43 }
 0x443   : > { %5233 = vmatpush1.bf16.msra.mxu0 %v11057_v27 }
 0x444   : > { %5234 = vmatprep.subr.bf16.mxu0 %v11065_v7 }
 0x447   : > { %5235 = vmatpush1.bf16.msra.mxu0 %v11063_v24  ;;  %v9726_v24 = vld [vmem:[%s13433_s17 + $0x20] sm:$0xff]  }
 0x448   : > { %5236 = vmatprep.subr.bf16.mxu0 %v11071_v26 }
 0x44b   : > { %5237 = vmatpush1.bf16.msra.mxu0 %v11069_v13  ;;  %v11038_v13 = vld [vmem:[%s14868_s10 + $0xcc] ss:$16 sps:$4 sm:$0xff]  }
 0x45b   : > { %v4370_v35 = vpop.permute.xlu0 %4369 }
 0x45c   : > { %v4433_v57 = vmul.f32 %v9693_v8, %v4370_v35  ;;  %v9709_v8 = vunpack.c.l.bf16 %v9726_v24  ;;  %v9710_v35 = vunpack.c.h.bf16 %v9726_v24  ;;  %v11077_v24 = vld [vmem:[%s14868_s10 + $0x1a4] ss:$16 sps:$4 sm:$0xff]  }
 0x45d   : > { %5238 = vmatprep.subr.bf16.mxu0 %v11077_v24 }
 0x45e   : > { %v4449_v58 = vadd.f32 %v4433_v57, %v13237_v62  ;;  %v11006_v62 = vld [vmem:[%s14868_s10 + $0x28] ss:$16 sps:$4 sm:$0xff]  }
 0x45f   : > { %v4372_v29 = vpop.permute.xlu0 %4371  ;;  %v11036_v57 = vld [vmem:[%s14868_s10 + $0xc8] ss:$16 sps:$4 sm:$0xff]  }
 0x460   : > { %v4434_v6 = vmul.f32 %v9694_v36, %v4372_v29 }
 0x462   : > { %v4450_v20 = vadd.f32 %v4434_v6, %v13242_v10 }
 0x463   : > { %v4374_v34 = vpop.permute.xlu1 %4373 }
 0x464   : > { %v4465_v14 = vpack.c.bf16 %v4450_v20, %v4449_v58  ;;  %v4435_v61 = vmul.f32 %v9697_v42, %v4374_v34  ;;  %v9727_v20 = vld [vmem:[%s13433_s17 + $0x28] sm:$0xff]  }
 0x465   : > { %v11050_v34 = vld [vmem:[%s14868_s10 + $0x10c] ss:$16 sps:$4 sm:$0xff]  }
 0x466   : > { %4614 = vmatmul.mubr.bf16.vlgmr.msra.gmra.mrb[64].mxu1 %v4465_v14  ;;  %v4451_v59 = vadd.f32 %v4435_v61, %v13251_v12  ;;  %v9725_v12 = vld [vmem:[%s13433_s17 + $0x18] sm:$0xff]   ;;  %v9713_v14 = vunpack.c.l.bf16 %v9727_v20 }
 0x467   : > { %v4376_v55 = vpop.permute.xlu1 %4375  ;;  %4623 = vmatprep.mubr.bf16.mxu1 %v14924_v49  ;;  %5326 = vmatpush1.bf16.msra.mxu1 %v11000_v22  ;;  %v9705_v39 = vunpack.c.l.bf16 %v9725_v12  ;;  %v9706_v60 = vunpack.c.h.bf16 %v9725_v12  ;;  %v11048_v61 = vld [vmem:[%s14868_s10 + $0x108] ss:$16 sps:$4 sm:$0xff]  }
 0x468   : > { %v4436_v10 = vmul.f32 %v9698_v44, %v4376_v55  ;;  %5327 = vmatprep.subr.bf16.mxu1 %v11008_v37  ;;  %v9714_v44 = vunpack.c.h.bf16 %v9727_v20  ;;  %v9729_v12 = vld [vmem:[%s13433_s17 + $0x38] sm:$0xff]  }
 0x46a   : > { %v4452_v51 = vadd.f32 %v4436_v10, %v13256_v9  ;;  %v11018_v9 = vld [vmem:[%s14868_s10 + $0x68] ss:$16 sps:$4 sm:$0xff]  }
 0x46b   : > { %v4378_v40 = vpop.permute.xlu0 %4377  ;;  %5328 = vmatpush1.bf16.msra.mxu1 %v11006_v62 }
 0x46c   : > { %v4466_v63 = vpack.c.bf16 %v4452_v51, %v4451_v59  ;;  %5329 = vmatprep.subr.bf16.mxu1 %v11014_v16  ;;  %v4437_v38 = vmul.f32 %v9701_v56, %v4378_v40  ;;  %v9728_v16 = vld [vmem:[%s13433_s17 + $0x30] sm:$0xff]   ;;  %v11062_v51 = vld [vmem:[%s14868_s10 + $0x14c] ss:$16 sps:$4 sm:$0xff]  }
 0x46d   : > { %v4380_v33 = vpop.permute.xlu1 %4379  ;;  %v9718_v40 = vunpack.c.h.bf16 %v9728_v16 }
 0x46e   : > { %v4438_v41 = vmul.f32 %v9702_v18, %v4380_v33  ;;  %4624 = vmatmul.mubr.bf16.gmra.mrb[68].mxu1 %v4466_v63  ;;  %v4453_v2 = vadd.f32 %v4437_v38, %v13265_v19  ;;  %v11030_v19 = vld [vmem:[%s14868_s10 + $0xa8] ss:$16 sps:$4 sm:$0xff]   ;;  %v9717_v18 = vunpack.c.l.bf16 %v9728_v16 }
 0x46f   : > { %4633 = vmatprep.mubr.bf16.mxu1 %v14924_v49  ;;  %5330 = vmatpush1.bf16.msra.mxu1 %v11012_v17  ;;  %v11060_v63 = vld [vmem:[%s14868_s10 + $0x148] ss:$16 sps:$4 sm:$0xff]  }
 0x470   : > { %v4454_v11 = vadd.f32 %v4438_v41, %v13270_v1  ;;  %5331 = vmatprep.subr.bf16.mxu1 %v11020_v31  ;;  %v11032_v1 = vld [vmem:[%s14868_s10 + $0xac] ss:$16 sps:$4 sm:$0xff]  }
 0x472   : > { %v4467_v21 = vpack.c.bf16 %v4454_v11, %v4453_v2  ;;  %v11074_v11 = vld [vmem:[%s14868_s10 + $0x18c] ss:$16 sps:$4 sm:$0xff]   ;;  %v9721_v2 = vunpack.c.l.bf16 %v9729_v12 }
 0x473   : > { %v4382_v3 = vpop.permute.xlu0 %4381  ;;  %5332 = vmatpush1.bf16.msra.mxu1 %v11018_v9 }
 0x474   : > { %5333 = vmatprep.subr.bf16.mxu1 %v11026_v23  ;;  %v4439_v27 = vmul.f32 %v9705_v39, %v4382_v3  ;;  %v9722_v39 = vunpack.c.h.bf16 %v9729_v12  ;;  %v11072_v3 = vld [vmem:[%s14868_s10 + $0x188] ss:$16 sps:$4 sm:$0xff]  }
 0x475   : > { %v4384_v43 = vpop.permute.xlu1 %4383 }
 0x476   : > { %v4440_v7 = vmul.f32 %v9706_v60, %v4384_v43  ;;  %4634 = vmatmul.mubr.bf16.gmra.mrb[72].mxu1 %v4467_v21  ;;  %v4455_v48 = vadd.f32 %v4439_v27, %v13279_v47  ;;  %v11042_v47 = vld [vmem:[%s14868_s10 + $0xe8] ss:$16 sps:$4 sm:$0xff]  }
 0x477   : > { %4643 = vmatprep.mubr.bf16.mxu1 %v14924_v49  ;;  %5334 = vmatpush1.bf16.msra.mxu1 %v11024_v4 }
 0x478   : > { %v4456_v26 = vadd.f32 %v4440_v7, %v13284_v46  ;;  %5335 = vmatprep.subr.bf16.mxu1 %v11032_v1  ;;  %v11044_v46 = vld [vmem:[%s14868_s10 + $0xec] ss:$16 sps:$4 sm:$0xff]   ;;  %v11075_v7 = vld [vmem:[%s14868_s10 + $0x1a0] ss:$16 sps:$4 sm:$0xff]  }
 0x479   : > { %5239 = vmatpush1.bf16.msra.mxu0 %v11075_v7 }
 0x47a   : > { %v4468_v29 = vpack.c.bf16 %v4456_v26, %v4455_v48  ;;  %v11084_v26 = vld [vmem:[%s14868_s10 + $0x1c8] ss:$16 sps:$4 sm:$0xff]   ;;  %v11089_v48 = vld [vmem:[%s14868_s10 + $0x1e4] ss:$16 sps:$4 sm:$0xff]  }
 0x47b   : > { %v4386_v36 = vpop.permute.xlu0 %4385  ;;  %5336 = vmatpush1.bf16.msra.mxu1 %v11030_v19  ;;  %v11078_v19 = vld [vmem:[%s14868_s10 + $0x1a8] ss:$16 sps:$4 sm:$0xff]  }
 0x47c   : > { %5337 = vmatprep.subr.bf16.mxu1 %v11038_v13  ;;  %v4441_v6 = vmul.f32 %v9709_v8, %v4386_v36  ;;  %v11086_v13 = vld [vmem:[%s14868_s10 + $0x1cc] ss:$16 sps:$4 sm:$0xff]   ;;  %v11087_v8 = vld [vmem:[%s14868_s10 + $0x1e0] ss:$16 sps:$4 sm:$0xff]   ;;  %v11090_v36 = vld [vmem:[%s14868_s10 + $0x1e8] ss:$16 sps:$4 sm:$0xff]  }
 0x47d   : > { %v4388_v0 = vpop.permute.xlu1 %4387 }
 0x47e   : > { %v4442_v58 = vmul.f32 %v9710_v35, %v4388_v0  ;;  %4644 = vmatmul.mubr.bf16.gmra.mrb[76].mxu1 %v4468_v29  ;;  %v4457_v22 = vadd.f32 %v4441_v6, %v13293_v30  ;;  %v11054_v30 = vld [vmem:[%s14868_s10 + $0x128] ss:$16 sps:$4 sm:$0xff]   ;;  %v11092_v35 = vld [vmem:[%s14868_s10 + $0x1ec] ss:$16 sps:$4 sm:$0xff]  }
 0x47f   : > { %4653 = vmatprep.mubr.bf16.mxu1 %v14924_v49  ;;  %5338 = vmatpush1.bf16.msra.mxu1 %v11036_v57  ;;  %v11095_v57 = vld [vmem:[%s14870_s12 + $0x4] ss:$28 sps:$4 sm:$0xff]   ;;  %v11098_v29 = vld [vmem:[%s14870_s12 + $0xc] ss:$28 sps:$4 sm:$0xff]  }
 0x480   : > { %v4458_v42 = vadd.f32 %v4442_v58, %v13298_v15  ;;  %5339 = vmatprep.subr.bf16.mxu1 %v11044_v46  ;;  %v11056_v15 = vld [vmem:[%s14868_s10 + $0x12c] ss:$16 sps:$4 sm:$0xff]   ;;  %v4489_v46 = vld [vmem:[%s14867_s9] sm:$0x3] }
 0x481   : > { %v13587_v0 = vrot.slane %v4489_v46, %v14922_v45  ;;  %v13590_v6 = vrot.slane %v4489_v46, %v14923_v32  ;;  %v11114_v46 = vld [vmem:[%s14870_s12 + $0xb0] ss:$28 sps:$4 sm:$0xff]  }
 0x482   : > { %v4469_v55 = vpack.c.bf16 %v4458_v42, %v4457_v22 }
 0x483   : > { %v4390_v37 = vpop.permute.xlu0 %4389  ;;  %5340 = vmatpush1.bf16.msra.mxu1 %v11042_v47 }
 0x484   : > { %5341 = vmatprep.subr.bf16.mxu1 %v11050_v34  ;;  %v4443_v62 = vmul.f32 %v9713_v14, %v4390_v37 }
 0x485   : > { %v4392_v25 = vpop.permute.xlu1 %4391 }
 0x486   : > { %v4444_v10 = vmul.f32 %v9714_v44, %v4392_v25  ;;  %4654 = vmatmul.mubr.bf16.gmra.mrb[80].mxu1 %v4469_v55  ;;  %v4459_v56 = vadd.f32 %v4443_v62, %v13307_v52  ;;  %v11066_v52 = vld [vmem:[%s14868_s10 + $0x168] ss:$16 sps:$4 sm:$0xff]  }
 0x487   : > { %4663 = vmatprep.mubr.bf16.mxu1 %v14924_v49  ;;  %5342 = vmatpush1.bf16.msra.mxu1 %v11048_v61 }
 0x488   : > { %v4460_v59 = vadd.f32 %v4444_v10, %v13312_v53  ;;  %5343 = vmatprep.subr.bf16.mxu1 %v11056_v15  ;;  %v11068_v53 = vld [vmem:[%s14868_s10 + $0x16c] ss:$16 sps:$4 sm:$0xff]  }
 0x48a   : > { %v4470_v31 = vpack.c.bf16 %v4460_v59, %v4459_v56 }
 0x48b   : > { %v4394_v17 = vpop.permute.xlu0 %4393  ;;  %5344 = vmatpush1.bf16.msra.mxu1 %v11054_v30 }
 0x48c   : > { %5345 = vmatprep.subr.bf16.mxu1 %v11062_v51  ;;  %v4445_v38 = vmul.f32 %v9717_v18, %v4394_v17  ;;  %v11096_v17 = vld [vmem:[%s14870_s12 + $0x8] ss:$28 sps:$4 sm:$0xff]  }
 0x48d   : > { %v4396_v33 = vpop.permute.xlu1 %4395 }
 0x48e   : > { %v4446_v41 = vmul.f32 %v9718_v40, %v4396_v33  ;;  %4664 = vmatmul.mubr.bf16.gmra.mrb[84].mxu1 %v4470_v31  ;;  %v4461_v23 = vadd.f32 %v4445_v38, %v13321_v50  ;;  %v11093_v40 = vld [vmem:[%s14870_s12] ss:$28 sps:$4 sm:$0xff]  }
 0x48f   : > { %4673 = vmatprep.mubr.bf16.mxu1 %v14924_v49  ;;  %5346 = vmatpush1.bf16.msra.mxu1 %v11060_v63  ;;  %v11104_v33 = vld [vmem:[%s14870_s12 + $0x44] ss:$28 sps:$4 sm:$0xff]  }
 0x490   : > { %v4462_v9 = vadd.f32 %v4446_v41, %v13326_v5  ;;  %5347 = vmatprep.subr.bf16.mxu1 %v11068_v53  ;;  %v11101_v53 = vld [vmem:[%s14870_s12 + $0x3c] ss:$28 sps:$4 sm:$0xff]  }
 0x492   : > { %v4471_v4 = vpack.c.bf16 %v4462_v9, %v4461_v23  ;;  %v11102_v23 = vld [vmem:[%s14870_s12 + $0x40] ss:$28 sps:$4 sm:$0xff]  }
 0x493   : > { %v4398_v60 = vpop.permute.xlu0 %4397  ;;  %5348 = vmatpush1.bf16.msra.mxu1 %v11066_v52  ;;  %v11099_v52 = vld [vmem:[%s14870_s12 + $0x38] ss:$28 sps:$4 sm:$0xff]  }
 0x494   : > { %5349 = vmatprep.subr.bf16.mxu1 %v11074_v11  ;;  %v4447_v1 = vmul.f32 %v9721_v2, %v4398_v60 }
 0x495   : > { %v4400_v21 = vpop.permute.xlu1 %4399 }
 0x496   : > { %v4448_v5 = vmul.f32 %v9722_v39, %v4400_v21  ;;  %4674 = vmatmul.mubr.bf16.gmra.mrb[88].mxu1 %v4471_v4  ;;  %v4463_v50 = vadd.f32 %v4447_v1, %v13341_v28  ;;  %v11081_v28 = vld [vmem:[%s14868_s10 + $0x1c0] ss:$16 sps:$4 sm:$0xff]  }
 0x497   : > { %4683 = vmatprep.mubr.bf16.mxu1 %v14924_v49  ;;  %5350 = vmatpush1.bf16.msra.mxu1 %v11072_v3  ;;  %v11080_v49 = vld [vmem:[%s14868_s10 + $0x1ac] ss:$16 sps:$4 sm:$0xff]   ;;  %v11107_v39 = vld [vmem:[%s14870_s12 + $0x74] ss:$28 sps:$4 sm:$0xff]  }
 0x498   : > { %v4464_v43 = vadd.f32 %v4448_v5, %v13352_v54  ;;  %5351 = vmatprep.subr.bf16.mxu1 %v11080_v49  ;;  %v11083_v54 = vld [vmem:[%s14868_s10 + $0x1c4] ss:$16 sps:$4 sm:$0xff]   ;;  %v11110_v3 = vld [vmem:[%s14870_s12 + $0x7c] ss:$28 sps:$4 sm:$0xff]  }
 0x499   : > { %5240 = vmatprep.subr.bf16.mxu0 %v11083_v54  ;;  %v11108_v49 = vld [vmem:[%s14870_s12 + $0x78] ss:$28 sps:$4 sm:$0xff]  }
 0x49a   : > { %v4472_v27 = vpack.c.bf16 %v4464_v43, %v4463_v50  ;;  %5241 = vmatpush1.bf16.msra.mxu0 %v11081_v28 }
 0x49b   : > { %5352 = vmatpush1.bf16.msra.mxu1 %v11078_v19  ;;  %5242 = vmatprep.subr.bf16.mxu0 %v11089_v48  ;;  %v11105_v19 = vld [vmem:[%s14870_s12 + $0x70] ss:$28 sps:$4 sm:$0xff]  }
 0x49c   : > { %5353 = vmatprep.subr.bf16.mxu1 %v11086_v13  ;;  %v11116_v13 = vld [vmem:[%s14870_s12 + $0xb4] ss:$28 sps:$4 sm:$0xff]  }
 0x49e   : > { %4684 = vmatmul.mubr.bf16.gmra.mrb[92].mxu1 %v4472_v27  ;;  %5243 = vmatpush1.bf16.msra.mxu0 %v11087_v8 }
 0x49f   : > { %5354 = vmatpush1.bf16.msra.mxu1 %v11084_v26  ;;  %7107 = vmatprep.subr.bf16.mxu0 %v11095_v57  ;;  %v11113_v26 = vld [vmem:[%s14870_s12 + $0xac] ss:$28 sps:$4 sm:$0xff]  }
 0x4a0   : > { %5355 = vmatprep.subr.bf16.mxu1 %v11092_v35 }
 0x4a3   : > { %5356 = vmatpush1.bf16.msra.mxu1 %v11090_v36  ;;  %v11111_v36 = vld [vmem:[%s14870_s12 + $0xa8] ss:$28 sps:$4 sm:$0xff]  }
 0x4a4   : > { %7333 = vmatprep.subr.bf16.mxu1 %v11098_v29 }
 0x539   : > { %v4615_v58 = vpop.f32.mrb[64].mxu1 }
 0x53a   : > { %v4616_v20 = vadd.f32 %v4615_v58, %v13587_v0  ;;  %v4617_v47 = vpop.f32.mrb[65].mxu1 }
 0x53b   : > { %v4618_v42 = vadd.f32 %v4617_v47, %v13590_v6  ;;  %v4619_v34 = vpop.f32.mrb[66].mxu1 }
 0x53c   : > { %v4726_v22 = vmul.f32 0.2, %v4616_v20  ;;  %v4620_v14 = vadd.f32 %v4619_v34, %v13587_v0  ;;  %v4621_v44 = vpop.f32.mrb[67].mxu1  ;;  %vm4694_vm15 = vcmp.ge.f32.partialorder %v4616_v20, 0.0 }
 0x53d   : > { %v4727_v37 = vmul.f32 0.2, %v4618_v42  ;;  %v4622_v61 = vadd.f32 %v4621_v44, %v13590_v6  ;;  %vm4695_vm1 = vcmp.ge.f32.partialorder %v4618_v42, 0.0 }
 0x53e   : > { %vm4696_vm2 = vcmp.ge.f32.partialorder %v4620_v14, 0.0  ;;  %v4728_v55 = vmul.f32 0.2, %v4620_v14  ;;  %v4758_v25 = vsel %vm4694_vm15, %v4616_v20, %v4726_v22  ;;  %v11119_v20 = vld [vmem:[%s14870_s12 + $0xe4] ss:$28 sps:$4 sm:$0xff]  }
 0x53f   : > { %vm4697_vm3 = vcmp.ge.f32.partialorder %v4622_v61, 0.0  ;;  %v4729_v15 = vmul.f32 0.2, %v4622_v61  ;;  %v4759_v30 = vsel %vm4695_vm1, %v4618_v42, %v4727_v37  ;;  %v11122_v42 = vld [vmem:[%s14870_s12 + $0xec] ss:$28 sps:$4 sm:$0xff]  }
 0x540   : > { %v4760_v62 = vsel %vm4696_vm2, %v4620_v14, %v4728_v55 }
 0x541   : > { %v4790_v10 = vpack.c.bf16 %v4760_v62, %v4758_v25  ;;  %v4625_v16 = vpop.f32.mrb[68].mxu1  ;;  %v4761_v59 = vsel %vm4697_vm3, %v4622_v61, %v4729_v15  ;;  %v11117_v62 = vld [vmem:[%s14870_s12 + $0xe0] ss:$28 sps:$4 sm:$0xff]  }
 0x542   : > { %v4626_v51 = vadd.f32 %v4625_v16, %v13587_v0  ;;  %v4627_v56 = vpop.f32.mrb[69].mxu1  ;;  %v4791_v18 = vpack.c.bf16 %v4761_v59, %v4759_v30  ;;  %v11125_v59 = vld [vmem:[%s14870_s12 + $0x11c] ss:$28 sps:$4 sm:$0xff]  }
 0x543   : > { %v4628_v63 = vadd.f32 %v4627_v56, %v13590_v6  ;;  %v4629_v31 = vpop.f32.mrb[70].mxu1 }
 0x544   : > { %v4730_v38 = vmul.f32 0.2, %v4626_v51  ;;  %v4630_v41 = vadd.f32 %v4629_v31, %v13587_v0  ;;  %v4631_v12 = vpop.f32.mrb[71].mxu1  ;;  %5244 = vmatprep.mubr.bf16.mxu0 %v4791_v18  ;;  %5357 = vmatprep.mubr.bf16.mxu1 %v4791_v18  ;;  %vm4698_vm4 = vcmp.ge.f32.partialorder %v4626_v51, 0.0 }
 0x545   : > { %v4731_v9 = vmul.f32 0.2, %v4628_v63  ;;  %v4632_v11 = vadd.f32 %v4631_v12, %v13590_v6  ;;  %5245 = vmatmul.mubr.bf16.vlgmr.msra.gmra.mrb[64].mxu0 %v4790_v10  ;;  %5358 = vmatmul.mubr.bf16.vlgmr.msra.gmra.mrb[96].mxu1 %v4790_v10  ;;  %vm4699_vm5 = vcmp.ge.f32.partialorder %v4628_v63, 0.0  ;;  %v11120_v10 = vld [vmem:[%s14870_s12 + $0xe8] ss:$28 sps:$4 sm:$0xff]  }
 0x546   : > { %vm4700_vm7 = vcmp.ge.f32.partialorder %v4630_v41, 0.0  ;;  %v4732_v2 = vmul.f32 0.2, %v4630_v41  ;;  %7108 = vmatpush1.bf16.msra.mxu0 %v11093_v40  ;;  %7334 = vmatpush1.bf16.msra.mxu1 %v11096_v17  ;;  %v4762_v4 = vsel %vm4698_vm4, %v4626_v51, %v4730_v38  ;;  %v11128_v51 = vld [vmem:[%s14870_s12 + $0x124] ss:$28 sps:$4 sm:$0xff]  }
 0x547   : > { %vm4701_vm8 = vcmp.ge.f32.partialorder %v4632_v11, 0.0  ;;  %v4733_v60 = vmul.f32 0.2, %v4632_v11  ;;  %7109 = vmatprep.subr.bf16.mxu0 %v11101_v53  ;;  %7335 = vmatprep.subr.bf16.mxu1 %v11104_v33  ;;  %v4763_v5 = vsel %vm4699_vm5, %v4628_v63, %v4731_v9  ;;  %v11123_v17 = vld [vmem:[%s14870_s12 + $0x118] ss:$28 sps:$4 sm:$0xff]  }
 0x548   : > { %v4764_v21 = vsel %vm4700_vm7, %v4630_v41, %v4732_v2  ;;  %v11126_v53 = vld [vmem:[%s14870_s12 + $0x120] ss:$28 sps:$4 sm:$0xff]   ;;  %v11131_v38 = vld [vmem:[%s14870_s12 + $0x154] ss:$28 sps:$4 sm:$0xff]  }
 0x549   : > { %v4635_v1 = vpop.f32.mrb[72].mxu1  ;;  %v4765_v43 = vsel %vm4701_vm8, %v4632_v11, %v4733_v60  ;;  %v4792_v50 = vpack.c.bf16 %v4764_v21, %v4762_v4  ;;  %v11134_v12 = vld [vmem:[%s14870_s12 + $0x15c] ss:$28 sps:$4 sm:$0xff]   ;;  %v11129_v21 = vld [vmem:[%s14870_s12 + $0x150] ss:$28 sps:$4 sm:$0xff]  }
 0x54a   : > { %v4636_v27 = vadd.f32 %v4635_v1, %v13587_v0  ;;  %v4637_v7 = vpop.f32.mrb[73].mxu1  ;;  %v4793_v24 = vpack.c.bf16 %v4765_v43, %v4763_v5  ;;  %7110 = vmatpush1.bf16.msra.mxu0 %v11099_v52  ;;  %7336 = vmatpush1.bf16.msra.mxu1 %v11102_v23  ;;  %v11132_v1 = vld [vmem:[%s14870_s12 + $0x158] ss:$28 sps:$4 sm:$0xff]  }
 0x54b   : > { %v4638_v28 = vadd.f32 %v4637_v7, %v13590_v6  ;;  %v4639_v54 = vpop.f32.mrb[74].mxu1  ;;  %7111 = vmatprep.subr.bf16.mxu0 %v11107_v39  ;;  %7337 = vmatprep.subr.bf16.mxu1 %v11110_v3 }
 0x54c   : > { %v4734_v48 = vmul.f32 0.2, %v4636_v27  ;;  %v4640_v8 = vadd.f32 %v4639_v54, %v13587_v0  ;;  %v4641_v35 = vpop.f32.mrb[75].mxu1  ;;  %5254 = vmatprep.mubr.bf16.mxu0 %v4793_v24  ;;  %5367 = vmatprep.mubr.bf16.mxu1 %v4793_v24  ;;  %vm4702_vm12 = vcmp.ge.f32.partialorder %v4636_v27, 0.0 }
 0x54d   : > { %v4735_v57 = vmul.f32 0.2, %v4638_v28  ;;  %v4642_v29 = vadd.f32 %v4641_v35, %v13590_v6  ;;  %5255 = vmatmul.mubr.bf16.gmra.mrb[68].mxu0 %v4792_v50  ;;  %5368 = vmatmul.mubr.bf16.gmra.mrb[100].mxu1 %v4792_v50  ;;  %vm4703_vm0 = vcmp.ge.f32.partialorder %v4638_v28, 0.0  ;;  %v11137_v50 = vld [vmem:[%s14870_s12 + $0x18c] ss:$28 sps:$4 sm:$0xff]  }
 0x54e   : > { %vm4704_vm6 = vcmp.ge.f32.partialorder %v4640_v8, 0.0  ;;  %v4736_v58 = vmul.f32 0.2, %v4640_v8  ;;  %7112 = vmatpush1.bf16.msra.mxu0 %v11105_v19  ;;  %7338 = vmatpush1.bf16.msra.mxu1 %v11108_v49  ;;  %v4766_v34 = vsel %vm4702_vm12, %v4636_v27, %v4734_v48  ;;  %v11140_v27 = vld [vmem:[%s14870_s12 + $0x194] ss:$28 sps:$4 sm:$0xff]  }
 0x54f   : > { %vm4705_vm9 = vcmp.ge.f32.partialorder %v4642_v29, 0.0  ;;  %v4737_v47 = vmul.f32 0.2, %v4642_v29  ;;  %7113 = vmatprep.subr.bf16.mxu0 %v11113_v26  ;;  %7339 = vmatprep.subr.bf16.mxu1 %v11116_v13  ;;  %v4767_v44 = vsel %vm4703_vm0, %v4638_v28, %v4735_v57  ;;  %v11135_v49 = vld [vmem:[%s14870_s12 + $0x188] ss:$28 sps:$4 sm:$0xff]  }
 0x550   : > { %v4768_v22 = vsel %vm4704_vm6, %v4640_v8, %v4736_v58  ;;  %v11138_v26 = vld [vmem:[%s14870_s12 + $0x190] ss:$28 sps:$4 sm:$0xff]   ;;  %v11143_v48 = vld [vmem:[%s14870_s12 + $0x1c4] ss:$28 sps:$4 sm:$0xff]  }
 0x551   : > { %v4645_v14 = vpop.f32.mrb[76].mxu1  ;;  %v4769_v37 = vsel %vm4705_vm9, %v4642_v29, %v4737_v47  ;;  %v4794_v61 = vpack.c.bf16 %v4768_v22, %v4766_v34  ;;  %v11146_v35 = vld [vmem:[%s14870_s12 + $0x1cc] ss:$28 sps:$4 sm:$0xff]   ;;  %v11141_v22 = vld [vmem:[%s14870_s12 + $0x1c0] ss:$28 sps:$4 sm:$0xff]  }
 0x552   : > { %v4646_v55 = vadd.f32 %v4645_v14, %v13587_v0  ;;  %v4647_v15 = vpop.f32.mrb[77].mxu1  ;;  %v4795_v25 = vpack.c.bf16 %v4769_v37, %v4767_v44  ;;  %7114 = vmatpush1.bf16.msra.mxu0 %v11111_v36  ;;  %7340 = vmatpush1.bf16.msra.mxu1 %v11114_v46  ;;  %v11144_v14 = vld [vmem:[%s14870_s12 + $0x1c8] ss:$28 sps:$4 sm:$0xff]  }
 0x553   : > { %v4648_v16 = vadd.f32 %v4647_v15, %v13590_v6  ;;  %v4649_v30 = vpop.f32.mrb[78].mxu1  ;;  %7115 = vmatprep.subr.bf16.mxu0 %v11119_v20  ;;  %7341 = vmatprep.subr.bf16.mxu1 %v11122_v42 }
 0x554   : > { %v4738_v56 = vmul.f32 0.2, %v4646_v55  ;;  %v4650_v18 = vadd.f32 %v4649_v30, %v13587_v0  ;;  %v4651_v40 = vpop.f32.mrb[79].mxu1  ;;  %5264 = vmatprep.mubr.bf16.mxu0 %v4795_v25  ;;  %5377 = vmatprep.mubr.bf16.mxu1 %v4795_v25  ;;  %vm4706_vm10 = vcmp.ge.f32.partialorder %v4646_v55, 0.0 }
 0x555   : > { %v4739_v63 = vmul.f32 0.2, %v4648_v16  ;;  %v4652_v31 = vadd.f32 %v4651_v40, %v13590_v6  ;;  %5265 = vmatmul.mubr.bf16.gmra.mrb[72].mxu0 %v4794_v61  ;;  %5378 = vmatmul.mubr.bf16.gmra.mrb[104].mxu1 %v4794_v61  ;;  %vm4707_vm11 = vcmp.ge.f32.partialorder %v4648_v16, 0.0  ;;  %v11149_v61 = vld [vmem:[%s14870_s12 + $0x1fc] ss:$28 sps:$4 sm:$0xff]  }
 0x556   : > { %vm4708_vm13 = vcmp.ge.f32.partialorder %v4650_v18, 0.0  ;;  %v4740_v33 = vmul.f32 0.2, %v4650_v18  ;;  %7116 = vmatpush1.bf16.msra.mxu0 %v11117_v62  ;;  %7342 = vmatpush1.bf16.msra.mxu1 %v11120_v10  ;;  %v4770_v52 = vsel %vm4706_vm10, %v4646_v55, %v4738_v56  ;;  %v11152_v55 = vld [vmem:[%s14870_s12 + $0x204] ss:$28 sps:$4 sm:$0xff]  }
 0x557   : > { %vm4709_vm14 = vcmp.ge.f32.partialorder %v4652_v31, 0.0  ;;  %v4741_v41 = vmul.f32 0.2, %v4652_v31  ;;  %7117 = vmatprep.subr.bf16.mxu0 %v11125_v59  ;;  %7343 = vmatprep.subr.bf16.mxu1 %v11128_v51  ;;  %v4771_v23 = vsel %vm4707_vm11, %v4648_v16, %v4739_v63  ;;  %v11147_v10 = vld [vmem:[%s14870_s12 + $0x1f8] ss:$28 sps:$4 sm:$0xff]  }
 0x558   : > { %v4772_v9 = vsel %vm4708_vm13, %v4650_v18, %v4740_v33  ;;  %v11150_v59 = vld [vmem:[%s14870_s12 + $0x200] ss:$28 sps:$4 sm:$0xff]   ;;  %v11155_v56 = vld [vmem:[%s14870_s12 + $0x234] ss:$28 sps:$4 sm:$0xff]  }
 0x559   : > { %v4655_v11 = vpop.f32.mrb[80].mxu1  ;;  %v4773_v2 = vsel %vm4709_vm14, %v4652_v31, %v4741_v41  ;;  %v4796_v39 = vpack.c.bf16 %v4772_v9, %v4770_v52  ;;  %v11158_v40 = vld [vmem:[%s14870_s12 + $0x23c] ss:$28 sps:$4 sm:$0xff]   ;;  %v11153_v9 = vld [vmem:[%s14870_s12 + $0x230] ss:$28 sps:$4 sm:$0xff]  }
 0x55a   : > { %v4656_v60 = vadd.f32 %v4655_v11, %v13587_v0  ;;  %v4657_v3 = vpop.f32.mrb[81].mxu1  ;;  %v4797_v4 = vpack.c.bf16 %v4773_v2, %v4771_v23  ;;  %7118 = vmatpush1.bf16.msra.mxu0 %v11123_v17  ;;  %7344 = vmatpush1.bf16.msra.mxu1 %v11126_v53  ;;  %v11156_v11 = vld [vmem:[%s14870_s12 + $0x238] ss:$28 sps:$4 sm:$0xff]  }
 0x55b   : > { %v4658_v5 = vadd.f32 %v4657_v3, %v13590_v6  ;;  %v4659_v43 = vpop.f32.mrb[82].mxu1  ;;  %7119 = vmatprep.subr.bf16.mxu0 %v11131_v38  ;;  %7345 = vmatprep.subr.bf16.mxu1 %v11134_v12 }
 0x55c   : > { %v4742_v7 = vmul.f32 0.2, %v4656_v60  ;;  %v4660_v24 = vadd.f32 %v4659_v43, %v13587_v0  ;;  %v4661_v19 = vpop.f32.mrb[83].mxu1  ;;  %5274 = vmatprep.mubr.bf16.mxu0 %v4797_v4  ;;  %5387 = vmatprep.mubr.bf16.mxu1 %v4797_v4  ;;  %vm4710_vm15 = vcmp.ge.f32.partialorder %v4656_v60, 0.0 }
 0x55d   : > { %v4743_v28 = vmul.f32 0.2, %v4658_v5  ;;  %v4662_v54 = vadd.f32 %v4661_v19, %v13590_v6  ;;  %5275 = vmatmul.mubr.bf16.gmra.mrb[76].mxu0 %v4796_v39  ;;  %5388 = vmatmul.mubr.bf16.gmra.mrb[108].mxu1 %v4796_v39  ;;  %vm4711_vm1 = vcmp.ge.f32.partialorder %v4658_v5, 0.0  ;;  %v11161_v39 = vld [vmem:[%s14870_s12 + $0x26c] ss:$28 sps:$4 sm:$0xff]  }
 0x55e   : > { %vm4712_vm2 = vcmp.ge.f32.partialorder %v4660_v24, 0.0  ;;  %v4744_v13 = vmul.f32 0.2, %v4660_v24  ;;  %7120 = vmatpush1.bf16.msra.mxu0 %v11129_v21  ;;  %7346 = vmatpush1.bf16.msra.mxu1 %v11132_v1  ;;  %v4774_v36 = vsel %vm4710_vm15, %v4656_v60, %v4742_v7  ;;  %v11164_v60 = vld [vmem:[%s14870_s12 + $0x274] ss:$28 sps:$4 sm:$0xff]  }
 0x55f   : > { %vm4713_vm3 = vcmp.ge.f32.partialorder %v4662_v54, 0.0  ;;  %v4745_v8 = vmul.f32 0.2, %v4662_v54  ;;  %7121 = vmatprep.subr.bf16.mxu0 %v11137_v50  ;;  %7347 = vmatprep.subr.bf16.mxu1 %v11140_v27  ;;  %v4775_v46 = vsel %vm4711_vm1, %v4658_v5, %v4743_v28  ;;  %v11159_v1 = vld [vmem:[%s14870_s12 + $0x268] ss:$28 sps:$4 sm:$0xff]  }
 0x560   : > { %v4776_v57 = vsel %vm4712_vm2, %v4660_v24, %v4744_v13  ;;  %v11162_v50 = vld [vmem:[%s14870_s12 + $0x270] ss:$28 sps:$4 sm:$0xff]   ;;  %v11167_v7 = vld [vmem:[%s14870_s12 + $0x2a4] ss:$28 sps:$4 sm:$0xff]  }
 0x561   : > { %v4665_v29 = vpop.f32.mrb[84].mxu1  ;;  %v4777_v58 = vsel %vm4713_vm3, %v4662_v54, %v4745_v8  ;;  %v4798_v20 = vpack.c.bf16 %v4776_v57, %v4774_v36  ;;  %v11170_v19 = vld [vmem:[%s14870_s12 + $0x2ac] ss:$28 sps:$4 sm:$0xff]   ;;  %v11165_v57 = vld [vmem:[%s14870_s12 + $0x2a0] ss:$28 sps:$4 sm:$0xff]  }
 0x562   : > { %v4666_v47 = vadd.f32 %v4665_v29, %v13587_v0  ;;  %v4667_v42 = vpop.f32.mrb[85].mxu1  ;;  %v4799_v34 = vpack.c.bf16 %v4777_v58, %v4775_v46  ;;  %7122 = vmatpush1.bf16.msra.mxu0 %v11135_v49  ;;  %7348 = vmatpush1.bf16.msra.mxu1 %v11138_v26  ;;  %v11168_v29 = vld [vmem:[%s14870_s12 + $0x2a8] ss:$28 sps:$4 sm:$0xff]  }
 0x563   : > { %v4668_v44 = vadd.f32 %v4667_v42, %v13590_v6  ;;  %v4669_v37 = vpop.f32.mrb[86].mxu1  ;;  %7123 = vmatprep.subr.bf16.mxu0 %v11143_v48  ;;  %7349 = vmatprep.subr.bf16.mxu1 %v11146_v35 }
 0x564   : > { %v4746_v15 = vmul.f32 0.2, %v4666_v47  ;;  %v4670_v25 = vadd.f32 %v4669_v37, %v13587_v0  ;;  %v4671_v62 = vpop.f32.mrb[87].mxu1  ;;  %5284 = vmatprep.mubr.bf16.mxu0 %v4799_v34  ;;  %5397 = vmatprep.mubr.bf16.mxu1 %v4799_v34  ;;  %vm4714_vm4 = vcmp.ge.f32.partialorder %v4666_v47, 0.0 }
 0x565   : > { %v4747_v16 = vmul.f32 0.2, %v4668_v44  ;;  %v4672_v30 = vadd.f32 %v4671_v62, %v13590_v6  ;;  %5285 = vmatmul.mubr.bf16.gmra.mrb[80].mxu0 %v4798_v20  ;;  %5398 = vmatmul.mubr.bf16.gmra.mrb[112].mxu1 %v4798_v20  ;;  %vm4715_vm5 = vcmp.ge.f32.partialorder %v4668_v44, 0.0  ;;  %v11173_v62 = vld [vmem:[%s14870_s12 + $0x2dc] ss:$28 sps:$4 sm:$0xff]  }
 0x566   : > { %vm4716_vm7 = vcmp.ge.f32.partialorder %v4670_v25, 0.0  ;;  %v4748_v51 = vmul.f32 0.2, %v4670_v25  ;;  %7124 = vmatpush1.bf16.msra.mxu0 %v11141_v22  ;;  %7350 = vmatpush1.bf16.msra.mxu1 %v11144_v14  ;;  %v4778_v17 = vsel %vm4714_vm4, %v4666_v47, %v4746_v15 }
 0x567   : > { %vm4717_vm8 = vcmp.ge.f32.partialorder %v4672_v30, 0.0  ;;  %v4749_v18 = vmul.f32 0.2, %v4672_v30  ;;  %7125 = vmatprep.subr.bf16.mxu0 %v11149_v61  ;;  %7351 = vmatprep.subr.bf16.mxu1 %v11152_v55  ;;  %v4779_v53 = vsel %vm4715_vm5, %v4668_v44, %v4747_v16  ;;  %v11176_v16 = vld [vmem:[%s14870_s12 + $0x2e4] ss:$28 sps:$4 sm:$0xff]  }
 0x568   : > { %v4780_v63 = vsel %vm4716_vm7, %v4670_v25, %v4748_v51  ;;  %v11180_v51 = vld [vmem:[%s14870_s12 + $0x318] ss:$28 sps:$4 sm:$0xff]  }
 0x569   : > { %v4675_v31 = vpop.f32.mrb[88].mxu1  ;;  %v4781_v33 = vsel %vm4717_vm8, %v4672_v30, %v4749_v18  ;;  %v4800_v38 = vpack.c.bf16 %v4780_v63, %v4778_v17  ;;  %v11177_v30 = vld [vmem:[%s14870_s12 + $0x310] ss:$28 sps:$4 sm:$0xff]   ;;  %v11183_v18 = vld [vmem:[%s14870_s12 + $0x348] ss:$28 sps:$4 sm:$0xff]  }
 0x56a   : > { %v4676_v41 = vadd.f32 %v4675_v31, %v13587_v0  ;;  %v4677_v12 = vpop.f32.mrb[89].mxu1  ;;  %v4801_v52 = vpack.c.bf16 %v4781_v33, %v4779_v53  ;;  %7126 = vmatpush1.bf16.msra.mxu0 %v11147_v10  ;;  %7352 = vmatpush1.bf16.msra.mxu1 %v11150_v59  ;;  %v11174_v10 = vld [vmem:[%s14870_s12 + $0x2e0] ss:$28 sps:$4 sm:$0xff]   ;;  %v11179_v59 = vld [vmem:[%s14870_s12 + $0x314] ss:$28 sps:$4 sm:$0xff]  }
 0x56b   : > { %v4678_v23 = vadd.f32 %v4677_v12, %v13590_v6  ;;  %v4679_v2 = vpop.f32.mrb[90].mxu1  ;;  %7127 = vmatprep.subr.bf16.mxu0 %v11155_v56  ;;  %7353 = vmatprep.subr.bf16.mxu1 %v11158_v40  ;;  %v11182_v56 = vld [vmem:[%s14870_s12 + $0x31c] ss:$28 sps:$4 sm:$0xff]   ;;  %v11185_v40 = vld [vmem:[%s14870_s12 + $0x34c] ss:$28 sps:$4 sm:$0xff]  }
 0x56c   : > { %v4750_v3 = vmul.f32 0.2, %v4676_v41  ;;  %v4680_v4 = vadd.f32 %v4679_v2, %v13587_v0  ;;  %v4681_v21 = vpop.f32.mrb[91].mxu1  ;;  %5294 = vmatprep.mubr.bf16.mxu0 %v4801_v52  ;;  %5407 = vmatprep.mubr.bf16.mxu1 %v4801_v52  ;;  %vm4718_vm12 = vcmp.ge.f32.partialorder %v4676_v41, 0.0  ;;  %v11186_v17 = vld [vmem:[%s14870_s12 + $0x350] ss:$28 sps:$4 sm:$0xff]  }
 0x56d   : > { %v4751_v5 = vmul.f32 0.2, %v4678_v23  ;;  %v4682_v43 = vadd.f32 %v4681_v21, %v13590_v6  ;;  %5295 = vmatmul.mubr.bf16.gmra.mrb[84].mxu0 %v4800_v38  ;;  %5408 = vmatmul.mubr.bf16.gmra.mrb[116].mxu1 %v4800_v38  ;;  %vm4719_vm0 = vcmp.ge.f32.partialorder %v4678_v23, 0.0  ;;  %v11188_v63 = vld [vmem:[%s14870_s12 + $0x354] ss:$28 sps:$4 sm:$0xff]  }
 0x56e   : > { %vm4720_vm6 = vcmp.ge.f32.partialorder %v4680_v4, 0.0  ;;  %v4752_v27 = vmul.f32 0.2, %v4680_v4  ;;  %7128 = vmatpush1.bf16.msra.mxu0 %v11153_v9  ;;  %7354 = vmatpush1.bf16.msra.mxu1 %v11156_v11  ;;  %v4782_v49 = vsel %vm4718_vm12, %v4676_v41, %v4750_v3  ;;  %v11191_v31 = vld [vmem:[%s14870_s12 + $0x384] ss:$28 sps:$4 sm:$0xff]   ;;  %v14925_v41 = vld [vmem:[#allocation4_spill] sm:$0xff] }
 0x56f   : > { %vm4721_vm9 = vcmp.ge.f32.partialorder %v4682_v43, 0.0  ;;  %v4753_v24 = vmul.f32 0.2, %v4682_v43  ;;  %7129 = vmatprep.subr.bf16.mxu0 %v11161_v39  ;;  %7355 = vmatprep.subr.bf16.mxu1 %v11164_v60  ;;  %v4783_v26 = vsel %vm4719_vm0, %v4678_v23, %v4751_v5  ;;  %v11194_v53 = vld [vmem:[%s14870_s12 + $0x38c] ss:$28 sps:$4 sm:$0xff]   ;;  %v14926_v9 = vld [vmem:[#allocation6_spill] sm:$0xff] }
 0x570   : > { %v4784_v28 = vsel %vm4720_vm6, %v4680_v4, %v4752_v27  ;;  %v4870_v33 = vld [vmem:[%s14869_s11] sm:$0xf] }
 0x571   : > { %v4685_v54 = vpop.f32.mrb[92].mxu1  ;;  %v4785_v13 = vsel %vm4721_vm9, %v4682_v43, %v4753_v24  ;;  %v4802_v48 = vpack.c.bf16 %v4784_v28, %v4782_v49  ;;  %v13826_v38 = vrot.slane %v4870_v33, %v14922_v45  ;;  %v13829_v12 = vrot.slane %v4870_v33, %v14925_v41 }
 0x572   : > { %v4686_v8 = vadd.f32 %v4685_v54, %v13587_v0  ;;  %v4687_v35 = vpop.f32.mrb[93].mxu1  ;;  %v4803_v36 = vpack.c.bf16 %v4785_v13, %v4783_v26  ;;  %7130 = vmatpush1.bf16.msra.mxu0 %v11159_v1  ;;  %7356 = vmatpush1.bf16.msra.mxu1 %v11162_v50  ;;  %v13832_v52 = vrot.slane %v4870_v33, %v14923_v32 }
 0x573   : > { %v4688_v46 = vadd.f32 %v4687_v35, %v13590_v6  ;;  %v4689_v58 = vpop.f32.mrb[94].mxu1  ;;  %7131 = vmatprep.subr.bf16.mxu0 %v11167_v7  ;;  %7357 = vmatprep.subr.bf16.mxu1 %v11170_v19  ;;  %v13835_v11 = vrot.slane %v4870_v33, %v14926_v9 }
 0x574   : > { %v4754_v20 = vmul.f32 0.2, %v4686_v8  ;;  %v4690_v47 = vadd.f32 %v4689_v58, %v13587_v0  ;;  %v4691_v42 = vpop.f32.mrb[95].mxu1  ;;  %5304 = vmatprep.mubr.bf16.mxu0 %v4803_v36  ;;  %5417 = vmatprep.mubr.bf16.mxu1 %v4803_v36  ;;  %vm4722_vm10 = vcmp.ge.f32.partialorder %v4686_v8, 0.0 }
 0x575   : > { %v4755_v34 = vmul.f32 0.2, %v4688_v46  ;;  %v4692_v22 = vadd.f32 %v4691_v42, %v13590_v6  ;;  %5305 = vmatmul.mubr.bf16.gmra.mrb[88].mxu0 %v4802_v48  ;;  %5418 = vmatmul.mubr.bf16.gmra.mrb[120].mxu1 %v4802_v48  ;;  %vm4723_vm11 = vcmp.ge.f32.partialorder %v4688_v46, 0.0  ;;  %v11171_v6 = vld [vmem:[%s14870_s12 + $0x2d8] ss:$28 sps:$4 sm:$0xff]  }
 0x576   : > { %vm4724_vm13 = vcmp.ge.f32.partialorder %v4690_v47, 0.0  ;;  %v4756_v14 = vmul.f32 0.2, %v4690_v47  ;;  %7132 = vmatpush1.bf16.msra.mxu0 %v11165_v57  ;;  %7358 = vmatpush1.bf16.msra.mxu1 %v11168_v29  ;;  %v4786_v37 = vsel %vm4722_vm10, %v4686_v8, %v4754_v20 }
 0x577   : > { %vm4725_vm14 = vcmp.ge.f32.partialorder %v4692_v22, 0.0  ;;  %v4757_v44 = vmul.f32 0.2, %v4692_v22  ;;  %v4787_v55 = vsel %vm4723_vm11, %v4688_v46, %v4755_v34  ;;  %7133 = vmatprep.subr.bf16.mxu0 %v11173_v62  ;;  %7359 = vmatprep.subr.bf16.mxu1 %v11176_v16  ;;  %v11189_v16 = vld [vmem:[%s14870_s12 + $0x380] ss:$28 sps:$4 sm:$0xff]  }
 0x578   : > { %v4788_v61 = vsel %vm4724_vm13, %v4690_v47, %v4756_v14 }
 0x579   : > { %v4789_v0 = vsel %vm4725_vm14, %v4692_v22, %v4757_v44  ;;  %v4804_v15 = vpack.c.bf16 %v4788_v61, %v4786_v37 }
 0x57a   : > { %v4805_v25 = vpack.c.bf16 %v4789_v0, %v4787_v55  ;;  %7134 = vmatpush1.bf16.msra.mxu0 %v11171_v6  ;;  %7360 = vmatpush1.bf16.msra.mxu1 %v11174_v10 }
 0x57b   : > { %7135 = vmatprep.subr.bf16.mxu0 %v11179_v59  ;;  %7361 = vmatprep.subr.bf16.mxu1 %v11182_v56 }
 0x57c   : > { %5314 = vmatprep.mubr.bf16.mxu0 %v4805_v25  ;;  %5427 = vmatprep.mubr.bf16.mxu1 %v4805_v25 }
 0x57d   : > { %5315 = vmatmul.mubr.bf16.gmra.mrb[92].mxu0 %v4804_v15  ;;  %5428 = vmatmul.mubr.bf16.gmra.mrb[124].mxu1 %v4804_v15 }
 0x57e   : > { %7136 = vmatpush1.bf16.msra.mxu0 %v11177_v30  ;;  %7362 = vmatpush1.bf16.msra.mxu1 %v11180_v51  ;;  %v11192_v30 = vld [vmem:[%s14870_s12 + $0x388] ss:$28 sps:$4 sm:$0xff]  }
 0x57f   : > { %7137 = vmatprep.subr.bf16.mxu0 %v11185_v40  ;;  %7363 = vmatprep.subr.bf16.mxu1 %v11188_v63  ;;  %v11197_v63 = vld [vmem:[%s14870_s12 + $0x3bc] ss:$28 sps:$4 sm:$0xff]  }
 0x582   : > { %7138 = vmatpush1.bf16.msra.mxu0 %v11183_v18  ;;  %7364 = vmatpush1.bf16.msra.mxu1 %v11186_v17 }
 0x583   : > { %7220 = vmatprep.subr.bf16.mxu0 %v11191_v31  ;;  %7446 = vmatprep.subr.bf16.mxu1 %v11194_v53  ;;  %v11200_v31 = vld [vmem:[%s14870_s12 + $0x3c4] ss:$28 sps:$4 sm:$0xff]  }
 0x618   : > { %v5246_v23 = vpop.f32.mrb[64].mxu0  ;;  %v5359_v2 = vpop.f32.mrb[96].mxu1 }
 0x619   : > { %v5247_v39 = vadd.f32 %v5246_v23, %v13826_v38  ;;  %v5360_v60 = vadd.f32 %v5359_v2, %v13829_v12  ;;  %v5248_v3 = vpop.f32.mrb[65].mxu0  ;;  %v5361_v4 = vpop.f32.mrb[97].mxu1  ;;  %v11195_v23 = vld [vmem:[%s14870_s12 + $0x3b8] ss:$28 sps:$4 sm:$0xff]   ;;  %v11198_v2 = vld [vmem:[%s14870_s12 + $0x3c0] ss:$28 sps:$4 sm:$0xff]  }
 0x61a   : > { %v5249_v21 = vadd.f32 %v5248_v3, %v13832_v52  ;;  %v5362_v1 = vadd.f32 %v5361_v4, %v13835_v11  ;;  %v5250_v5 = vpop.f32.mrb[66].mxu0  ;;  %v5363_v43 = vpop.f32.mrb[98].mxu1  ;;  %v11203_v3 = vld [vmem:[%s14870_s12 + $0x3f4] ss:$28 sps:$4 sm:$0xff]  }
 0x61b   : > { %vm5438_vm15 = vcmp.ge.f32.partialorder %v5247_v39, 0.0  ;;  %v5502_v50 = vmul.f32 0.2, %v5247_v39  ;;  %vm5440_vm1 = vcmp.ge.f32.partialorder %v5360_v60, 0.0  ;;  %v5504_v27 = vmul.f32 0.2, %v5360_v60 }
 0x61c   : > { %vm5439_vm2 = vcmp.ge.f32.partialorder %v5249_v21, 0.0  ;;  %v5503_v7 = vmul.f32 0.2, %v5249_v21  ;;  %vm5441_vm3 = vcmp.ge.f32.partialorder %v5362_v1, 0.0  ;;  %v5505_v24 = vmul.f32 0.2, %v5362_v1 }
 0x61d   : > { %v5251_v19 = vadd.f32 %v5250_v5, %v13826_v38  ;;  %v5364_v49 = vadd.f32 %v5363_v43, %v13829_v12  ;;  %v5252_v28 = vpop.f32.mrb[67].mxu0  ;;  %v5365_v54 = vpop.f32.mrb[99].mxu1  ;;  %v5566_v26 = vsel %vm5438_vm15, %v5247_v39, %v5502_v50  ;;  %v5568_v13 = vsel %vm5440_vm1, %v5360_v60, %v5504_v27  ;;  %v11206_v5 = vld [vmem:[%s14870_s12 + $0x3fc] ss:$28 sps:$4 sm:$0xff]  }
 0x61e   : > { %v5253_v48 = vadd.f32 %v5252_v28, %v13832_v52  ;;  %v5366_v8 = vadd.f32 %v5365_v54, %v13835_v11  ;;  %v5567_v46 = vsel %vm5439_vm2, %v5249_v21, %v5503_v7  ;;  %v5569_v58 = vsel %vm5441_vm3, %v5362_v1, %v5505_v24 }
 0x61f   : > { %vm5442_vm4 = vcmp.ge.f32.partialorder %v5251_v19, 0.0  ;;  %v5506_v35 = vmul.f32 0.2, %v5251_v19  ;;  %vm5444_vm5 = vcmp.ge.f32.partialorder %v5364_v49, 0.0  ;;  %v5508_v36 = vmul.f32 0.2, %v5364_v49 }
 0x620   : > { %vm5443_vm7 = vcmp.ge.f32.partialorder %v5253_v48, 0.0  ;;  %v5507_v57 = vmul.f32 0.2, %v5253_v48  ;;  %vm5445_vm8 = vcmp.ge.f32.partialorder %v5366_v8, 0.0  ;;  %v5509_v29 = vmul.f32 0.2, %v5366_v8 }
 0x621   : > { %v5570_v20 = vsel %vm5442_vm4, %v5251_v19, %v5506_v35  ;;  %v5572_v47 = vsel %vm5444_vm5, %v5364_v49, %v5508_v36  ;;  %v5256_v42 = vpop.f32.mrb[68].mxu0  ;;  %v5369_v34 = vpop.f32.mrb[100].mxu1 }
 0x622   : > { %v13847_v22 = vpack.c.bf16 %v5570_v20, %v5566_v26  ;;  %v13849_v14 = vpack.c.bf16 %v5572_v47, %v5568_v13  ;;  %v5571_v44 = vsel %vm5443_vm7, %v5253_v48, %v5507_v57  ;;  %v5573_v37 = vsel %vm5445_vm8, %v5366_v8, %v5509_v29  ;;  %v5258_v61 = vpop.f32.mrb[69].mxu0  ;;  %v5371_v55 = vpop.f32.mrb[101].mxu1 }
 0x623   : > { %v13851_v0 = vpack.c.bf16 %v5571_v44, %v5567_v46  ;;  %v13853_v15 = vpack.c.bf16 %v5573_v37, %v5569_v58  ;;  %v5257_v25 = vadd.f32 %v5256_v42, %v13826_v38  ;;  %v5370_v6 = vadd.f32 %v5369_v34, %v13829_v12  ;;  %v5260_v62 = vpop.f32.mrb[70].mxu0  ;;  %v5373_v10 = vpop.f32.mrb[102].mxu1  ;;  %v11201_v46 = vld [vmem:[%s14870_s12 + $0x3f0] ss:$28 sps:$4 sm:$0xff]  }
 0x624   : > { %v5259_v59 = vadd.f32 %v5258_v61, %v13832_v52  ;;  %v5372_v51 = vadd.f32 %v5371_v55, %v13835_v11  ;;  %v5261_v56 = vadd.f32 %v5260_v62, %v13826_v38  ;;  %v5374_v18 = vadd.f32 %v5373_v10, %v13829_v12  ;;  %v5262_v40 = vpop.f32.mrb[71].mxu0  ;;  %v5375_v17 = vpop.f32.mrb[103].mxu1 }
 0x625   : > { %vm5446_vm12 = vcmp.ge.f32.partialorder %v5257_v25, 0.0  ;;  %v5510_v53 = vmul.f32 0.2, %v5257_v25  ;;  %vm5448_vm0 = vcmp.ge.f32.partialorder %v5370_v6, 0.0  ;;  %v5512_v33 = vmul.f32 0.2, %v5370_v6  ;;  %7139 = vmatprep.mubr.bf16.mxu0 %v13851_v0  ;;  %7365 = vmatprep.mubr.bf16.mxu1 %v13851_v0 }
 0x626   : > { %vm5447_vm6 = vcmp.ge.f32.partialorder %v5259_v59, 0.0  ;;  %v5511_v39 = vmul.f32 0.2, %v5259_v59  ;;  %vm5449_vm9 = vcmp.ge.f32.partialorder %v5372_v51, 0.0  ;;  %v5513_v60 = vmul.f32 0.2, %v5372_v51  ;;  %7140 = vmatmul.mubr.bf16.vlgmr.msra.gmra.mrb[96].mxu0 %v13847_v22  ;;  %7366 = vmatmul.mubr.bf16.vlgmr.msra.gmra.mrb[128].mxu1 %v13847_v22 }
 0x627   : > { %v5574_v4 = vsel %vm5446_vm12, %v5257_v25, %v5510_v53  ;;  %v5576_v21 = vsel %vm5448_vm0, %v5370_v6, %v5512_v33  ;;  %vm5450_vm10 = vcmp.ge.f32.partialorder %v5261_v56, 0.0  ;;  %v5514_v1 = vmul.f32 0.2, %v5261_v56  ;;  %7221 = vmatpush1.bf16.msra.mxu0 %v11189_v16  ;;  %7447 = vmatpush1.bf16.msra.mxu1 %v11192_v30  ;;  %v11204_v16 = vld [vmem:[%s14870_s12 + $0x3f8] ss:$28 sps:$4 sm:$0xff]  }
 0x628   : > { %v5575_v43 = vsel %vm5447_vm6, %v5259_v59, %v5511_v39  ;;  %v5577_v50 = vsel %vm5449_vm9, %v5372_v51, %v5513_v60  ;;  %vm5452_vm11 = vcmp.ge.f32.partialorder %v5374_v18, 0.0  ;;  %v5516_v27 = vmul.f32 0.2, %v5374_v18  ;;  %v5266_v7 = vpop.f32.mrb[72].mxu0  ;;  %v5379_v24 = vpop.f32.mrb[104].mxu1  ;;  %7222 = vmatprep.subr.bf16.mxu0 %v11197_v63  ;;  %7448 = vmatprep.subr.bf16.mxu1 %v11200_v31 }
 0x629   : > { %v5578_v19 = vsel %vm5450_vm10, %v5261_v56, %v5514_v1  ;;  %v5263_v49 = vadd.f32 %v5262_v40, %v13832_v52  ;;  %v5376_v28 = vadd.f32 %v5375_v17, %v13835_v11  ;;  %v5267_v54 = vadd.f32 %v5266_v7, %v13826_v38  ;;  %v5268_v26 = vpop.f32.mrb[73].mxu0  ;;  %v5381_v13 = vpop.f32.mrb[105].mxu1  ;;  %v11209_v30 = vld [vmem:[%s14870_s12 + $0x42c] ss:$28 sps:$4 sm:$0xff]   ;;  %v11212_v17 = vld [vmem:[%s14870_s12 + $0x434] ss:$28 sps:$4 sm:$0xff]  }
 0x62a   : > { %v13892_v48 = vpack.c.bf16 %v5578_v19, %v5574_v4  ;;  %v5580_v8 = vsel %vm5452_vm11, %v5374_v18, %v5516_v27  ;;  %v5380_v35 = vadd.f32 %v5379_v24, %v13829_v12  ;;  %v5269_v36 = vadd.f32 %v5268_v26, %v13832_v52  ;;  %v5270_v57 = vpop.f32.mrb[74].mxu0  ;;  %v5383_v29 = vpop.f32.mrb[106].mxu1  ;;  %v11207_v40 = vld [vmem:[%s14870_s12 + $0x428] ss:$28 sps:$4 sm:$0xff]   ;;  %v11210_v39 = vld [vmem:[%s14870_s12 + $0x430] ss:$28 sps:$4 sm:$0xff]  }
 0x62b   : > { %v13899_v58 = vpack.c.bf16 %v5580_v8, %v5576_v21  ;;  %vm5451_vm13 = vcmp.ge.f32.partialorder %v5263_v49, 0.0  ;;  %v5515_v20 = vmul.f32 0.2, %v5263_v49  ;;  %vm5453_vm14 = vcmp.ge.f32.partialorder %v5376_v28, 0.0  ;;  %7223 = vmatpush1.bf16.msra.mxu0 %v11195_v23  ;;  %7449 = vmatpush1.bf16.msra.mxu1 %v11198_v2  ;;  %v5272_v47 = vpop.f32.mrb[75].mxu0  ;;  %v5385_v42 = vpop.f32.mrb[107].mxu1 }
 0x62c   : > { %v5517_v34 = vmul.f32 0.2, %v5376_v28  ;;  %vm5454_vm15 = vcmp.ge.f32.partialorder %v5267_v54, 0.0  ;;  %v5518_v44 = vmul.f32 0.2, %v5267_v54  ;;  %vm5456_vm1 = vcmp.ge.f32.partialorder %v5380_v35, 0.0  ;;  %7224 = vmatprep.subr.bf16.mxu0 %v11203_v3  ;;  %7450 = vmatprep.subr.bf16.mxu1 %v11206_v5 }
 0x62d   : > { %v5579_v37 = vsel %vm5451_vm13, %v5263_v49, %v5515_v20  ;;  %v5520_v61 = vmul.f32 0.2, %v5380_v35  ;;  %vm5455_vm2 = vcmp.ge.f32.partialorder %v5269_v36, 0.0  ;;  %v5519_v55 = vmul.f32 0.2, %v5269_v36 }
 0x62e   : > { %v13901_v25 = vpack.c.bf16 %v5579_v37, %v5575_v43  ;;  %v5581_v6 = vsel %vm5453_vm14, %v5376_v28, %v5517_v34  ;;  %v5582_v62 = vsel %vm5454_vm15, %v5267_v54, %v5518_v44  ;;  %v5382_v10 = vadd.f32 %v5381_v13, %v13835_v11  ;;  %v11215_v63 = vld [vmem:[%s14870_s12 + $0x464] ss:$28 sps:$4 sm:$0xff]   ;;  %v11218_v43 = vld [vmem:[%s14870_s12 + $0x46c] ss:$28 sps:$4 sm:$0xff]   ;;  %v11219_v37 = vld [vmem:[%s14870_s12 + $0x498] ss:$28 sps:$4 sm:$0xff]  }
 0x62f   : > { %v13911_v59 = vpack.c.bf16 %v5581_v6, %v5577_v50  ;;  %v5584_v51 = vsel %vm5456_vm1, %v5380_v35, %v5520_v61  ;;  %v5583_v56 = vsel %vm5455_vm2, %v5269_v36, %v5519_v55  ;;  %v5271_v18 = vadd.f32 %v5270_v57, %v13826_v38  ;;  %7225 = vmatpush1.bf16.msra.mxu0 %v11201_v46  ;;  %v11213_v5 = vld [vmem:[%s14870_s12 + $0x460] ss:$28 sps:$4 sm:$0xff]   ;;  %v11216_v20 = vld [vmem:[%s14870_s12 + $0x468] ss:$28 sps:$4 sm:$0xff]  }
 0x630   : > { %vm5457_vm3 = vcmp.ge.f32.partialorder %v5382_v10, 0.0  ;;  %v5521_v31 = vmul.f32 0.2, %v5382_v10  ;;  %v5384_v53 = vadd.f32 %v5383_v29, %v13829_v12  ;;  %v5273_v33 = vadd.f32 %v5272_v47, %v13832_v52  ;;  %7149 = vmatprep.mubr.bf16.mxu0 %v13901_v25  ;;  %7375 = vmatprep.mubr.bf16.mxu1 %v13901_v25  ;;  %v5276_v23 = vpop.f32.mrb[76].mxu0  ;;  %v5389_v2 = vpop.f32.mrb[108].mxu1 }
 0x631   : > { %vm5458_vm4 = vcmp.ge.f32.partialorder %v5271_v18, 0.0  ;;  %v5522_v60 = vmul.f32 0.2, %v5271_v18  ;;  %v5386_v3 = vadd.f32 %v5385_v42, %v13835_v11  ;;  %7150 = vmatmul.mubr.bf16.gmra.mrb[100].mxu0 %v13892_v48  ;;  %7376 = vmatmul.mubr.bf16.gmra.mrb[132].mxu1 %v13892_v48  ;;  %v5277_v4 = vadd.f32 %v5276_v23, %v13826_v38  ;;  %v5278_v21 = vpop.f32.mrb[77].mxu0  ;;  %v5391_v1 = vpop.f32.mrb[109].mxu1 }
 0x632   : > { %v5585_v50 = vsel %vm5457_vm3, %v5382_v10, %v5521_v31  ;;  %vm5460_vm5 = vcmp.ge.f32.partialorder %v5384_v53, 0.0  ;;  %v5524_v27 = vmul.f32 0.2, %v5384_v53  ;;  %vm5459_vm7 = vcmp.ge.f32.partialorder %v5273_v33, 0.0  ;;  %7451 = vmatpush1.bf16.msra.mxu1 %v11204_v16  ;;  %7226 = vmatprep.subr.bf16.mxu0 %v11209_v30  ;;  %v5280_v7 = vpop.f32.mrb[78].mxu0  ;;  %v5393_v24 = vpop.f32.mrb[110].mxu1 }
 0x633   : > { %v5586_v19 = vsel %vm5458_vm4, %v5271_v18, %v5522_v60  ;;  %v5523_v49 = vmul.f32 0.2, %v5273_v33  ;;  %vm5461_vm8 = vcmp.ge.f32.partialorder %v5386_v3, 0.0  ;;  %v5525_v28 = vmul.f32 0.2, %v5386_v3  ;;  %7452 = vmatprep.subr.bf16.mxu1 %v11212_v17  ;;  %7227 = vmatpush1.bf16.msra.mxu0 %v11207_v40  ;;  %v5282_v54 = vpop.f32.mrb[79].mxu0 }
 0x634   : > { %v13942_v26 = vpack.c.bf16 %v5586_v19, %v5582_v62  ;;  %v5588_v13 = vsel %vm5460_vm5, %v5384_v53, %v5524_v27  ;;  %vm5462_vm12 = vcmp.ge.f32.partialorder %v5277_v4, 0.0  ;;  %v5526_v8 = vmul.f32 0.2, %v5277_v4  ;;  %v5395_v35 = vpop.f32.mrb[111].mxu1  ;;  %7228 = vmatprep.subr.bf16.mxu0 %v11215_v63  ;;  %v11221_v61 = vld [vmem:[%s14870_s12 + $0x49c] ss:$28 sps:$4 sm:$0xff]  }
 0x635   : > { %v13944_v36 = vpack.c.bf16 %v5588_v13, %v5584_v51  ;;  %v5587_v57 = vsel %vm5459_vm7, %v5273_v33, %v5523_v49  ;;  %v5589_v29 = vsel %vm5461_vm8, %v5386_v3, %v5525_v28  ;;  %v5390_v46 = vadd.f32 %v5389_v2, %v13829_v12  ;;  %v11224_v55 = vld [vmem:[%s14870_s12 + $0x4a4] ss:$28 sps:$4 sm:$0xff]   ;;  %v11227_v16 = vld [vmem:[%s14870_s12 + $0x4d4] ss:$28 sps:$4 sm:$0xff]   ;;  %v11230_v2 = vld [vmem:[%s14870_s12 + $0x4dc] ss:$28 sps:$4 sm:$0xff]  }
 0x636   : > { %v13951_v47 = vpack.c.bf16 %v5587_v57, %v5583_v56  ;;  %v13953_v42 = vpack.c.bf16 %v5589_v29, %v5585_v50  ;;  %v5590_v34 = vsel %vm5462_vm12, %v5277_v4, %v5526_v8  ;;  %v5279_v44 = vadd.f32 %v5278_v21, %v13832_v52  ;;  %7453 = vmatpush1.bf16.msra.mxu1 %v11210_v39  ;;  %v11222_v17 = vld [vmem:[%s14870_s12 + $0x4a0] ss:$28 sps:$4 sm:$0xff]   ;;  %v11225_v23 = vld [vmem:[%s14870_s12 + $0x4d0] ss:$28 sps:$4 sm:$0xff]   ;;  %v11228_v8 = vld [vmem:[%s14870_s12 + $0x4d8] ss:$28 sps:$4 sm:$0xff]  }
 0x637   : > { %vm5464_vm0 = vcmp.ge.f32.partialorder %v5390_v46, 0.0  ;;  %v5528_v6 = vmul.f32 0.2, %v5390_v46  ;;  %v5392_v62 = vadd.f32 %v5391_v1, %v13835_v11  ;;  %v5281_v10 = vadd.f32 %v5280_v7, %v13826_v38  ;;  %7454 = vmatprep.subr.bf16.mxu1 %v11218_v43  ;;  %7229 = vmatpush1.bf16.msra.mxu0 %v11213_v5 }
 0x638   : > { %vm5463_vm6 = vcmp.ge.f32.partialorder %v5279_v44, 0.0  ;;  %v5527_v30 = vmul.f32 0.2, %v5279_v44  ;;  %v5394_v51 = vadd.f32 %v5393_v24, %v13829_v12  ;;  %v5283_v56 = vadd.f32 %v5282_v54, %v13832_v52  ;;  %7159 = vmatprep.mubr.bf16.mxu0 %v13951_v47  ;;  %7385 = vmatprep.mubr.bf16.mxu1 %v13951_v47  ;;  %v5286_v18 = vpop.f32.mrb[80].mxu0  ;;  %v5399_v40 = vpop.f32.mrb[112].mxu1 }
 0x639   : > { %v5592_v63 = vsel %vm5464_vm0, %v5390_v46, %v5528_v6  ;;  %vm5465_vm9 = vcmp.ge.f32.partialorder %v5392_v62, 0.0  ;;  %v5529_v31 = vmul.f32 0.2, %v5392_v62  ;;  %vm5466_vm10 = vcmp.ge.f32.partialorder %v5281_v10, 0.0  ;;  %7160 = vmatmul.mubr.bf16.gmra.mrb[104].mxu0 %v13942_v26  ;;  %7386 = vmatmul.mubr.bf16.gmra.mrb[136].mxu1 %v13942_v26  ;;  %v5288_v53 = vpop.f32.mrb[81].mxu0  ;;  %v5401_v33 = vpop.f32.mrb[113].mxu1 }
 0x63a   : > { %v5591_v39 = vsel %vm5463_vm6, %v5279_v44, %v5527_v30  ;;  %v5530_v60 = vmul.f32 0.2, %v5281_v10  ;;  %vm5468_vm11 = vcmp.ge.f32.partialorder %v5394_v51, 0.0  ;;  %v5532_v3 = vmul.f32 0.2, %v5394_v51  ;;  %7455 = vmatpush1.bf16.msra.mxu1 %v11216_v20  ;;  %7230 = vmatprep.subr.bf16.mxu0 %v11221_v61  ;;  %v5290_v4 = vpop.f32.mrb[82].mxu0 }
 0x63b   : > { %v5593_v21 = vsel %vm5465_vm9, %v5392_v62, %v5529_v31  ;;  %vm5467_vm13 = vcmp.ge.f32.partialorder %v5283_v56, 0.0  ;;  %v5531_v1 = vmul.f32 0.2, %v5283_v56  ;;  %v5396_v5 = vadd.f32 %v5395_v35, %v13835_v11  ;;  %7456 = vmatprep.subr.bf16.mxu1 %v11224_v55  ;;  %7231 = vmatpush1.bf16.msra.mxu0 %v11219_v37  ;;  %v5403_v43 = vpop.f32.mrb[114].mxu1  ;;  %v5292_v50 = vpop.f32.mrb[83].mxu0 }
 0x63c   : > { %v5594_v27 = vsel %vm5466_vm10, %v5281_v10, %v5530_v60  ;;  %v5596_v7 = vsel %vm5468_vm11, %v5394_v51, %v5532_v3  ;;  %v5287_v24 = vadd.f32 %v5286_v18, %v13826_v38  ;;  %v5400_v19 = vadd.f32 %v5399_v40, %v13829_v12  ;;  %v5405_v49 = vpop.f32.mrb[115].mxu1  ;;  %7232 = vmatprep.subr.bf16.mxu0 %v11227_v16  ;;  %v11233_v35 = vld [vmem:[%s14870_s12 + $0x50c] ss:$28 sps:$4 sm:$0xff]   ;;  %v11236_v30 = vld [vmem:[%s14870_s12 + $0x514] ss:$28 sps:$4 sm:$0xff]  }
 0x63d   : > { %v13992_v28 = vpack.c.bf16 %v5594_v27, %v5590_v34  ;;  %v13994_v54 = vpack.c.bf16 %v5596_v7, %v5592_v63  ;;  %v5595_v13 = vsel %vm5467_vm13, %v5283_v56, %v5531_v1  ;;  %vm5469_vm14 = vcmp.ge.f32.partialorder %v5396_v5, 0.0  ;;  %v11231_v37 = vld [vmem:[%s14870_s12 + $0x508] ss:$28 sps:$4 sm:$0xff]  }
 0x63e   : > { %v14002_v57 = vpack.c.bf16 %v5595_v13, %v5591_v39  ;;  %v5533_v29 = vmul.f32 0.2, %v5396_v5  ;;  %vm5470_vm15 = vcmp.ge.f32.partialorder %v5287_v24, 0.0  ;;  %v5534_v46 = vmul.f32 0.2, %v5287_v24  ;;  %7457 = vmatpush1.bf16.msra.mxu1 %v11222_v17 }
 0x63f   : > { %vm5472_vm1 = vcmp.ge.f32.partialorder %v5400_v19, 0.0  ;;  %v5536_v20 = vmul.f32 0.2, %v5400_v19  ;;  %v5289_v34 = vadd.f32 %v5288_v53, %v13832_v52  ;;  %v5402_v44 = vadd.f32 %v5401_v33, %v13835_v11  ;;  %7458 = vmatprep.subr.bf16.mxu1 %v11230_v2  ;;  %7233 = vmatpush1.bf16.msra.mxu0 %v11225_v23  ;;  %v11239_v51 = vld [vmem:[%s14870_s12 + $0x544] ss:$28 sps:$4 sm:$0xff]  }
 0x640   : > { %v5597_v61 = vsel %vm5469_vm14, %v5396_v5, %v5533_v29  ;;  %v5598_v55 = vsel %vm5470_vm15, %v5287_v24, %v5534_v46  ;;  %v5291_v6 = vadd.f32 %v5290_v4, %v13826_v38  ;;  %v5404_v62 = vadd.f32 %v5403_v43, %v13829_v12  ;;  %7169 = vmatprep.mubr.bf16.mxu0 %v14002_v57  ;;  %v5296_v10 = vpop.f32.mrb[84].mxu0  ;;  %v5409_v16 = vpop.f32.mrb[116].mxu1  ;;  %v11234_v17 = vld [vmem:[%s14870_s12 + $0x510] ss:$28 sps:$4 sm:$0xff]   ;;  %v11237_v53 = vld [vmem:[%s14870_s12 + $0x540] ss:$28 sps:$4 sm:$0xff]  }
 0x641   : > { %v14018_v56 = vpack.c.bf16 %v5597_v61, %v5593_v21  ;;  %v5600_v18 = vsel %vm5472_vm1, %v5400_v19, %v5536_v20  ;;  %vm5471_vm2 = vcmp.ge.f32.partialorder %v5289_v34, 0.0  ;;  %v5535_v40 = vmul.f32 0.2, %v5289_v34  ;;  %7395 = vmatprep.mubr.bf16.mxu1 %v14002_v57  ;;  %7170 = vmatmul.mubr.bf16.gmra.mrb[108].mxu0 %v13992_v28  ;;  %v5298_v63 = vpop.f32.mrb[85].mxu0  ;;  %v5411_v31 = vpop.f32.mrb[117].mxu1 }
 0x642   : > { %vm5473_vm3 = vcmp.ge.f32.partialorder %v5402_v44, 0.0  ;;  %v5537_v33 = vmul.f32 0.2, %v5402_v44  ;;  %vm5474_vm4 = vcmp.ge.f32.partialorder %v5291_v6, 0.0  ;;  %v5538_v23 = vmul.f32 0.2, %v5291_v6  ;;  %7396 = vmatmul.mubr.bf16.gmra.mrb[140].mxu1 %v13992_v28  ;;  %7234 = vmatprep.subr.bf16.mxu0 %v11233_v35 }
 0x643   : > { %v5599_v2 = vsel %vm5471_vm2, %v5289_v34, %v5535_v40  ;;  %vm5476_vm5 = vcmp.ge.f32.partialorder %v5404_v62, 0.0  ;;  %v5540_v39 = vmul.f32 0.2, %v5404_v62  ;;  %v5293_v60 = vadd.f32 %v5292_v50, %v13832_v52  ;;  %7459 = vmatpush1.bf16.msra.mxu1 %v11228_v8  ;;  %7235 = vmatpush1.bf16.msra.mxu0 %v11231_v37  ;;  %v5300_v3 = vpop.f32.mrb[86].mxu0  ;;  %v5413_v4 = vpop.f32.mrb[118].mxu1 }
 0x644   : > { %v5601_v21 = vsel %vm5473_vm3, %v5402_v44, %v5537_v33  ;;  %v5602_v1 = vsel %vm5474_vm4, %v5291_v6, %v5538_v23  ;;  %v5406_v5 = vadd.f32 %v5405_v49, %v13835_v11  ;;  %v5297_v43 = vadd.f32 %v5296_v10, %v13826_v38  ;;  %7460 = vmatprep.subr.bf16.mxu1 %v11236_v30  ;;  %v5302_v27 = vpop.f32.mrb[87].mxu0  ;;  %v5415_v7 = vpop.f32.mrb[119].mxu1  ;;  %v11242_v24 = vld [vmem:[%s14870_s12 + $0x54c] ss:$28 sps:$4 sm:$0xff]   ;;  %v11245_v49 = vld [vmem:[%s14870_s12 + $0x57c] ss:$28 sps:$4 sm:$0xff]  }
 0x645   : > { %v14036_v19 = vpack.c.bf16 %v5602_v1, %v5598_v55  ;;  %v5604_v50 = vsel %vm5476_vm5, %v5404_v62, %v5540_v39  ;;  %vm5475_vm7 = vcmp.ge.f32.partialorder %v5293_v60, 0.0  ;;  %v5539_v13 = vmul.f32 0.2, %v5293_v60  ;;  %7236 = vmatprep.subr.bf16.mxu0 %v11239_v51  ;;  %v11240_v44 = vld [vmem:[%s14870_s12 + $0x548] ss:$28 sps:$4 sm:$0xff]  }
 0x646   : > { %v14042_v8 = vpack.c.bf16 %v5604_v50, %v5600_v18  ;;  %vm5477_vm8 = vcmp.ge.f32.partialorder %v5406_v5, 0.0  ;;  %v5541_v35 = vmul.f32 0.2, %v5406_v5  ;;  %vm5478_vm12 = vcmp.ge.f32.partialorder %v5297_v43, 0.0  ;;  %v11243_v37 = vld [vmem:[%s14870_s12 + $0x578] ss:$28 sps:$4 sm:$0xff]  }
 0x647   : > { %v5603_v29 = vsel %vm5475_vm7, %v5293_v60, %v5539_v13  ;;  %v5542_v46 = vmul.f32 0.2, %v5297_v43  ;;  %v5410_v20 = vadd.f32 %v5409_v16, %v13829_v12  ;;  %v5299_v34 = vadd.f32 %v5298_v63, %v13832_v52  ;;  %7461 = vmatpush1.bf16.msra.mxu1 %v11234_v17  ;;  %7237 = vmatpush1.bf16.msra.mxu0 %v11237_v53  ;;  %v11248_v30 = vld [vmem:[%s14870_s12 + $0x584] ss:$28 sps:$4 sm:$0xff]   ;;  %v11251_v51 = vld [vmem:[%s14870_s12 + $0x5b4] ss:$28 sps:$4 sm:$0xff]  }
 0x648   : > { %v14052_v61 = vpack.c.bf16 %v5603_v29, %v5599_v2  ;;  %v5605_v55 = vsel %vm5477_vm8, %v5406_v5, %v5541_v35  ;;  %v5412_v6 = vadd.f32 %v5411_v31, %v13835_v11  ;;  %v5301_v62 = vadd.f32 %v5300_v3, %v13826_v38  ;;  %7462 = vmatprep.subr.bf16.mxu1 %v11242_v24  ;;  %v5306_v10 = vpop.f32.mrb[88].mxu0  ;;  %v5419_v16 = vpop.f32.mrb[120].mxu1  ;;  %v11249_v29 = vld [vmem:[%s14870_s12 + $0x5b0] ss:$28 sps:$4 sm:$0xff]  }
 0x649   : > { %v14062_v18 = vpack.c.bf16 %v5605_v55, %v5601_v21  ;;  %vm5480_vm0 = vcmp.ge.f32.partialorder %v5410_v20, 0.0  ;;  %v5544_v40 = vmul.f32 0.2, %v5410_v20  ;;  %7238 = vmatprep.subr.bf16.mxu0 %v11245_v49  ;;  %v5308_v17 = vpop.f32.mrb[89].mxu0  ;;  %v5421_v63 = vpop.f32.mrb[121].mxu1  ;;  %v5606_v31 = vsel %vm5478_vm12, %v5297_v43, %v5542_v46 }
 0x64a   : > { %vm5479_vm6 = vcmp.ge.f32.partialorder %v5299_v34, 0.0  ;;  %v5543_v53 = vmul.f32 0.2, %v5299_v34  ;;  %v5545_v33 = vmul.f32 0.2, %v5412_v6  ;;  %7179 = vmatprep.mubr.bf16.mxu0 %v14052_v61  ;;  %7405 = vmatprep.mubr.bf16.mxu1 %v14052_v61  ;;  %vm5481_vm9 = vcmp.ge.f32.partialorder %v5412_v6, 0.0 }
 0x64b   : > { %vm5482_vm10 = vcmp.ge.f32.partialorder %v5301_v62, 0.0  ;;  %v5546_v23 = vmul.f32 0.2, %v5301_v62  ;;  %v5414_v2 = vadd.f32 %v5413_v4, %v13829_v12  ;;  %7180 = vmatmul.mubr.bf16.gmra.mrb[112].mxu0 %v14036_v19  ;;  %7406 = vmatmul.mubr.bf16.gmra.mrb[144].mxu1 %v14036_v19  ;;  %v5310_v39 = vpop.f32.mrb[90].mxu0  ;;  %v5423_v60 = vpop.f32.mrb[122].mxu1  ;;  %v5608_v3 = vsel %vm5480_vm0, %v5410_v20, %v5544_v40 }
 0x64c   : > { %v5607_v21 = vsel %vm5479_vm6, %v5299_v34, %v5543_v53  ;;  %v5303_v1 = vadd.f32 %v5302_v27, %v13832_v52  ;;  %v5416_v5 = vadd.f32 %v5415_v7, %v13835_v11  ;;  %7463 = vmatpush1.bf16.msra.mxu1 %v11240_v44  ;;  %v11246_v43 = vld [vmem:[%s14870_s12 + $0x580] ss:$28 sps:$4 sm:$0xff]   ;;  %v5312_v24 = vpop.f32.mrb[91].mxu0  ;;  %v5425_v4 = vpop.f32.mrb[123].mxu1  ;;  %v5307_v49 = vadd.f32 %v5306_v10, %v13826_v38  ;;  %v11252_v10 = vld [vmem:[%s14870_s12 + $0x5b8] ss:$28 sps:$4 sm:$0xff]  }
 0x64d   : > { %v5610_v50 = vsel %vm5482_vm10, %v5301_v62, %v5546_v23  ;;  %vm5484_vm11 = vcmp.ge.f32.partialorder %v5414_v2, 0.0  ;;  %v5548_v13 = vmul.f32 0.2, %v5414_v2  ;;  %7464 = vmatprep.subr.bf16.mxu1 %v11248_v30  ;;  %7239 = vmatpush1.bf16.msra.mxu0 %v11243_v37  ;;  %v11254_v27 = vld [vmem:[%s14870_s12 + $0x5bc] ss:$28 sps:$4 sm:$0xff]   ;;  %v5420_v55 = vadd.f32 %v5419_v16, %v13829_v12 }
 0x64e   : > { %v14080_v35 = vpack.c.bf16 %v5610_v50, %v5606_v31  ;;  %vm5483_vm13 = vcmp.ge.f32.partialorder %v5303_v1, 0.0  ;;  %v5547_v7 = vmul.f32 0.2, %v5303_v1  ;;  %vm5485_vm14 = vcmp.ge.f32.partialorder %v5416_v5, 0.0  ;;  %7240 = vmatprep.subr.bf16.mxu0 %v11251_v51  ;;  %v11255_v51 = vld [vmem:[%s14870_s12 + $0x5e8] ss:$28 sps:$4 sm:$0xff]  }
 0x64f   : > { %v5612_v46 = vsel %vm5484_vm11, %v5414_v2, %v5548_v13  ;;  %v5549_v20 = vmul.f32 0.2, %v5416_v5  ;;  %vm5486_vm15 = vcmp.ge.f32.partialorder %v5307_v49, 0.0  ;;  %v5550_v34 = vmul.f32 0.2, %v5307_v49 }
 0x650   : > { %v14085_v44 = vpack.c.bf16 %v5612_v46, %v5608_v3  ;;  %v5611_v37 = vsel %vm5483_vm13, %v5303_v1, %v5547_v7  ;;  %v5309_v62 = vadd.f32 %v5308_v17, %v13832_v52  ;;  %7465 = vmatpush1.bf16.msra.mxu1 %v11246_v43  ;;  %v5316_v30 = vpop.f32.mrb[92].mxu0  ;;  %v5429_v40 = vpop.f32.mrb[124].mxu1  ;;  %v5609_v31 = vsel %vm5481_vm9, %v5412_v6, %v5545_v33  ;;  %v11257_v17 = vld [vmem:[%s14870_s12 + $0x5ec] ss:$28 sps:$4 sm:$0xff]   ;;  %v11260_v2 = vld [vmem:[%s14870_s12 + $0x5f4] ss:$28 sps:$4 sm:$0xff]  }
 0x651   : > { %v14096_v53 = vpack.c.bf16 %v5611_v37, %v5607_v21  ;;  %v5613_v23 = vsel %vm5485_vm14, %v5416_v5, %v5549_v20  ;;  %v5422_v16 = vadd.f32 %v5421_v63, %v13835_v11  ;;  %7466 = vmatprep.subr.bf16.mxu1 %v11254_v27  ;;  %v5318_v3 = vpop.f32.mrb[93].mxu0  ;;  %v5431_v1 = vpop.f32.mrb[125].mxu1  ;;  %vm5488_vm1 = vcmp.ge.f32.partialorder %v5420_v55, 0.0  ;;  %7241 = vmatpush1.bf16.msra.mxu0 %v11249_v29  ;;  %v11263_v27 = vld [vmem:[%s14870_s12 + $0x624] ss:$28 sps:$4 sm:$0xff]  }
 0x652   : > { %v14106_v43 = vpack.c.bf16 %v5613_v23, %v5609_v31  ;;  %v5552_v6 = vmul.f32 0.2, %v5420_v55  ;;  %vm5487_vm2 = vcmp.ge.f32.partialorder %v5309_v62, 0.0  ;;  %v5320_v33 = vpop.f32.mrb[94].mxu0  ;;  %v5433_v21 = vpop.f32.mrb[126].mxu1  ;;  %v5614_v63 = vsel %vm5486_vm15, %v5307_v49, %v5550_v34  ;;  %7242 = vmatprep.subr.bf16.mxu0 %v11257_v17 }
 0x653   : > { %v5551_v5 = vmul.f32 0.2, %v5309_v62  ;;  %vm5489_vm3 = vcmp.ge.f32.partialorder %v5422_v16, 0.0  ;;  %v5311_v50 = vadd.f32 %v5310_v39, %v13826_v38  ;;  %7189 = vmatprep.mubr.bf16.mxu0 %v14096_v53  ;;  %7415 = vmatprep.mubr.bf16.mxu1 %v14096_v53  ;;  %v5322_v13 = vpop.f32.mrb[95].mxu0  ;;  %v5553_v7 = vmul.f32 0.2, %v5422_v16 }
 0x654   : > { %v5424_v29 = vadd.f32 %v5423_v60, %v13829_v12  ;;  %v5313_v46 = vadd.f32 %v5312_v24, %v13832_v52  ;;  %v5426_v49 = vadd.f32 %v5425_v4, %v13835_v11  ;;  %7190 = vmatmul.mubr.bf16.gmra.mrb[116].mxu0 %v14080_v35  ;;  %v11258_v39 = vld [vmem:[%s14870_s12 + $0x5f0] ss:$28 sps:$4 sm:$0xff]   ;;  %v5435_v20 = vpop.f32.mrb[127].mxu1  ;;  %v5616_v34 = vsel %vm5488_vm1, %v5420_v55, %v5552_v6  ;;  %v11261_v60 = vld [vmem:[%s14870_s12 + $0x620] ss:$28 sps:$4 sm:$0xff]  }
 0x655   : > { %v5615_v37 = vsel %vm5487_vm2, %v5309_v62, %v5551_v5  ;;  %vm5490_vm4 = vcmp.ge.f32.partialorder %v5311_v50, 0.0  ;;  %v5554_v31 = vmul.f32 0.2, %v5311_v50  ;;  %7416 = vmatmul.mubr.bf16.gmra.mrb[148].mxu1 %v14080_v35  ;;  %7243 = vmatpush1.bf16.msra.mxu0 %v11255_v51  ;;  %v5317_v62 = vadd.f32 %v5316_v30, %v13826_v38  ;;  %v11266_v51 = vld [vmem:[%s14870_s12 + $0x62c] ss:$28 sps:$4 sm:$0xff]  }
 0x656   : > { %vm5492_vm5 = vcmp.ge.f32.partialorder %v5424_v29, 0.0  ;;  %v5556_v24 = vmul.f32 0.2, %v5424_v29  ;;  %vm5491_vm7 = vcmp.ge.f32.partialorder %v5313_v46, 0.0  ;;  %v5555_v4 = vmul.f32 0.2, %v5313_v46  ;;  %7467 = vmatpush1.bf16.msra.mxu1 %v11252_v10  ;;  %7244 = vmatprep.subr.bf16.mxu0 %v11263_v27 }
 0x657   : > { %v5618_v23 = vsel %vm5490_vm4, %v5311_v50, %v5554_v31  ;;  %vm5493_vm8 = vcmp.ge.f32.partialorder %v5426_v49, 0.0  ;;  %v5557_v55 = vmul.f32 0.2, %v5426_v49  ;;  %7468 = vmatprep.subr.bf16.mxu1 %v11260_v2  ;;  %v5430_v9 = vadd.f32 %v5429_v40, %v13829_v12  ;;  %v11269_v30 = vld [vmem:[%s14870_s12 + $0x65c] ss:$28 sps:$4 sm:$0xff]  }
 0x658   : > { %v14129_v6 = vpack.c.bf16 %v5618_v23, %v5614_v63  ;;  %v5620_v17 = vsel %vm5492_vm5, %v5424_v29, %v5556_v24  ;;  %v5619_v5 = vsel %vm5491_vm7, %v5313_v46, %v5555_v4  ;;  %v5617_v32 = vsel %vm5489_vm3, %v5422_v16, %v5553_v7  ;;  %v11267_v29 = vld [vmem:[%s14870_s12 + $0x658] ss:$28 sps:$4 sm:$0xff]  }
 0x659   : > { %v14133_v41 = vpack.c.bf16 %v5620_v17, %v5616_v34  ;;  %v14135_v45 = vpack.c.bf16 %v5619_v5, %v5615_v37  ;;  %v5621_v10 = vsel %vm5493_vm8, %v5426_v49, %v5557_v55  ;;  %vm5494_vm12 = vcmp.ge.f32.partialorder %v5317_v62, 0.0  ;;  %7245 = vmatpush1.bf16.msra.mxu0 %v11261_v60  ;;  %v11278_v17 = vld [vmem:[%s14870_s12 + $0x69c] ss:$28 sps:$4 sm:$0xff]  }
 0x65a   : > { %v14143_v2 = vpack.c.bf16 %v5621_v10, %v5617_v32  ;;  %v5558_v63 = vmul.f32 0.2, %v5317_v62  ;;  %v5560_v40 = vmul.f32 0.2, %v5430_v9  ;;  %7469 = vmatpush1.bf16.msra.mxu1 %v11258_v39  ;;  %v5319_v16 = vadd.f32 %v5318_v3, %v13832_v52  ;;  %v11264_v32 = vld [vmem:[%s14870_s12 + $0x628] ss:$28 sps:$4 sm:$0xff]   ;;  %7246 = vmatprep.subr.bf16.mxu0 %v11269_v30 }
 0x65b   : > { %v5432_v50 = vadd.f32 %v5431_v1, %v13835_v11  ;;  %v5321_v27 = vadd.f32 %v5320_v33, %v13826_v38  ;;  %v5434_v7 = vadd.f32 %v5433_v21, %v13829_v12  ;;  %7199 = vmatprep.mubr.bf16.mxu0 %v14135_v45  ;;  %vm5496_vm0 = vcmp.ge.f32.partialorder %v5430_v9, 0.0  ;;  %7425 = vmatprep.mubr.bf16.mxu1 %v14135_v45  ;;  %v11272_v38 = vld [vmem:[%s14870_s12 + $0x664] ss:$28 sps:$4 sm:$0xff]   ;;  %v11275_v12 = vld [vmem:[%s14870_s12 + $0x694] ss:$28 sps:$4 sm:$0xff]  }
 0x65c   : > { %v5323_v46 = vadd.f32 %v5322_v13, %v13832_v52  ;;  %v5436_v3 = vadd.f32 %v5435_v20, %v13835_v11  ;;  %v5622_v1 = vsel %vm5494_vm12, %v5317_v62, %v5558_v63  ;;  %vm5495_vm6 = vcmp.ge.f32.partialorder %v5319_v16, 0.0  ;;  %7200 = vmatmul.mubr.bf16.gmra.mrb[120].mxu0 %v14129_v6  ;;  %v11270_v52 = vld [vmem:[%s14870_s12 + $0x660] ss:$28 sps:$4 sm:$0xff]   ;;  %7470 = vmatprep.subr.bf16.mxu1 %v11266_v51  ;;  %v11273_v20 = vld [vmem:[%s14870_s12 + $0x690] ss:$28 sps:$4 sm:$0xff]  }
 0x65d   : > { %v5559_v33 = vmul.f32 0.2, %v5319_v16  ;;  %v5561_v21 = vmul.f32 0.2, %v5432_v50  ;;  %7426 = vmatmul.mubr.bf16.gmra.mrb[152].mxu1 %v14129_v6  ;;  %vm5498_vm9 = vcmp.ge.f32.partialorder %v5321_v27, 0.0  ;;  %vm5500_vm10 = vcmp.ge.f32.partialorder %v5434_v7, 0.0  ;;  %7247 = vmatpush1.bf16.msra.mxu0 %v11267_v29 }
 0x65e   : > { %v5562_v11 = vmul.f32 0.2, %v5321_v27  ;;  %v5564_v13 = vmul.f32 0.2, %v5434_v7  ;;  %v5624_v49 = vsel %vm5496_vm0, %v5430_v9, %v5560_v40  ;;  %vm5497_vm11 = vcmp.ge.f32.partialorder %v5432_v50, 0.0  ;;  %7471 = vmatpush1.bf16.msra.mxu1 %v11264_v32  ;;  %7248 = vmatprep.subr.bf16.mxu0 %v11275_v12 }
 0x65f   : > { %vm5499_vm13 = vcmp.ge.f32.partialorder %v5323_v46, 0.0  ;;  %v5563_v39 = vmul.f32 0.2, %v5323_v46  ;;  %vm5501_vm14 = vcmp.ge.f32.partialorder %v5436_v3, 0.0  ;;  %v5565_v31 = vmul.f32 0.2, %v5436_v3  ;;  %7472 = vmatprep.subr.bf16.mxu1 %v11272_v38 }
 0x660   : > { %v5626_v34 = vsel %vm5498_vm9, %v5321_v27, %v5562_v11  ;;  %v5628_v37 = vsel %vm5500_vm10, %v5434_v7, %v5564_v13  ;;  %v5623_v60 = vsel %vm5495_vm6, %v5319_v16, %v5559_v33  ;;  %v5625_v23 = vsel %vm5497_vm11, %v5432_v50, %v5561_v21  ;;  %v11276_v10 = vld [vmem:[%s14870_s12 + $0x698] ss:$28 sps:$4 sm:$0xff]   ;;  %v11281_v51 = vld [vmem:[%s14870_s12 + $0x6cc] ss:$28 sps:$4 sm:$0xff]  }
 0x661   : > { %v14176_v24 = vpack.c.bf16 %v5626_v34, %v5622_v1  ;;  %v14178_v9 = vpack.c.bf16 %v5628_v37, %v5624_v49  ;;  %v5627_v4 = vsel %vm5499_vm13, %v5323_v46, %v5563_v39  ;;  %v5629_v62 = vsel %vm5501_vm14, %v5436_v3, %v5565_v31  ;;  %7249 = vmatpush1.bf16.msra.mxu0 %v11273_v20  ;;  %v11284_v30 = vld [vmem:[%s14870_s12 + $0x6d4] ss:$28 sps:$4 sm:$0xff]   ;;  %v11279_v63 = vld [vmem:[%s14870_s12 + $0x6c8] ss:$28 sps:$4 sm:$0xff]   ;;  %v11293_v1 = vld [vmem:[%s14870_s12 + $0x80] ss:$28 sps:$4 sm:$0xff]  }
 0x662   : > { %v14181_v55 = vpack.c.bf16 %v5627_v4, %v5623_v60  ;;  %v14186_v5 = vpack.c.bf16 %v5629_v62, %v5625_v23  ;;  %7473 = vmatpush1.bf16.msra.mxu1 %v11270_v52  ;;  %v11287_v40 = vld [vmem:[%s14870_s12 + $0x14] ss:$28 sps:$4 sm:$0xff]   ;;  %7250 = vmatprep.subr.bf16.mxu0 %v11281_v51  ;;  %v11292_v32 = vld [vmem:[%s14870_s12 + $0x4c] ss:$28 sps:$4 sm:$0xff]   ;;  %v11295_v3 = vld [vmem:[%s14870_s12 + $0x84] ss:$28 sps:$4 sm:$0xff]  }
 0x663   : > { %7474 = vmatprep.subr.bf16.mxu1 %v11278_v17  ;;  %v11282_v16 = vld [vmem:[%s14870_s12 + $0x6d0] ss:$28 sps:$4 sm:$0xff]   ;;  %v11288_v50 = vld [vmem:[%s14870_s12 + $0x1d8] ss:$28 sps:$4 sm:$0xff]   ;;  %v11290_v46 = vld [vmem:[%s14870_s12 + $0x48] ss:$28 sps:$4 sm:$0xff]  }
 0x664   : > { %7209 = vmatprep.mubr.bf16.mxu0 %v14181_v55  ;;  %7435 = vmatprep.mubr.bf16.mxu1 %v14181_v55  ;;  %v11285_v27 = vld [vmem:[%s14870_s12 + $0x10] ss:$28 sps:$4 sm:$0xff]   ;;  %v11289_v7 = vld [vmem:[%s14870_s12 + $0x18] ss:$28 sps:$4 sm:$0xff]   ;;  %v11304_v12 = vld [vmem:[%s14870_s12 + $0x248] ss:$28 sps:$4 sm:$0xff]  }
 0x665   : > { %7210 = vmatmul.mubr.bf16.gmra.mrb[124].mxu0 %v14176_v24  ;;  %7436 = vmatmul.mubr.bf16.gmra.mrb[156].mxu1 %v14176_v24  ;;  %v11296_v29 = vld [vmem:[%s14870_s12 + $0x210] ss:$28 sps:$4 sm:$0xff]   ;;  %v11300_v33 = vld [vmem:[%s14870_s12 + $0xbc] ss:$28 sps:$4 sm:$0xff]   ;;  %v11305_v21 = vld [vmem:[%s14870_s12 + $0x88] ss:$28 sps:$4 sm:$0xff]  }
 0x666   : > { %7252 = vmatprep.mubr.bf16.mxu0 %v13853_v15  ;;  %7475 = vmatpush1.bf16.msra.mxu1 %v11276_v10  ;;  %v11297_v38 = vld [vmem:[%s14870_s12 + $0x50] ss:$28 sps:$4 sm:$0xff]   ;;  %v11312_v52 = vld [vmem:[%s14870_s12 + $0x280] ss:$28 sps:$4 sm:$0xff]   ;;  %v11298_v11 = vld [vmem:[%s14870_s12 + $0xb8] ss:$28 sps:$4 sm:$0xff]  }
 0x667   : > { %7478 = vmatprep.mubr.bf16.mxu1 %v13853_v15  ;;  %7476 = vmatprep.subr.bf16.mxu1 %v11284_v30  ;;  %v11303_v13 = vld [vmem:[%s14870_s12 + $0xf4] ss:$28 sps:$4 sm:$0xff]   ;;  %v11313_v49 = vld [vmem:[%s14870_s12 + $0xc0] ss:$28 sps:$4 sm:$0xff]   ;;  %v11308_v34 = vld [vmem:[%s14870_s12 + $0x12c] ss:$28 sps:$4 sm:$0xff]  }
 0x668   : > { %7251 = vmatpush1.bf16.msra.mxu0 %v11279_v63  ;;  %v11320_v39 = vld [vmem:[%s14870_s12 + $0x2b8] ss:$28 sps:$4 sm:$0xff]   ;;  %v11301_v20 = vld [vmem:[%s14870_s12 + $0xf0] ss:$28 sps:$4 sm:$0xff]   ;;  %v11306_v60 = vld [vmem:[%s14870_s12 + $0x128] ss:$28 sps:$4 sm:$0xff]  }
 0x669   : > { %7559 = vmatprep.subr.bf16.mxu0 %v11287_v40  ;;  %v11321_v37 = vld [vmem:[%s14870_s12 + $0xf8] ss:$28 sps:$4 sm:$0xff]   ;;  %v11328_v31 = vld [vmem:[%s14870_s12 + $0x2f0] ss:$28 sps:$4 sm:$0xff]   ;;  %v11311_v4 = vld [vmem:[%s14870_s12 + $0x164] ss:$28 sps:$4 sm:$0xff]  }
 0x66a   : > { %7477 = vmatpush1.bf16.msra.mxu1 %v11282_v16  ;;  %v11329_v23 = vld [vmem:[%s14870_s12 + $0x130] ss:$28 sps:$4 sm:$0xff]   ;;  %v11336_v62 = vld [vmem:[%s14870_s12 + $0x328] ss:$28 sps:$4 sm:$0xff]   ;;  %v11309_v17 = vld [vmem:[%s14870_s12 + $0x160] ss:$28 sps:$4 sm:$0xff]  }
 0x66b   : > { %9794 = vmatprep.subr.bf16.mxu1 %v11288_v50  ;;  %v11316_v10 = vld [vmem:[%s14870_s12 + $0x19c] ss:$28 sps:$4 sm:$0xff]   ;;  %v11337_v51 = vld [vmem:[%s14870_s12 + $0x168] ss:$28 sps:$4 sm:$0xff]   ;;  %v11319_v40 = vld [vmem:[%s14870_s12 + $0x1d4] ss:$28 sps:$4 sm:$0xff]  }
 0x66c   : > { %v11344_v30 = vld [vmem:[%s14870_s12 + $0x360] ss:$28 sps:$4 sm:$0xff]   ;;  %v11314_v63 = vld [vmem:[%s14870_s12 + $0x198] ss:$28 sps:$4 sm:$0xff]  }
 0x66d   : > { %7253 = vmatmul.mubr.bf16.vlgmr.msra.gmra.mrb[96].mxu0 %v13849_v14  ;;  %7479 = vmatmul.mubr.bf16.vlgmr.msra.gmra.mrb[128].mxu1 %v13849_v14  ;;  %v11345_v16 = vld [vmem:[%s14870_s12 + $0x1a0] ss:$28 sps:$4 sm:$0xff]   ;;  %v11352_v50 = vld [vmem:[%s14870_s12 + $0x558] ss:$28 sps:$4 sm:$0xff]  }
 0x66e   : > { %7262 = vmatprep.mubr.bf16.mxu0 %v13911_v59  ;;  %7488 = vmatprep.mubr.bf16.mxu1 %v13911_v59 }
 0x66f   : > { %7560 = vmatpush1.bf16.msra.mxu0 %v11285_v27  ;;  %9795 = vmatpush3.bf16.msra.mxu1 %v11289_v7  ;;  %v11317_v27 = vld [vmem:[%s14870_s12 + $0x1d0] ss:$28 sps:$4 sm:$0xff]  }
 0x670   : > { %7561 = vmatprep.subr.bf16.mxu0 %v11292_v32  ;;  %9796 = vmatprep.subr.bf16.mxu1 %v11296_v29  ;;  %v11324_v7 = vld [vmem:[%s14870_s12 + $0x20c] ss:$28 sps:$4 sm:$0xff]   ;;  %v11327_v29 = vld [vmem:[%s14870_s12 + $0x244] ss:$28 sps:$4 sm:$0xff]  }
 0x671   : > { %v11322_v32 = vld [vmem:[%s14870_s12 + $0x208] ss:$28 sps:$4 sm:$0xff]  }
 0x673   : > { %7562 = vmatpush1.bf16.msra.mxu0 %v11290_v46  ;;  %9797 = vmatpush3.bf16.msra.mxu1 %v11297_v38  ;;  %v11325_v46 = vld [vmem:[%s14870_s12 + $0x240] ss:$28 sps:$4 sm:$0xff]   ;;  %v11330_v38 = vld [vmem:[%s14870_s12 + $0x278] ss:$28 sps:$4 sm:$0xff]  }
 0x674   : > { %7563 = vmatprep.subr.bf16.mxu0 %v11295_v3  ;;  %9798 = vmatprep.subr.bf16.mxu1 %v11304_v12  ;;  %v11332_v3 = vld [vmem:[%s14870_s12 + $0x27c] ss:$28 sps:$4 sm:$0xff]   ;;  %v11335_v12 = vld [vmem:[%s14870_s12 + $0x2b4] ss:$28 sps:$4 sm:$0xff]  }
 0x675   : > { %7263 = vmatmul.mubr.bf16.gmra.mrb[100].mxu0 %v13899_v58  ;;  %7489 = vmatmul.mubr.bf16.gmra.mrb[132].mxu1 %v13899_v58 }
 0x676   : > { %7272 = vmatprep.mubr.bf16.mxu0 %v13953_v42  ;;  %7498 = vmatprep.mubr.bf16.mxu1 %v13953_v42 }
 0x677   : > { %7564 = vmatpush1.bf16.msra.mxu0 %v11293_v1  ;;  %9799 = vmatpush3.bf16.msra.mxu1 %v11305_v21  ;;  %v11333_v1 = vld [vmem:[%s14870_s12 + $0x2b0] ss:$28 sps:$4 sm:$0xff]   ;;  %v11338_v21 = vld [vmem:[%s14870_s12 + $0x2e8] ss:$28 sps:$4 sm:$0xff]  }
 0x678   : > { %7565 = vmatprep.subr.bf16.mxu0 %v11300_v33  ;;  %9800 = vmatprep.subr.bf16.mxu1 %v11312_v52  ;;  %v11340_v33 = vld [vmem:[%s14870_s12 + $0x2ec] ss:$28 sps:$4 sm:$0xff]   ;;  %v11343_v52 = vld [vmem:[%s14870_s12 + $0x324] ss:$28 sps:$4 sm:$0xff]  }
 0x67b   : > { %7566 = vmatpush1.bf16.msra.mxu0 %v11298_v11  ;;  %9801 = vmatpush3.bf16.msra.mxu1 %v11313_v49  ;;  %v11341_v11 = vld [vmem:[%s14870_s12 + $0x320] ss:$28 sps:$4 sm:$0xff]   ;;  %v11346_v49 = vld [vmem:[%s14870_s12 + $0x358] ss:$28 sps:$4 sm:$0xff]  }
 0x67c   : > { %7567 = vmatprep.subr.bf16.mxu0 %v11303_v13  ;;  %9802 = vmatprep.subr.bf16.mxu1 %v11320_v39  ;;  %v11348_v13 = vld [vmem:[%s14870_s12 + $0x35c] ss:$28 sps:$4 sm:$0xff]   ;;  %v11351_v39 = vld [vmem:[%s14870_s12 + $0x394] ss:$28 sps:$4 sm:$0xff]  }
 0x67d   : > { %7273 = vmatmul.mubr.bf16.gmra.mrb[104].mxu0 %v13944_v36  ;;  %7499 = vmatmul.mubr.bf16.gmra.mrb[136].mxu1 %v13944_v36 }
 0x67e   : > { %7282 = vmatprep.mubr.bf16.mxu0 %v14018_v56  ;;  %7508 = vmatprep.mubr.bf16.mxu1 %v14018_v56 }
 0x67f   : > { %7568 = vmatpush1.bf16.msra.mxu0 %v11301_v20  ;;  %9803 = vmatpush3.bf16.msra.mxu1 %v11321_v37  ;;  %v11349_v20 = vld [vmem:[%s14870_s12 + $0x390] ss:$28 sps:$4 sm:$0xff]  }
 0x680   : > { %7569 = vmatprep.subr.bf16.mxu0 %v11308_v34  ;;  %9804 = vmatprep.subr.bf16.mxu1 %v11328_v31  ;;  %v11353_v34 = vld [vmem:[%s14870_s12 + $0x398] ss:$28 sps:$4 sm:$0xff]   ;;  %v11360_v37 = vld [vmem:[%s14870_s12 + $0x590] ss:$28 sps:$4 sm:$0xff]   ;;  %v11354_v31 = vld [vmem:[%s14870_s12 + $0x3c8] ss:$28 sps:$4 sm:$0xff]  }
 0x683   : > { %7570 = vmatpush1.bf16.msra.mxu0 %v11306_v60  ;;  %9805 = vmatpush3.bf16.msra.mxu1 %v11329_v23  ;;  %v11359_v60 = vld [vmem:[%s14870_s12 + $0x404] ss:$28 sps:$4 sm:$0xff]   ;;  %v11364_v23 = vld [vmem:[%s14870_s12 + $0x43c] ss:$28 sps:$4 sm:$0xff]  }
 0x684   : > { %7571 = vmatprep.subr.bf16.mxu0 %v11311_v4  ;;  %9806 = vmatprep.subr.bf16.mxu1 %v11336_v62  ;;  %v11361_v4 = vld [vmem:[%s14870_s12 + $0x3d0] ss:$28 sps:$4 sm:$0xff]   ;;  %v11369_v62 = vld [vmem:[%s14870_s12 + $0x408] ss:$28 sps:$4 sm:$0xff]  }
 0x685   : > { %7283 = vmatmul.mubr.bf16.gmra.mrb[108].mxu0 %v13994_v54  ;;  %7509 = vmatmul.mubr.bf16.gmra.mrb[140].mxu1 %v13994_v54 }
 0x686   : > { %7292 = vmatprep.mubr.bf16.mxu0 %v14062_v18  ;;  %7518 = vmatprep.mubr.bf16.mxu1 %v14062_v18 }
 0x687   : > { %7572 = vmatpush1.bf16.msra.mxu0 %v11309_v17  ;;  %9807 = vmatpush3.bf16.msra.mxu1 %v11337_v51  ;;  %v11376_v17 = vld [vmem:[%s14870_s12 + $0x600] ss:$28 sps:$4 sm:$0xff]   ;;  %v11367_v51 = vld [vmem:[%s14870_s12 + $0x474] ss:$28 sps:$4 sm:$0xff]  }
 0x688   : > { %7573 = vmatprep.subr.bf16.mxu0 %v11316_v10  ;;  %9808 = vmatprep.subr.bf16.mxu1 %v11344_v30  ;;  %v11362_v10 = vld [vmem:[%s14870_s12 + $0x438] ss:$28 sps:$4 sm:$0xff]   ;;  %v11365_v30 = vld [vmem:[%s14870_s12 + $0x470] ss:$28 sps:$4 sm:$0xff]  }
 0x68b   : > { %7574 = vmatpush1.bf16.msra.mxu0 %v11314_v63  ;;  %9809 = vmatpush3.bf16.msra.mxu1 %v11345_v16  ;;  %v11384_v63 = vld [vmem:[%s14870_s12 + $0x638] ss:$28 sps:$4 sm:$0xff]   ;;  %v11370_v16 = vld [vmem:[%s14870_s12 + $0x4a8] ss:$28 sps:$4 sm:$0xff]  }
 0x68c   : > { %7575 = vmatprep.subr.bf16.mxu0 %v11319_v40  ;;  %9858 = vmatprep.subr.bf16.mxu1 %v11352_v50  ;;  %v11385_v40 = vld [vmem:[%s14870_s12 + $0x478] ss:$28 sps:$4 sm:$0xff]   ;;  %v11392_v50 = vld [vmem:[%s14870_s12 + $0x670] ss:$28 sps:$4 sm:$0xff]  }
 0x68d   : > { %7293 = vmatmul.mubr.bf16.gmra.mrb[112].mxu0 %v14042_v8  ;;  %7519 = vmatmul.mubr.bf16.gmra.mrb[144].mxu1 %v14042_v8 }
 0x68e   : > { %7302 = vmatprep.mubr.bf16.mxu0 %v14106_v43  ;;  %7528 = vmatprep.mubr.bf16.mxu1 %v14106_v43 }
 0x68f   : > { %7576 = vmatpush1.bf16.msra.mxu0 %v11317_v27  ;;  %v11373_v27 = vld [vmem:[%s14870_s12 + $0x4e0] ss:$28 sps:$4 sm:$0xff]  }
 0x690   : > { %7577 = vmatprep.subr.bf16.mxu0 %v11324_v7  ;;  %v11380_v7 = vld [vmem:[%s14870_s12 + $0x51c] ss:$28 sps:$4 sm:$0xff]  }
 0x693   : > { %7578 = vmatpush1.bf16.msra.mxu0 %v11322_v32  ;;  %v11400_v32 = vld [vmem:[%s14870_s12 + $0x6a8] ss:$28 sps:$4 sm:$0xff]  }
 0x694   : > { %7579 = vmatprep.subr.bf16.mxu0 %v11327_v29  ;;  %v11378_v29 = vld [vmem:[%s14870_s12 + $0x518] ss:$28 sps:$4 sm:$0xff]  }
 0x695   : > { %7303 = vmatmul.mubr.bf16.gmra.mrb[116].mxu0 %v14085_v44  ;;  %7529 = vmatmul.mubr.bf16.gmra.mrb[148].mxu1 %v14085_v44 }
 0x696   : > { %7312 = vmatprep.mubr.bf16.mxu0 %v14143_v2  ;;  %7538 = vmatprep.mubr.bf16.mxu1 %v14143_v2 }
 0x697   : > { %7580 = vmatpush1.bf16.msra.mxu0 %v11325_v46  ;;  %v11383_v46 = vld [vmem:[%s14870_s12 + $0x554] ss:$28 sps:$4 sm:$0xff]  }
 0x698   : > { %7581 = vmatprep.subr.bf16.mxu0 %v11332_v3  ;;  %v11381_v3 = vld [vmem:[%s14870_s12 + $0x550] ss:$28 sps:$4 sm:$0xff]  }
 0x69b   : > { %7582 = vmatpush1.bf16.msra.mxu0 %v11330_v38  ;;  %v11408_v38 = vld [vmem:[%s14870_s12 + $0x6e0] ss:$28 sps:$4 sm:$0xff]  }
 0x69c   : > { %7583 = vmatprep.subr.bf16.mxu0 %v11335_v12  ;;  %v11409_v12 = vld [vmem:[%s14870_s12 + $0x520] ss:$28 sps:$4 sm:$0xff]  }
 0x69d   : > { %7313 = vmatmul.mubr.bf16.gmra.mrb[120].mxu0 %v14133_v41  ;;  %7539 = vmatmul.mubr.bf16.gmra.mrb[152].mxu1 %v14133_v41 }
 0x69e   : > { %7322 = vmatprep.mubr.bf16.mxu0 %v14186_v5  ;;  %7548 = vmatprep.mubr.bf16.mxu1 %v14186_v5 }
 0x69f   : > { %7584 = vmatpush1.bf16.msra.mxu0 %v11333_v1  ;;  %v11386_v1 = vld [vmem:[%s14870_s12 + $0x588] ss:$28 sps:$4 sm:$0xff]  }
 0x6a0   : > { %7585 = vmatprep.subr.bf16.mxu0 %v11340_v33  ;;  %v11391_v33 = vld [vmem:[%s14870_s12 + $0x5c4] ss:$28 sps:$4 sm:$0xff]  }
 0x6a3   : > { %7586 = vmatpush1.bf16.msra.mxu0 %v11338_v21  ;;  %v11396_v21 = vld [vmem:[%s14870_s12 + $0x5fc] ss:$28 sps:$4 sm:$0xff]  }
 0x6a4   : > { %7587 = vmatprep.subr.bf16.mxu0 %v11343_v52  ;;  %v11399_v52 = vld [vmem:[%s14870_s12 + $0x634] ss:$28 sps:$4 sm:$0xff]  }
 0x6a5   : > { %7323 = vmatmul.mubr.bf16.gmra.mrb[124].mxu0 %v14178_v9  ;;  %7549 = vmatmul.mubr.bf16.gmra.mrb[156].mxu1 %v14178_v9 }
 0x6a6   : > { %7591 = vmatprep.mubr.bf16.mxu0 %v13851_v0  ;;  %7817 = vmatprep.mubr.bf16.mxu1 %v13851_v0  ;;  %v11356_v0 = vld [vmem:[%s14870_s12 + $0x3cc] ss:$28 sps:$4 sm:$0xff]  }
 0x6a7   : > { %7588 = vmatpush1.bf16.msra.mxu0 %v11341_v11  ;;  %v11397_v11 = vld [vmem:[%s14870_s12 + $0x630] ss:$28 sps:$4 sm:$0xff]  }
 0x6a8   : > { %7589 = vmatprep.subr.bf16.mxu0 %v11348_v13  ;;  %v11407_v13 = vld [vmem:[%s14870_s12 + $0x6a4] ss:$28 sps:$4 sm:$0xff]  }
 0x6ab   : > { %7590 = vmatpush1.bf16.msra.mxu0 %v11346_v49  ;;  %v11405_v49 = vld [vmem:[%s14870_s12 + $0x6a0] ss:$28 sps:$4 sm:$0xff]  }
 0x6ac   : > { %7672 = vmatprep.subr.bf16.mxu0 %v11351_v39 }
 0x6ad   : > { %7818 = vmatmul.mubr.bf16.vlgmr.msra.gmra.mrb[160].mxu1 %v13847_v22 }
 0x6ae   : > { %7592 = vmatmul.mubr.bf16.vlgmr.msra.gmra.mrb[128].mxu0 %v13847_v22  ;;  %7825 = vmatprep.mubr.bf16.mxu1 %v13901_v25  ;;  %v11368_v22 = vld [vmem:[%s14870_s12 + $0x5c8] ss:$28 sps:$4 sm:$0xff]  }
 0x6af   : > { %7601 = vmatprep.mubr.bf16.mxu0 %v13901_v25  ;;  %7673 = vmatpush1.bf16.msra.mxu0 %v11349_v20  ;;  %v11357_v25 = vld [vmem:[%s14870_s12 + $0x400] ss:$28 sps:$4 sm:$0xff]  }
 0x6b0   : > { %9859 = vmatpush3.bf16.msra.mxu1 %v11353_v34  ;;  %7674 = vmatprep.subr.bf16.mxu0 %v11356_v0 }
 0x6b1   : > { %9860 = vmatprep.subr.bf16.mxu1 %v11360_v37 }
 0x6b3   : > { %7675 = vmatpush1.bf16.msra.mxu0 %v11354_v31 }
 0x6b4   : > { %7676 = vmatprep.subr.bf16.mxu0 %v11359_v60  ;;  %9861 = vmatpush3.bf16.msra.mxu1 %v11361_v4 }
 0x6b5   : > { %9862 = vmatprep.subr.bf16.mxu1 %v11368_v22  ;;  %7826 = vmatmul.mubr.bf16.gmra.mrb[164].mxu1 %v13892_v48 }
 0x6b6   : > { %7602 = vmatmul.mubr.bf16.gmra.mrb[132].mxu0 %v13892_v48  ;;  %7833 = vmatprep.mubr.bf16.mxu1 %v13951_v47  ;;  %v11377_v48 = vld [vmem:[%s14870_s12 + $0x440] ss:$28 sps:$4 sm:$0xff]  }
 0x6b7   : > { %7611 = vmatprep.mubr.bf16.mxu0 %v13951_v47  ;;  %7677 = vmatpush1.bf16.msra.mxu0 %v11357_v25  ;;  %v11372_v47 = vld [vmem:[%s14870_s12 + $0x4ac] ss:$28 sps:$4 sm:$0xff]  }
 0x6b8   : > { %7678 = vmatprep.subr.bf16.mxu0 %v11364_v23  ;;  %9863 = vmatpush3.bf16.msra.mxu1 %v11369_v62 }
 0x6b9   : > { %9864 = vmatprep.subr.bf16.mxu1 %v11376_v17 }
 0x6bb   : > { %7679 = vmatpush1.bf16.msra.mxu0 %v11362_v10 }
 0x6bc   : > { %7680 = vmatprep.subr.bf16.mxu0 %v11367_v51  ;;  %9865 = vmatpush3.bf16.msra.mxu1 %v11377_v48 }
 0x6bd   : > { %7834 = vmatmul.mubr.bf16.gmra.mrb[168].mxu1 %v13942_v26  ;;  %9866 = vmatprep.subr.bf16.mxu1 %v11384_v63 }
 0x6be   : > { %7612 = vmatmul.mubr.bf16.gmra.mrb[136].mxu0 %v13942_v26  ;;  %7841 = vmatprep.mubr.bf16.mxu1 %v14002_v57  ;;  %v11375_v26 = vld [vmem:[%s14870_s12 + $0x4e4] ss:$28 sps:$4 sm:$0xff]  }
 0x6bf   : > { %7621 = vmatprep.mubr.bf16.mxu0 %v14002_v57  ;;  %7681 = vmatpush1.bf16.msra.mxu0 %v11365_v30  ;;  %v11393_v57 = vld [vmem:[%s14870_s12 + $0x4b0] ss:$28 sps:$4 sm:$0xff]  }
 0x6c0   : > { %7682 = vmatprep.subr.bf16.mxu0 %v11372_v47  ;;  %9867 = vmatpush3.bf16.msra.mxu1 %v11385_v40 }
 0x6c1   : > { %9868 = vmatprep.subr.bf16.mxu1 %v11392_v50 }
 0x6c3   : > { %7683 = vmatpush1.bf16.msra.mxu0 %v11370_v16 }
 0x6c4   : > { %7684 = vmatprep.subr.bf16.mxu0 %v11375_v26  ;;  %9869 = vmatpush3.bf16.msra.mxu1 %v11393_v57 }
 0x6c5   : > { %7842 = vmatmul.mubr.bf16.gmra.mrb[172].mxu1 %v13992_v28  ;;  %9870 = vmatprep.subr.bf16.mxu1 %v11400_v32 }
 0x6c6   : > { %7622 = vmatmul.mubr.bf16.gmra.mrb[140].mxu0 %v13992_v28  ;;  %7849 = vmatprep.mubr.bf16.mxu1 %v14052_v61  ;;  %v11401_v28 = vld [vmem:[%s14870_s12 + $0x4e8] ss:$28 sps:$4 sm:$0xff]  }
 0x6c7   : > { %7631 = vmatprep.mubr.bf16.mxu0 %v14052_v61  ;;  %7685 = vmatpush1.bf16.msra.mxu0 %v11373_v27  ;;  %v11388_v61 = vld [vmem:[%s14870_s12 + $0x58c] ss:$28 sps:$4 sm:$0xff]  }
 0x6c8   : > { %7686 = vmatprep.subr.bf16.mxu0 %v11380_v7  ;;  %9871 = vmatpush3.bf16.msra.mxu1 %v11401_v28 }
 0x6c9   : > { %9872 = vmatprep.subr.bf16.mxu1 %v11408_v38 }
 0x6cb   : > { %7687 = vmatpush1.bf16.msra.mxu0 %v11378_v29 }
 0x6cc   : > { %7688 = vmatprep.subr.bf16.mxu0 %v11383_v46  ;;  %9873 = vmatpush3.bf16.msra.mxu1 %v11409_v12 }
 0x6cd   : > { %7850 = vmatmul.mubr.bf16.gmra.mrb[176].mxu1 %v14036_v19 }
 0x6ce   : > { %7632 = vmatmul.mubr.bf16.gmra.mrb[144].mxu0 %v14036_v19  ;;  %7857 = vmatprep.mubr.bf16.mxu1 %v14096_v53  ;;  %v11389_v19 = vld [vmem:[%s14870_s12 + $0x5c0] ss:$28 sps:$4 sm:$0xff]  }
 0x6cf   : > { %7641 = vmatprep.mubr.bf16.mxu0 %v14096_v53  ;;  %7689 = vmatpush1.bf16.msra.mxu0 %v11381_v3  ;;  %v11394_v53 = vld [vmem:[%s14870_s12 + $0x5f8] ss:$28 sps:$4 sm:$0xff]  }
 0x6d0   : > { %7690 = vmatprep.subr.bf16.mxu0 %v11388_v61 }
 0x6d3   : > { %7691 = vmatpush1.bf16.msra.mxu0 %v11386_v1 }
 0x6d4   : > { %7692 = vmatprep.subr.bf16.mxu0 %v11391_v33 }
 0x6d5   : > { %7858 = vmatmul.mubr.bf16.gmra.mrb[180].mxu1 %v14080_v35 }
 0x6d6   : > { %7642 = vmatmul.mubr.bf16.gmra.mrb[148].mxu0 %v14080_v35  ;;  %7865 = vmatprep.mubr.bf16.mxu1 %v14135_v45  ;;  %v11404_v35 = vld [vmem:[%s14870_s12 + $0x66c] ss:$28 sps:$4 sm:$0xff]  }
 0x6d7   : > { %7651 = vmatprep.mubr.bf16.mxu0 %v14135_v45  ;;  %7693 = vmatpush1.bf16.msra.mxu0 %v11389_v19  ;;  %v11402_v45 = vld [vmem:[%s14870_s12 + $0x668] ss:$28 sps:$4 sm:$0xff]  }
 0x6d8   : > { %7694 = vmatprep.subr.bf16.mxu0 %v11396_v21 }
 0x6db   : > { %7695 = vmatpush1.bf16.msra.mxu0 %v11394_v53 }
 0x6dc   : > { %7696 = vmatprep.subr.bf16.mxu0 %v11399_v52 }
 0x6dd   : > { %7866 = vmatmul.mubr.bf16.gmra.mrb[184].mxu1 %v14129_v6 }
 0x6de   : > { %7652 = vmatmul.mubr.bf16.gmra.mrb[152].mxu0 %v14129_v6  ;;  %7873 = vmatprep.mubr.bf16.mxu1 %v14181_v55  ;;  %v11412_v6 = vld [vmem:[%s14870_s12 + $0x6dc] ss:$28 sps:$4 sm:$0xff]  }
 0x6df   : > { %7661 = vmatprep.mubr.bf16.mxu0 %v14181_v55  ;;  %7697 = vmatpush1.bf16.msra.mxu0 %v11397_v11  ;;  %v11410_v55 = vld [vmem:[%s14870_s12 + $0x6d8] ss:$28 sps:$4 sm:$0xff]  }
 0x6e0   : > { %7698 = vmatprep.subr.bf16.mxu0 %v11404_v35 }
 0x6e3   : > { %7699 = vmatpush1.bf16.msra.mxu0 %v11402_v45 }
 0x6e4   : > { %7700 = vmatprep.subr.bf16.mxu0 %v11407_v13 }
 0x6e5   : > { %7874 = vmatmul.mubr.bf16.gmra.mrb[188].mxu1 %v14176_v24 }
 0x6e6   : > { %7662 = vmatmul.mubr.bf16.gmra.mrb[156].mxu0 %v14176_v24  ;;  %7914 = vmatprep.mubr.bf16.mxu1 %v13853_v15 }
 0x6e7   : > { %7701 = vmatpush1.bf16.msra.mxu0 %v11405_v49  ;;  %7704 = vmatprep.mubr.bf16.mxu0 %v13853_v15  ;;  %v14927_v15 = vld [vmem:[#allocation3_spill] sm:$0xff] }
 0x6e8   : > { %7702 = vmatprep.subr.bf16.mxu0 %v11412_v6 }
 0x6eb   : > { %7703 = vmatpush1.bf16.msra.mxu0 %v11410_v55 }
 0x6ed   : > { %7915 = vmatmul.mubr.bf16.vlgmr.msra.gmra.mrb[192].mxu1 %v13849_v14 }
 0x6ee   : > { %7705 = vmatmul.mubr.bf16.vlgmr.msra.gmra.mrb[128].mxu0 %v13849_v14  ;;  %7922 = vmatprep.mubr.bf16.mxu1 %v13911_v59  ;;  %v14594_v14 = vld [vmem:[%s14871_s13] sm:$0xff] }
 0x6ef   : > { %7714 = vmatprep.mubr.bf16.mxu0 %v13911_v59 }
 0x6f5   : > { %7923 = vmatmul.mubr.bf16.gmra.mrb[196].mxu1 %v13899_v58 }
 0x6f6   : > { %7715 = vmatmul.mubr.bf16.gmra.mrb[132].mxu0 %v13899_v58  ;;  %7930 = vmatprep.mubr.bf16.mxu1 %v13953_v42  ;;  %v14598_v58 = vrot.slane %v14594_v14, %v14927_v15 }
 0x6f7   : > { %7724 = vmatprep.mubr.bf16.mxu0 %v13953_v42  ;;  %v14929_v42 = vld [vmem:[#allocation5_spill] sm:$0xff] }
 0x6fd   : > { %7931 = vmatmul.mubr.bf16.gmra.mrb[200].mxu1 %v13944_v36 }
 0x6fe   : > { %7725 = vmatmul.mubr.bf16.gmra.mrb[136].mxu0 %v13944_v36  ;;  %7938 = vmatprep.mubr.bf16.mxu1 %v14018_v56  ;;  %v14928_v36 = vld [vmem:[#allocation4_spill] sm:$0xff] }
 0x6ff   : > { %7734 = vmatprep.mubr.bf16.mxu0 %v14018_v56 }
 0x705   : > { %7939 = vmatmul.mubr.bf16.gmra.mrb[204].mxu1 %v13994_v54 }
 0x706   : > { %7735 = vmatmul.mubr.bf16.gmra.mrb[140].mxu0 %v13994_v54  ;;  %7946 = vmatprep.mubr.bf16.mxu1 %v14062_v18  ;;  %v14606_v54 = vrot.slane %v14594_v14, %v14929_v42 }
 0x707   : > { %7744 = vmatprep.mubr.bf16.mxu0 %v14062_v18  ;;  %v14930_v18 = vld [vmem:[#allocation6_spill] sm:$0xff] }
 0x70d   : > { %7947 = vmatmul.mubr.bf16.gmra.mrb[208].mxu1 %v14042_v8 }
 0x70e   : > { %7745 = vmatmul.mubr.bf16.gmra.mrb[144].mxu0 %v14042_v8  ;;  %7954 = vmatprep.mubr.bf16.mxu1 %v14106_v43 }
 0x70f   : > { %7754 = vmatprep.mubr.bf16.mxu0 %v14106_v43 }
 0x715   : > { %7955 = vmatmul.mubr.bf16.gmra.mrb[212].mxu1 %v14085_v44 }
 0x716   : > { %7755 = vmatmul.mubr.bf16.gmra.mrb[148].mxu0 %v14085_v44  ;;  %7962 = vmatprep.mubr.bf16.mxu1 %v14143_v2  ;;  %v14610_v44 = vrot.slane %v14594_v14, %v14930_v18 }
 0x717   : > { %7764 = vmatprep.mubr.bf16.mxu0 %v14143_v2 }
 0x71d   : > { %7963 = vmatmul.mubr.bf16.gmra.mrb[216].mxu1 %v14133_v41 }
 0x71e   : > { %7765 = vmatmul.mubr.bf16.gmra.mrb[152].mxu0 %v14133_v41  ;;  %7970 = vmatprep.mubr.bf16.mxu1 %v14186_v5  ;;  %v14602_v41 = vrot.slane %v14594_v14, %v14928_v36 }
 0x71f   : > { %7774 = vmatprep.mubr.bf16.mxu0 %v14186_v5 }
 0x725   : > { %7971 = vmatmul.mubr.bf16.gmra.mrb[220].mxu1 %v14178_v9 }
 0x726   : > { %7775 = vmatmul.mubr.bf16.gmra.mrb[156].mxu0 %v14178_v9 }
 0x740   : > { %v7254_v59 = vpop.f32.mrb[96].mxu0  ;;  %v7480_v56 = vpop.f32.mrb[128].mxu1 }
 0x741   : > { %v7256_v8 = vpop.f32.mrb[97].mxu0  ;;  %v7482_v43 = vpop.f32.mrb[129].mxu1  ;;  %v10018_v24 = vadd.f32 %v7254_v59, %v14598_v58  ;;  %v10050_v20 = vadd.f32 %v7480_v56, %v14602_v41 }
 0x742   : > { %v7258_v2 = vpop.f32.mrb[98].mxu0  ;;  %v7484_v5 = vpop.f32.mrb[130].mxu1  ;;  %v10019_v34 = vadd.f32 %v7256_v8, %v14606_v54  ;;  %v10051_v60 = vadd.f32 %v7482_v43, %v14610_v44 }
 0x743   : > { %v10020_v9 = vadd.f32 %v7258_v2, %v14598_v58  ;;  %v7260_v39 = vpop.f32.mrb[99].mxu0  ;;  %v10052_v0 = vadd.f32 %v7484_v5, %v14602_v41  ;;  %v7486_v31 = vpop.f32.mrb[131].mxu1 }
 0x744   : > { %v10021_v37 = vadd.f32 %v7260_v39, %v14606_v54  ;;  %v10053_v22 = vadd.f32 %v7486_v31, %v14610_v44 }
 0x745   : > { %v7979_v4 = vpack.c.bf16 %v10020_v9, %v10018_v24  ;;  %v7981_v25 = vpack.c.bf16 %v10052_v0, %v10050_v20 }
 0x746   : > { %v7980_v23 = vpack.c.bf16 %v10021_v37, %v10019_v34  ;;  %v7982_v17 = vpack.c.bf16 %v10053_v22, %v10051_v60 }
 0x747   : > { %v9569_v62 = vmul.bf16 3216621497, %v7979_v4  ;;  %v9571_v10 = vmul.bf16 3216621497, %v7981_v25 }
 0x748   : > { %v9570_v51 = vmul.bf16 3216621497, %v7980_v23  ;;  %v7264_v48 = vpop.f32.mrb[100].mxu0  ;;  %v9572_v30 = vmul.bf16 3216621497, %v7982_v17  ;;  %v7490_v47 = vpop.f32.mrb[132].mxu1 }
 0x749   : > { %11413 = vpow.bf16 %v9569_v62  ;;  %v7266_v63 = vpop.f32.mrb[101].mxu0  ;;  %v7492_v40 = vpop.f32.mrb[133].mxu1  ;;  %v10022_v50 = vadd.f32 %v7264_v48, %v14598_v58  ;;  %v10054_v26 = vadd.f32 %v7490_v47, %v14602_v41 }
 0x74a   : > { %11415 = vpow.bf16 %v9571_v10  ;;  %v7268_v16 = vpop.f32.mrb[102].mxu0  ;;  %v7494_v7 = vpop.f32.mrb[134].mxu1  ;;  %v10023_v32 = vadd.f32 %v7266_v63, %v14606_v54  ;;  %v10055_v3 = vadd.f32 %v7492_v40, %v14610_v44 }
 0x74b   : > { %11417 = vpow.bf16 %v9570_v51  ;;  %v10024_v27 = vadd.f32 %v7268_v16, %v14598_v58  ;;  %v7270_v57 = vpop.f32.mrb[103].mxu0  ;;  %v10056_v29 = vadd.f32 %v7494_v7, %v14602_v41  ;;  %v7496_v28 = vpop.f32.mrb[135].mxu1 }
 0x74c   : > { %11419 = vpow.bf16 %v9572_v30  ;;  %v10025_v46 = vadd.f32 %v7270_v57, %v14606_v54  ;;  %v10057_v38 = vadd.f32 %v7496_v28, %v14610_v44 }
 0x74d   : > { %v7986_v61 = vpack.c.bf16 %v10024_v27, %v10022_v50  ;;  %v7988_v12 = vpack.c.bf16 %v10056_v29, %v10054_v26 }
 0x74e   : > { %v7987_v1 = vpack.c.bf16 %v10025_v46, %v10023_v32  ;;  %v7989_v19 = vpack.c.bf16 %v10057_v38, %v10055_v3 }
 0x74f   : > { %v9576_v33 = vmul.bf16 3216621497, %v7986_v61  ;;  %v9578_v21 = vmul.bf16 3216621497, %v7988_v12 }
 0x750   : > { %v9577_v53 = vmul.bf16 3216621497, %v7987_v1  ;;  %v7274_v52 = vpop.f32.mrb[104].mxu0  ;;  %v9579_v11 = vmul.bf16 3216621497, %v7989_v19  ;;  %v7500_v35 = vpop.f32.mrb[136].mxu1 }
 0x751   : > { %11421 = vpow.bf16 %v9576_v33  ;;  %v7276_v45 = vpop.f32.mrb[105].mxu0  ;;  %v7502_v13 = vpop.f32.mrb[137].mxu1  ;;  %v10026_v6 = vadd.f32 %v7274_v52, %v14598_v58  ;;  %v10058_v55 = vadd.f32 %v7500_v35, %v14602_v41 }
 0x752   : > { %11423 = vpow.bf16 %v9578_v21  ;;  %v7278_v49 = vpop.f32.mrb[106].mxu0  ;;  %v7504_v59 = vpop.f32.mrb[138].mxu1  ;;  %v10027_v56 = vadd.f32 %v7276_v45, %v14606_v54  ;;  %v10059_v9 = vadd.f32 %v7502_v13, %v14610_v44 }
 0x753   : > { %11425 = vpow.bf16 %v9577_v53  ;;  %v10028_v15 = vadd.f32 %v7278_v49, %v14598_v58  ;;  %v7280_v36 = vpop.f32.mrb[107].mxu0  ;;  %v10060_v8 = vadd.f32 %v7504_v59, %v14602_v41  ;;  %v7506_v43 = vpop.f32.mrb[139].mxu1 }
 0x754   : > { %v11414_v42 = vpop.eup %11413  ;;  %11427 = vpow.bf16 %v9579_v11  ;;  %v10029_v18 = vadd.f32 %v7280_v36, %v14606_v54  ;;  %v10061_v39 = vadd.f32 %v7506_v43, %v14610_v44 }
 0x755   : > { %v11416_v2 = vpop.eup %11415  ;;  %v8259_v24 = vadd.bf16 1065369472, %v11414_v42  ;;  %v7993_v5 = vpack.c.bf16 %v10028_v15, %v10026_v6  ;;  %v7995_v0 = vpack.c.bf16 %v10060_v8, %v10058_v55 }
 0x756   : > { %v11418_v20 = vpop.eup %11417  ;;  %v8261_v34 = vadd.bf16 1065369472, %v11416_v2  ;;  %v7994_v37 = vpack.c.bf16 %v10029_v18, %v10027_v56  ;;  %v7996_v22 = vpack.c.bf16 %v10061_v39, %v10059_v9 }
 0x757   : > { %v11420_v31 = vpop.eup %11419  ;;  %11429 = vrcp.bf16 %v8259_v24  ;;  %v8260_v60 = vadd.bf16 1065369472, %v11418_v20  ;;  %v9583_v4 = vmul.bf16 3216621497, %v7993_v5  ;;  %v9585_v23 = vmul.bf16 3216621497, %v7995_v0 }
 0x758   : > { %11431 = vrcp.bf16 %v8261_v34  ;;  %v8262_v25 = vadd.bf16 1065369472, %v11420_v31  ;;  %v9584_v62 = vmul.bf16 3216621497, %v7994_v37  ;;  %v7284_v17 = vpop.f32.mrb[108].mxu0  ;;  %v7510_v10 = vpop.f32.mrb[140].mxu1 }
 0x759   : > { %11433 = vrcp.bf16 %v8260_v60  ;;  %v9586_v51 = vmul.bf16 3216621497, %v7996_v22  ;;  %v7286_v48 = vpop.f32.mrb[109].mxu0  ;;  %v7512_v30 = vpop.f32.mrb[141].mxu1  ;;  %v10030_v47 = vadd.f32 %v7284_v17, %v14598_v58  ;;  %v10062_v63 = vadd.f32 %v7510_v10, %v14602_v41 }
 0x75a   : > { %11435 = vrcp.bf16 %v8262_v25  ;;  %v10031_v40 = vadd.f32 %v7286_v48, %v14606_v54  ;;  %v7288_v16 = vpop.f32.mrb[110].mxu0  ;;  %v7514_v50 = vpop.f32.mrb[142].mxu1  ;;  %v10063_v27 = vadd.f32 %v7512_v30, %v14610_v44 }
 0x75b   : > { %11437 = vpow.bf16 %v9583_v4  ;;  %v10032_v7 = vadd.f32 %v7288_v16, %v14598_v58  ;;  %v10064_v57 = vadd.f32 %v7514_v50, %v14602_v41  ;;  %v7290_v32 = vpop.f32.mrb[111].mxu0  ;;  %v7516_v29 = vpop.f32.mrb[143].mxu1 }
 0x75c   : > { %v11422_v26 = vpop.eup %11421  ;;  %11439 = vpow.bf16 %v9585_v23  ;;  %v10033_v3 = vadd.f32 %v7290_v32, %v14606_v54  ;;  %v10065_v61 = vadd.f32 %v7516_v29, %v14610_v44 }
 0x75d   : > { %v11424_v46 = vpop.eup %11423  ;;  %v8266_v28 = vadd.bf16 1065369472, %v11422_v26  ;;  %11441 = vpow.bf16 %v9584_v62  ;;  %v8000_v1 = vpack.c.bf16 %v10032_v7, %v10030_v47  ;;  %v8002_v33 = vpack.c.bf16 %v10064_v57, %v10062_v63 }
 0x75e   : > { %v11426_v38 = vpop.eup %11425  ;;  %v8268_v12 = vadd.bf16 1065369472, %v11424_v46  ;;  %11443 = vpow.bf16 %v9586_v51  ;;  %v8001_v53 = vpack.c.bf16 %v10033_v3, %v10031_v40  ;;  %v8003_v52 = vpack.c.bf16 %v10065_v61, %v10063_v27 }
 0x75f   : > { %v11428_v19 = vpop.eup %11427  ;;  %11445 = vrcp.bf16 %v8266_v28  ;;  %v8267_v21 = vadd.bf16 1065369472, %v11426_v38  ;;  %v9590_v35 = vmul.bf16 3216621497, %v8000_v1  ;;  %v9592_v45 = vmul.bf16 3216621497, %v8002_v33 }
 0x760   : > { %11447 = vrcp.bf16 %v8268_v12  ;;  %v8269_v11 = vadd.bf16 1065369472, %v11428_v19  ;;  %v9591_v13 = vmul.bf16 3216621497, %v8001_v53  ;;  %v7294_v49 = vpop.f32.mrb[112].mxu0  ;;  %v7520_v6 = vpop.f32.mrb[144].mxu1 }
 0x761   : > { %11449 = vrcp.bf16 %v8267_v21  ;;  %v9593_v15 = vmul.bf16 3216621497, %v8003_v52  ;;  %v10034_v59 = vadd.f32 %v7294_v49, %v14598_v58  ;;  %v10066_v36 = vadd.f32 %v7520_v6, %v14602_v41  ;;  %v7296_v42 = vpop.f32.mrb[113].mxu0  ;;  %v7522_v56 = vpop.f32.mrb[145].mxu1 }
 0x762   : > { %v11430_v55 = vpop.eup %11429  ;;  %11451 = vrcp.bf16 %v8269_v11  ;;  %v10035_v43 = vadd.f32 %v7296_v42, %v14606_v54  ;;  %v10067_v2 = vadd.f32 %v7522_v56, %v14610_v44  ;;  %v7298_v24 = vpop.f32.mrb[114].mxu0 }
 0x763   : > { %v11432_v8 = vpop.eup %11431  ;;  %v8316_v18 = vmul.bf16 1065369472, %v11430_v55  ;;  %11453 = vpow.bf16 %v9590_v35  ;;  %v7524_v9 = vpop.f32.mrb[146].mxu1  ;;  %v10036_v20 = vadd.f32 %v7298_v24, %v14598_v58 }
 0x764   : > { %v11434_v5 = vpop.eup %11433  ;;  %v8320_v39 = vmul.bf16 1065369472, %v11432_v8  ;;  %11455 = vpow.bf16 %v9592_v45  ;;  %v10068_v34 = vadd.f32 %v7524_v9, %v14602_v41  ;;  %v7300_v0 = vpop.f32.mrb[115].mxu0 }
 0x765   : > { %v7526_v37 = vpop.f32.mrb[147].mxu1  ;;  %v11436_v31 = vpop.eup %11435  ;;  %v8318_v60 = vmul.bf16 1065369472, %v11434_v5  ;;  %11457 = vpow.bf16 %v9591_v13  ;;  %v10037_v4 = vadd.f32 %v7300_v0, %v14606_v54  ;;  %v8007_v62 = vpack.c.bf16 %v10036_v20, %v10034_v59 }
 0x766   : > { %v10069_v22 = vadd.f32 %v7526_v37, %v14610_v44  ;;  %v11438_v25 = vpop.eup %11437  ;;  %v8322_v23 = vmul.bf16 1065369472, %v11436_v31  ;;  %11459 = vpow.bf16 %v9593_v15  ;;  %v8009_v17 = vpack.c.bf16 %v10068_v34, %v10066_v36 }
 0x767   : > { %v11440_v10 = vpop.eup %11439  ;;  %v9625_v51 = vcombine.low %v8316_v18, %v8318_v60  ;;  %v9629_v48 = vcombine.high %v8316_v18, %v8318_v60  ;;  %v8273_v30 = vadd.bf16 1065369472, %v11438_v25  ;;  %v8008_v47 = vpack.c.bf16 %v10037_v4, %v10035_v43 }
 0x768   : > { %v11442_v63 = vpop.eup %11441  ;;  %v9626_v40 = vcombine.low %v8320_v39, %v8322_v23  ;;  %v9630_v16 = vcombine.high %v8320_v39, %v8322_v23  ;;  %v8275_v50 = vadd.bf16 1065369472, %v11440_v10  ;;  %v9597_v26 = vmul.bf16 3216621497, %v8007_v62  ;;  %v7304_v27 = vpop.f32.mrb[116].mxu0 }
 0x769   : > { %v11444_v7 = vpop.eup %11443  ;;  %8723 = vst [vmem:[%s14657_s27] sm:$0xff] %v9625_v51  ;;  %8727 = vst [vmem:[%s14657_s27 + $0x1c] sm:$0xff] %v9629_v48  ;;  %11461 = vrcp.bf16 %v8273_v30  ;;  %v8274_v57 = vadd.bf16 1065369472, %v11442_v63  ;;  %v9599_v32 = vmul.bf16 3216621497, %v8009_v17  ;;  %v8010_v3 = vpack.c.bf16 %v10069_v22, %v10067_v2  ;;  %v7530_v38 = vpop.f32.mrb[148].mxu1 }
 0x76a   : > { %v9598_v29 = vmul.bf16 3216621497, %v8008_v47  ;;  %v11446_v46 = vpop.eup %11445  ;;  %8724 = vst [vmem:[%s14657_s27 + $0x8] sm:$0xff] %v9626_v40  ;;  %8728 = vst [vmem:[%s14657_s27 + $0x24] sm:$0xff] %v9630_v16  ;;  %11463 = vrcp.bf16 %v8275_v50  ;;  %v8276_v28 = vadd.bf16 1065369472, %v11444_v7  ;;  %v10038_v61 = vadd.f32 %v7304_v27, %v14598_v58 }
 0x76b   : > { %v7306_v12 = vpop.f32.mrb[117].mxu0  ;;  %v11448_v1 = vpop.eup %11447  ;;  %v8330_v33 = vmul.bf16 1065369472, %v11446_v46  ;;  %11465 = vrcp.bf16 %v8274_v57  ;;  %v10070_v19 = vadd.f32 %v7530_v38, %v14602_v41  ;;  %v9600_v45 = vmul.bf16 3216621497, %v8010_v3 }
 0x76c   : > { %v10039_v21 = vadd.f32 %v7306_v12, %v14606_v54  ;;  %v7532_v53 = vpop.f32.mrb[149].mxu1  ;;  %v7308_v52 = vpop.f32.mrb[118].mxu0  ;;  %v8334_v35 = vmul.bf16 1065369472, %v11448_v1  ;;  %11467 = vrcp.bf16 %v8276_v28 }
 0x76d   : > { %v11450_v11 = vpop.eup %11449  ;;  %v10071_v13 = vadd.f32 %v7532_v53, %v14610_v44  ;;  %v7534_v49 = vpop.f32.mrb[150].mxu1  ;;  %11469 = vpow.bf16 %v9597_v26  ;;  %v10040_v59 = vadd.f32 %v7308_v52, %v14598_v58 }
 0x76e   : > { %v7310_v6 = vpop.f32.mrb[119].mxu0  ;;  %v11452_v55 = vpop.eup %11451  ;;  %v8332_v15 = vmul.bf16 1065369472, %v11450_v11  ;;  %v10072_v36 = vadd.f32 %v7534_v49, %v14602_v41  ;;  %11471 = vpow.bf16 %v9599_v32 }
 0x76f   : > { %v7536_v42 = vpop.f32.mrb[151].mxu1  ;;  %v11454_v56 = vpop.eup %11453  ;;  %v8336_v8 = vmul.bf16 1065369472, %v11452_v55  ;;  %v10041_v18 = vadd.f32 %v7310_v6, %v14606_v54  ;;  %11473 = vpow.bf16 %v9598_v29  ;;  %v8014_v4 = vpack.c.bf16 %v10040_v59, %v10038_v61 }
 0x770   : > { %v10073_v43 = vadd.f32 %v7536_v42, %v14610_v44  ;;  %v11456_v2 = vpop.eup %11455  ;;  %v9633_v24 = vcombine.low %v8330_v33, %v8332_v15  ;;  %v9637_v9 = vcombine.high %v8330_v33, %v8332_v15  ;;  %v8280_v5 = vadd.bf16 1065369472, %v11454_v56  ;;  %v7314_v37 = vpop.f32.mrb[120].mxu0 }
 0x771   : > { %v11458_v39 = vpop.eup %11457  ;;  %v9634_v20 = vcombine.low %v8334_v35, %v8336_v8  ;;  %v9638_v34 = vcombine.high %v8334_v35, %v8336_v8  ;;  %v8282_v0 = vadd.bf16 1065369472, %v11456_v2  ;;  %11475 = vpow.bf16 %v9600_v45  ;;  %v7540_v25 = vpop.f32.mrb[152].mxu1 }
 0x772   : > { %v11460_v31 = vpop.eup %11459  ;;  %8731 = vst [vmem:[%s14657_s27 + $0x38] sm:$0xff] %v9633_v24  ;;  %8735 = vst [vmem:[%s14657_s27 + $0x54] sm:$0xff] %v9637_v9  ;;  %11477 = vrcp.bf16 %v8280_v5  ;;  %v8281_v60 = vadd.bf16 1065369472, %v11458_v39  ;;  %v8016_v22 = vpack.c.bf16 %v10072_v36, %v10070_v19  ;;  %v7316_v23 = vpop.f32.mrb[121].mxu0  ;;  %v8015_v17 = vpack.c.bf16 %v10041_v18, %v10039_v21 }
 0x773   : > { %8732 = vst [vmem:[%s14657_s27 + $0x40] sm:$0xff] %v9634_v20  ;;  %8736 = vst [vmem:[%s14657_s27 + $0x5c] sm:$0xff] %v9638_v34  ;;  %11479 = vrcp.bf16 %v8282_v0  ;;  %v8283_v62 = vadd.bf16 1065369472, %v11460_v31  ;;  %v8017_v10 = vpack.c.bf16 %v10073_v43, %v10071_v13  ;;  %v7542_v51 = vpop.f32.mrb[153].mxu1  ;;  %v7318_v48 = vpop.f32.mrb[122].mxu0  ;;  %v10042_v63 = vadd.f32 %v7314_v37, %v14598_v58 }
 0x774   : > { %11481 = vrcp.bf16 %v8281_v60  ;;  %v9604_v30 = vmul.bf16 3216621497, %v8014_v4  ;;  %v9606_v47 = vmul.bf16 3216621497, %v8016_v22  ;;  %v7544_v40 = vpop.f32.mrb[154].mxu1  ;;  %v7320_v16 = vpop.f32.mrb[123].mxu0  ;;  %v10074_v7 = vadd.f32 %v7540_v25, %v14602_v41 }
 0x775   : > { %v11462_v50 = vpop.eup %11461  ;;  %11483 = vrcp.bf16 %v8283_v62  ;;  %v9605_v26 = vmul.bf16 3216621497, %v8015_v17  ;;  %v9607_v27 = vmul.bf16 3216621497, %v8017_v10  ;;  %v7546_v57 = vpop.f32.mrb[155].mxu1  ;;  %v10043_v46 = vadd.f32 %v7316_v23, %v14606_v54 }
 0x776   : > { %v11464_v32 = vpop.eup %11463  ;;  %v8344_v29 = vmul.bf16 1065369472, %v11462_v50  ;;  %11485 = vpow.bf16 %v9604_v30  ;;  %v10075_v28 = vadd.f32 %v7542_v51, %v14610_v44  ;;  %v10044_v38 = vadd.f32 %v7318_v48, %v14598_v58 }
 0x777   : > { %v11466_v3 = vpop.eup %11465  ;;  %v8348_v61 = vmul.bf16 1065369472, %v11464_v32  ;;  %11487 = vpow.bf16 %v9606_v47  ;;  %v10076_v12 = vadd.f32 %v7544_v40, %v14602_v41  ;;  %v10045_v19 = vadd.f32 %v7320_v16, %v14606_v54 }
 0x778   : > { %v11468_v1 = vpop.eup %11467  ;;  %v8346_v33 = vmul.bf16 1065369472, %v11466_v3  ;;  %11489 = vpow.bf16 %v9605_v26  ;;  %v10077_v21 = vadd.f32 %v7546_v57, %v14610_v44  ;;  %v8021_v11 = vpack.c.bf16 %v10044_v38, %v10042_v63  ;;  %v7324_v45 = vpop.f32.mrb[124].mxu0 }
 0x779   : > { %v11470_v53 = vpop.eup %11469  ;;  %v8350_v52 = vmul.bf16 1065369472, %v11468_v1  ;;  %11491 = vpow.bf16 %v9607_v27  ;;  %v8023_v35 = vpack.c.bf16 %v10076_v12, %v10074_v7  ;;  %v8022_v15 = vpack.c.bf16 %v10045_v19, %v10043_v46  ;;  %v7550_v59 = vpop.f32.mrb[156].mxu1 }
 0x77a   : > { %v11472_v13 = vpop.eup %11471  ;;  %v9641_v49 = vcombine.low %v8344_v29, %v8346_v33  ;;  %v9645_v6 = vcombine.high %v8344_v29, %v8346_v33  ;;  %v8287_v55 = vadd.bf16 1065369472, %v11470_v53  ;;  %v7326_v36 = vpop.f32.mrb[125].mxu0  ;;  %v9611_v43 = vmul.bf16 3216621497, %v8021_v11 }
 0x77b   : > { %v11474_v42 = vpop.eup %11473  ;;  %v9642_v56 = vcombine.low %v8348_v61, %v8350_v52  ;;  %v9646_v8 = vcombine.high %v8348_v61, %v8350_v52  ;;  %v8289_v18 = vadd.bf16 1065369472, %v11472_v13  ;;  %v7552_v2 = vpop.f32.mrb[157].mxu1  ;;  %v9613_v39 = vmul.bf16 3216621497, %v8023_v35 }
 0x77c   : > { %v7328_v24 = vpop.f32.mrb[126].mxu0  ;;  %v11476_v9 = vpop.eup %11475  ;;  %8739 = vst [vmem:[%s14657_s27 + $0x70] sm:$0xff] %v9641_v49  ;;  %8743 = vst [vmem:[%s14657_s27 + $0x8c] sm:$0xff] %v9645_v6  ;;  %11493 = vrcp.bf16 %v8287_v55  ;;  %v8288_v5 = vadd.bf16 1065369472, %v11474_v42  ;;  %v8024_v37 = vpack.c.bf16 %v10077_v21, %v10075_v28  ;;  %v10046_v31 = vadd.f32 %v7324_v45, %v14598_v58 }
 0x77d   : > { %v9612_v20 = vmul.bf16 3216621497, %v8022_v15  ;;  %v11478_v34 = vpop.eup %11477  ;;  %8740 = vst [vmem:[%s14657_s27 + $0x78] sm:$0xff] %v9642_v56  ;;  %8744 = vst [vmem:[%s14657_s27 + $0x94] sm:$0xff] %v9646_v8  ;;  %11495 = vrcp.bf16 %v8289_v18  ;;  %v8290_v0 = vadd.bf16 1065369472, %v11476_v9  ;;  %v10078_v23 = vadd.f32 %v7550_v59, %v14602_v41 }
 0x77e   : > { %v7554_v60 = vpop.f32.mrb[158].mxu1  ;;  %v7330_v4 = vpop.f32.mrb[127].mxu0  ;;  %v8358_v25 = vmul.bf16 1065369472, %v11478_v34  ;;  %11497 = vrcp.bf16 %v8288_v5  ;;  %v10047_v62 = vadd.f32 %v7326_v36, %v14606_v54  ;;  %v9614_v48 = vmul.bf16 3216621497, %v8024_v37 }
 0x77f   : > { %v11480_v22 = vpop.eup %11479  ;;  %v7556_v17 = vpop.f32.mrb[159].mxu1  ;;  %11499 = vrcp.bf16 %v8290_v0  ;;  %v10079_v30 = vadd.f32 %v7552_v2, %v14610_v44  ;;  %v10048_v40 = vadd.f32 %v7328_v24, %v14598_v58  ;;  %v10080_v16 = vadd.f32 %v7554_v60, %v14602_v41 }
 0x780   : > { %v11482_v10 = vpop.eup %11481  ;;  %v8362_v51 = vmul.bf16 1065369472, %v11480_v22  ;;  %11501 = vpow.bf16 %v9611_v43  ;;  %v10049_v27 = vadd.f32 %v7330_v4, %v14606_v54  ;;  %v10081_v7 = vadd.f32 %v7556_v17, %v14610_v44  ;;  %v9810_v28 = vpop.f32.mrb[160].mxu1 }
 0x781   : > { %v11484_v47 = vpop.eup %11483  ;;  %v8360_v63 = vmul.bf16 1065369472, %v11482_v10  ;;  %11503 = vpow.bf16 %v9613_v39  ;;  %v9811_v38 = vpop.f32.mrb[161].mxu1  ;;  %v8028_v44 = vpack.c.bf16 %v10048_v40, %v10046_v31  ;;  %v8030_v1 = vpack.c.bf16 %v10080_v16, %v10078_v23 }
 0x782   : > { %v11486_v50 = vpop.eup %11485  ;;  %v8364_v26 = vmul.bf16 1065369472, %v11484_v47  ;;  %11505 = vpow.bf16 %v9612_v20  ;;  %v9813_v33 = vpop.f32.mrb[162].mxu1  ;;  %v8029_v21 = vpack.c.bf16 %v10049_v27, %v10047_v62  ;;  %v8031_v53 = vpack.c.bf16 %v10081_v7, %v10079_v30 }
 0x783   : > { %v11488_v57 = vpop.eup %11487  ;;  %v9649_v32 = vcombine.low %v8358_v25, %v8360_v63  ;;  %v9653_v29 = vcombine.high %v8358_v25, %v8360_v63  ;;  %v8294_v46 = vadd.bf16 1065369472, %v11486_v50  ;;  %11507 = vpow.bf16 %v9614_v48  ;;  %v9814_v52 = vpop.f32.mrb[163].mxu1 }
 0x784   : > { %v11490_v58 = vpop.eup %11489  ;;  %v9650_v3 = vcombine.low %v8362_v51, %v8364_v26  ;;  %v9654_v41 = vcombine.high %v8362_v51, %v8364_v26  ;;  %v8296_v61 = vadd.bf16 1065369472, %v11488_v57  ;;  %v9618_v11 = vmul.bf16 3216621497, %v8028_v44 }
 0x785   : > { %v11492_v12 = vpop.eup %11491  ;;  %8747 = vst [vmem:[%s14657_s27 + $0xa8] sm:$0xff] %v9649_v32  ;;  %8751 = vst [vmem:[%s14657_s27 + $0xc4] sm:$0xff] %v9653_v29  ;;  %11509 = vrcp.bf16 %v8294_v46  ;;  %v8295_v54 = vadd.bf16 1065369472, %v11490_v58  ;;  %v9620_v35 = vmul.bf16 3216621497, %v8030_v1  ;;  %v14699_v45 = vadd.f32 %v9811_v38, %v9810_v28 }
 0x786   : > { %8748 = vst [vmem:[%s14657_s27 + $0xb0] sm:$0xff] %v9650_v3  ;;  %8752 = vst [vmem:[%s14657_s27 + $0xcc] sm:$0xff] %v9654_v41  ;;  %11511 = vrcp.bf16 %v8296_v61  ;;  %v8297_v19 = vadd.bf16 1065369472, %v11492_v12  ;;  %v9619_v49 = vmul.bf16 3216621497, %v8029_v21  ;;  %v14701_v55 = vadd.f32 %v9814_v52, %v9813_v33 }
 0x787   : > { %11513 = vrcp.bf16 %v8295_v54  ;;  %v11494_v13 = vpop.eup %11493  ;;  %v9621_v6 = vmul.bf16 3216621497, %v8031_v53 }
 0x788   : > { %11515 = vrcp.bf16 %v8297_v19  ;;  %v11496_v15 = vpop.eup %11495  ;;  %v8372_v59 = vmul.bf16 1065369472, %v11494_v13  ;;  %v9816_v18 = vpop.f32.mrb[164].mxu1 }
 0x789   : > { %11517 = vpow.bf16 %v9618_v11  ;;  %v11498_v36 = vpop.eup %11497  ;;  %v8376_v42 = vmul.bf16 1065369472, %v11496_v15  ;;  %v9817_v24 = vpop.f32.mrb[165].mxu1 }
 0x78a   : > { %11519 = vpow.bf16 %v9620_v35  ;;  %v11500_v56 = vpop.eup %11499  ;;  %v8374_v8 = vmul.bf16 1065369472, %v11498_v36  ;;  %v14703_v34 = vadd.f32 %v9817_v24, %v9816_v18  ;;  %v9819_v0 = vpop.f32.mrb[166].mxu1 }
 0x78b   : > { %11521 = vpow.bf16 %v9619_v49  ;;  %v11502_v43 = vpop.eup %11501  ;;  %v8378_v2 = vmul.bf16 1065369472, %v11500_v56  ;;  %v9820_v22 = vpop.f32.mrb[167].mxu1 }
 0x78c   : > { %11523 = vpow.bf16 %v9621_v6  ;;  %v11504_v9 = vpop.eup %11503  ;;  %v9657_v5 = vcombine.low %v8372_v59, %v8374_v8  ;;  %v9661_v39 = vcombine.high %v8372_v59, %v8374_v8  ;;  %v8301_v20 = vadd.bf16 1065369472, %v11502_v43 }
 0x78d   : > { %v11506_v37 = vpop.eup %11505  ;;  %v9658_v31 = vcombine.low %v8376_v42, %v8378_v2  ;;  %v9662_v60 = vcombine.high %v8376_v42, %v8378_v2  ;;  %v8303_v4 = vadd.bf16 1065369472, %v11504_v9  ;;  %v14707_v62 = vadd.f32 %v9820_v22, %v9819_v0 }
 0x78e   : > { %v11508_v25 = vpop.eup %11507  ;;  %8755 = vst [vmem:[%s14657_s27 + $0xe0] sm:$0xff] %v9657_v5  ;;  %8759 = vst [vmem:[%s14657_s27 + $0xfc] sm:$0xff] %v9661_v39  ;;  %11525 = vrcp.bf16 %v8301_v20  ;;  %v8302_v23 = vadd.bf16 1065369472, %v11506_v37 }
 0x78f   : > { %8756 = vst [vmem:[%s14657_s27 + $0xe8] sm:$0xff] %v9658_v31  ;;  %8760 = vst [vmem:[%s14657_s27 + $0x104] sm:$0xff] %v9662_v60  ;;  %11527 = vrcp.bf16 %v8303_v4  ;;  %v8304_v10 = vadd.bf16 1065369472, %v11508_v25 }
 0x790   : > { %v11510_v17 = vpop.eup %11509  ;;  %11529 = vrcp.bf16 %v8302_v23  ;;  %v9822_v16 = vpop.f32.mrb[168].mxu1 }
 0x791   : > { %v11512_v51 = vpop.eup %11511  ;;  %v8386_v48 = vmul.bf16 1065369472, %v11510_v17  ;;  %11531 = vrcp.bf16 %v8304_v10  ;;  %v9823_v27 = vpop.f32.mrb[169].mxu1 }
 0x792   : > { %v11514_v30 = vpop.eup %11513  ;;  %v8390_v47 = vmul.bf16 1065369472, %v11512_v51  ;;  %v14711_v46 = vadd.f32 %v9823_v27, %v9822_v16  ;;  %v9825_v28 = vpop.f32.mrb[170].mxu1 }
 0x793   : > { %v11516_v63 = vpop.eup %11515  ;;  %v8388_v40 = vmul.bf16 1065369472, %v11514_v30  ;;  %v9826_v38 = vpop.f32.mrb[171].mxu1 }
 0x794   : > { %v11518_v50 = vpop.eup %11517  ;;  %v8392_v26 = vmul.bf16 1065369472, %v11516_v63  ;;  %v14715_v44 = vadd.f32 %v9826_v38, %v9825_v28 }
 0x795   : > { %v11520_v7 = vpop.eup %11519  ;;  %v9665_v57 = vcombine.low %v8386_v48, %v8388_v40  ;;  %v9669_v32 = vcombine.high %v8386_v48, %v8388_v40  ;;  %v8308_v29 = vadd.bf16 1065369472, %v11518_v50 }
 0x796   : > { %v11522_v58 = vpop.eup %11521  ;;  %v9666_v3 = vcombine.low %v8390_v47, %v8392_v26  ;;  %v9670_v41 = vcombine.high %v8390_v47, %v8392_v26  ;;  %v8310_v61 = vadd.bf16 1065369472, %v11520_v7 }
 0x797   : > { %v11524_v12 = vpop.eup %11523  ;;  %8763 = vst [vmem:[%s14657_s27 + $0x118] sm:$0xff] %v9665_v57  ;;  %8767 = vst [vmem:[%s14657_s27 + $0x134] sm:$0xff] %v9669_v32  ;;  %11533 = vrcp.bf16 %v8308_v29  ;;  %v8309_v54 = vadd.bf16 1065369472, %v11522_v58 }
 0x798   : > { %8764 = vst [vmem:[%s14657_s27 + $0x120] sm:$0xff] %v9666_v3  ;;  %8768 = vst [vmem:[%s14657_s27 + $0x13c] sm:$0xff] %v9670_v41  ;;  %11535 = vrcp.bf16 %v8310_v61  ;;  %v8311_v1 = vadd.bf16 1065369472, %v11524_v12  ;;  %v9828_v53 = vpop.f32.mrb[172].mxu1  ;;  %v14931_v3 = vld [vmem:[#allocation2_spill] sm:$0xff] }
 0x799   : > { %11537 = vrcp.bf16 %v8309_v54  ;;  %v11526_v33 = vpop.eup %11525  ;;  %v9829_v35 = vpop.f32.mrb[173].mxu1  ;;  %v5946_v41 = vsub.s32 6, %v14931_v3  ;;  %v5938_v54 = vsub.s32 4, %v14931_v3 }
 0x79a   : > { %11539 = vrcp.bf16 %v8311_v1  ;;  %v11528_v19 = vpop.eup %11527  ;;  %v8400_v21 = vmul.bf16 1065369472, %v11526_v33  ;;  %v14719_v6 = vadd.f32 %v9829_v35, %v9828_v53  ;;  %v9831_v15 = vpop.f32.mrb[174].mxu1  ;;  %v5942_v33 = vsub.s32 5, %v14931_v3 }
 0x79b   : > { %v11530_v52 = vpop.eup %11529  ;;  %v8404_v11 = vmul.bf16 1065369472, %v11528_v19  ;;  %v9832_v36 = vpop.f32.mrb[175].mxu1  ;;  %v14751_v19 = vrot.slane %v14594_v14, %v5946_v41 }
 0x79c   : > { %v11532_v13 = vpop.eup %11531  ;;  %v8402_v49 = vmul.bf16 1065369472, %v11530_v52  ;;  %v14721_v8 = vadd.f32 %v9832_v36, %v9831_v15 }
 0x79d   : > { %v8406_v59 = vmul.bf16 1065369472, %v11532_v13 }
 0x79e   : > { %v9673_v42 = vcombine.low %v8400_v21, %v8402_v49  ;;  %v9677_v56 = vcombine.high %v8400_v21, %v8402_v49  ;;  %v14754_v21 = vrot.slane %v14594_v14, %v5938_v54  ;;  %v7820_v49 = vadd.f32 %v14699_v45, %v14751_v19 }
 0x79f   : > { %v9674_v18 = vcombine.low %v8404_v11, %v8406_v59  ;;  %v9678_v43 = vcombine.high %v8404_v11, %v8406_v59  ;;  %v14757_v11 = vrot.slane %v14594_v14, %v5942_v33 }
 0x7a0   : > { %8771 = vst [vmem:[%s14657_s27 + $0x150] sm:$0xff] %v9673_v42  ;;  %8775 = vst [vmem:[%s14657_s27 + $0x16c] sm:$0xff] %v9677_v56  ;;  %v9834_v5 = vpop.f32.mrb[176].mxu1  ;;  %v7823_v42 = vadd.f32 %v14701_v55, %v14751_v19 }
 0x7a1   : > { %8772 = vst [vmem:[%s14657_s27 + $0x158] sm:$0xff] %v9674_v18  ;;  %8776 = vst [vmem:[%s14657_s27 + $0x174] sm:$0xff] %v9678_v43  ;;  %v9835_v0 = vpop.f32.mrb[177].mxu1 }
 0x7a2   : > { %v11534_v2 = vpop.eup %11533  ;;  %v14727_v60 = vadd.f32 %v9835_v0, %v9834_v5  ;;  %v9837_v4 = vpop.f32.mrb[178].mxu1 }
 0x7a3   : > { %v11536_v24 = vpop.eup %11535  ;;  %v8414_v9 = vmul.bf16 1065369472, %v11534_v2  ;;  %v9838_v25 = vpop.f32.mrb[179].mxu1 }
 0x7a4   : > { %v11538_v39 = vpop.eup %11537  ;;  %v8418_v20 = vmul.bf16 1065369472, %v11536_v24  ;;  %v14729_v10 = vadd.f32 %v9838_v25, %v9837_v4 }
 0x7a5   : > { %v11540_v37 = vpop.eup %11539  ;;  %v8416_v31 = vmul.bf16 1065369472, %v11538_v39 }
 0x7a6   : > { %v8420_v22 = vmul.bf16 1065369472, %v11540_v37 }
 0x7a7   : > { %v9681_v23 = vcombine.low %v8414_v9, %v8416_v31  ;;  %v9685_v17 = vcombine.high %v8414_v9, %v8416_v31 }
 0x7a8   : > { %v9682_v51 = vcombine.low %v8418_v20, %v8420_v22  ;;  %v9686_v48 = vcombine.high %v8418_v20, %v8420_v22  ;;  %v9840_v30 = vpop.f32.mrb[180].mxu1 }
 0x7a9   : > { %8779 = vst [vmem:[%s14657_s27 + $0x188] sm:$0xff] %v9681_v23  ;;  %8783 = vst [vmem:[%s14657_s27 + $0x1a4] sm:$0xff] %v9685_v17  ;;  %v9841_v47 = vpop.f32.mrb[181].mxu1  ;;  %v7828_v23 = vadd.f32 %v14703_v34, %v14751_v19 }
 0x7aa   : > { %8780 = vst [vmem:[%s14657_s27 + $0x190] sm:$0xff] %v9682_v51  ;;  %8784 = vst [vmem:[%s14657_s27 + $0x1ac] sm:$0xff] %v9686_v48  ;;  %v14735_v63 = vadd.f32 %v9841_v47, %v9840_v30  ;;  %v9843_v40 = vpop.f32.mrb[182].mxu1  ;;  %v7831_v47 = vadd.f32 %v14707_v62, %v14751_v19 }
 0x7ab   : > { %v9844_v16 = vpop.f32.mrb[183].mxu1 }
 0x7ac   : > { %v14737_v50 = vadd.f32 %v9844_v16, %v9843_v40 }
 0x7b0   : > { %v9846_v26 = vpop.f32.mrb[184].mxu1 }
 0x7b1   : > { %v9847_v27 = vpop.f32.mrb[185].mxu1 }
 0x7b2   : > { %v14739_v7 = vadd.f32 %v9847_v27, %v9846_v26  ;;  %v9849_v57 = vpop.f32.mrb[186].mxu1 }
 0x7b3   : > { %v9850_v32 = vpop.f32.mrb[187].mxu1 }
 0x7b4   : > { %v14741_v29 = vadd.f32 %v9850_v32, %v9849_v57 }
 0x7b8   : > { %v9852_v28 = vpop.f32.mrb[188].mxu1 }
 0x7b9   : > { %v9853_v58 = vpop.f32.mrb[189].mxu1 }
 0x7ba   : > { %v14744_v61 = vadd.f32 %v9853_v58, %v9852_v28  ;;  %v9855_v38 = vpop.f32.mrb[190].mxu1 }
 0x7bb   : > { %v9856_v12 = vpop.f32.mrb[191].mxu1 }
 0x7bc   : > { %v14747_v1 = vadd.f32 %v9856_v12, %v9855_v38 }
 0x7c0   : > { %v9874_v52 = vpop.f32.mrb[192].mxu1 }
 0x7c1   : > { %v7706_v53 = vpop.f32.mrb[128].mxu0  ;;  %v9875_v13 = vpop.f32.mrb[193].mxu1 }
 0x7c2   : > { %v7708_v35 = vpop.f32.mrb[129].mxu0  ;;  %v9876_v15 = vadd.f32 %v9875_v13, %v9874_v52  ;;  %v9877_v36 = vpop.f32.mrb[194].mxu1  ;;  %v10082_v56 = vadd.f32 %v7706_v53, %v14754_v21 }
 0x7c3   : > { %v7710_v59 = vpop.f32.mrb[130].mxu0  ;;  %v9878_v2 = vpop.f32.mrb[195].mxu1  ;;  %v10083_v14 = vadd.f32 %v7708_v35, %v14757_v11  ;;  %v7836_v35 = vadd.f32 %v14711_v46, %v14751_v19 }
 0x7c4   : > { %v10084_v18 = vadd.f32 %v7710_v59, %v14754_v21  ;;  %v7712_v43 = vpop.f32.mrb[131].mxu0  ;;  %v7917_v24 = vadd.f32 %v9876_v15, %v7820_v49  ;;  %v9879_v5 = vadd.f32 %v9878_v2, %v9877_v36  ;;  %v7839_v36 = vadd.f32 %v14715_v44, %v14751_v19 }
 0x7c5   : > { %v10085_v9 = vadd.f32 %v7712_v43, %v14757_v11 }
 0x7c6   : > { %v7983_v39 = vpack.c.bf16 %v10084_v18, %v10082_v56  ;;  %v7920_v20 = vadd.f32 %v9879_v5, %v7823_v42 }
 0x7c7   : > { %v7984_v45 = vpack.c.bf16 %v10085_v9, %v10083_v14 }
 0x7c8   : > { %v9573_v0 = vmul.bf16 3216621497, %v7983_v39  ;;  %v7985_v31 = vpack.c.bf16 %v7920_v20, %v7917_v24  ;;  %v9880_v55 = vpop.f32.mrb[196].mxu1 }
 0x7c9   : > { %v9574_v37 = vmul.bf16 3216621497, %v7984_v45  ;;  %v7716_v4 = vpop.f32.mrb[132].mxu0  ;;  %v9881_v25 = vpop.f32.mrb[197].mxu1 }
 0x7ca   : > { %11541 = vpow.bf16 %v9573_v0  ;;  %v7718_v22 = vpop.f32.mrb[133].mxu0  ;;  %v9575_v17 = vmul.bf16 3216621497, %v7985_v31  ;;  %v9882_v51 = vadd.f32 %v9881_v25, %v9880_v55  ;;  %v9883_v30 = vpop.f32.mrb[198].mxu1  ;;  %v10086_v40 = vadd.f32 %v7716_v4, %v14754_v21 }
 0x7cb   : > { %11543 = vpow.bf16 %v9574_v37  ;;  %v7720_v48 = vpop.f32.mrb[134].mxu0  ;;  %v10087_v16 = vadd.f32 %v7718_v22, %v14757_v11  ;;  %v9884_v57 = vpop.f32.mrb[199].mxu1 }
 0x7cc   : > { %v10088_v26 = vadd.f32 %v7720_v48, %v14754_v21  ;;  %v7722_v27 = vpop.f32.mrb[135].mxu0  ;;  %11545 = vpow.bf16 %v9575_v17  ;;  %v7925_v32 = vadd.f32 %v9882_v51, %v7828_v23  ;;  %v9885_v28 = vadd.f32 %v9884_v57, %v9883_v30 }
 0x7cd   : > { %v10089_v34 = vadd.f32 %v7722_v27, %v14757_v11  ;;  %v7844_v17 = vadd.f32 %v14719_v6, %v14751_v19  ;;  %v7847_v30 = vadd.f32 %v14721_v8, %v14751_v19 }
 0x7ce   : > { %v7990_v58 = vpack.c.bf16 %v10088_v26, %v10086_v40  ;;  %v7928_v41 = vadd.f32 %v9885_v28, %v7831_v47 }
 0x7cf   : > { %v7991_v3 = vpack.c.bf16 %v10089_v34, %v10087_v16 }
 0x7d0   : > { %v9580_v38 = vmul.bf16 3216621497, %v7990_v58  ;;  %v7992_v54 = vpack.c.bf16 %v7928_v41, %v7925_v32  ;;  %v9886_v33 = vpop.f32.mrb[200].mxu1 }
 0x7d1   : > { %v9581_v12 = vmul.bf16 3216621497, %v7991_v3  ;;  %v7726_v62 = vpop.f32.mrb[136].mxu0  ;;  %v9887_v52 = vpop.f32.mrb[201].mxu1 }
 0x7d2   : > { %11547 = vpow.bf16 %v9580_v38  ;;  %v7728_v53 = vpop.f32.mrb[137].mxu0  ;;  %v9582_v13 = vmul.bf16 3216621497, %v7992_v54  ;;  %v9888_v49 = vadd.f32 %v9887_v52, %v9886_v33  ;;  %v9889_v59 = vpop.f32.mrb[202].mxu1  ;;  %v10090_v42 = vadd.f32 %v7726_v62, %v14754_v21 }
 0x7d3   : > { %11549 = vpow.bf16 %v9581_v12  ;;  %v7730_v15 = vpop.f32.mrb[138].mxu0  ;;  %v10091_v56 = vadd.f32 %v7728_v53, %v14757_v11  ;;  %v9890_v2 = vpop.f32.mrb[203].mxu1 }
 0x7d4   : > { %v10092_v18 = vadd.f32 %v7730_v15, %v14754_v21  ;;  %v7732_v43 = vpop.f32.mrb[139].mxu0  ;;  %11551 = vpow.bf16 %v9582_v13  ;;  %v7933_v24 = vadd.f32 %v9888_v49, %v7836_v35  ;;  %v9891_v9 = vadd.f32 %v9890_v2, %v9889_v59 }
 0x7d5   : > { %v11542_v14 = vpop.eup %11541  ;;  %v10093_v46 = vadd.f32 %v7732_v43, %v14757_v11 }
 0x7d6   : > { %v11544_v5 = vpop.eup %11543  ;;  %v8263_v39 = vadd.bf16 1065369472, %v11542_v14  ;;  %v7997_v45 = vpack.c.bf16 %v10092_v18, %v10090_v42  ;;  %v7936_v44 = vadd.f32 %v9891_v9, %v7839_v36  ;;  %v7852_v36 = vadd.f32 %v14727_v60, %v14751_v19 }
 0x7d7   : > { %v8264_v20 = vadd.bf16 1065369472, %v11544_v5  ;;  %v7998_v0 = vpack.c.bf16 %v10093_v46, %v10091_v56  ;;  %v11546_v37 = vpop.eup %11545 }
 0x7d8   : > { %11553 = vrcp.bf16 %v8263_v39  ;;  %v9587_v31 = vmul.bf16 3216621497, %v7997_v45  ;;  %v8265_v4 = vadd.bf16 1065369472, %v11546_v37  ;;  %v7999_v22 = vpack.c.bf16 %v7936_v44, %v7933_v24  ;;  %v9892_v23 = vpop.f32.mrb[204].mxu1 }
 0x7d9   : > { %11555 = vrcp.bf16 %v8264_v20  ;;  %v9588_v55 = vmul.bf16 3216621497, %v7998_v0  ;;  %v7736_v25 = vpop.f32.mrb[140].mxu0  ;;  %v9893_v48 = vpop.f32.mrb[205].mxu1 }
 0x7da   : > { %11557 = vpow.bf16 %v9587_v31  ;;  %v7738_v51 = vpop.f32.mrb[141].mxu0  ;;  %v9589_v47 = vmul.bf16 3216621497, %v7999_v22  ;;  %v9894_v40 = vadd.f32 %v9893_v48, %v9892_v23  ;;  %v9895_v26 = vpop.f32.mrb[206].mxu1  ;;  %v10094_v27 = vadd.f32 %v7736_v25, %v14754_v21 }
 0x7db   : > { %11559 = vrcp.bf16 %v8265_v4  ;;  %v7740_v16 = vpop.f32.mrb[142].mxu0  ;;  %v10095_v57 = vadd.f32 %v7738_v51, %v14757_v11  ;;  %v9896_v6 = vpop.f32.mrb[207].mxu1 }
 0x7dc   : > { %11561 = vpow.bf16 %v9588_v55  ;;  %v10096_v32 = vadd.f32 %v7740_v16, %v14754_v21  ;;  %v7742_v34 = vpop.f32.mrb[143].mxu0  ;;  %v7941_v58 = vadd.f32 %v9894_v40, %v7844_v17  ;;  %v9897_v8 = vadd.f32 %v9896_v6, %v9895_v26 }
 0x7dd   : > { %v11548_v28 = vpop.eup %11547  ;;  %11563 = vpow.bf16 %v9589_v47  ;;  %v10097_v3 = vadd.f32 %v7742_v34, %v14757_v11  ;;  %v7855_v55 = vadd.f32 %v14729_v10, %v14751_v19 }
 0x7de   : > { %v11550_v41 = vpop.eup %11549  ;;  %v8270_v38 = vadd.bf16 1065369472, %v11548_v28  ;;  %v8004_v12 = vpack.c.bf16 %v10096_v32, %v10094_v27  ;;  %v7944_v33 = vadd.f32 %v9897_v8, %v7847_v30 }
 0x7df   : > { %v8271_v54 = vadd.bf16 1065369472, %v11550_v41  ;;  %v8005_v62 = vpack.c.bf16 %v10097_v3, %v10095_v57  ;;  %v11552_v53 = vpop.eup %11551  ;;  %v7863_v3 = vadd.f32 %v14737_v50, %v14751_v19 }
 0x7e0   : > { %11565 = vrcp.bf16 %v8270_v38  ;;  %v9594_v52 = vmul.bf16 3216621497, %v8004_v12  ;;  %v8272_v35 = vadd.bf16 1065369472, %v11552_v53  ;;  %v8006_v49 = vpack.c.bf16 %v7944_v33, %v7941_v58  ;;  %v9898_v59 = vpop.f32.mrb[208].mxu1 }
 0x7e1   : > { %11567 = vrcp.bf16 %v8271_v54  ;;  %v9595_v13 = vmul.bf16 3216621497, %v8005_v62  ;;  %v7746_v15 = vpop.f32.mrb[144].mxu0  ;;  %v9899_v56 = vpop.f32.mrb[209].mxu1  ;;  %v7860_v58 = vadd.f32 %v14735_v63, %v14751_v19 }
 0x7e2   : > { %11569 = vpow.bf16 %v9594_v52  ;;  %v7748_v42 = vpop.f32.mrb[145].mxu0  ;;  %v9596_v43 = vmul.bf16 3216621497, %v8006_v49  ;;  %v10098_v2 = vadd.f32 %v7746_v15, %v14754_v21  ;;  %v9900_v14 = vadd.f32 %v9899_v56, %v9898_v59  ;;  %v9901_v46 = vpop.f32.mrb[210].mxu1 }
 0x7e3   : > { %v11554_v18 = vpop.eup %11553  ;;  %11571 = vrcp.bf16 %v8272_v35  ;;  %v7750_v24 = vpop.f32.mrb[146].mxu0  ;;  %v10099_v39 = vadd.f32 %v7748_v42, %v14757_v11 }
 0x7e4   : > { %v11556_v9 = vpop.eup %11555  ;;  %v8324_v5 = vmul.bf16 1065369472, %v11554_v18  ;;  %11573 = vpow.bf16 %v9595_v13  ;;  %v10100_v45 = vadd.f32 %v7750_v24, %v14754_v21  ;;  %v7752_v20 = vpop.f32.mrb[147].mxu0  ;;  %v7949_v37 = vadd.f32 %v9900_v14, %v7852_v36 }
 0x7e5   : > { %v9902_v60 = vpop.f32.mrb[211].mxu1  ;;  %v11558_v0 = vpop.eup %11557  ;;  %v8326_v44 = vmul.bf16 1065369472, %v11556_v9  ;;  %11575 = vpow.bf16 %v9596_v43  ;;  %v10101_v31 = vadd.f32 %v7752_v20, %v14757_v11 }
 0x7e6   : > { %v11560_v4 = vpop.eup %11559  ;;  %v8277_v22 = vadd.bf16 1065369472, %v11558_v0  ;;  %v8011_v25 = vpack.c.bf16 %v10100_v45, %v10098_v2  ;;  %v9903_v23 = vadd.f32 %v9902_v60, %v9901_v46 }
 0x7e7   : > { %v11562_v17 = vpop.eup %11561  ;;  %v9627_v51 = vcombine.low %v8324_v5, %v8326_v44  ;;  %v9631_v48 = vcombine.high %v8324_v5, %v8326_v44  ;;  %v8328_v30 = vmul.bf16 1065369472, %v11560_v4  ;;  %v8012_v47 = vpack.c.bf16 %v10101_v31, %v10099_v39 }
 0x7e8   : > { %v11564_v40 = vpop.eup %11563  ;;  %11577 = vrcp.bf16 %v8277_v22  ;;  %v8278_v16 = vadd.bf16 1065369472, %v11562_v17  ;;  %v9601_v26 = vmul.bf16 3216621497, %v8011_v25  ;;  %v7952_v27 = vadd.f32 %v9903_v23, %v7855_v55  ;;  %v9904_v28 = vpop.f32.mrb[212].mxu1 }
 0x7e9   : > { %8725 = vst [vmem:[%s14657_s27 + $0x10] sm:$0xff] %v9627_v51  ;;  %8729 = vst [vmem:[%s14657_s27 + $0x2c] sm:$0xff] %v9631_v48  ;;  %v9628_v57 = vcombine.low %v8328_v30, %v8328_v30  ;;  %v9632_v32 = vcombine.high %v8328_v30, %v8328_v30  ;;  %v8279_v10 = vadd.bf16 1065369472, %v11564_v40  ;;  %v9602_v34 = vmul.bf16 3216621497, %v8012_v47 }
 0x7ea   : > { %v7756_v6 = vpop.f32.mrb[148].mxu0  ;;  %11579 = vrcp.bf16 %v8278_v16  ;;  %v8013_v8 = vpack.c.bf16 %v7952_v27, %v7949_v37  ;;  %v9905_v38 = vpop.f32.mrb[213].mxu1  ;;  %v7868_v25 = vadd.f32 %v14739_v7, %v14751_v19  ;;  %v7871_v23 = vadd.f32 %v14741_v29, %v14751_v19 }
 0x7eb   : > { %v7758_v41 = vpop.f32.mrb[149].mxu0  ;;  %v11566_v12 = vpop.eup %11565  ;;  %8726 = vst [vmem:[%s14657_s27 + $0x18] sm:$0xf] %v9628_v57  ;;  %8730 = vst [vmem:[%s14657_s27 + $0x34] sm:$0xf] %v9632_v32  ;;  %11581 = vrcp.bf16 %v8279_v10  ;;  %v10102_v54 = vadd.f32 %v7756_v6, %v14754_v21  ;;  %v9906_v33 = vadd.f32 %v9905_v38, %v9904_v28 }
 0x7ec   : > { %v10103_v62 = vadd.f32 %v7758_v41, %v14757_v11  ;;  %v7760_v53 = vpop.f32.mrb[150].mxu0  ;;  %v9907_v52 = vpop.f32.mrb[214].mxu1  ;;  %v8338_v63 = vmul.bf16 1065369472, %v11566_v12  ;;  %11583 = vpow.bf16 %v9601_v26  ;;  %v9603_v13 = vmul.bf16 3216621497, %v8013_v8 }
 0x7ed   : > { %v11568_v35 = vpop.eup %11567  ;;  %v10104_v50 = vadd.f32 %v7760_v53, %v14754_v21  ;;  %v7762_v49 = vpop.f32.mrb[151].mxu0  ;;  %11585 = vpow.bf16 %v9602_v34  ;;  %v7957_v42 = vadd.f32 %v9906_v33, %v7860_v58  ;;  %v7876_v12 = vadd.f32 %v14744_v61, %v14751_v19 }
 0x7ee   : > { %v9908_v15 = vpop.f32.mrb[215].mxu1  ;;  %v11570_v59 = vpop.eup %11569  ;;  %v8340_v36 = vmul.bf16 1065369472, %v11568_v35  ;;  %v10105_v56 = vadd.f32 %v7762_v49, %v14757_v11  ;;  %11587 = vpow.bf16 %v9603_v13 }
 0x7ef   : > { %v11572_v18 = vpop.eup %11571  ;;  %v8284_v43 = vadd.bf16 1065369472, %v11570_v59  ;;  %v8018_v2 = vpack.c.bf16 %v10104_v50, %v10102_v54  ;;  %v9909_v14 = vadd.f32 %v9908_v15, %v9907_v52  ;;  %v7879_v52 = vadd.f32 %v14747_v1, %v14751_v19 }
 0x7f0   : > { %v11574_v24 = vpop.eup %11573  ;;  %v9635_v46 = vcombine.low %v8338_v63, %v8340_v36  ;;  %v9639_v9 = vcombine.high %v8338_v63, %v8340_v36  ;;  %v8342_v5 = vmul.bf16 1065369472, %v11572_v18  ;;  %v8019_v39 = vpack.c.bf16 %v10105_v56, %v10103_v62  ;;  %v9910_v22 = vpop.f32.mrb[216].mxu1 }
 0x7f1   : > { %v11576_v45 = vpop.eup %11575  ;;  %11589 = vrcp.bf16 %v8284_v43  ;;  %v8285_v20 = vadd.bf16 1065369472, %v11574_v24  ;;  %v9608_v60 = vmul.bf16 3216621497, %v8018_v2  ;;  %v7960_v0 = vadd.f32 %v9909_v14, %v7863_v3  ;;  %v7766_v55 = vpop.f32.mrb[152].mxu0 }
 0x7f2   : > { %8733 = vst [vmem:[%s14657_s27 + $0x48] sm:$0xff] %v9635_v46  ;;  %8737 = vst [vmem:[%s14657_s27 + $0x64] sm:$0xff] %v9639_v9  ;;  %v9636_v44 = vcombine.low %v8342_v5, %v8342_v5  ;;  %v9640_v37 = vcombine.high %v8342_v5, %v8342_v5  ;;  %v8286_v31 = vadd.bf16 1065369472, %v11576_v45  ;;  %v9609_v4 = vmul.bf16 3216621497, %v8019_v39 }
 0x7f3   : > { %11591 = vrcp.bf16 %v8285_v20  ;;  %v8020_v17 = vpack.c.bf16 %v7960_v0, %v7957_v42  ;;  %v7768_v51 = vpop.f32.mrb[153].mxu0  ;;  %v9911_v48 = vpop.f32.mrb[217].mxu1  ;;  %v10106_v47 = vadd.f32 %v7766_v55, %v14754_v21 }
 0x7f4   : > { %v11578_v30 = vpop.eup %11577  ;;  %8734 = vst [vmem:[%s14657_s27 + $0x50] sm:$0xf] %v9636_v44  ;;  %8738 = vst [vmem:[%s14657_s27 + $0x6c] sm:$0xf] %v9640_v37  ;;  %11593 = vrcp.bf16 %v8286_v31  ;;  %v10107_v40 = vadd.f32 %v7768_v51, %v14757_v11  ;;  %v9912_v16 = vadd.f32 %v9911_v48, %v9910_v22  ;;  %v7770_v26 = vpop.f32.mrb[154].mxu0 }
 0x7f5   : > { %v9913_v27 = vpop.f32.mrb[218].mxu1  ;;  %v8352_v57 = vmul.bf16 1065369472, %v11578_v30  ;;  %11595 = vpow.bf16 %v9608_v60  ;;  %v9610_v7 = vmul.bf16 3216621497, %v8020_v17  ;;  %v10108_v29 = vadd.f32 %v7770_v26, %v14754_v21  ;;  %v7772_v32 = vpop.f32.mrb[155].mxu0 }
 0x7f6   : > { %v9914_v10 = vpop.f32.mrb[219].mxu1  ;;  %v11580_v34 = vpop.eup %11579  ;;  %11597 = vpow.bf16 %v9609_v4  ;;  %v7965_v6 = vadd.f32 %v9912_v16, %v7868_v25  ;;  %v10109_v28 = vadd.f32 %v7772_v32, %v14757_v11 }
 0x7f7   : > { %v9915_v58 = vadd.f32 %v9914_v10, %v9913_v27  ;;  %v11582_v3 = vpop.eup %11581  ;;  %v8354_v8 = vmul.bf16 1065369472, %v11580_v34  ;;  %11599 = vpow.bf16 %v9610_v7  ;;  %v8025_v41 = vpack.c.bf16 %v10108_v29, %v10106_v47 }
 0x7f8   : > { %v11584_v38 = vpop.eup %11583  ;;  %v8356_v54 = vmul.bf16 1065369472, %v11582_v3  ;;  %v8026_v62 = vpack.c.bf16 %v10109_v28, %v10107_v40  ;;  %v9916_v42 = vpop.f32.mrb[220].mxu1 }
 0x7f9   : > { %v7968_v33 = vadd.f32 %v9915_v58, %v7871_v23  ;;  %v11586_v53 = vpop.eup %11585  ;;  %v9643_v35 = vcombine.low %v8352_v57, %v8354_v8  ;;  %v9647_v63 = vcombine.high %v8352_v57, %v8354_v8  ;;  %v8291_v13 = vadd.bf16 1065369472, %v11584_v38  ;;  %v7776_v61 = vpop.f32.mrb[156].mxu0 }
 0x7fa   : > { %v11588_v50 = vpop.eup %11587  ;;  %v9644_v49 = vcombine.low %v8356_v54, %v8356_v54  ;;  %v9648_v15 = vcombine.high %v8356_v54, %v8356_v54  ;;  %v8292_v59 = vadd.bf16 1065369472, %v11586_v53  ;;  %v9615_v36 = vmul.bf16 3216621497, %v8025_v41  ;;  %v7778_v2 = vpop.f32.mrb[157].mxu0 }
 0x7fb   : > { %8741 = vst [vmem:[%s14657_s27 + $0x80] sm:$0xff] %v9643_v35  ;;  %8745 = vst [vmem:[%s14657_s27 + $0x9c] sm:$0xff] %v9647_v63  ;;  %11601 = vrcp.bf16 %v8291_v13  ;;  %v8293_v56 = vadd.bf16 1065369472, %v11588_v50  ;;  %v9616_v18 = vmul.bf16 3216621497, %v8026_v62  ;;  %v8027_v43 = vpack.c.bf16 %v7968_v33, %v7965_v6 }
 0x7fc   : > { %v9917_v1 = vpop.f32.mrb[221].mxu1  ;;  %v11590_v19 = vpop.eup %11589  ;;  %8742 = vst [vmem:[%s14657_s27 + $0x88] sm:$0xf] %v9644_v49  ;;  %8746 = vst [vmem:[%s14657_s27 + $0xa4] sm:$0xf] %v9648_v15  ;;  %11603 = vrcp.bf16 %v8292_v59  ;;  %v10110_v14 = vadd.f32 %v7776_v61, %v14754_v21  ;;  %v10111_v24 = vadd.f32 %v7778_v2, %v14757_v11 }
 0x7fd   : > { %v9918_v46 = vadd.f32 %v9917_v1, %v9916_v42  ;;  %v7780_v9 = vpop.f32.mrb[158].mxu0  ;;  %v9919_v5 = vpop.f32.mrb[222].mxu1  ;;  %v8366_v39 = vmul.bf16 1065369472, %v11590_v19  ;;  %11605 = vrcp.bf16 %v8293_v56  ;;  %v9617_v45 = vmul.bf16 3216621497, %v8027_v43 }
 0x7fe   : > { %v10112_v20 = vadd.f32 %v7780_v9, %v14754_v21  ;;  %v7782_v60 = vpop.f32.mrb[159].mxu0  ;;  %v9920_v0 = vpop.f32.mrb[223].mxu1  ;;  %11607 = vpow.bf16 %v9615_v36 }
 0x7ff   : > { %v11592_v44 = vpop.eup %11591  ;;  %v7973_v37 = vadd.f32 %v9918_v46, %v7876_v12  ;;  %v10113_v31 = vadd.f32 %v7782_v60, %v14757_v11  ;;  %v9921_v4 = vadd.f32 %v9920_v0, %v9919_v5  ;;  %11609 = vpow.bf16 %v9616_v18 }
 0x800   : > { %v11594_v55 = vpop.eup %11593  ;;  %v8368_v22 = vmul.bf16 1065369472, %v11592_v44  ;;  %v8032_v25 = vpack.c.bf16 %v10112_v20, %v10110_v14  ;;  %11611 = vpow.bf16 %v9617_v45 }
 0x801   : > { %v11596_v23 = vpop.eup %11595  ;;  %v8370_v17 = vmul.bf16 1065369472, %v11594_v55  ;;  %v8033_v51 = vpack.c.bf16 %v10113_v31, %v10111_v24  ;;  %v7976_v48 = vadd.f32 %v9921_v4, %v7879_v52 }
 0x802   : > { %v11598_v21 = vpop.eup %11597  ;;  %v9651_v30 = vcombine.low %v8366_v39, %v8368_v22  ;;  %v9655_v47 = vcombine.high %v8366_v39, %v8368_v22  ;;  %v8298_v40 = vadd.bf16 1065369472, %v11596_v23  ;;  %v9622_v57 = vmul.bf16 3216621497, %v8032_v25 }
 0x803   : > { %v11600_v16 = vpop.eup %11599  ;;  %v9652_v11 = vcombine.low %v8370_v17, %v8370_v17  ;;  %v9656_v26 = vcombine.high %v8370_v17, %v8370_v17  ;;  %v8299_v27 = vadd.bf16 1065369472, %v11598_v21  ;;  %v9623_v29 = vmul.bf16 3216621497, %v8033_v51 }
 0x804   : > { %8749 = vst [vmem:[%s14657_s27 + $0xb8] sm:$0xff] %v9651_v30  ;;  %8753 = vst [vmem:[%s14657_s27 + $0xd4] sm:$0xff] %v9655_v47  ;;  %11613 = vrcp.bf16 %v8298_v40  ;;  %v8300_v7 = vadd.bf16 1065369472, %v11600_v16  ;;  %v8034_v32 = vpack.c.bf16 %v7976_v48, %v7973_v37 }
 0x805   : > { %8750 = vst [vmem:[%s14657_s27 + $0xc0] sm:$0xf] %v9652_v11  ;;  %8754 = vst [vmem:[%s14657_s27 + $0xdc] sm:$0xf] %v9656_v26  ;;  %11615 = vrcp.bf16 %v8299_v27 }
 0x806   : > { %11617 = vrcp.bf16 %v8300_v7  ;;  %v9624_v10 = vmul.bf16 3216621497, %v8034_v32  ;;  %v11602_v34 = vpop.eup %11601 }
 0x807   : > { %11619 = vpow.bf16 %v9622_v57  ;;  %v11604_v6 = vpop.eup %11603  ;;  %v8380_v28 = vmul.bf16 1065369472, %v11602_v34 }
 0x808   : > { %11621 = vpow.bf16 %v9623_v29  ;;  %v11606_v58 = vpop.eup %11605  ;;  %v8382_v3 = vmul.bf16 1065369472, %v11604_v6 }
 0x809   : > { %11623 = vpow.bf16 %v9624_v10  ;;  %v11608_v8 = vpop.eup %11607  ;;  %v8384_v41 = vmul.bf16 1065369472, %v11606_v58 }
 0x80a   : > { %v11610_v38 = vpop.eup %11609  ;;  %v9659_v12 = vcombine.low %v8380_v28, %v8382_v3  ;;  %v9663_v54 = vcombine.high %v8380_v28, %v8382_v3  ;;  %v8305_v62 = vadd.bf16 1065369472, %v11608_v8 }
 0x80b   : > { %v11612_v33 = vpop.eup %11611  ;;  %v9660_v53 = vcombine.low %v8384_v41, %v8384_v41  ;;  %v9664_v52 = vcombine.high %v8384_v41, %v8384_v41  ;;  %v8306_v35 = vadd.bf16 1065369472, %v11610_v38 }
 0x80c   : > { %8757 = vst [vmem:[%s14657_s27 + $0xf0] sm:$0xff] %v9659_v12  ;;  %8761 = vst [vmem:[%s14657_s27 + $0x10c] sm:$0xff] %v9663_v54  ;;  %11625 = vrcp.bf16 %v8305_v62  ;;  %v8307_v63 = vadd.bf16 1065369472, %v11612_v33 }
 0x80d   : > { %8758 = vst [vmem:[%s14657_s27 + $0xf8] sm:$0xf] %v9660_v53  ;;  %8762 = vst [vmem:[%s14657_s27 + $0x114] sm:$0xf] %v9664_v52  ;;  %11627 = vrcp.bf16 %v8306_v35 }
 0x80e   : > { %11629 = vrcp.bf16 %v8307_v63 }
 0x80f   : > { %v11614_v13 = vpop.eup %11613 }
 0x810   : > { %v11616_v50 = vpop.eup %11615  ;;  %v8394_v49 = vmul.bf16 1065369472, %v11614_v13 }
 0x811   : > { %v11618_v15 = vpop.eup %11617  ;;  %v8396_v59 = vmul.bf16 1065369472, %v11616_v50 }
 0x812   : > { %v11620_v36 = vpop.eup %11619  ;;  %v8398_v61 = vmul.bf16 1065369472, %v11618_v15 }
 0x813   : > { %v11622_v42 = vpop.eup %11621  ;;  %v9667_v56 = vcombine.low %v8394_v49, %v8396_v59  ;;  %v9671_v18 = vcombine.high %v8394_v49, %v8396_v59  ;;  %v8312_v43 = vadd.bf16 1065369472, %v11620_v36 }
 0x814   : > { %v11624_v2 = vpop.eup %11623  ;;  %v9668_v1 = vcombine.low %v8398_v61, %v8398_v61  ;;  %v9672_v19 = vcombine.high %v8398_v61, %v8398_v61  ;;  %v8313_v14 = vadd.bf16 1065369472, %v11622_v42 }
 0x815   : > { %8765 = vst [vmem:[%s14657_s27 + $0x128] sm:$0xff] %v9667_v56  ;;  %8769 = vst [vmem:[%s14657_s27 + $0x144] sm:$0xff] %v9671_v18  ;;  %11631 = vrcp.bf16 %v8312_v43  ;;  %v8314_v24 = vadd.bf16 1065369472, %v11624_v2 }
 0x816   : > { %8766 = vst [vmem:[%s14657_s27 + $0x130] sm:$0xf] %v9668_v1  ;;  %8770 = vst [vmem:[%s14657_s27 + $0x14c] sm:$0xf] %v9672_v19  ;;  %11633 = vrcp.bf16 %v8313_v14 }
 0x817   : > { %11635 = vrcp.bf16 %v8314_v24  ;;  %v11626_v46 = vpop.eup %11625 }
 0x818   : > { %v11628_v9 = vpop.eup %11627  ;;  %v8408_v5 = vmul.bf16 1065369472, %v11626_v46 }
 0x819   : > { %v11630_v39 = vpop.eup %11629  ;;  %v8410_v45 = vmul.bf16 1065369472, %v11628_v9 }
 0x81a   : > { %v8412_v20 = vmul.bf16 1065369472, %v11630_v39 }
 0x81b   : > { %v9675_v60 = vcombine.low %v8408_v5, %v8410_v45  ;;  %v9679_v0 = vcombine.high %v8408_v5, %v8410_v45 }
 0x81c   : > { %v9676_v44 = vcombine.low %v8412_v20, %v8412_v20  ;;  %v9680_v37 = vcombine.high %v8412_v20, %v8412_v20 }
 0x81d   : > { %8773 = vst [vmem:[%s14657_s27 + $0x160] sm:$0xff] %v9675_v60  ;;  %8777 = vst [vmem:[%s14657_s27 + $0x17c] sm:$0xff] %v9679_v0 }
 0x81e   : > { %8774 = vst [vmem:[%s14657_s27 + $0x168] sm:$0xf] %v9676_v44  ;;  %8778 = vst [vmem:[%s14657_s27 + $0x184] sm:$0xf] %v9680_v37 }
 0x820   : > { %v11632_v31 = vpop.eup %11631 }
 0x821   : > { %v11634_v4 = vpop.eup %11633  ;;  %v8422_v55 = vmul.bf16 1065369472, %v11632_v31 }
 0x822   : > { %v11636_v22 = vpop.eup %11635  ;;  %v8424_v25 = vmul.bf16 1065369472, %v11634_v4 }
 0x823   : > { %v8426_v23 = vmul.bf16 1065369472, %v11636_v22 }
 0x824   : > { %v9683_v17 = vcombine.low %v8422_v55, %v8424_v25  ;;  %v9687_v51 = vcombine.high %v8422_v55, %v8424_v25 }
 0x825   : > { %v9684_v48 = vcombine.low %v8426_v23, %v8426_v23  ;;  %v9688_v21 = vcombine.high %v8426_v23, %v8426_v23 }
 0x826   : > { %8781 = vst [vmem:[%s14657_s27 + $0x198] sm:$0xff] %v9683_v17  ;;  %8785 = vst [vmem:[%s14657_s27 + $0x1b4] sm:$0xff] %v9687_v51 }
 0x827   : > { %8782 = vst [vmem:[%s14657_s27 + $0x1a0] sm:$0xf] %v9684_v48  ;;  %8786 = vst [vmem:[%s14657_s27 + $0x1bc] sm:$0xf] %v9688_v21 }
 0x828 PF: > { %s26_s18 = sadd.s32 1, %s11643_s18  }
 0x829   : > { %p23_p4 = scmp.ge.s32.totalorder %s26_s18, 4  }
 0x82b   :  { %25 = sbr.rel (!%p23_p4) target bundleno = 1 (0x1), region = 121 }

</bundles_post_ra>
